<compile_context>
chip_gen: v7x
topology: tpu7x:2x2x1
jax: 0.10.0
libtpu: 0.0.40
codegen_flags: <defaults>
</compile_context>

<pallas_src>
import numpy as np
import jax
import jax.numpy as jnp
from jax.experimental import pallas as pl
from jax.experimental.pallas import tpu as pltpu


def _round_up(x, m):
    return ((x + m - 1) // m) * m


# ----------------------------------------------------------------------------
# Fused decoder kernel
# ----------------------------------------------------------------------------

def _make_decoder_kernel(*, nlayers, T, BB, C, H0P, HP):
    """Build the fused DecoderRNN kernel body (all shapes Python-static).

    H0P: padded hidden width of cell 0 (= round_up(hidden+value, 128)).
    HP : padded hidden width of cells 1..L-1 (= round_up(hidden, 128)).
    """
    f32 = jnp.float32
    bf16 = jnp.bfloat16
    n_in = 14 + 2 * (nlayers - 1)

    def kernel(*refs):
        (onehot_ref, keys_ref, vals_ref, mask_ref,
         init0_ref, inith_ref) = refs[0:6]
        w_ih0_ref, w_hh0_ref, b_ih0_ref, b_hh0_ref = refs[6:10]
        fused_refs = refs[10:10 + 2 * (nlayers - 1)]
        wq_ref, bq_ref, ws_ref, bs_ref = refs[10 + 2 * (nlayers - 1):n_in]
        out_ref = refs[n_in]

        # ------------------ attention (t == 0 only) ------------------
        # Only the first step's context reaches the returned scores (it seeds cell-0's
        # initial hidden); attention at t>0 only fills plot_attention, which forward()
        # does not return, so it is hoisted out of the loop.
        last_h = jnp.broadcast_to(inith_ref[pl.ds(nlayers - 1, 1), :], (BB, HP))
        query = (jnp.dot(last_h, wq_ref[...],
                         preferred_element_type=f32) + bq_ref[...])          # (BB, Dk)
        energy = jnp.sum(keys_ref[...] * query[None, :, :],
                         axis=-1, keepdims=True)                              # (Tk, BB, 1)
        e_max = jnp.max(energy, axis=0, keepdims=True)
        p = jnp.exp(energy - e_max)
        att = p / jnp.sum(p, axis=0, keepdims=True)                           # softmax over keys
        att = att * mask_ref[...]                                             # zero padded keys
        att = att / jnp.maximum(jnp.sum(att, axis=0, keepdims=True), 1e-12)   # L1 renorm
        context = jnp.sum(att * vals_ref[...], axis=0)                        # (BB, H0P), pre-padded

        # Initial hidden states, carried as VALUES through the unrolled recurrence.
        # init0_row already holds init_hidden[0] at lanes [V:V+H]; context occupies [0:V].
        h0 = context + jnp.broadcast_to(init0_ref[...], (BB, H0P))            # (BB, H0P)
        hs = [jnp.broadcast_to(inith_ref[pl.ds(i, 1), :], (BB, HP))
              for i in range(1, nlayers)]                                     # each (BB, HP)

        # ---- hoisted cell-0 input projection: ONE (T*BB, C) x (C, 3*H0P) matmul ----
        onehot = onehot_ref[...].reshape(T * BB, C).astype(bf16)
        gx_all = (jnp.dot(onehot, w_ih0_ref[...],
                          preferred_element_type=f32) + b_ih0_ref[...])       # (T*BB, 3*H0P)

        # Hoist weight loads out of the recurrence.
        w_hh0 = w_hh0_ref[...]
        b_hh0 = b_hh0_ref[...]
        wfs = [fused_refs[2 * i][...] for i in range(nlayers - 1)]
        bfs = [fused_refs[2 * i + 1][...] for i in range(nlayers - 1)]

        # ------------- time recurrence: unrolled, hidden state in values -------------
        last_outs = []
        for t in range(T):
            gx0 = gx_all[t * BB:(t + 1) * BB, :]              # sublane-aligned static slice
            gh0 = (jnp.dot(h0.astype(bf16), w_hh0,
                           preferred_element_type=f32) + b_hh0)
            r = jax.nn.sigmoid(gx0[:, 0:H0P] + gh0[:, 0:H0P])
            z = jax.nn.sigmoid(gx0[:, H0P:2 * H0P] + gh0[:, H0P:2 * H0P])
            n = jnp.tanh(gx0[:, 2 * H0P:3 * H0P] + r * gh0[:, 2 * H0P:3 * H0P])
            h0 = (1.0 - z) * n + z * h0

            x = h0
            for i in range(nlayers - 1):
                h_prev = hs[i]
                # single fused matmul per layer per step; gate blocks are 128-lane
                # aligned: [r | z | n_x | n_h], each HP wide.
                xh = jnp.concatenate([x, h_prev], axis=1).astype(bf16)
                g = jnp.dot(xh, wfs[i], preferred_element_type=f32) + bfs[i]
                r = jax.nn.sigmoid(g[:, 0:HP])
                z = jax.nn.sigmoid(g[:, HP:2 * HP])
                n = jnp.tanh(g[:, 2 * HP:3 * HP] + r * g[:, 3 * HP:4 * HP])
                h_new = (1.0 - z) * n + z * h_prev
                hs[i] = h_new
                x = h_new
            last_outs.append(x)

        # ---- scoring head hoisted out of the loop: one dense matmul + dense store ----
        hcat = jnp.concatenate(last_outs, axis=0)                             # (T*BB, HP)
        scores = (jnp.dot(jax.nn.sigmoid(hcat).astype(bf16), ws_ref[...],
                          preferred_element_type=f32) + bs_ref[...])          # (T*BB, C)
        out_ref[...] = scores.reshape(T, BB, C)

    return kernel


def _decoder_scores(onehot, keys, values_pad, att_mask, packed, *,
                    nlayers, T, B_pad, BB, C, H0P, HP):
    inputs = [onehot, keys, values_pad, att_mask,
              packed['init0_row'], packed['inith_pad'],
              packed['w_ih0'], packed['w_hh0'], packed['b_ih0'], packed['b_hh0']]
    for wf, bf in packed['fused']:
        inputs.extend([wf, bf])
    inputs.extend([packed['w_q'], packed['b_q'], packed['w_s'], packed['b_s']])

    def batch_spec(shape):
        blk = (shape[0], BB) + tuple(shape[2:])
        nd = len(shape)
        return pl.BlockSpec(blk, lambda g, _n=nd: (0, g) + (0,) * (_n - 2))

    def rep_spec(shape):
        nd = len(shape)
        return pl.BlockSpec(tuple(shape), lambda g, _n=nd: (0,) * _n)

    in_specs = [batch_spec(onehot.shape), batch_spec(keys.shape),
                batch_spec(values_pad.shape), batch_spec(att_mask.shape)]
    in_specs += [rep_spec(a.shape) for a in inputs[4:]]

    kernel = _make_decoder_kernel(nlayers=nlayers, T=T, BB=BB, C=C, H0P=H0P, HP=HP)

    return pl.pallas_call(
        kernel,
        out_shape=jax.ShapeDtypeStruct((T, B_pad, C), jnp.float32),
        grid_spec=pltpu.PrefetchScalarGridSpec(
            num_scalar_prefetch=0,
            grid=(B_pad // BB,),                   # batch blocks: "parallel" -> v7x 2-TC
            in_specs=in_specs,
            out_specs=pl.BlockSpec((T, BB, C), lambda g: (0, g, 0)),
        ),
        compiler_params=pltpu.CompilerParams(
            dimension_semantics=("parallel",),
            vmem_limit_bytes=32 * 1024 * 1024),
    )(*inputs)


# ----------------------------------------------------------------------------
# Parameters (PyTorch layer sizing; weights stored transposed, packed for the kernel)
# ----------------------------------------------------------------------------

def init_params(key, *, num_chars, key_size, value_size, nlayers, hidden_size):
    assert nlayers >= 2
    kit = iter(jax.random.split(key, 5 * nlayers + 8))
    cells, init_h = [], []
    for i in range(nlayers):
        if i == 0:
            in_size, cell_h = num_chars, hidden_size + value_size
        elif i == 1:
            in_size, cell_h = hidden_size + value_size, hidden_size
        else:
            in_size, cell_h = hidden_size, hidden_size
        bound = 1.0 / np.sqrt(cell_h)
        w_ih = jax.random.uniform(next(kit), (in_size, 3 * cell_h), jnp.float32, -bound, bound)
        w_hh = jax.random.uniform(next(kit), (cell_h, 3 * cell_h), jnp.float32, -bound, bound)
        b_ih = jax.random.uniform(next(kit), (1, 3 * cell_h), jnp.float32, -bound, bound)
        b_hh = jax.random.uniform(next(kit), (1, 3 * cell_h), jnp.float32, -bound, bound)
        cells.append((w_ih, w_hh, b_ih, b_hh))
        init_h.append(jax.random.normal(next(kit), (hidden_size,), jnp.float32))

    qb = 1.0 / np.sqrt(hidden_size)
    w_q = jax.random.uniform(next(kit), (hidden_size, key_size), jnp.float32, -qb, qb)
    b_q = jax.random.uniform(next(kit), (1, key_size), jnp.float32, -qb, qb)
    sb = 1.0 / np.sqrt(hidden_size)
    w_s = jax.random.uniform(next(kit), (hidden_size, num_chars), jnp.float32, -sb, sb)
    b_s = jax.random.uniform(next(kit), (1, num_chars), jnp.float32, -sb, sb)
    return {'cells': cells, 'init_hidden': jnp.stack(init_h, axis=0),
            'w_q': w_q, 'b_q': b_q, 'w_s': w_s, 'b_s': b_s}


def pack_params(p, *, value_size, nlayers, hidden_size):
    """Pad / fuse / bf16-cast weights for the lane-aligned kernel layout."""
    f32, bf16 = jnp.float32, jnp.bfloat16
    H, V = hidden_size, value_size
    H0 = H + V
    H0P = _round_up(H0, 128)
    HP = _round_up(H, 128)

    def pad_gate_cols(w, hid, hidp, ng=3):
        # (rows, ng*hid) -> (rows, ng*hidp): zero-pad each gate's column block
        blocks = [jnp.pad(w[:, g * hid:(g + 1) * hid], ((0, 0), (0, hidp - hid)))
                  for g in range(ng)]
        return jnp.concatenate(blocks, axis=1)

    w_ih0, w_hh0, b_ih0, b_hh0 = p['cells'][0]
    pk = {}
    pk['w_ih0'] = pad_gate_cols(w_ih0, H0, H0P).astype(bf16)                         # (C, 3*H0P)
    pk['w_hh0'] = jnp.pad(pad_gate_cols(w_hh0, H0, H0P),
                          ((0, H0P - H0), (0, 0))).astype(bf16)                      # (H0P, 3*H0P)
    pk['b_ih0'] = pad_gate_cols(b_ih0, H0, H0P).astype(f32)                          # (1, 3*H0P)
    pk['b_hh0'] = pad_gate_cols(b_hh0, H0, H0P).astype(f32)

    fused = []
    for i in range(1, nlayers):
        w_ih, w_hh, b_ih, b_hh = p['cells'][i]
        in_i = w_ih.shape[0]                       # H0 for layer 1, H otherwise
        INP = H0P if i == 1 else HP
        # fused weight: rows [x(INP) ; h(HP)], columns [r | z | n_x | n_h], each HP wide
        Wf = jnp.zeros((INP + HP, 4 * HP), f32)
        Wf = Wf.at[:in_i, 0 * HP:0 * HP + H].set(w_ih[:, 0:H])
        Wf = Wf.at[:in_i, 1 * HP:1 * HP + H].set(w_ih[:, H:2 * H])
        Wf = Wf.at[:in_i, 2 * HP:2 * HP + H].set(w_ih[:, 2 * H:3 * H])
        Wf = Wf.at[INP:INP + H, 0 * HP:0 * HP + H].set(w_hh[:, 0:H])
        Wf = Wf.at[INP:INP + H, 1 * HP:1 * HP + H].set(w_hh[:, H:2 * H])
        Wf = Wf.at[INP:INP + H, 3 * HP:3 * HP + H].set(w_hh[:, 2 * H:3 * H])
        bf = jnp.zeros((1, 4 * HP), f32)
        bf = bf.at[:, 0 * HP:0 * HP + H].set(b_ih[:, 0:H] + b_hh[:, 0:H])
        bf = bf.at[:, 1 * HP:1 * HP + H].set(b_ih[:, H:2 * H] + b_hh[:, H:2 * H])
        bf = bf.at[:, 2 * HP:2 * HP + H].set(b_ih[:, 2 * H:3 * H])
        bf = bf.at[:, 3 * HP:3 * HP + H].set(b_hh[:, 2 * H:3 * H])
        fused.append((Wf.astype(bf16), bf))
    pk['fused'] = fused

    pk['w_s'] = jnp.pad(p['w_s'], ((0, HP - H), (0, 0))).astype(bf16)                # (HP, C)
    pk['b_s'] = p['b_s'].astype(f32)
    pk['w_q'] = jnp.pad(p['w_q'], ((0, HP - H), (0, 0))).astype(f32)                 # (HP, Dk)
    pk['b_q'] = p['b_q'].astype(f32)
    # init_hidden[0] placed at lanes [V:V+H] of a (1, H0P) row (context occupies [0:V])
    pk['init0_row'] = jnp.zeros((1, H0P), f32).at[0, V:V + H].set(p['init_hidden'][0])
    pk['inith_pad'] = jnp.pad(p['init_hidden'], ((0, 0), (0, HP - H))).astype(f32)   # (L, HP)
    return pk, H0P, HP


# ----------------------------------------------------------------------------
# Forward (DecoderRNN.forward equivalent, deterministic teacher-forcing path)
# ----------------------------------------------------------------------------

def decoder_forward(seq_list, keys, values, masks, params, *, num_chars,
                    key_size, value_size, nlayers, hidden_size):
    batch_size = len(seq_list)
    assert batch_size == keys.shape[1], 'batch sizes must match'
    assert len(masks) == keys.shape[1], 'batch sizes must match'
    assert values.shape[1] == keys.shape[1], 'batch sizes must match'

    H, V, C = hidden_size, value_size, num_chars
    lens = [int(s.shape[0]) for s in seq_list]
    T = lens[0]                          # reference decodes range(lens[0]) steps
    Tk = keys.shape[0]
    B_pad = _round_up(batch_size, 8)     # sublane-tile padded batch
    BB = 8                               # batch rows per grid step

    # rnn.pad_sequence(seq_list, batch_first=True) on integer char ids
    T_max = max(lens)
    seq_pad = jnp.zeros((batch_size, T_max), jnp.int32)
    for i, s in enumerate(seq_list):
        seq_pad = seq_pad.at[i, :lens[i]].set(s.astype(jnp.int32))

    # Teacher-forced one-hot inputs, time-major, batch padded to B_pad.
    # TODO(synk): scheduled-sampling branch (teacher prob + F.gumbel_softmax(hard=True)
    # feedback of the previous step's scores) is stochastic training-time behaviour and
    # is not implemented; this is the deterministic teacher-forcing (teacher=0) path.
    tokens_tb = seq_pad[:, :T].T                                               # (T, B)
    onehot = jax.nn.one_hot(tokens_tb, C, dtype=jnp.float32)                   # (T, B, C)
    onehot = jnp.pad(onehot, ((0, 0), (0, B_pad - batch_size), (0, 0)))

    packed, H0P, HP = pack_params(params, value_size=V, nlayers=nlayers, hidden_size=H)

    keys_p = jnp.pad(keys.astype(jnp.float32),
                     ((0, 0), (0, B_pad - batch_size), (0, 0)))
    # values lane-padded to H0P so the attention context lands pre-padded for cell 0
    values_p = jnp.pad(values.astype(jnp.float32),
                       ((0, 0), (0, B_pad - batch_size), (0, H0P - V)))
    att_mask = (jnp.arange(Tk)[:, None]
                < jnp.asarray(masks, jnp.int32)[None, :]).astype(jnp.float32)  # (Tk, B)
    att_mask = jnp.pad(att_mask, ((0, 0), (0, B_pad - batch_size)))[:, :, None]

    scores_all = _decoder_scores(onehot, keys_p, values_p, att_mask, packed,
                                 nlayers=nlayers, T=T, B_pad=B_pad, BB=BB,
                                 C=C, H0P=H0P, HP=HP)                          # (T, B_pad, C)
    scores_all = scores_all[:, :batch_size, :]

    # flatten -> scoring -> pad_sequence(padding_value=-99) of the reference is
    # equivalent to masking here, since scoring is row-wise and already fused above.
    lens_c = [min(l, T) for l in lens]
    max_m = max(lens_c)
    valid = (jnp.arange(max_m)[None, :]
             < jnp.asarray(lens_c, jnp.int32)[:, None])                        # (B, max_m)
    scores_bt = jnp.transpose(scores_all[:max_m], (1, 0, 2))                   # (B, max_m, C)
    return jnp.where(valid[:, :, None], scores_bt, jnp.float32(-99.0))


# ----------------------------------------------------------------------------
# Pure-JAX reference (mirrors the PyTorch forward; bf16-rounded matmul weights)
# ----------------------------------------------------------------------------

def decoder_forward_ref(seq_list, keys, values, masks, params, *, num_chars,
                        key_size, value_size, nlayers, hidden_size):
    f32, bf16 = jnp.float32, jnp.bfloat16

    def wq(a):        # mirror the kernel's bf16 weight rounding
        return a.astype(bf16)

    B = len(seq_list)
    H, V, C = hidden_size, value_size, num_chars
    lens = [int(s.shape[0]) for s in seq_list]
    T = lens[0]
    Tk = keys.shape[0]
    T_max = max(lens)
    seq_pad = jnp.zeros((B, T_max), jnp.int32)
    for i, s in enumerate(seq_list):
        seq_pad = seq_pad.at[i, :lens[i]].set(s.astype(jnp.int32))
    tokens_tb = seq_pad[:, :T].T
    onehot = jax.nn.one_hot(tokens_tb, C, dtype=f32)                           # (T, B, C)

    inith = params['init_hidden']
    mask_bt = (jnp.arange(Tk)[None, :]
               < jnp.asarray(masks, jnp.int32)[:, None]).astype(f32)           # (B, Tk)

    last_h = jnp.broadcast_to(inith[nlayers - 1][None, :], (B, H))
    query = last_h @ params['w_q'] + params['b_q']
    energy = jnp.einsum('bd,tbd->bt', query, keys, precision='highest')
    att = jax.nn.softmax(energy, axis=1) * mask_bt
    att = att / jnp.maximum(jnp.sum(att, axis=1, keepdims=True), 1e-12)
    context = jnp.einsum('bt,tbv->bv', att, values, precision='highest')

    h = [jnp.concatenate([context, jnp.broadcast_to(inith[0][None, :], (B, H))], axis=1)]
    for i in range(1, nlayers):
        h.append(jnp.broadcast_to(inith[i][None, :], (B, H)))

    outs = []
    for t in range(T):
        x = onehot[t]
        for i in range(nlayers):
            w_ih, w_hh, b_ih, b_hh = params['cells'][i]
            hid = h[i].shape[1]
            gx = jnp.dot(x.astype(bf16), wq(w_ih), preferred_element_type=f32) + b_ih
            gh = jnp.dot(h[i].astype(bf16), wq(w_hh), preferred_element_type=f32) + b_hh
            r = jax.nn.sigmoid(gx[:, :hid] + gh[:, :hid])
            z = jax.nn.sigmoid(gx[:, hid:2 * hid] + gh[:, hid:2 * hid])
            n = jnp.tanh(gx[:, 2 * hid:3 * hid] + r * gh[:, 2 * hid:3 * hid])
            h[i] = (1.0 - z) * n + z * h[i]
            x = h[i]
        outs.append(x)
    rnn_pred = jnp.stack(outs, 0)                                              # (T, B, H)
    scores = (jnp.dot(jax.nn.sigmoid(rnn_pred).astype(bf16), wq(params['w_s']),
                      preferred_element_type=f32) + params['b_s'])             # (T, B, C)

    lens_c = [min(l, T) for l in lens]
    max_m = max(lens_c)
    valid = jnp.arange(max_m)[None, :] < jnp.asarray(lens_c, jnp.int32)[:, None]
    scores_bt = jnp.transpose(scores[:max_m], (1, 0, 2))
    return jnp.where(valid[:, :, None], scores_bt, jnp.float32(-99.0))


# ----------------------------------------------------------------------------
# Main
# ----------------------------------------------------------------------------

if __name__ == "__main__":
    num_chars = 128
    key_size, value_size = 32, 64
    hidden_size, nlayers = 64, 3
    batch = 2
    Tk = 10                      # encoder (key/value) length
    lens = [8, 6]                # decoder lengths; lens[0] drives the decode loop
    masks = [10, 7]              # valid key/value positions per example

    root = jax.random.PRNGKey(0)
    k_par, k_seq, k_keys, k_vals = jax.random.split(root, 4)
    params = init_params(k_par, num_chars=num_chars, key_size=key_size,
                         value_size=value_size, nlayers=nlayers,
                         hidden_size=hidden_size)

    seq_list = []
    for L in lens:
        k_seq, sk = jax.random.split(k_seq)
        seq_list.append(jax.random.randint(sk, (L,), 0, num_chars, jnp.int32))
    keys = jax.random.normal(k_keys, (Tk, batch, key_size), jnp.float32)
    values = jax.random.normal(k_vals, (Tk, batch, value_size), jnp.float32)

    out = decoder_forward(seq_list, keys, values, masks, params,
                          num_chars=num_chars, key_size=key_size,
                          value_size=value_size, nlayers=nlayers,
                          hidden_size=hidden_size)
    out = jax.block_until_ready(out)

    ref = decoder_forward_ref(seq_list, keys, values, masks, params,
                              num_chars=num_chars, key_size=key_size,
                              value_size=value_size, nlayers=nlayers,
                              hidden_size=hidden_size)
    ref = jax.block_until_ready(ref)

    assert out.shape == (batch, lens[0], num_chars), out.shape
    assert bool(jnp.all(out[1, lens[1]:, :] == -99.0))
    assert bool(jnp.all(jnp.isfinite(out)))
    err = float(jnp.max(jnp.abs(out - ref)))
    assert err < 5e-2, f"max abs diff vs reference: {err}"
    print("KERNEL_OK")
</pallas_src>

<mosaic_0001>
module attributes {stable_mosaic.version = 11 : i64} {
  func.func @kernel(%arg0: i32, %arg1: memref<8x8x128xf32, #tpu.memory_space<vmem>>, %arg2: memref<10x8x32xf32, #tpu.memory_space<vmem>>, %arg3: memref<10x8x128xf32, #tpu.memory_space<vmem>>, %arg4: memref<10x8x1xf32, #tpu.memory_space<vmem>>, %arg5: memref<1x128xf32, #tpu.memory_space<vmem>>, %arg6: memref<3x128xf32, #tpu.memory_space<vmem>>, %arg7: memref<128x384xbf16, #tpu.memory_space<vmem>>, %arg8: memref<128x384xbf16, #tpu.memory_space<vmem>>, %arg9: memref<1x384xf32, #tpu.memory_space<vmem>>, %arg10: memref<1x384xf32, #tpu.memory_space<vmem>>, %arg11: memref<256x512xbf16, #tpu.memory_space<vmem>>, %arg12: memref<1x512xf32, #tpu.memory_space<vmem>>, %arg13: memref<256x512xbf16, #tpu.memory_space<vmem>>, %arg14: memref<1x512xf32, #tpu.memory_space<vmem>>, %arg15: memref<128x32xf32, #tpu.memory_space<vmem>>, %arg16: memref<1x32xf32, #tpu.memory_space<vmem>>, %arg17: memref<128x128xbf16, #tpu.memory_space<vmem>>, %arg18: memref<1x128xf32, #tpu.memory_space<vmem>>, %arg19: memref<8x8x128xf32, #tpu.memory_space<vmem>>) attributes {dimension_semantics = [#tpu.dimension_semantics<parallel>], iteration_bounds = array<i64: 1>, scalar_prefetch = 0 : i64, scratch_operands = 0 : i64, tpu.core_type = #tpu.core_type<tc>, window_params = [{transform_indices = @transform_0, window_bounds = array<i64: 8, 8, 128>}, {transform_indices = @transform_1, window_bounds = array<i64: 10, 8, 32>}, {transform_indices = @transform_2, window_bounds = array<i64: 10, 8, 128>}, {transform_indices = @transform_3, window_bounds = array<i64: 10, 8, 1>}, {pipeline_mode = #tpu.pipeline_mode<synchronous>, transform_indices = @transform_4, window_bounds = array<i64: 1, 128>}, {pipeline_mode = #tpu.pipeline_mode<synchronous>, transform_indices = @transform_5, window_bounds = array<i64: 3, 128>}, {pipeline_mode = #tpu.pipeline_mode<synchronous>, transform_indices = @transform_6, window_bounds = array<i64: 128, 384>}, {pipeline_mode = #tpu.pipeline_mode<synchronous>, transform_indices = @transform_7, window_bounds = array<i64: 128, 384>}, {pipeline_mode = #tpu.pipeline_mode<synchronous>, transform_indices = @transform_8, window_bounds = array<i64: 1, 384>}, {pipeline_mode = #tpu.pipeline_mode<synchronous>, transform_indices = @transform_9, window_bounds = array<i64: 1, 384>}, {pipeline_mode = #tpu.pipeline_mode<synchronous>, transform_indices = @transform_10, window_bounds = array<i64: 256, 512>}, {pipeline_mode = #tpu.pipeline_mode<synchronous>, transform_indices = @transform_11, window_bounds = array<i64: 1, 512>}, {pipeline_mode = #tpu.pipeline_mode<synchronous>, transform_indices = @transform_12, window_bounds = array<i64: 256, 512>}, {pipeline_mode = #tpu.pipeline_mode<synchronous>, transform_indices = @transform_13, window_bounds = array<i64: 1, 512>}, {pipeline_mode = #tpu.pipeline_mode<synchronous>, transform_indices = @transform_14, window_bounds = array<i64: 128, 32>}, {pipeline_mode = #tpu.pipeline_mode<synchronous>, transform_indices = @transform_15, window_bounds = array<i64: 1, 32>}, {pipeline_mode = #tpu.pipeline_mode<synchronous>, transform_indices = @transform_16, window_bounds = array<i64: 128, 128>}, {pipeline_mode = #tpu.pipeline_mode<synchronous>, transform_indices = @transform_17, window_bounds = array<i64: 1, 128>}, {transform_indices = @transform_18, window_bounds = array<i64: 8, 8, 128>}]} {
    %c2 = arith.constant 2 : index
    %c0 = arith.constant 0 : index
    %0 = vector.load %arg6[%c2, %c0] : memref<3x128xf32, #tpu.memory_space<vmem>>, vector<1x128xf32>
    %1 = vector.shape_cast %0 : vector<1x128xf32> to vector<1x128xf32>
    %2 = vector.broadcast %1 : vector<1x128xf32> to vector<8x128xf32>
    %c0_0 = arith.constant 0 : index
    %c0_1 = arith.constant 0 : index
    %3 = vector.load %arg15[%c0_0, %c0_1] : memref<128x32xf32, #tpu.memory_space<vmem>>, vector<128x32xf32>
    %cst = arith.constant dense<0.000000e+00> : vector<8x32xf32>
    %4 = tpu.matmul %2, %3, %cst {dimension_numbers = #tpu.dot_dimension_numbers<[1], [0], [0], [1], [0, 0, 1, 1], [], []>} : vector<8x128xf32>, vector<128x32xf32>, vector<8x32xf32> -> vector<8x32xf32>
    %c0_2 = arith.constant 0 : index
    %c0_3 = arith.constant 0 : index
    %5 = vector.load %arg16[%c0_2, %c0_3] : memref<1x32xf32, #tpu.memory_space<vmem>>, vector<1x32xf32>
    %6 = vector.broadcast %5 : vector<1x32xf32> to vector<8x32xf32>
    %7 = arith.addf %4, %6 : vector<8x32xf32>
    %c0_4 = arith.constant 0 : index
    %c0_5 = arith.constant 0 : index
    %c0_6 = arith.constant 0 : index
    %8 = vector.load %arg2[%c0_4, %c0_5, %c0_6] : memref<10x8x32xf32, #tpu.memory_space<vmem>>, vector<10x8x32xf32>
    %9 = vector.shape_cast %7 : vector<8x32xf32> to vector<1x8x32xf32>
    %10 = vector.broadcast %9 : vector<1x8x32xf32> to vector<10x8x32xf32>
    %11 = arith.mulf %8, %10 : vector<10x8x32xf32>
    %cst_7 = arith.constant dense<0.000000e+00> : vector<10x8xf32>
    %12 = vector.multi_reduction <add>, %11, %cst_7 [2] : vector<10x8x32xf32> to vector<10x8xf32>
    %13 = vector.shape_cast %12 : vector<10x8xf32> to vector<10x8x1xf32>
    %cst_8 = arith.constant dense<0xFF800000> : vector<8x1xf32>
    %14 = vector.multi_reduction <maximumf>, %13, %cst_8 [0] : vector<10x8x1xf32> to vector<8x1xf32>
    %15 = vector.shape_cast %14 : vector<8x1xf32> to vector<1x8x1xf32>
    %16 = vector.broadcast %15 : vector<1x8x1xf32> to vector<10x8x1xf32>
    %17 = arith.subf %13, %16 : vector<10x8x1xf32>
    %18 = math.exp %17 : vector<10x8x1xf32>
    %cst_9 = arith.constant dense<0.000000e+00> : vector<8x1xf32>
    %19 = vector.multi_reduction <add>, %18, %cst_9 [0] : vector<10x8x1xf32> to vector<8x1xf32>
    %20 = vector.shape_cast %19 : vector<8x1xf32> to vector<1x8x1xf32>
    %21 = vector.broadcast %20 : vector<1x8x1xf32> to vector<10x8x1xf32>
    %22 = arith.divf %18, %21 : vector<10x8x1xf32>
    %c0_10 = arith.constant 0 : index
    %c0_11 = arith.constant 0 : index
    %c0_12 = arith.constant 0 : index
    %23 = vector.load %arg4[%c0_10, %c0_11, %c0_12] : memref<10x8x1xf32, #tpu.memory_space<vmem>>, vector<10x8x1xf32>
    %24 = arith.mulf %22, %23 : vector<10x8x1xf32>
    %cst_13 = arith.constant dense<0.000000e+00> : vector<8x1xf32>
    %25 = vector.multi_reduction <add>, %24, %cst_13 [0] : vector<10x8x1xf32> to vector<8x1xf32>
    %26 = vector.shape_cast %25 : vector<8x1xf32> to vector<1x8x1xf32>
    %cst_14 = arith.constant 9.99999996E-13 : f32
    %27 = vector.broadcast %cst_14 : f32 to vector<1x8x1xf32>
    %28 = arith.maximumf %26, %27 : vector<1x8x1xf32>
    %29 = vector.broadcast %28 : vector<1x8x1xf32> to vector<10x8x1xf32>
    %30 = arith.divf %24, %29 : vector<10x8x1xf32>
    %c0_15 = arith.constant 0 : index
    %c0_16 = arith.constant 0 : index
    %c0_17 = arith.constant 0 : index
    %31 = vector.load %arg3[%c0_15, %c0_16, %c0_17] : memref<10x8x128xf32, #tpu.memory_space<vmem>>, vector<10x8x128xf32>
    %32 = vector.broadcast %30 : vector<10x8x1xf32> to vector<10x8x128xf32>
    %33 = arith.mulf %32, %31 : vector<10x8x128xf32>
    %cst_18 = arith.constant dense<0.000000e+00> : vector<8x128xf32>
    %34 = vector.multi_reduction <add>, %33, %cst_18 [0] : vector<10x8x128xf32> to vector<8x128xf32>
    %c0_19 = arith.constant 0 : index
    %c0_20 = arith.constant 0 : index
    %35 = vector.load %arg5[%c0_19, %c0_20] : memref<1x128xf32, #tpu.memory_space<vmem>>, vector<1x128xf32>
    %36 = vector.shape_cast %35 : vector<1x128xf32> to vector<1x128xf32>
    %37 = vector.broadcast %36 : vector<1x128xf32> to vector<8x128xf32>
    %38 = arith.addf %34, %37 : vector<8x128xf32>
    %c1 = arith.constant 1 : index
    %c0_21 = arith.constant 0 : index
    %39 = vector.load %arg6[%c1, %c0_21] : memref<3x128xf32, #tpu.memory_space<vmem>>, vector<1x128xf32>
    %40 = vector.shape_cast %39 : vector<1x128xf32> to vector<1x128xf32>
    %41 = vector.broadcast %40 : vector<1x128xf32> to vector<8x128xf32>
    %c2_22 = arith.constant 2 : index
    %c0_23 = arith.constant 0 : index
    %42 = vector.load %arg6[%c2_22, %c0_23] : memref<3x128xf32, #tpu.memory_space<vmem>>, vector<1x128xf32>
    %43 = vector.shape_cast %42 : vector<1x128xf32> to vector<1x128xf32>
    %44 = vector.broadcast %43 : vector<1x128xf32> to vector<8x128xf32>
    %c0_24 = arith.constant 0 : index
    %c0_25 = arith.constant 0 : index
    %c0_26 = arith.constant 0 : index
    %45 = vector.load %arg1[%c0_24, %c0_25, %c0_26] : memref<8x8x128xf32, #tpu.memory_space<vmem>>, vector<8x8x128xf32>
    %46 = vector.shape_cast %45 : vector<8x8x128xf32> to vector<64x128xf32>
    %47 = arith.truncf %46 : vector<64x128xf32> to vector<64x128xbf16>
    %c0_27 = arith.constant 0 : index
    %c0_28 = arith.constant 0 : index
    %48 = vector.load %arg7[%c0_27, %c0_28] : memref<128x384xbf16, #tpu.memory_space<vmem>>, vector<128x384xbf16>
    %cst_29 = arith.constant dense<0.000000e+00> : vector<64x384xf32>
    %49 = tpu.matmul %47, %48, %cst_29 {dimension_numbers = #tpu.dot_dimension_numbers<[1], [0], [0], [1], [0, 0, 1, 1], [], []>} : vector<64x128xbf16>, vector<128x384xbf16>, vector<64x384xf32> -> vector<64x384xf32>
    %c0_30 = arith.constant 0 : index
    %c0_31 = arith.constant 0 : index
    %50 = vector.load %arg9[%c0_30, %c0_31] : memref<1x384xf32, #tpu.memory_space<vmem>>, vector<1x384xf32>
    %51 = vector.broadcast %50 : vector<1x384xf32> to vector<64x384xf32>
    %52 = arith.addf %49, %51 : vector<64x384xf32>
    %c0_32 = arith.constant 0 : index
    %c0_33 = arith.constant 0 : index
    %53 = vector.load %arg8[%c0_32, %c0_33] : memref<128x384xbf16, #tpu.memory_space<vmem>>, vector<128x384xbf16>
    %c0_34 = arith.constant 0 : index
    %c0_35 = arith.constant 0 : index
    %54 = vector.load %arg10[%c0_34, %c0_35] : memref<1x384xf32, #tpu.memory_space<vmem>>, vector<1x384xf32>
    %c0_36 = arith.constant 0 : index
    %c0_37 = arith.constant 0 : index
    %55 = vector.load %arg11[%c0_36, %c0_37] : memref<256x512xbf16, #tpu.memory_space<vmem>>, vector<256x512xbf16>
    %c0_38 = arith.constant 0 : index
    %c0_39 = arith.constant 0 : index
    %56 = vector.load %arg13[%c0_38, %c0_39] : memref<256x512xbf16, #tpu.memory_space<vmem>>, vector<256x512xbf16>
    %c0_40 = arith.constant 0 : index
    %c0_41 = arith.constant 0 : index
    %57 = vector.load %arg12[%c0_40, %c0_41] : memref<1x512xf32, #tpu.memory_space<vmem>>, vector<1x512xf32>
    %c0_42 = arith.constant 0 : index
    %c0_43 = arith.constant 0 : index
    %58 = vector.load %arg14[%c0_42, %c0_43] : memref<1x512xf32, #tpu.memory_space<vmem>>, vector<1x512xf32>
    %59 = vector.extract_strided_slice %52 {offsets = [0, 0], sizes = [8, 384], strides = [1, 1]} : vector<64x384xf32> to vector<8x384xf32>
    %60 = arith.truncf %38 : vector<8x128xf32> to vector<8x128xbf16>
    %cst_44 = arith.constant dense<0.000000e+00> : vector<8x384xf32>
    %61 = tpu.matmul %60, %53, %cst_44 {dimension_numbers = #tpu.dot_dimension_numbers<[1], [0], [0], [1], [0, 0, 1, 1], [], []>} : vector<8x128xbf16>, vector<128x384xbf16>, vector<8x384xf32> -> vector<8x384xf32>
    %62 = vector.broadcast %54 : vector<1x384xf32> to vector<8x384xf32>
    %63 = arith.addf %61, %62 : vector<8x384xf32>
    %64 = vector.extract_strided_slice %59 {offsets = [0, 0], sizes = [8, 128], strides = [1, 1]} : vector<8x384xf32> to vector<8x128xf32>
    %65 = vector.extract_strided_slice %63 {offsets = [0, 0], sizes = [8, 128], strides = [1, 1]} : vector<8x384xf32> to vector<8x128xf32>
    %66 = arith.addf %64, %65 : vector<8x128xf32>
    %67 = arith.negf %66 : vector<8x128xf32>
    %68 = math.exp %67 : vector<8x128xf32>
    %cst_45 = arith.constant 1.000000e+00 : f32
    %69 = vector.broadcast %cst_45 : f32 to vector<8x128xf32>
    %70 = arith.addf %69, %68 : vector<8x128xf32>
    %71 = arith.divf %69, %70 : vector<8x128xf32>
    %72 = vector.extract_strided_slice %59 {offsets = [0, 128], sizes = [8, 128], strides = [1, 1]} : vector<8x384xf32> to vector<8x128xf32>
    %73 = vector.extract_strided_slice %63 {offsets = [0, 128], sizes = [8, 128], strides = [1, 1]} : vector<8x384xf32> to vector<8x128xf32>
    %74 = arith.addf %72, %73 : vector<8x128xf32>
    %75 = arith.negf %74 : vector<8x128xf32>
    %76 = math.exp %75 : vector<8x128xf32>
    %cst_46 = arith.constant 1.000000e+00 : f32
    %77 = vector.broadcast %cst_46 : f32 to vector<8x128xf32>
    %78 = arith.addf %77, %76 : vector<8x128xf32>
    %79 = arith.divf %77, %78 : vector<8x128xf32>
    %80 = vector.extract_strided_slice %59 {offsets = [0, 256], sizes = [8, 128], strides = [1, 1]} : vector<8x384xf32> to vector<8x128xf32>
    %81 = vector.extract_strided_slice %63 {offsets = [0, 256], sizes = [8, 128], strides = [1, 1]} : vector<8x384xf32> to vector<8x128xf32>
    %82 = arith.mulf %71, %81 : vector<8x128xf32>
    %83 = arith.addf %80, %82 : vector<8x128xf32>
    %84 = math.tanh %83 : vector<8x128xf32>
    %cst_47 = arith.constant 1.000000e+00 : f32
    %85 = vector.broadcast %cst_47 : f32 to vector<8x128xf32>
    %86 = arith.subf %85, %79 : vector<8x128xf32>
    %87 = arith.mulf %86, %84 : vector<8x128xf32>
    %88 = arith.mulf %79, %38 : vector<8x128xf32>
    %89 = arith.addf %87, %88 : vector<8x128xf32>
    %90 = tpu.concatenate %89, %41 in 1 : vector<8x128xf32>, vector<8x128xf32> -> vector<8x256xf32>
    %91 = arith.truncf %90 : vector<8x256xf32> to vector<8x256xbf16>
    %cst_48 = arith.constant dense<0.000000e+00> : vector<8x512xf32>
    %92 = tpu.matmul %91, %55, %cst_48 {dimension_numbers = #tpu.dot_dimension_numbers<[1], [0], [0], [1], [0, 0, 1, 1], [], []>} : vector<8x256xbf16>, vector<256x512xbf16>, vector<8x512xf32> -> vector<8x512xf32>
    %93 = vector.broadcast %57 : vector<1x512xf32> to vector<8x512xf32>
    %94 = arith.addf %92, %93 : vector<8x512xf32>
    %95 = vector.extract_strided_slice %94 {offsets = [0, 0], sizes = [8, 128], strides = [1, 1]} : vector<8x512xf32> to vector<8x128xf32>
    %96 = arith.negf %95 : vector<8x128xf32>
    %97 = math.exp %96 : vector<8x128xf32>
    %cst_49 = arith.constant 1.000000e+00 : f32
    %98 = vector.broadcast %cst_49 : f32 to vector<8x128xf32>
    %99 = arith.addf %98, %97 : vector<8x128xf32>
    %100 = arith.divf %98, %99 : vector<8x128xf32>
    %101 = vector.extract_strided_slice %94 {offsets = [0, 128], sizes = [8, 128], strides = [1, 1]} : vector<8x512xf32> to vector<8x128xf32>
    %102 = arith.negf %101 : vector<8x128xf32>
    %103 = math.exp %102 : vector<8x128xf32>
    %cst_50 = arith.constant 1.000000e+00 : f32
    %104 = vector.broadcast %cst_50 : f32 to vector<8x128xf32>
    %105 = arith.addf %104, %103 : vector<8x128xf32>
    %106 = arith.divf %104, %105 : vector<8x128xf32>
    %107 = vector.extract_strided_slice %94 {offsets = [0, 256], sizes = [8, 128], strides = [1, 1]} : vector<8x512xf32> to vector<8x128xf32>
    %108 = vector.extract_strided_slice %94 {offsets = [0, 384], sizes = [8, 128], strides = [1, 1]} : vector<8x512xf32> to vector<8x128xf32>
    %109 = arith.mulf %100, %108 : vector<8x128xf32>
    %110 = arith.addf %107, %109 : vector<8x128xf32>
    %111 = math.tanh %110 : vector<8x128xf32>
    %cst_51 = arith.constant 1.000000e+00 : f32
    %112 = vector.broadcast %cst_51 : f32 to vector<8x128xf32>
    %113 = arith.subf %112, %106 : vector<8x128xf32>
    %114 = arith.mulf %113, %111 : vector<8x128xf32>
    %115 = arith.mulf %106, %41 : vector<8x128xf32>
    %116 = arith.addf %114, %115 : vector<8x128xf32>
    %117 = tpu.concatenate %116, %44 in 1 : vector<8x128xf32>, vector<8x128xf32> -> vector<8x256xf32>
    %118 = arith.truncf %117 : vector<8x256xf32> to vector<8x256xbf16>
    %cst_52 = arith.constant dense<0.000000e+00> : vector<8x512xf32>
    %119 = tpu.matmul %118, %56, %cst_52 {dimension_numbers = #tpu.dot_dimension_numbers<[1], [0], [0], [1], [0, 0, 1, 1], [], []>} : vector<8x256xbf16>, vector<256x512xbf16>, vector<8x512xf32> -> vector<8x512xf32>
    %120 = vector.broadcast %58 : vector<1x512xf32> to vector<8x512xf32>
    %121 = arith.addf %119, %120 : vector<8x512xf32>
    %122 = vector.extract_strided_slice %121 {offsets = [0, 0], sizes = [8, 128], strides = [1, 1]} : vector<8x512xf32> to vector<8x128xf32>
    %123 = arith.negf %122 : vector<8x128xf32>
    %124 = math.exp %123 : vector<8x128xf32>
    %cst_53 = arith.constant 1.000000e+00 : f32
    %125 = vector.broadcast %cst_53 : f32 to vector<8x128xf32>
    %126 = arith.addf %125, %124 : vector<8x128xf32>
    %127 = arith.divf %125, %126 : vector<8x128xf32>
    %128 = vector.extract_strided_slice %121 {offsets = [0, 128], sizes = [8, 128], strides = [1, 1]} : vector<8x512xf32> to vector<8x128xf32>
    %129 = arith.negf %128 : vector<8x128xf32>
    %130 = math.exp %129 : vector<8x128xf32>
    %cst_54 = arith.constant 1.000000e+00 : f32
    %131 = vector.broadcast %cst_54 : f32 to vector<8x128xf32>
    %132 = arith.addf %131, %130 : vector<8x128xf32>
    %133 = arith.divf %131, %132 : vector<8x128xf32>
    %134 = vector.extract_strided_slice %121 {offsets = [0, 256], sizes = [8, 128], strides = [1, 1]} : vector<8x512xf32> to vector<8x128xf32>
    %135 = vector.extract_strided_slice %121 {offsets = [0, 384], sizes = [8, 128], strides = [1, 1]} : vector<8x512xf32> to vector<8x128xf32>
    %136 = arith.mulf %127, %135 : vector<8x128xf32>
    %137 = arith.addf %134, %136 : vector<8x128xf32>
    %138 = math.tanh %137 : vector<8x128xf32>
    %cst_55 = arith.constant 1.000000e+00 : f32
    %139 = vector.broadcast %cst_55 : f32 to vector<8x128xf32>
    %140 = arith.subf %139, %133 : vector<8x128xf32>
    %141 = arith.mulf %140, %138 : vector<8x128xf32>
    %142 = arith.mulf %133, %44 : vector<8x128xf32>
    %143 = arith.addf %141, %142 : vector<8x128xf32>
    %144 = vector.extract_strided_slice %52 {offsets = [8, 0], sizes = [8, 384], strides = [1, 1]} : vector<64x384xf32> to vector<8x384xf32>
    %145 = arith.truncf %89 : vector<8x128xf32> to vector<8x128xbf16>
    %cst_56 = arith.constant dense<0.000000e+00> : vector<8x384xf32>
    %146 = tpu.matmul %145, %53, %cst_56 {dimension_numbers = #tpu.dot_dimension_numbers<[1], [0], [0], [1], [0, 0, 1, 1], [], []>} : vector<8x128xbf16>, vector<128x384xbf16>, vector<8x384xf32> -> vector<8x384xf32>
    %147 = vector.broadcast %54 : vector<1x384xf32> to vector<8x384xf32>
    %148 = arith.addf %146, %147 : vector<8x384xf32>
    %149 = vector.extract_strided_slice %144 {offsets = [0, 0], sizes = [8, 128], strides = [1, 1]} : vector<8x384xf32> to vector<8x128xf32>
    %150 = vector.extract_strided_slice %148 {offsets = [0, 0], sizes = [8, 128], strides = [1, 1]} : vector<8x384xf32> to vector<8x128xf32>
    %151 = arith.addf %149, %150 : vector<8x128xf32>
    %152 = arith.negf %151 : vector<8x128xf32>
    %153 = math.exp %152 : vector<8x128xf32>
    %cst_57 = arith.constant 1.000000e+00 : f32
    %154 = vector.broadcast %cst_57 : f32 to vector<8x128xf32>
    %155 = arith.addf %154, %153 : vector<8x128xf32>
    %156 = arith.divf %154, %155 : vector<8x128xf32>
    %157 = vector.extract_strided_slice %144 {offsets = [0, 128], sizes = [8, 128], strides = [1, 1]} : vector<8x384xf32> to vector<8x128xf32>
    %158 = vector.extract_strided_slice %148 {offsets = [0, 128], sizes = [8, 128], strides = [1, 1]} : vector<8x384xf32> to vector<8x128xf32>
    %159 = arith.addf %157, %158 : vector<8x128xf32>
    %160 = arith.negf %159 : vector<8x128xf32>
    %161 = math.exp %160 : vector<8x128xf32>
    %cst_58 = arith.constant 1.000000e+00 : f32
    %162 = vector.broadcast %cst_58 : f32 to vector<8x128xf32>
    %163 = arith.addf %162, %161 : vector<8x128xf32>
    %164 = arith.divf %162, %163 : vector<8x128xf32>
    %165 = vector.extract_strided_slice %144 {offsets = [0, 256], sizes = [8, 128], strides = [1, 1]} : vector<8x384xf32> to vector<8x128xf32>
    %166 = vector.extract_strided_slice %148 {offsets = [0, 256], sizes = [8, 128], strides = [1, 1]} : vector<8x384xf32> to vector<8x128xf32>
    %167 = arith.mulf %156, %166 : vector<8x128xf32>
    %168 = arith.addf %165, %167 : vector<8x128xf32>
    %169 = math.tanh %168 : vector<8x128xf32>
    %cst_59 = arith.constant 1.000000e+00 : f32
    %170 = vector.broadcast %cst_59 : f32 to vector<8x128xf32>
    %171 = arith.subf %170, %164 : vector<8x128xf32>
    %172 = arith.mulf %171, %169 : vector<8x128xf32>
    %173 = arith.mulf %164, %89 : vector<8x128xf32>
    %174 = arith.addf %172, %173 : vector<8x128xf32>
    %175 = tpu.concatenate %174, %116 in 1 : vector<8x128xf32>, vector<8x128xf32> -> vector<8x256xf32>
    %176 = arith.truncf %175 : vector<8x256xf32> to vector<8x256xbf16>
    %cst_60 = arith.constant dense<0.000000e+00> : vector<8x512xf32>
    %177 = tpu.matmul %176, %55, %cst_60 {dimension_numbers = #tpu.dot_dimension_numbers<[1], [0], [0], [1], [0, 0, 1, 1], [], []>} : vector<8x256xbf16>, vector<256x512xbf16>, vector<8x512xf32> -> vector<8x512xf32>
    %178 = vector.broadcast %57 : vector<1x512xf32> to vector<8x512xf32>
    %179 = arith.addf %177, %178 : vector<8x512xf32>
    %180 = vector.extract_strided_slice %179 {offsets = [0, 0], sizes = [8, 128], strides = [1, 1]} : vector<8x512xf32> to vector<8x128xf32>
    %181 = arith.negf %180 : vector<8x128xf32>
    %182 = math.exp %181 : vector<8x128xf32>
    %cst_61 = arith.constant 1.000000e+00 : f32
    %183 = vector.broadcast %cst_61 : f32 to vector<8x128xf32>
    %184 = arith.addf %183, %182 : vector<8x128xf32>
    %185 = arith.divf %183, %184 : vector<8x128xf32>
    %186 = vector.extract_strided_slice %179 {offsets = [0, 128], sizes = [8, 128], strides = [1, 1]} : vector<8x512xf32> to vector<8x128xf32>
    %187 = arith.negf %186 : vector<8x128xf32>
    %188 = math.exp %187 : vector<8x128xf32>
    %cst_62 = arith.constant 1.000000e+00 : f32
    %189 = vector.broadcast %cst_62 : f32 to vector<8x128xf32>
    %190 = arith.addf %189, %188 : vector<8x128xf32>
    %191 = arith.divf %189, %190 : vector<8x128xf32>
    %192 = vector.extract_strided_slice %179 {offsets = [0, 256], sizes = [8, 128], strides = [1, 1]} : vector<8x512xf32> to vector<8x128xf32>
    %193 = vector.extract_strided_slice %179 {offsets = [0, 384], sizes = [8, 128], strides = [1, 1]} : vector<8x512xf32> to vector<8x128xf32>
    %194 = arith.mulf %185, %193 : vector<8x128xf32>
    %195 = arith.addf %192, %194 : vector<8x128xf32>
    %196 = math.tanh %195 : vector<8x128xf32>
    %cst_63 = arith.constant 1.000000e+00 : f32
    %197 = vector.broadcast %cst_63 : f32 to vector<8x128xf32>
    %198 = arith.subf %197, %191 : vector<8x128xf32>
    %199 = arith.mulf %198, %196 : vector<8x128xf32>
    %200 = arith.mulf %191, %116 : vector<8x128xf32>
    %201 = arith.addf %199, %200 : vector<8x128xf32>
    %202 = tpu.concatenate %201, %143 in 1 : vector<8x128xf32>, vector<8x128xf32> -> vector<8x256xf32>
    %203 = arith.truncf %202 : vector<8x256xf32> to vector<8x256xbf16>
    %cst_64 = arith.constant dense<0.000000e+00> : vector<8x512xf32>
    %204 = tpu.matmul %203, %56, %cst_64 {dimension_numbers = #tpu.dot_dimension_numbers<[1], [0], [0], [1], [0, 0, 1, 1], [], []>} : vector<8x256xbf16>, vector<256x512xbf16>, vector<8x512xf32> -> vector<8x512xf32>
    %205 = vector.broadcast %58 : vector<1x512xf32> to vector<8x512xf32>
    %206 = arith.addf %204, %205 : vector<8x512xf32>
    %207 = vector.extract_strided_slice %206 {offsets = [0, 0], sizes = [8, 128], strides = [1, 1]} : vector<8x512xf32> to vector<8x128xf32>
    %208 = arith.negf %207 : vector<8x128xf32>
    %209 = math.exp %208 : vector<8x128xf32>
    %cst_65 = arith.constant 1.000000e+00 : f32
    %210 = vector.broadcast %cst_65 : f32 to vector<8x128xf32>
    %211 = arith.addf %210, %209 : vector<8x128xf32>
    %212 = arith.divf %210, %211 : vector<8x128xf32>
    %213 = vector.extract_strided_slice %206 {offsets = [0, 128], sizes = [8, 128], strides = [1, 1]} : vector<8x512xf32> to vector<8x128xf32>
    %214 = arith.negf %213 : vector<8x128xf32>
    %215 = math.exp %214 : vector<8x128xf32>
    %cst_66 = arith.constant 1.000000e+00 : f32
    %216 = vector.broadcast %cst_66 : f32 to vector<8x128xf32>
    %217 = arith.addf %216, %215 : vector<8x128xf32>
    %218 = arith.divf %216, %217 : vector<8x128xf32>
    %219 = vector.extract_strided_slice %206 {offsets = [0, 256], sizes = [8, 128], strides = [1, 1]} : vector<8x512xf32> to vector<8x128xf32>
    %220 = vector.extract_strided_slice %206 {offsets = [0, 384], sizes = [8, 128], strides = [1, 1]} : vector<8x512xf32> to vector<8x128xf32>
    %221 = arith.mulf %212, %220 : vector<8x128xf32>
    %222 = arith.addf %219, %221 : vector<8x128xf32>
    %223 = math.tanh %222 : vector<8x128xf32>
    %cst_67 = arith.constant 1.000000e+00 : f32
    %224 = vector.broadcast %cst_67 : f32 to vector<8x128xf32>
    %225 = arith.subf %224, %218 : vector<8x128xf32>
    %226 = arith.mulf %225, %223 : vector<8x128xf32>
    %227 = arith.mulf %218, %143 : vector<8x128xf32>
    %228 = arith.addf %226, %227 : vector<8x128xf32>
    %229 = vector.extract_strided_slice %52 {offsets = [16, 0], sizes = [8, 384], strides = [1, 1]} : vector<64x384xf32> to vector<8x384xf32>
    %230 = arith.truncf %174 : vector<8x128xf32> to vector<8x128xbf16>
    %cst_68 = arith.constant dense<0.000000e+00> : vector<8x384xf32>
    %231 = tpu.matmul %230, %53, %cst_68 {dimension_numbers = #tpu.dot_dimension_numbers<[1], [0], [0], [1], [0, 0, 1, 1], [], []>} : vector<8x128xbf16>, vector<128x384xbf16>, vector<8x384xf32> -> vector<8x384xf32>
    %232 = vector.broadcast %54 : vector<1x384xf32> to vector<8x384xf32>
    %233 = arith.addf %231, %232 : vector<8x384xf32>
    %234 = vector.extract_strided_slice %229 {offsets = [0, 0], sizes = [8, 128], strides = [1, 1]} : vector<8x384xf32> to vector<8x128xf32>
    %235 = vector.extract_strided_slice %233 {offsets = [0, 0], sizes = [8, 128], strides = [1, 1]} : vector<8x384xf32> to vector<8x128xf32>
    %236 = arith.addf %234, %235 : vector<8x128xf32>
    %237 = arith.negf %236 : vector<8x128xf32>
    %238 = math.exp %237 : vector<8x128xf32>
    %cst_69 = arith.constant 1.000000e+00 : f32
    %239 = vector.broadcast %cst_69 : f32 to vector<8x128xf32>
    %240 = arith.addf %239, %238 : vector<8x128xf32>
    %241 = arith.divf %239, %240 : vector<8x128xf32>
    %242 = vector.extract_strided_slice %229 {offsets = [0, 128], sizes = [8, 128], strides = [1, 1]} : vector<8x384xf32> to vector<8x128xf32>
    %243 = vector.extract_strided_slice %233 {offsets = [0, 128], sizes = [8, 128], strides = [1, 1]} : vector<8x384xf32> to vector<8x128xf32>
    %244 = arith.addf %242, %243 : vector<8x128xf32>
    %245 = arith.negf %244 : vector<8x128xf32>
    %246 = math.exp %245 : vector<8x128xf32>
    %cst_70 = arith.constant 1.000000e+00 : f32
    %247 = vector.broadcast %cst_70 : f32 to vector<8x128xf32>
    %248 = arith.addf %247, %246 : vector<8x128xf32>
    %249 = arith.divf %247, %248 : vector<8x128xf32>
    %250 = vector.extract_strided_slice %229 {offsets = [0, 256], sizes = [8, 128], strides = [1, 1]} : vector<8x384xf32> to vector<8x128xf32>
    %251 = vector.extract_strided_slice %233 {offsets = [0, 256], sizes = [8, 128], strides = [1, 1]} : vector<8x384xf32> to vector<8x128xf32>
    %252 = arith.mulf %241, %251 : vector<8x128xf32>
    %253 = arith.addf %250, %252 : vector<8x128xf32>
    %254 = math.tanh %253 : vector<8x128xf32>
    %cst_71 = arith.constant 1.000000e+00 : f32
    %255 = vector.broadcast %cst_71 : f32 to vector<8x128xf32>
    %256 = arith.subf %255, %249 : vector<8x128xf32>
    %257 = arith.mulf %256, %254 : vector<8x128xf32>
    %258 = arith.mulf %249, %174 : vector<8x128xf32>
    %259 = arith.addf %257, %258 : vector<8x128xf32>
    %260 = tpu.concatenate %259, %201 in 1 : vector<8x128xf32>, vector<8x128xf32> -> vector<8x256xf32>
    %261 = arith.truncf %260 : vector<8x256xf32> to vector<8x256xbf16>
    %cst_72 = arith.constant dense<0.000000e+00> : vector<8x512xf32>
    %262 = tpu.matmul %261, %55, %cst_72 {dimension_numbers = #tpu.dot_dimension_numbers<[1], [0], [0], [1], [0, 0, 1, 1], [], []>} : vector<8x256xbf16>, vector<256x512xbf16>, vector<8x512xf32> -> vector<8x512xf32>
    %263 = vector.broadcast %57 : vector<1x512xf32> to vector<8x512xf32>
    %264 = arith.addf %262, %263 : vector<8x512xf32>
    %265 = vector.extract_strided_slice %264 {offsets = [0, 0], sizes = [8, 128], strides = [1, 1]} : vector<8x512xf32> to vector<8x128xf32>
    %266 = arith.negf %265 : vector<8x128xf32>
    %267 = math.exp %266 : vector<8x128xf32>
    %cst_73 = arith.constant 1.000000e+00 : f32
    %268 = vector.broadcast %cst_73 : f32 to vector<8x128xf32>
    %269 = arith.addf %268, %267 : vector<8x128xf32>
    %270 = arith.divf %268, %269 : vector<8x128xf32>
    %271 = vector.extract_strided_slice %264 {offsets = [0, 128], sizes = [8, 128], strides = [1, 1]} : vector<8x512xf32> to vector<8x128xf32>
    %272 = arith.negf %271 : vector<8x128xf32>
    %273 = math.exp %272 : vector<8x128xf32>
    %cst_74 = arith.constant 1.000000e+00 : f32
    %274 = vector.broadcast %cst_74 : f32 to vector<8x128xf32>
    %275 = arith.addf %274, %273 : vector<8x128xf32>
    %276 = arith.divf %274, %275 : vector<8x128xf32>
    %277 = vector.extract_strided_slice %264 {offsets = [0, 256], sizes = [8, 128], strides = [1, 1]} : vector<8x512xf32> to vector<8x128xf32>
    %278 = vector.extract_strided_slice %264 {offsets = [0, 384], sizes = [8, 128], strides = [1, 1]} : vector<8x512xf32> to vector<8x128xf32>
    %279 = arith.mulf %270, %278 : vector<8x128xf32>
    %280 = arith.addf %277, %279 : vector<8x128xf32>
    %281 = math.tanh %280 : vector<8x128xf32>
    %cst_75 = arith.constant 1.000000e+00 : f32
    %282 = vector.broadcast %cst_75 : f32 to vector<8x128xf32>
    %283 = arith.subf %282, %276 : vector<8x128xf32>
    %284 = arith.mulf %283, %281 : vector<8x128xf32>
    %285 = arith.mulf %276, %201 : vector<8x128xf32>
    %286 = arith.addf %284, %285 : vector<8x128xf32>
    %287 = tpu.concatenate %286, %228 in 1 : vector<8x128xf32>, vector<8x128xf32> -> vector<8x256xf32>
    %288 = arith.truncf %287 : vector<8x256xf32> to vector<8x256xbf16>
    %cst_76 = arith.constant dense<0.000000e+00> : vector<8x512xf32>
    %289 = tpu.matmul %288, %56, %cst_76 {dimension_numbers = #tpu.dot_dimension_numbers<[1], [0], [0], [1], [0, 0, 1, 1], [], []>} : vector<8x256xbf16>, vector<256x512xbf16>, vector<8x512xf32> -> vector<8x512xf32>
    %290 = vector.broadcast %58 : vector<1x512xf32> to vector<8x512xf32>
    %291 = arith.addf %289, %290 : vector<8x512xf32>
    %292 = vector.extract_strided_slice %291 {offsets = [0, 0], sizes = [8, 128], strides = [1, 1]} : vector<8x512xf32> to vector<8x128xf32>
    %293 = arith.negf %292 : vector<8x128xf32>
    %294 = math.exp %293 : vector<8x128xf32>
    %cst_77 = arith.constant 1.000000e+00 : f32
    %295 = vector.broadcast %cst_77 : f32 to vector<8x128xf32>
    %296 = arith.addf %295, %294 : vector<8x128xf32>
    %297 = arith.divf %295, %296 : vector<8x128xf32>
    %298 = vector.extract_strided_slice %291 {offsets = [0, 128], sizes = [8, 128], strides = [1, 1]} : vector<8x512xf32> to vector<8x128xf32>
    %299 = arith.negf %298 : vector<8x128xf32>
    %300 = math.exp %299 : vector<8x128xf32>
    %cst_78 = arith.constant 1.000000e+00 : f32
    %301 = vector.broadcast %cst_78 : f32 to vector<8x128xf32>
    %302 = arith.addf %301, %300 : vector<8x128xf32>
    %303 = arith.divf %301, %302 : vector<8x128xf32>
    %304 = vector.extract_strided_slice %291 {offsets = [0, 256], sizes = [8, 128], strides = [1, 1]} : vector<8x512xf32> to vector<8x128xf32>
    %305 = vector.extract_strided_slice %291 {offsets = [0, 384], sizes = [8, 128], strides = [1, 1]} : vector<8x512xf32> to vector<8x128xf32>
    %306 = arith.mulf %297, %305 : vector<8x128xf32>
    %307 = arith.addf %304, %306 : vector<8x128xf32>
    %308 = math.tanh %307 : vector<8x128xf32>
    %cst_79 = arith.constant 1.000000e+00 : f32
    %309 = vector.broadcast %cst_79 : f32 to vector<8x128xf32>
    %310 = arith.subf %309, %303 : vector<8x128xf32>
    %311 = arith.mulf %310, %308 : vector<8x128xf32>
    %312 = arith.mulf %303, %228 : vector<8x128xf32>
    %313 = arith.addf %311, %312 : vector<8x128xf32>
    %314 = vector.extract_strided_slice %52 {offsets = [24, 0], sizes = [8, 384], strides = [1, 1]} : vector<64x384xf32> to vector<8x384xf32>
    %315 = arith.truncf %259 : vector<8x128xf32> to vector<8x128xbf16>
    %cst_80 = arith.constant dense<0.000000e+00> : vector<8x384xf32>
    %316 = tpu.matmul %315, %53, %cst_80 {dimension_numbers = #tpu.dot_dimension_numbers<[1], [0], [0], [1], [0, 0, 1, 1], [], []>} : vector<8x128xbf16>, vector<128x384xbf16>, vector<8x384xf32> -> vector<8x384xf32>
    %317 = vector.broadcast %54 : vector<1x384xf32> to vector<8x384xf32>
    %318 = arith.addf %316, %317 : vector<8x384xf32>
    %319 = vector.extract_strided_slice %314 {offsets = [0, 0], sizes = [8, 128], strides = [1, 1]} : vector<8x384xf32> to vector<8x128xf32>
    %320 = vector.extract_strided_slice %318 {offsets = [0, 0], sizes = [8, 128], strides = [1, 1]} : vector<8x384xf32> to vector<8x128xf32>
    %321 = arith.addf %319, %320 : vector<8x128xf32>
    %322 = arith.negf %321 : vector<8x128xf32>
    %323 = math.exp %322 : vector<8x128xf32>
    %cst_81 = arith.constant 1.000000e+00 : f32
    %324 = vector.broadcast %cst_81 : f32 to vector<8x128xf32>
    %325 = arith.addf %324, %323 : vector<8x128xf32>
    %326 = arith.divf %324, %325 : vector<8x128xf32>
    %327 = vector.extract_strided_slice %314 {offsets = [0, 128], sizes = [8, 128], strides = [1, 1]} : vector<8x384xf32> to vector<8x128xf32>
    %328 = vector.extract_strided_slice %318 {offsets = [0, 128], sizes = [8, 128], strides = [1, 1]} : vector<8x384xf32> to vector<8x128xf32>
    %329 = arith.addf %327, %328 : vector<8x128xf32>
    %330 = arith.negf %329 : vector<8x128xf32>
    %331 = math.exp %330 : vector<8x128xf32>
    %cst_82 = arith.constant 1.000000e+00 : f32
    %332 = vector.broadcast %cst_82 : f32 to vector<8x128xf32>
    %333 = arith.addf %332, %331 : vector<8x128xf32>
    %334 = arith.divf %332, %333 : vector<8x128xf32>
    %335 = vector.extract_strided_slice %314 {offsets = [0, 256], sizes = [8, 128], strides = [1, 1]} : vector<8x384xf32> to vector<8x128xf32>
    %336 = vector.extract_strided_slice %318 {offsets = [0, 256], sizes = [8, 128], strides = [1, 1]} : vector<8x384xf32> to vector<8x128xf32>
    %337 = arith.mulf %326, %336 : vector<8x128xf32>
    %338 = arith.addf %335, %337 : vector<8x128xf32>
    %339 = math.tanh %338 : vector<8x128xf32>
    %cst_83 = arith.constant 1.000000e+00 : f32
    %340 = vector.broadcast %cst_83 : f32 to vector<8x128xf32>
    %341 = arith.subf %340, %334 : vector<8x128xf32>
    %342 = arith.mulf %341, %339 : vector<8x128xf32>
    %343 = arith.mulf %334, %259 : vector<8x128xf32>
    %344 = arith.addf %342, %343 : vector<8x128xf32>
    %345 = tpu.concatenate %344, %286 in 1 : vector<8x128xf32>, vector<8x128xf32> -> vector<8x256xf32>
    %346 = arith.truncf %345 : vector<8x256xf32> to vector<8x256xbf16>
    %cst_84 = arith.constant dense<0.000000e+00> : vector<8x512xf32>
    %347 = tpu.matmul %346, %55, %cst_84 {dimension_numbers = #tpu.dot_dimension_numbers<[1], [0], [0], [1], [0, 0, 1, 1], [], []>} : vector<8x256xbf16>, vector<256x512xbf16>, vector<8x512xf32> -> vector<8x512xf32>
    %348 = vector.broadcast %57 : vector<1x512xf32> to vector<8x512xf32>
    %349 = arith.addf %347, %348 : vector<8x512xf32>
    %350 = vector.extract_strided_slice %349 {offsets = [0, 0], sizes = [8, 128], strides = [1, 1]} : vector<8x512xf32> to vector<8x128xf32>
    %351 = arith.negf %350 : vector<8x128xf32>
    %352 = math.exp %351 : vector<8x128xf32>
    %cst_85 = arith.constant 1.000000e+00 : f32
    %353 = vector.broadcast %cst_85 : f32 to vector<8x128xf32>
    %354 = arith.addf %353, %352 : vector<8x128xf32>
    %355 = arith.divf %353, %354 : vector<8x128xf32>
    %356 = vector.extract_strided_slice %349 {offsets = [0, 128], sizes = [8, 128], strides = [1, 1]} : vector<8x512xf32> to vector<8x128xf32>
    %357 = arith.negf %356 : vector<8x128xf32>
    %358 = math.exp %357 : vector<8x128xf32>
    %cst_86 = arith.constant 1.000000e+00 : f32
    %359 = vector.broadcast %cst_86 : f32 to vector<8x128xf32>
    %360 = arith.addf %359, %358 : vector<8x128xf32>
    %361 = arith.divf %359, %360 : vector<8x128xf32>
    %362 = vector.extract_strided_slice %349 {offsets = [0, 256], sizes = [8, 128], strides = [1, 1]} : vector<8x512xf32> to vector<8x128xf32>
    %363 = vector.extract_strided_slice %349 {offsets = [0, 384], sizes = [8, 128], strides = [1, 1]} : vector<8x512xf32> to vector<8x128xf32>
    %364 = arith.mulf %355, %363 : vector<8x128xf32>
    %365 = arith.addf %362, %364 : vector<8x128xf32>
    %366 = math.tanh %365 : vector<8x128xf32>
    %cst_87 = arith.constant 1.000000e+00 : f32
    %367 = vector.broadcast %cst_87 : f32 to vector<8x128xf32>
    %368 = arith.subf %367, %361 : vector<8x128xf32>
    %369 = arith.mulf %368, %366 : vector<8x128xf32>
    %370 = arith.mulf %361, %286 : vector<8x128xf32>
    %371 = arith.addf %369, %370 : vector<8x128xf32>
    %372 = tpu.concatenate %371, %313 in 1 : vector<8x128xf32>, vector<8x128xf32> -> vector<8x256xf32>
    %373 = arith.truncf %372 : vector<8x256xf32> to vector<8x256xbf16>
    %cst_88 = arith.constant dense<0.000000e+00> : vector<8x512xf32>
    %374 = tpu.matmul %373, %56, %cst_88 {dimension_numbers = #tpu.dot_dimension_numbers<[1], [0], [0], [1], [0, 0, 1, 1], [], []>} : vector<8x256xbf16>, vector<256x512xbf16>, vector<8x512xf32> -> vector<8x512xf32>
    %375 = vector.broadcast %58 : vector<1x512xf32> to vector<8x512xf32>
    %376 = arith.addf %374, %375 : vector<8x512xf32>
    %377 = vector.extract_strided_slice %376 {offsets = [0, 0], sizes = [8, 128], strides = [1, 1]} : vector<8x512xf32> to vector<8x128xf32>
    %378 = arith.negf %377 : vector<8x128xf32>
    %379 = math.exp %378 : vector<8x128xf32>
    %cst_89 = arith.constant 1.000000e+00 : f32
    %380 = vector.broadcast %cst_89 : f32 to vector<8x128xf32>
    %381 = arith.addf %380, %379 : vector<8x128xf32>
    %382 = arith.divf %380, %381 : vector<8x128xf32>
    %383 = vector.extract_strided_slice %376 {offsets = [0, 128], sizes = [8, 128], strides = [1, 1]} : vector<8x512xf32> to vector<8x128xf32>
    %384 = arith.negf %383 : vector<8x128xf32>
    %385 = math.exp %384 : vector<8x128xf32>
    %cst_90 = arith.constant 1.000000e+00 : f32
    %386 = vector.broadcast %cst_90 : f32 to vector<8x128xf32>
    %387 = arith.addf %386, %385 : vector<8x128xf32>
    %388 = arith.divf %386, %387 : vector<8x128xf32>
    %389 = vector.extract_strided_slice %376 {offsets = [0, 256], sizes = [8, 128], strides = [1, 1]} : vector<8x512xf32> to vector<8x128xf32>
    %390 = vector.extract_strided_slice %376 {offsets = [0, 384], sizes = [8, 128], strides = [1, 1]} : vector<8x512xf32> to vector<8x128xf32>
    %391 = arith.mulf %382, %390 : vector<8x128xf32>
    %392 = arith.addf %389, %391 : vector<8x128xf32>
    %393 = math.tanh %392 : vector<8x128xf32>
    %cst_91 = arith.constant 1.000000e+00 : f32
    %394 = vector.broadcast %cst_91 : f32 to vector<8x128xf32>
    %395 = arith.subf %394, %388 : vector<8x128xf32>
    %396 = arith.mulf %395, %393 : vector<8x128xf32>
    %397 = arith.mulf %388, %313 : vector<8x128xf32>
    %398 = arith.addf %396, %397 : vector<8x128xf32>
    %399 = vector.extract_strided_slice %52 {offsets = [32, 0], sizes = [8, 384], strides = [1, 1]} : vector<64x384xf32> to vector<8x384xf32>
    %400 = arith.truncf %344 : vector<8x128xf32> to vector<8x128xbf16>
    %cst_92 = arith.constant dense<0.000000e+00> : vector<8x384xf32>
    %401 = tpu.matmul %400, %53, %cst_92 {dimension_numbers = #tpu.dot_dimension_numbers<[1], [0], [0], [1], [0, 0, 1, 1], [], []>} : vector<8x128xbf16>, vector<128x384xbf16>, vector<8x384xf32> -> vector<8x384xf32>
    %402 = vector.broadcast %54 : vector<1x384xf32> to vector<8x384xf32>
    %403 = arith.addf %401, %402 : vector<8x384xf32>
    %404 = vector.extract_strided_slice %399 {offsets = [0, 0], sizes = [8, 128], strides = [1, 1]} : vector<8x384xf32> to vector<8x128xf32>
    %405 = vector.extract_strided_slice %403 {offsets = [0, 0], sizes = [8, 128], strides = [1, 1]} : vector<8x384xf32> to vector<8x128xf32>
    %406 = arith.addf %404, %405 : vector<8x128xf32>
    %407 = arith.negf %406 : vector<8x128xf32>
    %408 = math.exp %407 : vector<8x128xf32>
    %cst_93 = arith.constant 1.000000e+00 : f32
    %409 = vector.broadcast %cst_93 : f32 to vector<8x128xf32>
    %410 = arith.addf %409, %408 : vector<8x128xf32>
    %411 = arith.divf %409, %410 : vector<8x128xf32>
    %412 = vector.extract_strided_slice %399 {offsets = [0, 128], sizes = [8, 128], strides = [1, 1]} : vector<8x384xf32> to vector<8x128xf32>
    %413 = vector.extract_strided_slice %403 {offsets = [0, 128], sizes = [8, 128], strides = [1, 1]} : vector<8x384xf32> to vector<8x128xf32>
    %414 = arith.addf %412, %413 : vector<8x128xf32>
    %415 = arith.negf %414 : vector<8x128xf32>
    %416 = math.exp %415 : vector<8x128xf32>
    %cst_94 = arith.constant 1.000000e+00 : f32
    %417 = vector.broadcast %cst_94 : f32 to vector<8x128xf32>
    %418 = arith.addf %417, %416 : vector<8x128xf32>
    %419 = arith.divf %417, %418 : vector<8x128xf32>
    %420 = vector.extract_strided_slice %399 {offsets = [0, 256], sizes = [8, 128], strides = [1, 1]} : vector<8x384xf32> to vector<8x128xf32>
    %421 = vector.extract_strided_slice %403 {offsets = [0, 256], sizes = [8, 128], strides = [1, 1]} : vector<8x384xf32> to vector<8x128xf32>
    %422 = arith.mulf %411, %421 : vector<8x128xf32>
    %423 = arith.addf %420, %422 : vector<8x128xf32>
    %424 = math.tanh %423 : vector<8x128xf32>
    %cst_95 = arith.constant 1.000000e+00 : f32
    %425 = vector.broadcast %cst_95 : f32 to vector<8x128xf32>
    %426 = arith.subf %425, %419 : vector<8x128xf32>
    %427 = arith.mulf %426, %424 : vector<8x128xf32>
    %428 = arith.mulf %419, %344 : vector<8x128xf32>
    %429 = arith.addf %427, %428 : vector<8x128xf32>
    %430 = tpu.concatenate %429, %371 in 1 : vector<8x128xf32>, vector<8x128xf32> -> vector<8x256xf32>
    %431 = arith.truncf %430 : vector<8x256xf32> to vector<8x256xbf16>
    %cst_96 = arith.constant dense<0.000000e+00> : vector<8x512xf32>
    %432 = tpu.matmul %431, %55, %cst_96 {dimension_numbers = #tpu.dot_dimension_numbers<[1], [0], [0], [1], [0, 0, 1, 1], [], []>} : vector<8x256xbf16>, vector<256x512xbf16>, vector<8x512xf32> -> vector<8x512xf32>
    %433 = vector.broadcast %57 : vector<1x512xf32> to vector<8x512xf32>
    %434 = arith.addf %432, %433 : vector<8x512xf32>
    %435 = vector.extract_strided_slice %434 {offsets = [0, 0], sizes = [8, 128], strides = [1, 1]} : vector<8x512xf32> to vector<8x128xf32>
    %436 = arith.negf %435 : vector<8x128xf32>
    %437 = math.exp %436 : vector<8x128xf32>
    %cst_97 = arith.constant 1.000000e+00 : f32
    %438 = vector.broadcast %cst_97 : f32 to vector<8x128xf32>
    %439 = arith.addf %438, %437 : vector<8x128xf32>
    %440 = arith.divf %438, %439 : vector<8x128xf32>
    %441 = vector.extract_strided_slice %434 {offsets = [0, 128], sizes = [8, 128], strides = [1, 1]} : vector<8x512xf32> to vector<8x128xf32>
    %442 = arith.negf %441 : vector<8x128xf32>
    %443 = math.exp %442 : vector<8x128xf32>
    %cst_98 = arith.constant 1.000000e+00 : f32
    %444 = vector.broadcast %cst_98 : f32 to vector<8x128xf32>
    %445 = arith.addf %444, %443 : vector<8x128xf32>
    %446 = arith.divf %444, %445 : vector<8x128xf32>
    %447 = vector.extract_strided_slice %434 {offsets = [0, 256], sizes = [8, 128], strides = [1, 1]} : vector<8x512xf32> to vector<8x128xf32>
    %448 = vector.extract_strided_slice %434 {offsets = [0, 384], sizes = [8, 128], strides = [1, 1]} : vector<8x512xf32> to vector<8x128xf32>
    %449 = arith.mulf %440, %448 : vector<8x128xf32>
    %450 = arith.addf %447, %449 : vector<8x128xf32>
    %451 = math.tanh %450 : vector<8x128xf32>
    %cst_99 = arith.constant 1.000000e+00 : f32
    %452 = vector.broadcast %cst_99 : f32 to vector<8x128xf32>
    %453 = arith.subf %452, %446 : vector<8x128xf32>
    %454 = arith.mulf %453, %451 : vector<8x128xf32>
    %455 = arith.mulf %446, %371 : vector<8x128xf32>
    %456 = arith.addf %454, %455 : vector<8x128xf32>
    %457 = tpu.concatenate %456, %398 in 1 : vector<8x128xf32>, vector<8x128xf32> -> vector<8x256xf32>
    %458 = arith.truncf %457 : vector<8x256xf32> to vector<8x256xbf16>
    %cst_100 = arith.constant dense<0.000000e+00> : vector<8x512xf32>
    %459 = tpu.matmul %458, %56, %cst_100 {dimension_numbers = #tpu.dot_dimension_numbers<[1], [0], [0], [1], [0, 0, 1, 1], [], []>} : vector<8x256xbf16>, vector<256x512xbf16>, vector<8x512xf32> -> vector<8x512xf32>
    %460 = vector.broadcast %58 : vector<1x512xf32> to vector<8x512xf32>
    %461 = arith.addf %459, %460 : vector<8x512xf32>
    %462 = vector.extract_strided_slice %461 {offsets = [0, 0], sizes = [8, 128], strides = [1, 1]} : vector<8x512xf32> to vector<8x128xf32>
    %463 = arith.negf %462 : vector<8x128xf32>
    %464 = math.exp %463 : vector<8x128xf32>
    %cst_101 = arith.constant 1.000000e+00 : f32
    %465 = vector.broadcast %cst_101 : f32 to vector<8x128xf32>
    %466 = arith.addf %465, %464 : vector<8x128xf32>
    %467 = arith.divf %465, %466 : vector<8x128xf32>
    %468 = vector.extract_strided_slice %461 {offsets = [0, 128], sizes = [8, 128], strides = [1, 1]} : vector<8x512xf32> to vector<8x128xf32>
    %469 = arith.negf %468 : vector<8x128xf32>
    %470 = math.exp %469 : vector<8x128xf32>
    %cst_102 = arith.constant 1.000000e+00 : f32
    %471 = vector.broadcast %cst_102 : f32 to vector<8x128xf32>
    %472 = arith.addf %471, %470 : vector<8x128xf32>
    %473 = arith.divf %471, %472 : vector<8x128xf32>
    %474 = vector.extract_strided_slice %461 {offsets = [0, 256], sizes = [8, 128], strides = [1, 1]} : vector<8x512xf32> to vector<8x128xf32>
    %475 = vector.extract_strided_slice %461 {offsets = [0, 384], sizes = [8, 128], strides = [1, 1]} : vector<8x512xf32> to vector<8x128xf32>
    %476 = arith.mulf %467, %475 : vector<8x128xf32>
    %477 = arith.addf %474, %476 : vector<8x128xf32>
    %478 = math.tanh %477 : vector<8x128xf32>
    %cst_103 = arith.constant 1.000000e+00 : f32
    %479 = vector.broadcast %cst_103 : f32 to vector<8x128xf32>
    %480 = arith.subf %479, %473 : vector<8x128xf32>
    %481 = arith.mulf %480, %478 : vector<8x128xf32>
    %482 = arith.mulf %473, %398 : vector<8x128xf32>
    %483 = arith.addf %481, %482 : vector<8x128xf32>
    %484 = vector.extract_strided_slice %52 {offsets = [40, 0], sizes = [8, 384], strides = [1, 1]} : vector<64x384xf32> to vector<8x384xf32>
    %485 = arith.truncf %429 : vector<8x128xf32> to vector<8x128xbf16>
    %cst_104 = arith.constant dense<0.000000e+00> : vector<8x384xf32>
    %486 = tpu.matmul %485, %53, %cst_104 {dimension_numbers = #tpu.dot_dimension_numbers<[1], [0], [0], [1], [0, 0, 1, 1], [], []>} : vector<8x128xbf16>, vector<128x384xbf16>, vector<8x384xf32> -> vector<8x384xf32>
    %487 = vector.broadcast %54 : vector<1x384xf32> to vector<8x384xf32>
    %488 = arith.addf %486, %487 : vector<8x384xf32>
    %489 = vector.extract_strided_slice %484 {offsets = [0, 0], sizes = [8, 128], strides = [1, 1]} : vector<8x384xf32> to vector<8x128xf32>
    %490 = vector.extract_strided_slice %488 {offsets = [0, 0], sizes = [8, 128], strides = [1, 1]} : vector<8x384xf32> to vector<8x128xf32>
    %491 = arith.addf %489, %490 : vector<8x128xf32>
    %492 = arith.negf %491 : vector<8x128xf32>
    %493 = math.exp %492 : vector<8x128xf32>
    %cst_105 = arith.constant 1.000000e+00 : f32
    %494 = vector.broadcast %cst_105 : f32 to vector<8x128xf32>
    %495 = arith.addf %494, %493 : vector<8x128xf32>
    %496 = arith.divf %494, %495 : vector<8x128xf32>
    %497 = vector.extract_strided_slice %484 {offsets = [0, 128], sizes = [8, 128], strides = [1, 1]} : vector<8x384xf32> to vector<8x128xf32>
    %498 = vector.extract_strided_slice %488 {offsets = [0, 128], sizes = [8, 128], strides = [1, 1]} : vector<8x384xf32> to vector<8x128xf32>
    %499 = arith.addf %497, %498 : vector<8x128xf32>
    %500 = arith.negf %499 : vector<8x128xf32>
    %501 = math.exp %500 : vector<8x128xf32>
    %cst_106 = arith.constant 1.000000e+00 : f32
    %502 = vector.broadcast %cst_106 : f32 to vector<8x128xf32>
    %503 = arith.addf %502, %501 : vector<8x128xf32>
    %504 = arith.divf %502, %503 : vector<8x128xf32>
    %505 = vector.extract_strided_slice %484 {offsets = [0, 256], sizes = [8, 128], strides = [1, 1]} : vector<8x384xf32> to vector<8x128xf32>
    %506 = vector.extract_strided_slice %488 {offsets = [0, 256], sizes = [8, 128], strides = [1, 1]} : vector<8x384xf32> to vector<8x128xf32>
    %507 = arith.mulf %496, %506 : vector<8x128xf32>
    %508 = arith.addf %505, %507 : vector<8x128xf32>
    %509 = math.tanh %508 : vector<8x128xf32>
    %cst_107 = arith.constant 1.000000e+00 : f32
    %510 = vector.broadcast %cst_107 : f32 to vector<8x128xf32>
    %511 = arith.subf %510, %504 : vector<8x128xf32>
    %512 = arith.mulf %511, %509 : vector<8x128xf32>
    %513 = arith.mulf %504, %429 : vector<8x128xf32>
    %514 = arith.addf %512, %513 : vector<8x128xf32>
    %515 = tpu.concatenate %514, %456 in 1 : vector<8x128xf32>, vector<8x128xf32> -> vector<8x256xf32>
    %516 = arith.truncf %515 : vector<8x256xf32> to vector<8x256xbf16>
    %cst_108 = arith.constant dense<0.000000e+00> : vector<8x512xf32>
    %517 = tpu.matmul %516, %55, %cst_108 {dimension_numbers = #tpu.dot_dimension_numbers<[1], [0], [0], [1], [0, 0, 1, 1], [], []>} : vector<8x256xbf16>, vector<256x512xbf16>, vector<8x512xf32> -> vector<8x512xf32>
    %518 = vector.broadcast %57 : vector<1x512xf32> to vector<8x512xf32>
    %519 = arith.addf %517, %518 : vector<8x512xf32>
    %520 = vector.extract_strided_slice %519 {offsets = [0, 0], sizes = [8, 128], strides = [1, 1]} : vector<8x512xf32> to vector<8x128xf32>
    %521 = arith.negf %520 : vector<8x128xf32>
    %522 = math.exp %521 : vector<8x128xf32>
    %cst_109 = arith.constant 1.000000e+00 : f32
    %523 = vector.broadcast %cst_109 : f32 to vector<8x128xf32>
    %524 = arith.addf %523, %522 : vector<8x128xf32>
    %525 = arith.divf %523, %524 : vector<8x128xf32>
    %526 = vector.extract_strided_slice %519 {offsets = [0, 128], sizes = [8, 128], strides = [1, 1]} : vector<8x512xf32> to vector<8x128xf32>
    %527 = arith.negf %526 : vector<8x128xf32>
    %528 = math.exp %527 : vector<8x128xf32>
    %cst_110 = arith.constant 1.000000e+00 : f32
    %529 = vector.broadcast %cst_110 : f32 to vector<8x128xf32>
    %530 = arith.addf %529, %528 : vector<8x128xf32>
    %531 = arith.divf %529, %530 : vector<8x128xf32>
    %532 = vector.extract_strided_slice %519 {offsets = [0, 256], sizes = [8, 128], strides = [1, 1]} : vector<8x512xf32> to vector<8x128xf32>
    %533 = vector.extract_strided_slice %519 {offsets = [0, 384], sizes = [8, 128], strides = [1, 1]} : vector<8x512xf32> to vector<8x128xf32>
    %534 = arith.mulf %525, %533 : vector<8x128xf32>
    %535 = arith.addf %532, %534 : vector<8x128xf32>
    %536 = math.tanh %535 : vector<8x128xf32>
    %cst_111 = arith.constant 1.000000e+00 : f32
    %537 = vector.broadcast %cst_111 : f32 to vector<8x128xf32>
    %538 = arith.subf %537, %531 : vector<8x128xf32>
    %539 = arith.mulf %538, %536 : vector<8x128xf32>
    %540 = arith.mulf %531, %456 : vector<8x128xf32>
    %541 = arith.addf %539, %540 : vector<8x128xf32>
    %542 = tpu.concatenate %541, %483 in 1 : vector<8x128xf32>, vector<8x128xf32> -> vector<8x256xf32>
    %543 = arith.truncf %542 : vector<8x256xf32> to vector<8x256xbf16>
    %cst_112 = arith.constant dense<0.000000e+00> : vector<8x512xf32>
    %544 = tpu.matmul %543, %56, %cst_112 {dimension_numbers = #tpu.dot_dimension_numbers<[1], [0], [0], [1], [0, 0, 1, 1], [], []>} : vector<8x256xbf16>, vector<256x512xbf16>, vector<8x512xf32> -> vector<8x512xf32>
    %545 = vector.broadcast %58 : vector<1x512xf32> to vector<8x512xf32>
    %546 = arith.addf %544, %545 : vector<8x512xf32>
    %547 = vector.extract_strided_slice %546 {offsets = [0, 0], sizes = [8, 128], strides = [1, 1]} : vector<8x512xf32> to vector<8x128xf32>
    %548 = arith.negf %547 : vector<8x128xf32>
    %549 = math.exp %548 : vector<8x128xf32>
    %cst_113 = arith.constant 1.000000e+00 : f32
    %550 = vector.broadcast %cst_113 : f32 to vector<8x128xf32>
    %551 = arith.addf %550, %549 : vector<8x128xf32>
    %552 = arith.divf %550, %551 : vector<8x128xf32>
    %553 = vector.extract_strided_slice %546 {offsets = [0, 128], sizes = [8, 128], strides = [1, 1]} : vector<8x512xf32> to vector<8x128xf32>
    %554 = arith.negf %553 : vector<8x128xf32>
    %555 = math.exp %554 : vector<8x128xf32>
    %cst_114 = arith.constant 1.000000e+00 : f32
    %556 = vector.broadcast %cst_114 : f32 to vector<8x128xf32>
    %557 = arith.addf %556, %555 : vector<8x128xf32>
    %558 = arith.divf %556, %557 : vector<8x128xf32>
    %559 = vector.extract_strided_slice %546 {offsets = [0, 256], sizes = [8, 128], strides = [1, 1]} : vector<8x512xf32> to vector<8x128xf32>
    %560 = vector.extract_strided_slice %546 {offsets = [0, 384], sizes = [8, 128], strides = [1, 1]} : vector<8x512xf32> to vector<8x128xf32>
    %561 = arith.mulf %552, %560 : vector<8x128xf32>
    %562 = arith.addf %559, %561 : vector<8x128xf32>
    %563 = math.tanh %562 : vector<8x128xf32>
    %cst_115 = arith.constant 1.000000e+00 : f32
    %564 = vector.broadcast %cst_115 : f32 to vector<8x128xf32>
    %565 = arith.subf %564, %558 : vector<8x128xf32>
    %566 = arith.mulf %565, %563 : vector<8x128xf32>
    %567 = arith.mulf %558, %483 : vector<8x128xf32>
    %568 = arith.addf %566, %567 : vector<8x128xf32>
    %569 = vector.extract_strided_slice %52 {offsets = [48, 0], sizes = [8, 384], strides = [1, 1]} : vector<64x384xf32> to vector<8x384xf32>
    %570 = arith.truncf %514 : vector<8x128xf32> to vector<8x128xbf16>
    %cst_116 = arith.constant dense<0.000000e+00> : vector<8x384xf32>
    %571 = tpu.matmul %570, %53, %cst_116 {dimension_numbers = #tpu.dot_dimension_numbers<[1], [0], [0], [1], [0, 0, 1, 1], [], []>} : vector<8x128xbf16>, vector<128x384xbf16>, vector<8x384xf32> -> vector<8x384xf32>
    %572 = vector.broadcast %54 : vector<1x384xf32> to vector<8x384xf32>
    %573 = arith.addf %571, %572 : vector<8x384xf32>
    %574 = vector.extract_strided_slice %569 {offsets = [0, 0], sizes = [8, 128], strides = [1, 1]} : vector<8x384xf32> to vector<8x128xf32>
    %575 = vector.extract_strided_slice %573 {offsets = [0, 0], sizes = [8, 128], strides = [1, 1]} : vector<8x384xf32> to vector<8x128xf32>
    %576 = arith.addf %574, %575 : vector<8x128xf32>
    %577 = arith.negf %576 : vector<8x128xf32>
    %578 = math.exp %577 : vector<8x128xf32>
    %cst_117 = arith.constant 1.000000e+00 : f32
    %579 = vector.broadcast %cst_117 : f32 to vector<8x128xf32>
    %580 = arith.addf %579, %578 : vector<8x128xf32>
    %581 = arith.divf %579, %580 : vector<8x128xf32>
    %582 = vector.extract_strided_slice %569 {offsets = [0, 128], sizes = [8, 128], strides = [1, 1]} : vector<8x384xf32> to vector<8x128xf32>
    %583 = vector.extract_strided_slice %573 {offsets = [0, 128], sizes = [8, 128], strides = [1, 1]} : vector<8x384xf32> to vector<8x128xf32>
    %584 = arith.addf %582, %583 : vector<8x128xf32>
    %585 = arith.negf %584 : vector<8x128xf32>
    %586 = math.exp %585 : vector<8x128xf32>
    %cst_118 = arith.constant 1.000000e+00 : f32
    %587 = vector.broadcast %cst_118 : f32 to vector<8x128xf32>
    %588 = arith.addf %587, %586 : vector<8x128xf32>
    %589 = arith.divf %587, %588 : vector<8x128xf32>
    %590 = vector.extract_strided_slice %569 {offsets = [0, 256], sizes = [8, 128], strides = [1, 1]} : vector<8x384xf32> to vector<8x128xf32>
    %591 = vector.extract_strided_slice %573 {offsets = [0, 256], sizes = [8, 128], strides = [1, 1]} : vector<8x384xf32> to vector<8x128xf32>
    %592 = arith.mulf %581, %591 : vector<8x128xf32>
    %593 = arith.addf %590, %592 : vector<8x128xf32>
    %594 = math.tanh %593 : vector<8x128xf32>
    %cst_119 = arith.constant 1.000000e+00 : f32
    %595 = vector.broadcast %cst_119 : f32 to vector<8x128xf32>
    %596 = arith.subf %595, %589 : vector<8x128xf32>
    %597 = arith.mulf %596, %594 : vector<8x128xf32>
    %598 = arith.mulf %589, %514 : vector<8x128xf32>
    %599 = arith.addf %597, %598 : vector<8x128xf32>
    %600 = tpu.concatenate %599, %541 in 1 : vector<8x128xf32>, vector<8x128xf32> -> vector<8x256xf32>
    %601 = arith.truncf %600 : vector<8x256xf32> to vector<8x256xbf16>
    %cst_120 = arith.constant dense<0.000000e+00> : vector<8x512xf32>
    %602 = tpu.matmul %601, %55, %cst_120 {dimension_numbers = #tpu.dot_dimension_numbers<[1], [0], [0], [1], [0, 0, 1, 1], [], []>} : vector<8x256xbf16>, vector<256x512xbf16>, vector<8x512xf32> -> vector<8x512xf32>
    %603 = vector.broadcast %57 : vector<1x512xf32> to vector<8x512xf32>
    %604 = arith.addf %602, %603 : vector<8x512xf32>
    %605 = vector.extract_strided_slice %604 {offsets = [0, 0], sizes = [8, 128], strides = [1, 1]} : vector<8x512xf32> to vector<8x128xf32>
    %606 = arith.negf %605 : vector<8x128xf32>
    %607 = math.exp %606 : vector<8x128xf32>
    %cst_121 = arith.constant 1.000000e+00 : f32
    %608 = vector.broadcast %cst_121 : f32 to vector<8x128xf32>
    %609 = arith.addf %608, %607 : vector<8x128xf32>
    %610 = arith.divf %608, %609 : vector<8x128xf32>
    %611 = vector.extract_strided_slice %604 {offsets = [0, 128], sizes = [8, 128], strides = [1, 1]} : vector<8x512xf32> to vector<8x128xf32>
    %612 = arith.negf %611 : vector<8x128xf32>
    %613 = math.exp %612 : vector<8x128xf32>
    %cst_122 = arith.constant 1.000000e+00 : f32
    %614 = vector.broadcast %cst_122 : f32 to vector<8x128xf32>
    %615 = arith.addf %614, %613 : vector<8x128xf32>
    %616 = arith.divf %614, %615 : vector<8x128xf32>
    %617 = vector.extract_strided_slice %604 {offsets = [0, 256], sizes = [8, 128], strides = [1, 1]} : vector<8x512xf32> to vector<8x128xf32>
    %618 = vector.extract_strided_slice %604 {offsets = [0, 384], sizes = [8, 128], strides = [1, 1]} : vector<8x512xf32> to vector<8x128xf32>
    %619 = arith.mulf %610, %618 : vector<8x128xf32>
    %620 = arith.addf %617, %619 : vector<8x128xf32>
    %621 = math.tanh %620 : vector<8x128xf32>
    %cst_123 = arith.constant 1.000000e+00 : f32
    %622 = vector.broadcast %cst_123 : f32 to vector<8x128xf32>
    %623 = arith.subf %622, %616 : vector<8x128xf32>
    %624 = arith.mulf %623, %621 : vector<8x128xf32>
    %625 = arith.mulf %616, %541 : vector<8x128xf32>
    %626 = arith.addf %624, %625 : vector<8x128xf32>
    %627 = tpu.concatenate %626, %568 in 1 : vector<8x128xf32>, vector<8x128xf32> -> vector<8x256xf32>
    %628 = arith.truncf %627 : vector<8x256xf32> to vector<8x256xbf16>
    %cst_124 = arith.constant dense<0.000000e+00> : vector<8x512xf32>
    %629 = tpu.matmul %628, %56, %cst_124 {dimension_numbers = #tpu.dot_dimension_numbers<[1], [0], [0], [1], [0, 0, 1, 1], [], []>} : vector<8x256xbf16>, vector<256x512xbf16>, vector<8x512xf32> -> vector<8x512xf32>
    %630 = vector.broadcast %58 : vector<1x512xf32> to vector<8x512xf32>
    %631 = arith.addf %629, %630 : vector<8x512xf32>
    %632 = vector.extract_strided_slice %631 {offsets = [0, 0], sizes = [8, 128], strides = [1, 1]} : vector<8x512xf32> to vector<8x128xf32>
    %633 = arith.negf %632 : vector<8x128xf32>
    %634 = math.exp %633 : vector<8x128xf32>
    %cst_125 = arith.constant 1.000000e+00 : f32
    %635 = vector.broadcast %cst_125 : f32 to vector<8x128xf32>
    %636 = arith.addf %635, %634 : vector<8x128xf32>
    %637 = arith.divf %635, %636 : vector<8x128xf32>
    %638 = vector.extract_strided_slice %631 {offsets = [0, 128], sizes = [8, 128], strides = [1, 1]} : vector<8x512xf32> to vector<8x128xf32>
    %639 = arith.negf %638 : vector<8x128xf32>
    %640 = math.exp %639 : vector<8x128xf32>
    %cst_126 = arith.constant 1.000000e+00 : f32
    %641 = vector.broadcast %cst_126 : f32 to vector<8x128xf32>
    %642 = arith.addf %641, %640 : vector<8x128xf32>
    %643 = arith.divf %641, %642 : vector<8x128xf32>
    %644 = vector.extract_strided_slice %631 {offsets = [0, 256], sizes = [8, 128], strides = [1, 1]} : vector<8x512xf32> to vector<8x128xf32>
    %645 = vector.extract_strided_slice %631 {offsets = [0, 384], sizes = [8, 128], strides = [1, 1]} : vector<8x512xf32> to vector<8x128xf32>
    %646 = arith.mulf %637, %645 : vector<8x128xf32>
    %647 = arith.addf %644, %646 : vector<8x128xf32>
    %648 = math.tanh %647 : vector<8x128xf32>
    %cst_127 = arith.constant 1.000000e+00 : f32
    %649 = vector.broadcast %cst_127 : f32 to vector<8x128xf32>
    %650 = arith.subf %649, %643 : vector<8x128xf32>
    %651 = arith.mulf %650, %648 : vector<8x128xf32>
    %652 = arith.mulf %643, %568 : vector<8x128xf32>
    %653 = arith.addf %651, %652 : vector<8x128xf32>
    %654 = vector.extract_strided_slice %52 {offsets = [56, 0], sizes = [8, 384], strides = [1, 1]} : vector<64x384xf32> to vector<8x384xf32>
    %655 = arith.truncf %599 : vector<8x128xf32> to vector<8x128xbf16>
    %cst_128 = arith.constant dense<0.000000e+00> : vector<8x384xf32>
    %656 = tpu.matmul %655, %53, %cst_128 {dimension_numbers = #tpu.dot_dimension_numbers<[1], [0], [0], [1], [0, 0, 1, 1], [], []>} : vector<8x128xbf16>, vector<128x384xbf16>, vector<8x384xf32> -> vector<8x384xf32>
    %657 = vector.broadcast %54 : vector<1x384xf32> to vector<8x384xf32>
    %658 = arith.addf %656, %657 : vector<8x384xf32>
    %659 = vector.extract_strided_slice %654 {offsets = [0, 0], sizes = [8, 128], strides = [1, 1]} : vector<8x384xf32> to vector<8x128xf32>
    %660 = vector.extract_strided_slice %658 {offsets = [0, 0], sizes = [8, 128], strides = [1, 1]} : vector<8x384xf32> to vector<8x128xf32>
    %661 = arith.addf %659, %660 : vector<8x128xf32>
    %662 = arith.negf %661 : vector<8x128xf32>
    %663 = math.exp %662 : vector<8x128xf32>
    %cst_129 = arith.constant 1.000000e+00 : f32
    %664 = vector.broadcast %cst_129 : f32 to vector<8x128xf32>
    %665 = arith.addf %664, %663 : vector<8x128xf32>
    %666 = arith.divf %664, %665 : vector<8x128xf32>
    %667 = vector.extract_strided_slice %654 {offsets = [0, 128], sizes = [8, 128], strides = [1, 1]} : vector<8x384xf32> to vector<8x128xf32>
    %668 = vector.extract_strided_slice %658 {offsets = [0, 128], sizes = [8, 128], strides = [1, 1]} : vector<8x384xf32> to vector<8x128xf32>
    %669 = arith.addf %667, %668 : vector<8x128xf32>
    %670 = arith.negf %669 : vector<8x128xf32>
    %671 = math.exp %670 : vector<8x128xf32>
    %cst_130 = arith.constant 1.000000e+00 : f32
    %672 = vector.broadcast %cst_130 : f32 to vector<8x128xf32>
    %673 = arith.addf %672, %671 : vector<8x128xf32>
    %674 = arith.divf %672, %673 : vector<8x128xf32>
    %675 = vector.extract_strided_slice %654 {offsets = [0, 256], sizes = [8, 128], strides = [1, 1]} : vector<8x384xf32> to vector<8x128xf32>
    %676 = vector.extract_strided_slice %658 {offsets = [0, 256], sizes = [8, 128], strides = [1, 1]} : vector<8x384xf32> to vector<8x128xf32>
    %677 = arith.mulf %666, %676 : vector<8x128xf32>
    %678 = arith.addf %675, %677 : vector<8x128xf32>
    %679 = math.tanh %678 : vector<8x128xf32>
    %cst_131 = arith.constant 1.000000e+00 : f32
    %680 = vector.broadcast %cst_131 : f32 to vector<8x128xf32>
    %681 = arith.subf %680, %674 : vector<8x128xf32>
    %682 = arith.mulf %681, %679 : vector<8x128xf32>
    %683 = arith.mulf %674, %599 : vector<8x128xf32>
    %684 = arith.addf %682, %683 : vector<8x128xf32>
    %685 = tpu.concatenate %684, %626 in 1 : vector<8x128xf32>, vector<8x128xf32> -> vector<8x256xf32>
    %686 = arith.truncf %685 : vector<8x256xf32> to vector<8x256xbf16>
    %cst_132 = arith.constant dense<0.000000e+00> : vector<8x512xf32>
    %687 = tpu.matmul %686, %55, %cst_132 {dimension_numbers = #tpu.dot_dimension_numbers<[1], [0], [0], [1], [0, 0, 1, 1], [], []>} : vector<8x256xbf16>, vector<256x512xbf16>, vector<8x512xf32> -> vector<8x512xf32>
    %688 = vector.broadcast %57 : vector<1x512xf32> to vector<8x512xf32>
    %689 = arith.addf %687, %688 : vector<8x512xf32>
    %690 = vector.extract_strided_slice %689 {offsets = [0, 0], sizes = [8, 128], strides = [1, 1]} : vector<8x512xf32> to vector<8x128xf32>
    %691 = arith.negf %690 : vector<8x128xf32>
    %692 = math.exp %691 : vector<8x128xf32>
    %cst_133 = arith.constant 1.000000e+00 : f32
    %693 = vector.broadcast %cst_133 : f32 to vector<8x128xf32>
    %694 = arith.addf %693, %692 : vector<8x128xf32>
    %695 = arith.divf %693, %694 : vector<8x128xf32>
    %696 = vector.extract_strided_slice %689 {offsets = [0, 128], sizes = [8, 128], strides = [1, 1]} : vector<8x512xf32> to vector<8x128xf32>
    %697 = arith.negf %696 : vector<8x128xf32>
    %698 = math.exp %697 : vector<8x128xf32>
    %cst_134 = arith.constant 1.000000e+00 : f32
    %699 = vector.broadcast %cst_134 : f32 to vector<8x128xf32>
    %700 = arith.addf %699, %698 : vector<8x128xf32>
    %701 = arith.divf %699, %700 : vector<8x128xf32>
    %702 = vector.extract_strided_slice %689 {offsets = [0, 256], sizes = [8, 128], strides = [1, 1]} : vector<8x512xf32> to vector<8x128xf32>
    %703 = vector.extract_strided_slice %689 {offsets = [0, 384], sizes = [8, 128], strides = [1, 1]} : vector<8x512xf32> to vector<8x128xf32>
    %704 = arith.mulf %695, %703 : vector<8x128xf32>
    %705 = arith.addf %702, %704 : vector<8x128xf32>
    %706 = math.tanh %705 : vector<8x128xf32>
    %cst_135 = arith.constant 1.000000e+00 : f32
    %707 = vector.broadcast %cst_135 : f32 to vector<8x128xf32>
    %708 = arith.subf %707, %701 : vector<8x128xf32>
    %709 = arith.mulf %708, %706 : vector<8x128xf32>
    %710 = arith.mulf %701, %626 : vector<8x128xf32>
    %711 = arith.addf %709, %710 : vector<8x128xf32>
    %712 = tpu.concatenate %711, %653 in 1 : vector<8x128xf32>, vector<8x128xf32> -> vector<8x256xf32>
    %713 = arith.truncf %712 : vector<8x256xf32> to vector<8x256xbf16>
    %cst_136 = arith.constant dense<0.000000e+00> : vector<8x512xf32>
    %714 = tpu.matmul %713, %56, %cst_136 {dimension_numbers = #tpu.dot_dimension_numbers<[1], [0], [0], [1], [0, 0, 1, 1], [], []>} : vector<8x256xbf16>, vector<256x512xbf16>, vector<8x512xf32> -> vector<8x512xf32>
    %715 = vector.broadcast %58 : vector<1x512xf32> to vector<8x512xf32>
    %716 = arith.addf %714, %715 : vector<8x512xf32>
    %717 = vector.extract_strided_slice %716 {offsets = [0, 0], sizes = [8, 128], strides = [1, 1]} : vector<8x512xf32> to vector<8x128xf32>
    %718 = arith.negf %717 : vector<8x128xf32>
    %719 = math.exp %718 : vector<8x128xf32>
    %cst_137 = arith.constant 1.000000e+00 : f32
    %720 = vector.broadcast %cst_137 : f32 to vector<8x128xf32>
    %721 = arith.addf %720, %719 : vector<8x128xf32>
    %722 = arith.divf %720, %721 : vector<8x128xf32>
    %723 = vector.extract_strided_slice %716 {offsets = [0, 128], sizes = [8, 128], strides = [1, 1]} : vector<8x512xf32> to vector<8x128xf32>
    %724 = arith.negf %723 : vector<8x128xf32>
    %725 = math.exp %724 : vector<8x128xf32>
    %cst_138 = arith.constant 1.000000e+00 : f32
    %726 = vector.broadcast %cst_138 : f32 to vector<8x128xf32>
    %727 = arith.addf %726, %725 : vector<8x128xf32>
    %728 = arith.divf %726, %727 : vector<8x128xf32>
    %729 = vector.extract_strided_slice %716 {offsets = [0, 256], sizes = [8, 128], strides = [1, 1]} : vector<8x512xf32> to vector<8x128xf32>
    %730 = vector.extract_strided_slice %716 {offsets = [0, 384], sizes = [8, 128], strides = [1, 1]} : vector<8x512xf32> to vector<8x128xf32>
    %731 = arith.mulf %722, %730 : vector<8x128xf32>
    %732 = arith.addf %729, %731 : vector<8x128xf32>
    %733 = math.tanh %732 : vector<8x128xf32>
    %cst_139 = arith.constant 1.000000e+00 : f32
    %734 = vector.broadcast %cst_139 : f32 to vector<8x128xf32>
    %735 = arith.subf %734, %728 : vector<8x128xf32>
    %736 = arith.mulf %735, %733 : vector<8x128xf32>
    %737 = arith.mulf %728, %653 : vector<8x128xf32>
    %738 = arith.addf %736, %737 : vector<8x128xf32>
    %739 = tpu.concatenate %143, %228, %313, %398, %483, %568, %653, %738 in 0 : vector<8x128xf32>, vector<8x128xf32>, vector<8x128xf32>, vector<8x128xf32>, vector<8x128xf32>, vector<8x128xf32>, vector<8x128xf32>, vector<8x128xf32> -> vector<64x128xf32>
    %740 = arith.negf %739 : vector<64x128xf32>
    %741 = math.exp %740 : vector<64x128xf32>
    %cst_140 = arith.constant 1.000000e+00 : f32
    %742 = vector.broadcast %cst_140 : f32 to vector<64x128xf32>
    %743 = arith.addf %742, %741 : vector<64x128xf32>
    %744 = arith.divf %742, %743 : vector<64x128xf32>
    %745 = arith.truncf %744 : vector<64x128xf32> to vector<64x128xbf16>
    %c0_141 = arith.constant 0 : index
    %c0_142 = arith.constant 0 : index
    %746 = vector.load %arg17[%c0_141, %c0_142] : memref<128x128xbf16, #tpu.memory_space<vmem>>, vector<128x128xbf16>
    %cst_143 = arith.constant dense<0.000000e+00> : vector<64x128xf32>
    %747 = tpu.matmul %745, %746, %cst_143 {dimension_numbers = #tpu.dot_dimension_numbers<[1], [0], [0], [1], [0, 0, 1, 1], [], []>} : vector<64x128xbf16>, vector<128x128xbf16>, vector<64x128xf32> -> vector<64x128xf32>
    %c0_144 = arith.constant 0 : index
    %c0_145 = arith.constant 0 : index
    %748 = vector.load %arg18[%c0_144, %c0_145] : memref<1x128xf32, #tpu.memory_space<vmem>>, vector<1x128xf32>
    %749 = vector.broadcast %748 : vector<1x128xf32> to vector<64x128xf32>
    %750 = arith.addf %747, %749 : vector<64x128xf32>
    %751 = vector.shape_cast %750 : vector<64x128xf32> to vector<8x8x128xf32>
    %c0_146 = arith.constant 0 : index
    %c0_147 = arith.constant 0 : index
    %c0_148 = arith.constant 0 : index
    %752 = vector.load %arg19[%c0_146, %c0_147, %c0_148] : memref<8x8x128xf32, #tpu.memory_space<vmem>>, vector<8x8x128xf32>
    tpu.vector_store %arg19[%c0_146, %c0_147, %c0_148], %751 {strides = array<i32>} : memref<8x8x128xf32, #tpu.memory_space<vmem>>, vector<8x8x128xf32>,
    return
  }
  func.func @transform_0(%arg0: i32) -> (i32, i32, i32) {
    %c0_i32 = arith.constant 0 : i32
    %c0_i32_0 = arith.constant 0 : i32
    %c0_i32_1 = arith.constant 0 : i32
    return %c0_i32, %arg0, %c0_i32_0 : i32, i32, i32
  }
  func.func @transform_1(%arg0: i32) -> (i32, i32, i32) {
    %c0_i32 = arith.constant 0 : i32
    %c0_i32_0 = arith.constant 0 : i32
    %c0_i32_1 = arith.constant 0 : i32
    return %c0_i32, %arg0, %c0_i32_0 : i32, i32, i32
  }
  func.func @transform_2(%arg0: i32) -> (i32, i32, i32) {
    %c0_i32 = arith.constant 0 : i32
    %c0_i32_0 = arith.constant 0 : i32
    %c0_i32_1 = arith.constant 0 : i32
    return %c0_i32, %arg0, %c0_i32_0 : i32, i32, i32
  }
  func.func @transform_3(%arg0: i32) -> (i32, i32, i32) {
    %c0_i32 = arith.constant 0 : i32
    %c0_i32_0 = arith.constant 0 : i32
    %c0_i32_1 = arith.constant 0 : i32
    return %c0_i32, %arg0, %c0_i32_0 : i32, i32, i32
  }
  func.func @transform_4(%arg0: i32) -> (i32, i32) {
    %c0_i32 = arith.constant 0 : i32
    %c0_i32_0 = arith.constant 0 : i32
    %c0_i32_1 = arith.constant 0 : i32
    return %c0_i32, %c0_i32_0 : i32, i32
  }
  func.func @transform_5(%arg0: i32) -> (i32, i32) {
    %c0_i32 = arith.constant 0 : i32
    %c0_i32_0 = arith.constant 0 : i32
    %c0_i32_1 = arith.constant 0 : i32
    return %c0_i32, %c0_i32_0 : i32, i32
  }
  func.func @transform_6(%arg0: i32) -> (i32, i32) {
    %c0_i32 = arith.constant 0 : i32
    %c0_i32_0 = arith.constant 0 : i32
    %c0_i32_1 = arith.constant 0 : i32
    return %c0_i32, %c0_i32_0 : i32, i32
  }
  func.func @transform_7(%arg0: i32) -> (i32, i32) {
    %c0_i32 = arith.constant 0 : i32
    %c0_i32_0 = arith.constant 0 : i32
    %c0_i32_1 = arith.constant 0 : i32
    return %c0_i32, %c0_i32_0 : i32, i32
  }
  func.func @transform_8(%arg0: i32) -> (i32, i32) {
    %c0_i32 = arith.constant 0 : i32
    %c0_i32_0 = arith.constant 0 : i32
    %c0_i32_1 = arith.constant 0 : i32
    return %c0_i32, %c0_i32_0 : i32, i32
  }
  func.func @transform_9(%arg0: i32) -> (i32, i32) {
    %c0_i32 = arith.constant 0 : i32
    %c0_i32_0 = arith.constant 0 : i32
    %c0_i32_1 = arith.constant 0 : i32
    return %c0_i32, %c0_i32_0 : i32, i32
  }
  func.func @transform_10(%arg0: i32) -> (i32, i32) {
    %c0_i32 = arith.constant 0 : i32
    %c0_i32_0 = arith.constant 0 : i32
    %c0_i32_1 = arith.constant 0 : i32
    return %c0_i32, %c0_i32_0 : i32, i32
  }
  func.func @transform_11(%arg0: i32) -> (i32, i32) {
    %c0_i32 = arith.constant 0 : i32
    %c0_i32_0 = arith.constant 0 : i32
    %c0_i32_1 = arith.constant 0 : i32
    return %c0_i32, %c0_i32_0 : i32, i32
  }
  func.func @transform_12(%arg0: i32) -> (i32, i32) {
    %c0_i32 = arith.constant 0 : i32
    %c0_i32_0 = arith.constant 0 : i32
    %c0_i32_1 = arith.constant 0 : i32
    return %c0_i32, %c0_i32_0 : i32, i32
  }
  func.func @transform_13(%arg0: i32) -> (i32, i32) {
    %c0_i32 = arith.constant 0 : i32
    %c0_i32_0 = arith.constant 0 : i32
    %c0_i32_1 = arith.constant 0 : i32
    return %c0_i32, %c0_i32_0 : i32, i32
  }
  func.func @transform_14(%arg0: i32) -> (i32, i32) {
    %c0_i32 = arith.constant 0 : i32
    %c0_i32_0 = arith.constant 0 : i32
    %c0_i32_1 = arith.constant 0 : i32
    return %c0_i32, %c0_i32_0 : i32, i32
  }
  func.func @transform_15(%arg0: i32) -> (i32, i32) {
    %c0_i32 = arith.constant 0 : i32
    %c0_i32_0 = arith.constant 0 : i32
    %c0_i32_1 = arith.constant 0 : i32
    return %c0_i32, %c0_i32_0 : i32, i32
  }
  func.func @transform_16(%arg0: i32) -> (i32, i32) {
    %c0_i32 = arith.constant 0 : i32
    %c0_i32_0 = arith.constant 0 : i32
    %c0_i32_1 = arith.constant 0 : i32
    return %c0_i32, %c0_i32_0 : i32, i32
  }
  func.func @transform_17(%arg0: i32) -> (i32, i32) {
    %c0_i32 = arith.constant 0 : i32
    %c0_i32_0 = arith.constant 0 : i32
    %c0_i32_1 = arith.constant 0 : i32
    return %c0_i32, %c0_i32_0 : i32, i32
  }
  func.func @transform_18(%arg0: i32) -> (i32, i32, i32) {
    %c0_i32 = arith.constant 0 : i32
    %c0_i32_0 = arith.constant 0 : i32
    %c0_i32_1 = arith.constant 0 : i32
    return %c0_i32, %arg0, %c0_i32_0 : i32, i32, i32
  }
}

</mosaic_0001>

<bundles_post_ra>
// kernel: tpu_custom_call.1
= control target key start
LH: loop header
LB: loop body
LE: loop exit
PB: predicated region body
PF: predicated region fallthrough
CT: control target
= control target key end

     0   :  { %s9905_s0 = inlined_call_operand.vmem [shape: f32[8,8,128], index: 0, kind: input, shape index: {}]   ;;  %s9906_s1 = inlined_call_operand.hbm [shape: f32[10,8,32], index: 1, kind: input, shape index: {}]   ;;  %s9907_s2 = inlined_call_operand.hbm [shape: f32[10,8,128], index: 2, kind: input, shape index: {}]   ;;  %s9908_s3 = inlined_call_operand.vmem [shape: f32[10,8,1], index: 3, kind: input, shape index: {}]   ;;  %s9909_s4 = inlined_call_operand.vmem [shape: f32[1,128], index: 4, kind: input, shape index: {}]   ;;  %s9910_s5 = inlined_call_operand.hbm [shape: f32[3,128], index: 5, kind: input, shape index: {}]   ;;  %s9911_s6 = inlined_call_operand.vmem [shape: bf16[128,384], index: 6, kind: input, shape index: {}]   ;;  %s9912_s7 = inlined_call_operand.hbm [shape: bf16[128,384], index: 7, kind: input, shape index: {}]   ;;  %s9913_s8 = inlined_call_operand.hbm [shape: f32[1,384], index: 8, kind: input, shape index: {}]   ;;  %s9914_s9 = inlined_call_operand.hbm [shape: f32[1,384], index: 9, kind: input, shape index: {}]   ;;  %s9915_s10 = inlined_call_operand.hbm [shape: bf16[256,512], index: 10, kind: input, shape index: {}]   ;;  %s9916_s11 = inlined_call_operand.hbm [shape: f32[1,512], index: 11, kind: input, shape index: {}]   ;;  %s9917_s12 = inlined_call_operand.hbm [shape: bf16[256,512], index: 12, kind: input, shape index: {}]   ;;  %s9918_s13 = inlined_call_operand.vmem [shape: f32[1,512], index: 13, kind: input, shape index: {}]   ;;  %s9919_s14 = inlined_call_operand.vmem [shape: f32[128,32], index: 14, kind: input, shape index: {}]   ;;  %s9920_s15 = inlined_call_operand.vmem [shape: f32[1,32], index: 15, kind: input, shape index: {}]   ;;  %s9921_s16 = inlined_call_operand.hbm [shape: bf16[128,128], index: 16, kind: input, shape index: {}]   ;;  %s9922_s17 = inlined_call_operand.vmem [shape: f32[1,128], index: 17, kind: input, shape index: {}]   ;;  %s9923_s18 = inlined_call_operand.hbm [shape: f32[8,8,128], index: 18, kind: output, shape index: {}]  }
   0x1   :  { %10392 = sst [smem:[#allocation158_spill]] %s9905_s0 }
   0x2   :  { %10393 = sst [smem:[#allocation159_spill]] %s9906_s1 }
   0x3   :  { %10394 = sst [smem:[#allocation160_spill]] %s9907_s2 }
   0x4   :  { %10395 = sst [smem:[#allocation161_spill]] %s9923_s18 }
   0x5   :  { %23 = vsyncpa [#allocation3], 0 }
   0x6   :  { %24 = vsyncpa [#allocation6], 0 }
   0x7   :  { %25 = vsyncpa [#allocation9], 0 }
   0x8   :  { %26 = vsyncpa [#allocation12], 0 }
   0x9   :  { %27 = vsyncpa [#allocation15], 0 }
   0xa   :  { %28 = vsyncpa [#allocation18], 0 }
   0xb   :  { %29 = vsyncpa [#allocation4], 0  ;;  %s6466_s27 = smov [#allocation5]   ;;  %s6467_s29 = smov [#allocation8]  }
   0xc   :  { %s49_s28 = sshll.u32 %s6466_s27, 4  ;;  %s77_s30 = sshll.u32 %s6467_s29, 4  ;;  %s50_s28 = int_to_ptr.vmem [resolvable:$true] %s49_s28  ;;  %s6584_s30 = int_to_ptr.vmem [resolvable:$true] %s77_s30 }
   0xd   :  { %s10396_s1 = sld [smem:[#allocation160_spill]] }
  0x13   :  { %s6210_s20 = scalar_lea.hbm %s10396_s1, 1280 }
  0x14   :  { %p6211_p0 = scmp.ne.s32.totalorder %s10396_s1, %s6210_s20  ;;  %p6214_p1 = scmp.lt.u32.totalorder %s6210_s20, %s10396_s1 }
  0x16   :  { %p6216_p2 = pnand %p6214_p1, %p6211_p0 }
  0x18   :  { %6219 = shalt.err (!%p6216_p2)
}
  0x19   :  { %s6220_s24 = scalar_lea.vmem %s50_s28, 1280  ;;  %p6225_p4 = scmp.lt.s32.totalorder %s50_s28, %s50_s28 }
  0x1a   :  { %p6221_p3 = scmp.ne.s32.totalorder %s50_s28, %s6220_s24  ;;  %p6226_p5 = scmp.lt.s32.totalorder %s6220_s24, %s6220_s24 }
  0x1c   :  { %p6227_p6 = por %p6226_p5, %p6225_p4 }
  0x1e   :  { %p6228_p7 = pnand %p6227_p6, %p6221_p3 }
  0x20   :  { %6231 = shalt.err (!%p6228_p7)
}
  0x21   :  { %s9927_s25 = smov 128   ;;  %s9929_s26 = smov 8  }
  0x22   :  { %55 = dma.hbm_to_vmem [thread:$0]  %s10396_s1, 1280, %s50_s28, [#allocation6], %s9927_s25, %s9927_s25, %s9929_s26  }
  0x23   :  { %s6232_s20 = scalar_lea.hbm %s9912_s7, 3072 }
  0x24   :  { %p6233_p8 = scmp.ne.s32.totalorder %s9912_s7, %s6232_s20  ;;  %p6236_p9 = scmp.lt.u32.totalorder %s6232_s20, %s9912_s7 }
  0x26   :  { %p6238_p10 = pnand %p6236_p9, %p6233_p8 }
  0x28   :  { %6241 = shalt.err (!%p6238_p10)
}
  0x29   :  { %s6242_s24 = scalar_lea.vmem %s6584_s30, 3072  ;;  %p6247_p12 = scmp.lt.s32.totalorder %s6584_s30, %s6584_s30 }
  0x2a   :  { %p6243_p11 = scmp.ne.s32.totalorder %s6584_s30, %s6242_s24  ;;  %p6248_p13 = scmp.lt.s32.totalorder %s6242_s24, %s6242_s24 }
  0x2c   :  { %p6249_p0 = por %p6248_p13, %p6247_p12 }
  0x2e   :  { %p6250_p1 = pnand %p6249_p0, %p6243_p11 }
  0x30   :  { %6253 = shalt.err (!%p6250_p1)
}
  0x31   :  { %s6470_s28 = smov 192   ;;  %s6471_s1 = smov 12  }
  0x32   :  { %83 = dma.hbm_to_vmem [thread:$0]  %s9912_s7, 3072, %s6584_s30, [#allocation9], %s6470_s28, %s6470_s28, %s6471_s1  }
  0x33   :  { %s6472_s0 = smov [#allocation11]   ;;  %s6473_s20 = smov [#allocation14]  }
  0x34   :  { %s100_s19 = sshll.u32 %s6472_s0, 4  ;;  %s122_s21 = sshll.u32 %s6473_s20, 4  ;;  %s101_s19 = int_to_ptr.vmem [resolvable:$true] %s100_s19  ;;  %s123_s21 = int_to_ptr.vmem [resolvable:$true] %s122_s21 }
  0x35   :  { %s6254_s23 = scalar_lea.hbm %s9914_s9, 48 }
  0x36   :  { %p6255_p2 = scmp.ne.s32.totalorder %s9914_s9, %s6254_s23  ;;  %p6258_p3 = scmp.lt.u32.totalorder %s6254_s23, %s9914_s9 }
  0x38   :  { %p6260_p4 = pnand %p6258_p3, %p6255_p2 }
  0x3a   :  { %6263 = shalt.err (!%p6260_p4)
}
  0x3b   :  { %s6264_s7 = scalar_lea.vmem %s101_s19, 48  ;;  %s6268_s30 = scalar_lea.vmem %s101_s19, 64 }
  0x3c   :  { %p6265_p5 = scmp.ne.s32.totalorder %s101_s19, %s6264_s7  ;;  %p6269_p6 = scmp.lt.s32.totalorder %s101_s19, %s101_s19 }
  0x3d   :  { %p6270_p7 = scmp.lt.s32.totalorder %s6268_s30, %s6264_s7 }
  0x3f   :  { %p6271_p8 = por %p6270_p7, %p6269_p6 }
  0x41   :  { %p6272_p9 = pnand %p6271_p8, %p6265_p5 }
  0x43   :  { %6275 = shalt.err (!%p6272_p9)
}
  0x44   :  { %103 = dma.hbm_to_vmem [thread:$0]  %s9914_s9, 48, %s101_s19, [#allocation12]  }
  0x45   :  { %s6276_s29 = scalar_lea.hbm %s9916_s11, 64 }
  0x46   :  { %p6277_p10 = scmp.ne.s32.totalorder %s9916_s11, %s6276_s29  ;;  %p6280_p11 = scmp.lt.u32.totalorder %s6276_s29, %s9916_s11 }
  0x48   :  { %p6282_p12 = pnand %p6280_p11, %p6277_p10 }
  0x4a   :  { %6285 = shalt.err (!%p6282_p12)
}
  0x4b   :  { %s6286_s22 = scalar_lea.vmem %s123_s21, 64  ;;  %p6291_p0 = scmp.lt.s32.totalorder %s123_s21, %s123_s21 }
  0x4c   :  { %p6287_p13 = scmp.ne.s32.totalorder %s123_s21, %s6286_s22  ;;  %p6292_p1 = scmp.lt.s32.totalorder %s6286_s22, %s6286_s22 }
  0x4e   :  { %p6293_p2 = por %p6292_p1, %p6291_p0 }
  0x50   :  { %p6294_p3 = pnand %p6293_p2, %p6287_p13 }
  0x52   :  { %6297 = shalt.err (!%p6294_p3)
}
  0x53   :  { %125 = dma.hbm_to_vmem [thread:$0]  %s9916_s11, 64, %s123_s21, [#allocation15]  }
  0x54   :  { %s6474_s2 = smov [#allocation2]   ;;  %s6475_s24 = smov [#allocation7]  }
  0x55   :  { %s37_s23 = sshll.u32 %s6474_s2, 4  ;;  %s66_s7 = sshll.u32 %s6475_s24, 4  ;;  %s38_s23 = int_to_ptr.vmem [resolvable:$true] %s37_s23  ;;  %s67_s7 = int_to_ptr.vmem [resolvable:$true] %s66_s7 }
  0x56   :  { %s10397_s1 = sld [smem:[#allocation159_spill]] }
  0x5c   :  { %s6298_s25 = scalar_lea.hbm %s10397_s1, 1280 }
  0x5d   :  { %p6299_p4 = scmp.ne.s32.totalorder %s10397_s1, %s6298_s25  ;;  %p6302_p5 = scmp.lt.u32.totalorder %s6298_s25, %s10397_s1 }
  0x5f   :  { %p6304_p6 = pnand %p6302_p5, %p6299_p4 }
  0x61   :  { %6307 = shalt.err (!%p6304_p6)
}
  0x62   :  { %s6308_s11 = scalar_lea.vmem %s38_s23, 1280  ;;  %p6313_p8 = scmp.lt.s32.totalorder %s38_s23, %s38_s23 }
  0x63   :  { %p6309_p7 = scmp.ne.s32.totalorder %s38_s23, %s6308_s11  ;;  %p6314_p9 = scmp.lt.s32.totalorder %s6308_s11, %s6308_s11 }
  0x65   :  { %p6315_p10 = por %p6314_p9, %p6313_p8 }
  0x67   :  { %p6316_p11 = pnand %p6315_p10, %p6309_p7 }
  0x69   :  { %6319 = shalt.err (!%p6316_p11)
}
  0x6a   :  { %s10398_s21 = smov 8   ;;  %s10399_s0 = smov 128  }
  0x6b   :  { %43 = dma.hbm_to_vmem [thread:$0]  %s10397_s1, 1280, %s38_s23, [#allocation3], %s10399_s0, %s10399_s0, %s10398_s21  }
  0x6c   :  { %s6320_s2 = scalar_lea.hbm %s9910_s5, 64 }
  0x6d   :  { %p6321_p12 = scmp.ne.s32.totalorder %s9910_s5, %s6320_s2  ;;  %p6324_p13 = scmp.lt.u32.totalorder %s6320_s2, %s9910_s5 }
  0x6f   :  { %p6326_p0 = pnand %p6324_p13, %p6321_p12 }
  0x71   :  { %6329 = shalt.err (!%p6326_p0)
}
  0x72   :  { %s6330_s27 = scalar_lea.vmem %s67_s7, 64  ;;  %p6335_p2 = scmp.lt.s32.totalorder %s67_s7, %s67_s7 }
  0x73   :  { %p6331_p1 = scmp.ne.s32.totalorder %s67_s7, %s6330_s27  ;;  %p6336_p3 = scmp.lt.s32.totalorder %s6330_s27, %s6330_s27 }
  0x75   :  { %p6337_p4 = por %p6336_p3, %p6335_p2 }
  0x77   :  { %p6338_p5 = pnand %p6337_p4, %p6331_p1 }
  0x79   :  { %6341 = shalt.err (!%p6338_p5)
}
  0x7a   :  { %69 = dma.hbm_to_vmem [thread:$0]  %s9910_s5, 64, %s67_s7, [#allocation6]  }
  0x7b   :  { %s6476_s29 = smov [#allocation10]   ;;  %s6477_s26 = smov [#allocation13]  }
  0x7c   :  { %s90_s18 = sshll.u32 %s6476_s29, 4  ;;  %s109_s11 = sshll.u32 %s6477_s26, 4  ;;  %s91_s18 = int_to_ptr.vmem [resolvable:$true] %s90_s18  ;;  %s6669_s11 = int_to_ptr.vmem [resolvable:$true] %s109_s11 }
  0x7d   :  { %s6342_s9 = scalar_lea.hbm %s9913_s8, 48 }
  0x7e   :  { %p6343_p6 = scmp.ne.s32.totalorder %s9913_s8, %s6342_s9  ;;  %p6346_p7 = scmp.lt.u32.totalorder %s6342_s9, %s9913_s8 }
  0x80   :  { %p6348_p8 = pnand %p6346_p7, %p6343_p6 }
  0x82   :  { %6351 = shalt.err (!%p6348_p8)
}
  0x83   :  { %s6352_s5 = scalar_lea.vmem %s91_s18, 48  ;;  %s6356_s7 = scalar_lea.vmem %s91_s18, 64 }
  0x84   :  { %p6353_p9 = scmp.ne.s32.totalorder %s91_s18, %s6352_s5  ;;  %p6357_p10 = scmp.lt.s32.totalorder %s91_s18, %s91_s18 }
  0x85   :  { %p6358_p11 = scmp.lt.s32.totalorder %s6356_s7, %s6352_s5 }
  0x87   :  { %p6359_p12 = por %p6358_p11, %p6357_p10 }
  0x89   :  { %p6360_p13 = pnand %p6359_p12, %p6353_p9 }
  0x8b   :  { %6363 = shalt.err (!%p6360_p13)
}
  0x8c   :  { %93 = dma.hbm_to_vmem [thread:$0]  %s9913_s8, 48, %s91_s18, [#allocation9]  }
  0x8d   :  { %s6364_s1 = scalar_lea.hbm %s9915_s10, 8192 }
  0x8e   :  { %p6365_p0 = scmp.ne.s32.totalorder %s9915_s10, %s6364_s1  ;;  %p6368_p1 = scmp.lt.u32.totalorder %s6364_s1, %s9915_s10 }
  0x90   :  { %p6370_p2 = pnand %p6368_p1, %p6365_p0 }
  0x92   :  { %6373 = shalt.err (!%p6370_p2)
}
  0x93   :  { %s6374_s9 = scalar_lea.vmem %s6669_s11, 8192  ;;  %p6379_p4 = scmp.lt.s32.totalorder %s6669_s11, %s6669_s11 }
  0x94   :  { %p6375_p3 = scmp.ne.s32.totalorder %s6669_s11, %s6374_s9  ;;  %p6380_p5 = scmp.lt.s32.totalorder %s6374_s9, %s6374_s9 }
  0x96   :  { %p6381_p6 = por %p6380_p5, %p6379_p4 }
  0x98   :  { %p6382_p7 = pnand %p6381_p6, %p6375_p3 }
  0x9a   :  { %6385 = shalt.err (!%p6382_p7)
}
  0x9b   :  { %s6478_s8 = smov 256   ;;  %s6479_s18 = smov 16  }
  0x9c   :  { %115 = dma.hbm_to_vmem [thread:$0]  %s9915_s10, 8192, %s6669_s11, [#allocation12], %s6478_s8, %s6478_s8, %s6479_s18  }
  0x9d   :  { %s6480_s24 = smov [#allocation16]   ;;  %s6481_s5 = smov [#allocation17]  }
  0x9e   :  { %s131_s30 = sshll.u32 %s6480_s24, 4  ;;  %s149_s7 = sshll.u32 %s6481_s5, 4  ;;  %s132_s30 = int_to_ptr.vmem [resolvable:$true] %s131_s30  ;;  %s6700_s7 = int_to_ptr.vmem [resolvable:$true] %s149_s7 }
  0x9f   :  { %s6386_s27 = scalar_lea.hbm %s9917_s12, 8192 }
  0xa0   :  { %p6387_p8 = scmp.ne.s32.totalorder %s9917_s12, %s6386_s27  ;;  %p6390_p9 = scmp.lt.u32.totalorder %s6386_s27, %s9917_s12 }
  0xa2   :  { %p6392_p10 = pnand %p6390_p9, %p6387_p8 }
  0xa4   :  { %6395 = shalt.err (!%p6392_p10)
}
  0xa5   :  { %s6396_s10 = scalar_lea.vmem %s132_s30, 8192  ;;  %p6401_p12 = scmp.lt.s32.totalorder %s132_s30, %s132_s30 }
  0xa6   :  { %p6397_p11 = scmp.ne.s32.totalorder %s132_s30, %s6396_s10  ;;  %p6402_p13 = scmp.lt.s32.totalorder %s6396_s10, %s6396_s10 }
  0xa8   :  { %p6403_p0 = por %p6402_p13, %p6401_p12 }
  0xaa   :  { %p6404_p1 = pnand %p6403_p0, %p6397_p11 }
  0xac   :  { %6407 = shalt.err (!%p6404_p1)
}
  0xad   :  { %137 = dma.hbm_to_vmem [thread:$0]  %s9917_s12, 8192, %s132_s30, [#allocation15], %s6478_s8, %s6478_s8, %s6479_s18  }
  0xae   :  { %s6408_s19 = scalar_lea.hbm %s9921_s16, 1024 }
  0xaf   :  { %p6409_p2 = scmp.ne.s32.totalorder %s9921_s16, %s6408_s19  ;;  %p6412_p3 = scmp.lt.u32.totalorder %s6408_s19, %s9921_s16 }
  0xb1   :  { %p6414_p4 = pnand %p6412_p3, %p6409_p2 }
  0xb3   :  { %6417 = shalt.err (!%p6414_p4)
}
  0xb4   :  { %s6418_s25 = scalar_lea.vmem %s6700_s7, 1024  ;;  %p6423_p6 = scmp.lt.s32.totalorder %s6700_s7, %s6700_s7 }
  0xb5   :  { %p6419_p5 = scmp.ne.s32.totalorder %s6700_s7, %s6418_s25  ;;  %p6424_p7 = scmp.lt.s32.totalorder %s6418_s25, %s6418_s25 }
  0xb7   :  { %p6425_p8 = por %p6424_p7, %p6423_p6 }
  0xb9   :  { %p6426_p9 = pnand %p6425_p8, %p6419_p5 }
  0xbb   :  { %6429 = shalt.err (!%p6426_p9)
}
  0xbc   :  { %s6482_s12 = smov 64   ;;  %s6483_s8 = smov 4  }
  0xbd   :  { %155 = dma.hbm_to_vmem [thread:$0]  %s9921_s16, 1024, %s6700_s7, [#allocation18], %s6482_s12, %s6482_s12, %s6483_s8  }
  0xbe   :  { %6452 = dma.done.wait [#allocation3], 1280  }
  0xbf   :  { %6453 = vsyncadd [#allocation3], 4294966016 }
  0xc0   :  { %6454 = dma.done.wait [#allocation6], 1344  }
  0xc1   :  { %6455 = vsyncadd [#allocation6], 4294965952 }
  0xc2   :  { %6456 = dma.done.wait [#allocation9], 3120  }
  0xc3   :  { %6457 = vsyncadd [#allocation9], 4294964176 }
  0xc4   :  { %6458 = dma.done.wait [#allocation12], 8240  }
  0xc5   :  { %6459 = vsyncadd [#allocation12], 4294959056 }
  0xc6   :  { %6460 = dma.done.wait [#allocation15], 8256  }
  0xc7   :  { %6461 = vsyncadd [#allocation15], 4294959040 }
  0xc8   :  { %6462 = dma.done.wait [#allocation18], 1024  }
  0xc9   :  { %6463 = vsyncadd [#allocation18], 4294966272  ;;  %v6484_v0 = vmov 0.0|0.0   ;;  %vm6485_vm0 = vmmov 0   ;;  %v9934_v1 = vmov 0.0   ;;  %v194_v2 = vld [vmem:[%s9919_s14] sm:$0xff] }
  0xca   :  { %5134 = vmatprep.subr.bf16.mxu0 %v6484_v0  ;;  %4923 = vmatprep.mubr.msk.f32.mxu0 %vm6485_vm0, %v9934_v1  ;;  %v195_v3 = vld [vmem:[%s9919_s14 + $0x8] sm:$0xff]  ;;  %v196_v4 = vld [vmem:[%s9919_s14 + $0x10] sm:$0xff]  ;;  %v197_v6 = vld [vmem:[%s9919_s14 + $0x18] sm:$0xff]  ;;  %vm307_vm1 = vcmask 261120   ;;  %v9932_v61 = vmov 0   ;;  %vm417_vm2 = vcmask 7168  }
  0xcb   :  { %v5135_v5 = vpack.c.bf16 %v195_v3, %v194_v2  ;;  %v5138_v7 = vpack.c.bf16 %v197_v6, %v196_v4  ;;  %v198_v8 = vld [vmem:[%s9919_s14 + $0x20] sm:$0xff]  ;;  %v199_v9 = vld [vmem:[%s9919_s14 + $0x28] sm:$0xff]  ;;  %v200_v10 = vld [vmem:[%s9919_s14 + $0x30] sm:$0xff]  ;;  %5182 = vset.pattern.permute.xlu1 %v9932_v61  ;;  %5181 = vset.pattern.permute.xlu0 %v9932_v61  ;;  %s10400_s20 = sld [smem:[#allocation158_spill]] }
  0xcc   :  { %v201_v11 = vld [vmem:[%s9919_s14 + $0x38] sm:$0xff]  ;;  %v5141_v12 = vpack.c.bf16 %v199_v9, %v198_v8  ;;  %v202_v13 = vld [vmem:[%s9919_s14 + $0x40] sm:$0xff]  ;;  %v203_v14 = vld [vmem:[%s9919_s14 + $0x48] sm:$0xff]  ;;  %762 = vmatprep.mubr.bf16.mxu1 %v9932_v61 }
  0xcd   :  { %5136 = vmatpush3.bf16.msra.mxu0 %v5135_v5  ;;  %v5144_v15 = vpack.c.bf16 %v201_v11, %v200_v10  ;;  %v204_v16 = vld [vmem:[%s9919_s14 + $0x50] sm:$0xff]  ;;  %v205_v17 = vld [vmem:[%s9919_s14 + $0x58] sm:$0xff]  ;;  %v5147_v18 = vpack.c.bf16 %v203_v14, %v202_v13  ;;  %v206_v19 = vld [vmem:[%s9919_s14 + $0x60] sm:$0xff] }
  0xce   :  { %5137 = vmatprep.subr.bf16.mxu0 %v6484_v0  ;;  %v207_v20 = vld [vmem:[%s9919_s14 + $0x68] sm:$0xff]  ;;  %v5150_v21 = vpack.c.bf16 %v205_v17, %v204_v16  ;;  %v208_v22 = vld [vmem:[%s9919_s14 + $0x70] sm:$0xff]  ;;  %v209_v23 = vld [vmem:[%s9919_s14 + $0x78] sm:$0xff] }
  0xcf   :  { %v5153_v24 = vpack.c.bf16 %v207_v20, %v206_v19  ;;  %v5156_v25 = vpack.c.bf16 %v209_v23, %v208_v22  ;;  %v4533_v26 = vld [vmem:[#allocation7 + $0x2] ss:$0 sm:$0xff]  ;;  %v4534_v27 = vld [vmem:[%s9920_s15] ss:$0 sm:$0xff]  ;;  %v292_v33 = vld [vmem:[#allocation2 + $0x28] sm:$0xff] }
  0xd0   :  { %v291_v29 = vld [vmem:[#allocation2 + $0x20] sm:$0xff]  ;;  %v288_v34 = vld [vmem:[#allocation2 + $0x8] sm:$0xff]  ;;  %v290_v41 = vld [vmem:[#allocation2 + $0x18] sm:$0xff] }
  0xd1   :  { %5139 = vmatpush3.bf16.msra.mxu0 %v5138_v7  ;;  %v287_v30 = vld [vmem:[#allocation2] sm:$0xff]  ;;  %v289_v42 = vld [vmem:[#allocation2 + $0x10] sm:$0xff]  ;;  %v294_v47 = vld [vmem:[#allocation2 + $0x38] sm:$0xff] }
  0xd2   :  { %5140 = vmatprep.subr.bf16.mxu0 %v6484_v0  ;;  %v293_v48 = vld [vmem:[#allocation2 + $0x30] sm:$0xff]  ;;  %v296_v53 = vld [vmem:[#allocation2 + $0x48] sm:$0xff]  ;;  %v295_v54 = vld [vmem:[#allocation2 + $0x40] sm:$0xff] }
  0xd3   :  { %v5183_v3 = vld [vmem:[%s9911_s6 + $0x4] ss:$12 sps:$4 sm:$0xff]   ;;  %v5185_v4 = vld [vmem:[%s9911_s6] ss:$12 sps:$4 sm:$0xff]   ;;  %v5186_v5 = vld [vmem:[%s9911_s6 + $0x8] ss:$12 sps:$4 sm:$0xff]  }
  0xd4   :  { %v5187_v8 = vld [vmem:[%s9911_s6 + $0x1c] ss:$12 sps:$4 sm:$0xff]   ;;  %v5190_v9 = vld [vmem:[%s9911_s6 + $0x20] ss:$12 sps:$4 sm:$0xff]   ;;  %730 = vmatprep.subr.bf16.mxu1 %v5183_v3  ;;  %v5189_v10 = vld [vmem:[%s9911_s6 + $0x18] ss:$12 sps:$4 sm:$0xff]  }
  0xd5   :  { %5142 = vmatpush3.bf16.msra.mxu0 %v5141_v12  ;;  %731 = vmatpush1.bf16.msra.mxu1 %v5185_v4  ;;  %v5191_v11 = vld [vmem:[%s9911_s6 + $0x34] ss:$12 sps:$4 sm:$0xff]   ;;  %v5194_v12 = vld [vmem:[%s9911_s6 + $0x38] ss:$12 sps:$4 sm:$0xff]   ;;  %v5193_v16 = vld [vmem:[%s9911_s6 + $0x30] ss:$12 sps:$4 sm:$0xff]  }
  0xd6   :  { %5143 = vmatprep.subr.bf16.mxu0 %v6484_v0  ;;  %732 = vmatprep.subr.bf16.mxu1 %v5187_v8  ;;  %v5195_v20 = vld [vmem:[%s9911_s6 + $0x4c] ss:$12 sps:$4 sm:$0xff]  }
  0xd9   :  { %5145 = vmatpush3.bf16.msra.mxu0 %v5144_v15  ;;  %733 = vmatpush1.bf16.msra.mxu1 %v5189_v10 }
  0xda   :  { %5146 = vmatprep.subr.bf16.mxu0 %v6484_v0  ;;  %734 = vmatprep.subr.bf16.mxu1 %v5191_v11 }
  0xdd   :  { %5148 = vmatpush3.bf16.msra.mxu0 %v5147_v18  ;;  %735 = vmatpush1.bf16.msra.mxu1 %v5193_v16 }
  0xde   :  { %5149 = vmatprep.subr.bf16.mxu0 %v6484_v0  ;;  %736 = vmatprep.subr.bf16.mxu1 %v5195_v20 }
  0xe1   :  { %5151 = vmatpush3.bf16.msra.mxu0 %v5150_v21  ;;  %v5198_v21 = vld [vmem:[%s9911_s6 + $0x50] ss:$12 sps:$4 sm:$0xff]  }
  0xe2   :  { %5152 = vmatprep.subr.bf16.mxu0 %v6484_v0 }
  0xe5   :  { %5154 = vmatpush3.bf16.msra.mxu0 %v5153_v24 }
  0xe6   :  { %5155 = vmatprep.subr.bf16.mxu0 %v6484_v0 }
  0xe9   :  { %5157 = vmatpush3.bf16.msra.mxu0 %v5156_v25 }
  0xea   :  { %4926 = vmatprep.subr.bf16.mxu0 %v5186_v5 }
  0xec   :  { %4924 = vmatmul.mubr.f32.vlgmr.msra.gmra.mrb[0].mxu0 %v4533_v26  ;;  %v5197_v26 = vld [vmem:[%s9911_s6 + $0x48] ss:$12 sps:$4 sm:$0xff]  }
  0xed   :  { %4927 = vmatpush3.bf16.msra.mxu0 %v5186_v5  ;;  %737 = vmatpush1.bf16.msra.mxu1 %v5197_v26 }
  0xee   :  { %4928 = vmatprep.subr.bf16.mxu0 %v5190_v9 }
  0xf1   :  { %4929 = vmatpush3.bf16.msra.mxu0 %v5190_v9 }
  0xf2   :  { %4930 = vmatprep.subr.bf16.mxu0 %v5194_v12 }
  0xf5   :  { %4931 = vmatpush3.bf16.msra.mxu0 %v5194_v12 }
  0xf6   :  { %4932 = vmatprep.subr.bf16.mxu0 %v5198_v21 }
  0xf9   :  { %4933 = vmatpush3.bf16.msra.mxu0 %v5198_v21 }
 0x1bf   :  { %v283_v28 = vpop.f32.mrb[0].mxu0 }
 0x1c0   :  { %v284_v31 = vadd.f32 %v4534_v27, %v283_v28  ;;  %v4925_v32 = vpop.f32.mrb[1].mxu0 }
 0x1c1   :  { %v5201_v32 = vld [vmem:[%s9911_s6 + $0x60] ss:$12 sps:$4 sm:$0xff]  }
 0x1c2   :  { %v301_v35 = vmul.f32 %v291_v29, %v284_v31  ;;  %v297_v36 = vmul.f32 %v287_v30, %v284_v31  ;;  %v302_v39 = vmul.f32 %v292_v33, %v284_v31  ;;  %v298_v40 = vmul.f32 %v288_v34, %v284_v31  ;;  %v5199_v29 = vld [vmem:[%s9911_s6 + $0x64] ss:$12 sps:$4 sm:$0xff]   ;;  %v5202_v30 = vld [vmem:[%s9911_s6 + $0x68] ss:$12 sps:$4 sm:$0xff]  }
 0x1c3   :  { %v300_v45 = vmul.f32 %v290_v41, %v284_v31  ;;  %v299_v46 = vmul.f32 %v289_v42, %v284_v31  ;;  %v304_v51 = vmul.f32 %v294_v47, %v284_v31  ;;  %v303_v52 = vmul.f32 %v293_v48, %v284_v31  ;;  %738 = vmatprep.subr.bf16.mxu1 %v5199_v29 }
 0x1c4   :  { %v320_v37 = vsel %vm307_vm1, %v301_v35, 0.0  ;;  %v308_v38 = vsel %vm307_vm1, %v297_v36, 0.0  ;;  %v323_v43 = vsel %vm307_vm1, %v302_v39, 0.0  ;;  %v311_v44 = vsel %vm307_vm1, %v298_v40, 0.0  ;;  %v5203_v36 = vld [vmem:[%s9911_s6 + $0x7c] ss:$12 sps:$4 sm:$0xff]   ;;  %4934 = vmatprep.subr.bf16.mxu0 %v5202_v30  ;;  %739 = vmatpush1.bf16.msra.mxu1 %v5201_v32 }
 0x1c5   :  { %321 = vadd.xlane.f32.xlu1 %v320_v37  ;;  %309 = vadd.xlane.f32.xlu0 %v308_v38  ;;  %v317_v49 = vsel %vm307_vm1, %v300_v45, 0.0  ;;  %v314_v50 = vsel %vm307_vm1, %v299_v46, 0.0  ;;  %v329_v55 = vsel %vm307_vm1, %v304_v51, 0.0  ;;  %v326_v56 = vsel %vm307_vm1, %v303_v52, 0.0  ;;  %v5206_v37 = vld [vmem:[%s9911_s6 + $0x80] ss:$12 sps:$4 sm:$0xff]  }
 0x1c6   :  { %v306_v57 = vmul.f32 %v296_v53, %v284_v31  ;;  %v305_v58 = vmul.f32 %v295_v54, %v284_v31  ;;  %4935 = vmatpush3.bf16.msra.mxu0 %v5202_v30  ;;  %740 = vmatprep.subr.bf16.mxu1 %v5203_v36  ;;  %v5210_v45 = vld [vmem:[%s9911_s6 + $0x98] ss:$12 sps:$4 sm:$0xff]  }
 0x1c7   :  { %4936 = vmatprep.subr.bf16.mxu0 %v5206_v37  ;;  %v5211_v51 = vld [vmem:[%s9911_s6 + $0xac] ss:$12 sps:$4 sm:$0xff]   ;;  %v401_v30 = vld [vmem:[%s9908_s3 + $0x20] sm:$0xff] }
 0x1c8   :  { %v335_v59 = vsel %vm307_vm1, %v306_v57, 0.0  ;;  %v332_v60 = vsel %vm307_vm1, %v305_v58, 0.0 }
 0x1c9   :  { %324 = vadd.xlane.f32.xlu1 %v323_v43  ;;  %312 = vadd.xlane.f32.xlu0 %v311_v44  ;;  %v5205_v43 = vld [vmem:[%s9911_s6 + $0x78] ss:$12 sps:$4 sm:$0xff]   ;;  %v5207_v44 = vld [vmem:[%s9911_s6 + $0x94] ss:$12 sps:$4 sm:$0xff]  }
 0x1ca   :  { %741 = vmatpush1.bf16.msra.mxu1 %v5205_v43  ;;  %4937 = vmatpush3.bf16.msra.mxu0 %v5206_v37 }
 0x1cb   :  { %742 = vmatprep.subr.bf16.mxu1 %v5207_v44  ;;  %4938 = vmatprep.subr.bf16.mxu0 %v5210_v45 }
 0x1cd   :  { %318 = vadd.xlane.f32.xlu1 %v317_v49  ;;  %315 = vadd.xlane.f32.xlu0 %v314_v50  ;;  %v5209_v50 = vld [vmem:[%s9911_s6 + $0x90] ss:$12 sps:$4 sm:$0xff]  }
 0x1ce   :  { %743 = vmatpush1.bf16.msra.mxu1 %v5209_v50  ;;  %4939 = vmatpush3.bf16.msra.mxu0 %v5210_v45  ;;  %v404_v45 = vld [vmem:[%s9908_s3 + $0x38] sm:$0xff]  ;;  %v405_v50 = vld [vmem:[%s9908_s3 + $0x40] sm:$0xff] }
 0x1cf   :  { %744 = vmatprep.subr.bf16.mxu1 %v5211_v51 }
 0x1d1   :  { %330 = vadd.xlane.f32.xlu1 %v329_v55  ;;  %327 = vadd.xlane.f32.xlu0 %v326_v56 }
 0x1d5   :  { %336 = vadd.xlane.f32.xlu1 %v335_v59  ;;  %333 = vadd.xlane.f32.xlu0 %v332_v60 }
 0x252   :  { %v6797_v62 = vpop.xlane.xlu1 %321  ;;  %v310_v63 = vpop.xlane.xlu0 %309 }
 0x253   :  { %v338_v15 = vmax.f32 %v310_v63, %v6797_v62 }
 0x256   :  { %v6799_v0 = vpop.xlane.xlu1 %324  ;;  %v313_v2 = vpop.xlane.xlu0 %312 }
 0x257   :  { %v339_v17 = vmax.f32 %v313_v2, %v6799_v0 }
 0x25a   :  { %v6810_v6 = vpop.xlane.xlu1 %318  ;;  %v316_v7 = vpop.xlane.xlu0 %315 }
 0x25e   :  { %v6827_v13 = vpop.xlane.xlu1 %330  ;;  %v6829_v14 = vpop.xlane.xlu0 %327 }
 0x25f   :  { %v341_v18 = vmax.f32 %v6810_v6, %v6827_v13  ;;  %v340_v19 = vmax.f32 %v316_v7, %v6829_v14 }
 0x261   :  { %v345_v27 = vmax.f32 %v340_v19, %v341_v18  ;;  %v397_v18 = vld [vmem:[%s9908_s3] sm:$0xff] }
 0x262   :  { %v6845_v22 = vpop.xlane.xlu1 %336  ;;  %v6847_v23 = vpop.xlane.xlu0 %333 }
 0x263   :  { %v343_v24 = vmax.f32 %v339_v17, %v6845_v22  ;;  %v342_v25 = vmax.f32 %v338_v15, %v6847_v23 }
 0x265   :  { %v344_v28 = vmax.f32 %v342_v25, %v343_v24  ;;  %v400_v25 = vld [vmem:[%s9908_s3 + $0x18] sm:$0xff] }
 0x267   :  { %v346_v31 = vmax.f32 %v344_v28, %v345_v27 }
 0x269   :  { %v347_v33 = vsub.f32 %v310_v63, %v346_v31  ;;  %v348_v34 = vsub.f32 %v313_v2, %v346_v31  ;;  %v349_v35 = vsub.f32 %v316_v7, %v346_v31  ;;  %v350_v38 = vsub.f32 %v6810_v6, %v346_v31 }
 0x26a   :  { %v351_v41 = vsub.f32 %v6797_v62, %v346_v31  ;;  %v352_v46 = vsub.f32 %v6799_v0, %v346_v31  ;;  %v353_v48 = vsub.f32 %v6829_v14, %v346_v31  ;;  %v354_v52 = vsub.f32 %v6827_v13, %v346_v31 }
 0x26b   :  { %v357_v39 = vmul.f32 1.442695, %v347_v33  ;;  %v359_v40 = vmul.f32 1.442695, %v348_v34  ;;  %v361_v42 = vmul.f32 1.442695, %v349_v35  ;;  %v355_v54 = vsub.f32 %v6847_v23, %v346_v31 }
 0x26c   :  { %v363_v47 = vmul.f32 1.442695, %v350_v38  ;;  %v365_v49 = vmul.f32 1.442695, %v351_v41  ;;  %v367_v53 = vmul.f32 1.442695, %v352_v46  ;;  %v356_v56 = vsub.f32 %v6845_v22, %v346_v31 }
 0x26d   :  { %5447 = vpow2.f32 %v357_v39  ;;  %v369_v55 = vmul.f32 1.442695, %v353_v48  ;;  %v371_v57 = vmul.f32 1.442695, %v354_v52  ;;  %v373_v60 = vmul.f32 1.442695, %v355_v54 }
 0x26e   :  { %5449 = vpow2.f32 %v359_v40  ;;  %v375_v0 = vmul.f32 1.442695, %v356_v56  ;;  %v398_v22 = vld [vmem:[%s9908_s3 + $0x8] sm:$0xff]  ;;  %v399_v23 = vld [vmem:[%s9908_s3 + $0x10] sm:$0xff] }
 0x26f   :  { %5451 = vpow2.f32 %v361_v42  ;;  %v402_v35 = vld [vmem:[%s9908_s3 + $0x28] sm:$0xff]  ;;  %v403_v40 = vld [vmem:[%s9908_s3 + $0x30] sm:$0xff] }
 0x270   :  { %5453 = vpow2.f32 %v363_v47 }
 0x271   :  { %5455 = vpow2.f32 %v365_v49 }
 0x272   :  { %5457 = vpow2.f32 %v367_v53 }
 0x273   :  { %5459 = vpow2.f32 %v369_v55  ;;  %v406_v55 = vld [vmem:[%s9908_s3 + $0x48] sm:$0xff] }
 0x274   :  { %5461 = vpow2.f32 %v371_v57 }
 0x275   :  { %5463 = vpow2.f32 %v373_v60 }
 0x276   :  { %5465 = vpow2.f32 %v375_v0 }
 0x277   :  { %v5448_v58 = vpop.eup %5447 }
 0x278   :  { %v5450_v59 = vpop.eup %5449 }
 0x279   :  { %v377_v62 = vadd.f32 %v5450_v59, %v5448_v58  ;;  %v5452_v63 = vpop.eup %5451 }
 0x27a   :  { %v5454_v3 = vpop.eup %5453 }
 0x27b   :  { %v378_v2 = vadd.f32 %v5452_v63, %v377_v62  ;;  %v5456_v5 = vpop.eup %5455 }
 0x27c   :  { %v5458_v7 = vpop.eup %5457 }
 0x27d   :  { %v379_v4 = vadd.f32 %v5454_v3, %v378_v2  ;;  %v5460_v9 = vpop.eup %5459 }
 0x27e   :  { %v5462_v11 = vpop.eup %5461 }
 0x27f   :  { %v380_v6 = vadd.f32 %v5456_v5, %v379_v4  ;;  %v5464_v13 = vpop.eup %5463 }
 0x280   :  { %v5466_v15 = vpop.eup %5465 }
 0x281   :  { %v381_v8 = vadd.f32 %v5458_v7, %v380_v6 }
 0x283   :  { %v382_v10 = vadd.f32 %v5460_v9, %v381_v8 }
 0x285   :  { %v383_v12 = vadd.f32 %v5462_v11, %v382_v10 }
 0x287   :  { %v384_v14 = vadd.f32 %v5464_v13, %v383_v12  ;;  %v5214_v12 = vld [vmem:[%s9911_s6 + $0xb0] ss:$12 sps:$4 sm:$0xff]  }
 0x288   :  { %4940 = vmatprep.subr.bf16.mxu0 %v5214_v12 }
 0x289   :  { %v385_v16 = vadd.f32 %v5466_v15, %v384_v14  ;;  %v542_v14 = vld [vmem:[%s10400_s20 + $0x8] sm:$0xff]  ;;  %4941 = vmatpush3.bf16.msra.mxu0 %v5214_v12 }
 0x28a   :  { %4950 = vmatprep.subr.bf16.mxu0 %v9934_v1 }
 0x28b   :  { %5467 = vrcp.f32 %v385_v16 }
 0x295   :  { %v5468_v17 = vpop.eup %5467 }
 0x296   :  { %v387_v19 = vmul.f32 %v5468_v17, %v5448_v58  ;;  %v388_v20 = vmul.f32 %v5468_v17, %v5450_v59  ;;  %v389_v21 = vmul.f32 %v5468_v17, %v5452_v63  ;;  %v390_v24 = vmul.f32 %v5468_v17, %v5454_v3 }
 0x297   :  { %v391_v27 = vmul.f32 %v5468_v17, %v5456_v5  ;;  %v392_v31 = vmul.f32 %v5468_v17, %v5458_v7  ;;  %v393_v37 = vmul.f32 %v5468_v17, %v5460_v9  ;;  %v394_v42 = vmul.f32 %v5468_v17, %v5462_v11  ;;  %v5213_v11 = vld [vmem:[%s9911_s6 + $0xa8] ss:$12 sps:$4 sm:$0xff]  }
 0x298   :  { %v407_v26 = vmul.f32 %v397_v18, %v387_v19  ;;  %v408_v28 = vmul.f32 %v398_v22, %v388_v20  ;;  %v409_v29 = vmul.f32 %v399_v23, %v389_v21  ;;  %v410_v32 = vmul.f32 %v400_v25, %v390_v24  ;;  %745 = vmatpush1.bf16.msra.mxu1 %v5213_v11  ;;  %v5217_v18 = vld [vmem:[#allocation8] ss:$12 sps:$4 sm:$0xff]   ;;  %v544_v20 = vld [vmem:[%s10400_s20 + $0x18] sm:$0xff]  ;;  %v5219_v24 = vld [vmem:[#allocation8 + $0x1c] ss:$12 sps:$4 sm:$0xff]  }
 0x299   :  { %v411_v38 = vmul.f32 %v401_v30, %v391_v27  ;;  %v6915_v43 = vmul.f32 %v402_v35, %v392_v31  ;;  %v395_v47 = vmul.f32 %v5468_v17, %v5464_v13  ;;  %v6921_v48 = vmul.f32 %v403_v40, %v393_v37  ;;  %v541_v13 = vld [vmem:[%s10400_s20] sm:$0xff]  ;;  %v543_v19 = vld [vmem:[%s10400_s20 + $0x10] sm:$0xff]  ;;  %v5218_v21 = vld [vmem:[#allocation8 + $0x8] ss:$12 sps:$4 sm:$0xff]  }
 0x29a   :  { %v418_v33 = vsel %vm417_vm2, %v407_v26, 0.0  ;;  %v419_v34 = vsel %vm417_vm2, %v408_v28, 0.0  ;;  %v421_v39 = vsel %vm417_vm2, %v409_v29, 0.0  ;;  %v423_v44 = vsel %vm417_vm2, %v410_v32, 0.0  ;;  %v5221_v25 = vld [vmem:[#allocation8 + $0x18] ss:$12 sps:$4 sm:$0xff]  }
 0x29b   :  { %v420_v36 = vadd.f32 %v419_v34, %v418_v33  ;;  %v425_v49 = vsel %vm417_vm2, %v411_v38, 0.0  ;;  %v396_v52 = vmul.f32 %v5468_v17, %v5466_v15  ;;  %v6927_v53 = vmul.f32 %v404_v45, %v394_v42  ;;  %v6962_v17 = vld [vmem:[#allocation8 + $0x4] ss:$12 sps:$4 sm:$0xff]   ;;  %v5229_v33 = vld [vmem:[#allocation8 + $0x48] ss:$12 sps:$4 sm:$0xff]   ;;  %v545_v34 = vld [vmem:[%s10400_s20 + $0x20] sm:$0xff] }
 0x29c   :  { %v427_v54 = vsel %vm417_vm2, %v6915_v43, 0.0  ;;  %v6934_v57 = vmul.f32 %v405_v50, %v395_v47  ;;  %v429_v58 = vsel %vm417_vm2, %v6921_v48, 0.0  ;;  %v549_v15 = vpack.c.bf16 %v542_v14, %v541_v13  ;;  %1176 = vmatprep.subr.bf16.mxu1 %v6962_v17  ;;  %v5226_v30 = vld [vmem:[#allocation8 + $0x38] ss:$12 sps:$4 sm:$0xff]   ;;  %v6994_v40 = vld [vmem:[#allocation8 + $0x60] ss:$12 sps:$4 sm:$0xff]  }
 0x29d   :  { %v422_v41 = vadd.f32 %v421_v39, %v420_v36  ;;  %v416_v60 = vmul.f32 %v406_v55, %v396_v52  ;;  %v431_v62 = vsel %vm417_vm2, %v6927_v53, 0.0  ;;  %v550_v22 = vpack.c.bf16 %v544_v20, %v543_v19  ;;  %v546_v35 = vld [vmem:[%s10400_s20 + $0x28] sm:$0xff]  ;;  %v6987_v36 = vld [vmem:[#allocation8 + $0x50] ss:$12 sps:$4 sm:$0xff]   ;;  %v7016_v47 = vld [vmem:[#allocation8 + $0x80] ss:$12 sps:$4 sm:$0xff]  }
 0x29e   :  { %v433_v0 = vsel %vm417_vm2, %v6934_v57, 0.0  ;;  %4942 = vmatprep.mubr.bf16.mxu0 %v549_v15  ;;  %763 = vmatmul.mubr.bf16.vlgmr.msra.gmra.mrb[0].mxu1 %v549_v15  ;;  %v551_v37 = vpack.c.bf16 %v546_v35, %v545_v34  ;;  %v6992_v39 = vld [vmem:[#allocation8 + $0x64] ss:$12 sps:$4 sm:$0xff]   ;;  %v7032_v52 = vld [vmem:[#allocation8 + $0xac] ss:$12 sps:$4 sm:$0xff]   ;;  %v455_v14 = vld [vmem:[#allocation5 + $0x30] sm:$0xff] }
 0x29f   :  { %v424_v46 = vadd.f32 %v423_v44, %v422_v41  ;;  %v435_v3 = vsel %vm417_vm2, %v416_v60, 0.0  ;;  %772 = vmatprep.mubr.bf16.mxu1 %v9932_v61  ;;  %1177 = vmatpush1.bf16.msra.mxu1 %v5217_v18  ;;  %v6997_v41 = vld [vmem:[#allocation8 + $0x68] ss:$12 sps:$4 sm:$0xff]   ;;  %v7007_v44 = vld [vmem:[#allocation8 + $0x78] ss:$12 sps:$4 sm:$0xff]   ;;  %v547_v45 = vld [vmem:[%s10400_s20 + $0x30] sm:$0xff] }
 0x2a0   :  { %4943 = vmatmul.mubr.bf16.vlgmr.msra.gmra.mrb[4].mxu0 %v550_v22  ;;  %1178 = vmatprep.subr.bf16.mxu1 %v5219_v24  ;;  %v7028_v50 = vld [vmem:[#allocation8 + $0x90] ss:$12 sps:$4 sm:$0xff]   ;;  %v454_v11 = vld [vmem:[#allocation5 + $0x28] sm:$0xff]  ;;  %v456_v19 = vld [vmem:[#allocation5 + $0x38] sm:$0xff] }
 0x2a1   :  { %v426_v51 = vadd.f32 %v425_v49, %v424_v46  ;;  %4951 = vmatpush3.bf16.msra.mxu0 %v5218_v21  ;;  %4946 = vmatprep.mubr.bf16.mxu0 %v551_v37  ;;  %v548_v46 = vld [vmem:[%s10400_s20 + $0x38] sm:$0xff]  ;;  %v7045_v55 = vld [vmem:[#allocation13 + $0x4] ss:$16 sps:$4 sm:$0xff]  }
 0x2a2   :  { %4952 = vmatprep.subr.bf16.mxu0 %v9934_v1  ;;  %v7026_v49 = vld [vmem:[#allocation8 + $0x94] ss:$12 sps:$4 sm:$0xff]   ;;  %v4535_v34 = vld [vmem:[%s9909_s4] ss:$0 sm:$0xff] }
 0x2a3   :  { %v428_v56 = vadd.f32 %v427_v54, %v426_v51  ;;  %1179 = vmatpush1.bf16.msra.mxu1 %v5221_v25  ;;  %v7030_v51 = vld [vmem:[#allocation8 + $0x98] ss:$12 sps:$4 sm:$0xff]   ;;  %v7039_v54 = vld [vmem:[#allocation8 + $0xb0] ss:$12 sps:$4 sm:$0xff]  }
 0x2a4   :  { %v457_v25 = vld [vmem:[#allocation5 + $0x40] sm:$0xff] }
 0x2a5   :  { %v430_v59 = vadd.f32 %v429_v58, %v428_v56  ;;  %v7047_v56 = vld [vmem:[#allocation13 + $0xc] ss:$16 sps:$4 sm:$0xff]  }
 0x2a6   :  { %773 = vmatmul.mubr.bf16.gmra.mrb[4].mxu1 %v550_v22 }
 0x2a7   :  { %v432_v63 = vadd.f32 %v431_v62, %v430_v59  ;;  %782 = vmatprep.mubr.bf16.mxu1 %v9932_v61  ;;  %v449_v62 = vld [vmem:[#allocation5] sm:$0xff] }
 0x2a9   :  { %v434_v2 = vadd.f32 %v433_v0, %v432_v63  ;;  %v451_v0 = vld [vmem:[#allocation5 + $0x10] sm:$0xff] }
 0x2ab   :  { %v436_v4 = vadd.f32 %v435_v3, %v434_v2 }
 0x2ad   :  { %v437_v5 = vmax.f32 %v436_v4, 1e-12 }
 0x2ae   :  { %783 = vmatmul.mubr.bf16.gmra.mrb[8].mxu1 %v551_v37 }
 0x2af   :  { %5469 = vrcp.f32 %v437_v5  ;;  %792 = vmatprep.mubr.bf16.mxu1 %v9932_v61  ;;  %v452_v5 = vld [vmem:[#allocation5 + $0x18] sm:$0xff] }
 0x2b9   :  { %v6943_v6 = vpop.eup %5469 }
 0x2ba   :  { %v440_v7 = vmul.f32 %v6943_v6, %v408_v28  ;;  %v439_v8 = vmul.f32 %v6943_v6, %v407_v26  ;;  %v441_v9 = vmul.f32 %v6943_v6, %v409_v29  ;;  %v448_v10 = vmul.f32 %v6943_v6, %v416_v60  ;;  %v5222_v26 = vld [vmem:[#allocation8 + $0x20] ss:$12 sps:$4 sm:$0xff]   ;;  %v5225_v29 = vld [vmem:[#allocation8 + $0x30] ss:$12 sps:$4 sm:$0xff]   ;;  %v450_v60 = vld [vmem:[#allocation5 + $0x8] sm:$0xff] }
 0x2bb   :  { %v442_v16 = vmul.f32 %v6943_v6, %v410_v32  ;;  %v443_v23 = vmul.f32 %v6943_v6, %v411_v38  ;;  %v444_v27 = vmul.f32 %v6943_v6, %v6915_v43  ;;  %v5223_v28 = vld [vmem:[#allocation8 + $0x34] ss:$12 sps:$4 sm:$0xff]   ;;  %4953 = vmatpush3.bf16.msra.mxu0 %v5222_v26  ;;  %v445_v31 = vmul.f32 %v6943_v6, %v6921_v48  ;;  %v5227_v32 = vld [vmem:[#allocation8 + $0x4c] ss:$12 sps:$4 sm:$0xff]   ;;  %v7004_v43 = vld [vmem:[#allocation8 + $0x7c] ss:$12 sps:$4 sm:$0xff]  }
 0x2bc   :  { %466 = vperm.xlu1 %5182, %v440_v7   ;;  %461 = vperm.xlu0 %5181, %v439_v8   ;;  %v446_v38 = vmul.f32 %v6943_v6, %v6927_v53  ;;  %v447_v42 = vmul.f32 %v6943_v6, %v6934_v57  ;;  %v552_v48 = vpack.c.bf16 %v548_v46, %v547_v45  ;;  %v7037_v53 = vld [vmem:[#allocation8 + $0xa8] ss:$12 sps:$4 sm:$0xff]   ;;  %v453_v7 = vld [vmem:[#allocation5 + $0x20] sm:$0xff] }
 0x2bd   :  { %1180 = vmatprep.subr.bf16.mxu1 %v5223_v28  ;;  %4954 = vmatprep.subr.bf16.mxu0 %v9934_v1  ;;  %v7062_v46 = vld [vmem:[#allocation13 + $0x24] ss:$16 sps:$4 sm:$0xff]  }
 0x2be   :  { %1181 = vmatpush1.bf16.msra.mxu1 %v5225_v29  ;;  %4947 = vmatmul.mubr.bf16.gmra.mrb[8].mxu0 %v552_v48 }
 0x2bf   :  { %4955 = vmatpush3.bf16.msra.mxu0 %v5226_v30  ;;  %1182 = vmatprep.subr.bf16.mxu1 %v5227_v32 }
 0x2c0   :  { %471 = vperm.xlu1 %5182, %v441_v9   ;;  %506 = vperm.xlu0 %5181, %v448_v10  }
 0x2c1   :  { %4956 = vmatprep.subr.bf16.mxu0 %v9934_v1  ;;  %4966 = vmatprep.mubr.msk.bf16.mxu0 %vm6485_vm0, %v9934_v1 }
 0x2c2   :  { %1183 = vmatpush1.bf16.msra.mxu1 %v5229_v33 }
 0x2c3   :  { %4957 = vmatpush3.bf16.msra.mxu0 %v6987_v36  ;;  %1184 = vmatprep.subr.bf16.mxu1 %v6992_v39 }
 0x2c4   :  { %476 = vperm.xlu1 %5182, %v442_v16   ;;  %4958 = vmatprep.subr.bf16.mxu0 %v9934_v1 }
 0x2c5   :  { %793 = vmatmul.mubr.bf16.gmra.mrb[12].mxu1 %v552_v48  ;;  %v7064_v48 = vld [vmem:[#allocation13 + $0x2c] ss:$16 sps:$4 sm:$0xff]  }
 0x2c6   :  { %1185 = vmatpush1.bf16.msra.mxu1 %v6994_v40  ;;  %1208 = vmatprep.mubr.bf16.mxu1 %v9932_v61 }
 0x2c7   :  { %4959 = vmatpush3.bf16.msra.mxu0 %v6997_v41  ;;  %1186 = vmatprep.subr.bf16.mxu1 %v7004_v43 }
 0x2c8   :  { %481 = vperm.xlu1 %5182, %v443_v23   ;;  %4960 = vmatprep.subr.bf16.mxu0 %v9934_v1 }
 0x2ca   :  { %1187 = vmatpush1.bf16.msra.mxu1 %v7007_v44 }
 0x2cb   :  { %4961 = vmatpush3.bf16.msra.mxu0 %v7016_v47  ;;  %1188 = vmatprep.subr.bf16.mxu1 %v7026_v49 }
 0x2cc   :  { %486 = vperm.xlu1 %5182, %v444_v27   ;;  %4962 = vmatprep.subr.bf16.mxu0 %v9934_v1  ;;  %v458_v27 = vld [vmem:[#allocation5 + $0x48] sm:$0xff] }
 0x2ce   :  { %1189 = vmatpush1.bf16.msra.mxu1 %v7028_v50 }
 0x2cf   :  { %4963 = vmatpush3.bf16.msra.mxu0 %v7030_v51  ;;  %1190 = vmatprep.subr.bf16.mxu1 %v7032_v52 }
 0x2d0   :  { %491 = vperm.xlu1 %5182, %v445_v31   ;;  %4964 = vmatprep.subr.bf16.mxu0 %v9934_v1 }
 0x2d2   :  { %1191 = vmatpush1.bf16.msra.mxu1 %v7037_v53 }
 0x2d3   :  { %4965 = vmatpush3.bf16.msra.mxu0 %v7039_v54  ;;  %1621 = vmatprep.subr.bf16.mxu1 %v7045_v55 }
 0x2d4   :  { %496 = vperm.xlu1 %5182, %v446_v38   ;;  %1662 = vmatprep.subr.bf16.mxu0 %v7047_v56  ;;  %v7056_v38 = vld [vmem:[#allocation13] ss:$16 sps:$4 sm:$0xff]  }
 0x2d8   :  { %501 = vperm.xlu1 %5182, %v447_v42   ;;  %v7058_v42 = vld [vmem:[#allocation13 + $0x8] ss:$16 sps:$4 sm:$0xff]  }
 0x33b   :  { %v467_v57 = vpop.permute.xlu1 %466  ;;  %v462_v63 = vpop.permute.xlu0 %461 }
 0x33c   :  { %v510_v3 = vmul.f32 %v467_v57, %v450_v60  ;;  %v509_v4 = vmul.f32 %v462_v63, %v449_v62  ;;  %v7068_v57 = vld [vmem:[#allocation13 + $0x20] ss:$16 sps:$4 sm:$0xff]   ;;  %v7076_v60 = vld [vmem:[#allocation13 + $0x4c] ss:$16 sps:$4 sm:$0xff]   ;;  %v7082_v63 = vld [vmem:[#allocation13 + $0x48] ss:$16 sps:$4 sm:$0xff]  }
 0x33d   :  { %v7080_v62 = vld [vmem:[#allocation13 + $0x40] ss:$16 sps:$4 sm:$0xff]  }
 0x33e   :  { %v519_v9 = vadd.f32 %v510_v3, %v509_v4 }
 0x33f   :  { %v472_v58 = vpop.permute.xlu1 %471  ;;  %v507_v28 = vpop.permute.xlu0 %506 }
 0x340   :  { %v511_v6 = vmul.f32 %v472_v58, %v451_v0  ;;  %v518_v32 = vmul.f32 %v507_v28, %v458_v27  ;;  %v7070_v58 = vld [vmem:[#allocation13 + $0x28] ss:$16 sps:$4 sm:$0xff]   ;;  %v587_v0 = vlaneseq }
 0x342   :  { %v520_v12 = vadd.f32 %v519_v9, %v511_v6 }
 0x343   :  { %v477_v59 = vpop.permute.xlu1 %476 }
 0x344   :  { %v512_v10 = vmul.f32 %v477_v59, %v452_v5  ;;  %v7074_v59 = vld [vmem:[#allocation13 + $0x44] ss:$16 sps:$4 sm:$0xff]   ;;  %v585_v5 = vld [vmem:[#allocation10] sm:$0x7] }
 0x346   :  { %v521_v16 = vadd.f32 %v520_v12, %v512_v10 }
 0x347   :  { %v482_v2 = vpop.permute.xlu1 %481 }
 0x348   :  { %v513_v13 = vmul.f32 %v482_v2, %v453_v7  ;;  %v7088_v2 = vshrl.u32 %v587_v0, 7 }
 0x34a   :  { %v522_v20 = vadd.f32 %v521_v16, %v513_v13  ;;  %v7091_v3 = vsub.s32 0, %v7088_v2  ;;  %v7094_v4 = vsub.s32 2, %v7088_v2  ;;  %v7097_v6 = vsub.s32 1, %v7088_v2 }
 0x34b   :  { %v487_v8 = vpop.permute.xlu1 %486 }
 0x34c   :  { %v514_v18 = vmul.f32 %v487_v8, %v454_v11  ;;  %v7100_v7 = vrot.slane %v585_v5, %v7091_v3  ;;  %v7103_v8 = vrot.slane %v585_v5, %v7094_v4  ;;  %v7108_v10 = vrot.slane %v585_v5, %v7097_v6 }
 0x34e   :  { %v523_v23 = vadd.f32 %v522_v20, %v514_v18 }
 0x34f   :  { %v492_v15 = vpop.permute.xlu1 %491 }
 0x350   :  { %v515_v21 = vmul.f32 %v492_v15, %v455_v14 }
 0x352   :  { %v524_v26 = vadd.f32 %v523_v23, %v515_v21 }
 0x353   :  { %v497_v22 = vpop.permute.xlu1 %496 }
 0x354   :  { %v516_v24 = vmul.f32 %v497_v22, %v456_v19 }
 0x356   :  { %v525_v30 = vadd.f32 %v524_v26, %v516_v24 }
 0x357   :  { %v502_v29 = vpop.permute.xlu1 %501 }
 0x358   :  { %v517_v31 = vmul.f32 %v502_v29, %v457_v25 }
 0x35a   :  { %v526_v33 = vadd.f32 %v525_v30, %v517_v31 }
 0x35c   :  { %v527_v35 = vadd.f32 %v526_v33, %v518_v32 }
 0x35e   :  { %v7054_v37 = vadd.f32 %v4535_v34, %v527_v35 }
 0x360   :  { %v1031_v45 = vpack.c.bf16 %v7054_v37, %v7054_v37 }
 0x362   :  { %1209 = vmatmul.mubr.bf16.vlgmr.msra.gmra.mrb[16].mxu1 %v1031_v45  ;;  %4967 = vmatmul.mubr.bf16.vlgmr.msra.gmra.mrb[12].mxu0 %v1031_v45 }
 0x363   :  { %1622 = vmatpush1.bf16.msra.mxu1 %v7056_v38  ;;  %1663 = vmatpush1.bf16.msra.mxu0 %v7058_v42 }
 0x364   :  { %1623 = vmatprep.subr.bf16.mxu1 %v7062_v46  ;;  %1664 = vmatprep.subr.bf16.mxu0 %v7064_v48 }
 0x367   :  { %1624 = vmatpush1.bf16.msra.mxu1 %v7068_v57  ;;  %1665 = vmatpush1.bf16.msra.mxu0 %v7070_v58 }
 0x368   :  { %1625 = vmatprep.subr.bf16.mxu1 %v7074_v59  ;;  %1666 = vmatprep.subr.bf16.mxu0 %v7076_v60 }
 0x36b   :  { %1626 = vmatpush1.bf16.msra.mxu1 %v7080_v62  ;;  %1667 = vmatpush1.bf16.msra.mxu0 %v7082_v63 }
 0x371   :  { %v7105_v9 = vpop.f32.mrb[0].mxu1 }
 0x372   :  { %v7110_v11 = vpop.f32.mrb[1].mxu1 }
 0x373   :  { %v768_v12 = vpop.f32.mrb[2].mxu1  ;;  %v4944_v13 = vpop.f32.mrb[4].mxu0 }
 0x374   :  { %v7113_v14 = vadd.f32 %v768_v12, %v7100_v7  ;;  %v770_v15 = vpop.f32.mrb[3].mxu1  ;;  %v7116_v16 = vadd.f32 %v4944_v13, %v7103_v8  ;;  %v7118_v18 = vpop.f32.mrb[5].mxu0 }
 0x375   :  { %v7121_v19 = vadd.f32 %v770_v15, %v7108_v10  ;;  %v4945_v20 = vpop.f32.mrb[6].mxu0 }
 0x376   :  { %10401 = vst [vmem:[#allocation27_spill] sm:$0xff] %v7113_v14  ;;  %10402 = vst [vmem:[#allocation28_spill] sm:$0xff] %v7116_v16  ;;  %v7124_v21 = vadd.f32 %v4945_v20, %v7103_v8  ;;  %v840_v22 = vpop.f32.mrb[7].mxu0  ;;  %v7239_v16 = vld [vmem:[#allocation13 + $0x10c] ss:$16 sps:$4 sm:$0xff]  }
 0x377   :  { %10403 = vst [vmem:[#allocation29_spill] sm:$0xff] %v7121_v19  ;;  %v7127_v23 = vadd.f32 %v840_v22, %v7103_v8  ;;  %10436 = vst [vmem:[#allocation62_spill] sm:$0xff] %v7239_v16  ;;  %v7251_v19 = vld [vmem:[#allocation13 + $0x12c] ss:$16 sps:$4 sm:$0xff]   ;;  %v7253_v14 = vld [vmem:[#allocation13 + $0x120] ss:$16 sps:$4 sm:$0xff]  }
 0x378   :  { %10404 = vst [vmem:[#allocation30_spill] sm:$0xff] %v7124_v21  ;;  %v7229_v21 = vld [vmem:[#allocation13 + $0xe0] ss:$16 sps:$4 sm:$0xff]   ;;  %10440 = vst [vmem:[#allocation66_spill] sm:$0xff] %v7251_v19 }
 0x379   :  { %10405 = vst [vmem:[#allocation31_spill] sm:$0xff] %v7127_v23  ;;  %v774_v24 = vpop.f32.mrb[4].mxu1  ;;  %10433 = vst [vmem:[#allocation59_spill] sm:$0xff] %v7229_v21  ;;  %v7249_v23 = vld [vmem:[#allocation13 + $0x124] ss:$16 sps:$4 sm:$0xff]  }
 0x37a   :  { %v7130_v25 = vadd.f32 %v774_v24, %v7100_v7  ;;  %v776_v26 = vpop.f32.mrb[5].mxu1  ;;  %10439 = vst [vmem:[#allocation65_spill] sm:$0xff] %v7249_v23  ;;  %10441 = vst [vmem:[#allocation67_spill] sm:$0xff] %v7253_v14 }
 0x37b   :  { %v7133_v27 = vadd.f32 %v776_v26, %v7108_v10  ;;  %v778_v28 = vpop.f32.mrb[6].mxu1 }
 0x37c   :  { %10406 = vst [vmem:[#allocation32_spill] sm:$0xff] %v7130_v25  ;;  %v7136_v29 = vadd.f32 %v778_v28, %v7100_v7  ;;  %v780_v30 = vpop.f32.mrb[7].mxu1  ;;  %v7243_v25 = vld [vmem:[#allocation13 + $0x108] ss:$16 sps:$4 sm:$0xff]  }
 0x37d   :  { %10407 = vst [vmem:[#allocation33_spill] sm:$0xff] %v7133_v27  ;;  %v7139_v31 = vadd.f32 %v780_v30, %v7108_v10  ;;  %v7241_v27 = vld [vmem:[#allocation13 + $0x100] ss:$16 sps:$4 sm:$0xff]   ;;  %10438 = vst [vmem:[#allocation64_spill] sm:$0xff] %v7243_v25 }
 0x37e   :  { %10408 = vst [vmem:[#allocation34_spill] sm:$0xff] %v7136_v29  ;;  %v7237_v29 = vld [vmem:[#allocation13 + $0x104] ss:$16 sps:$4 sm:$0xff]   ;;  %10437 = vst [vmem:[#allocation63_spill] sm:$0xff] %v7241_v27 }
 0x37f   :  { %10409 = vst [vmem:[#allocation35_spill] sm:$0xff] %v7139_v31  ;;  %v7231_v31 = vld [vmem:[#allocation13 + $0xe8] ss:$16 sps:$4 sm:$0xff]   ;;  %10435 = vst [vmem:[#allocation61_spill] sm:$0xff] %v7237_v29 }
 0x380   :  { %10434 = vst [vmem:[#allocation60_spill] sm:$0xff] %v7231_v31 }
 0x381   :  { %v784_v32 = vpop.f32.mrb[8].mxu1 }
 0x382   :  { %v7142_v33 = vadd.f32 %v784_v32, %v7100_v7  ;;  %v786_v34 = vpop.f32.mrb[9].mxu1 }
 0x383   :  { %v7145_v35 = vadd.f32 %v786_v34, %v7108_v10  ;;  %v788_v45 = vpop.f32.mrb[10].mxu1 }
 0x384   :  { %10410 = vst [vmem:[#allocation36_spill] sm:$0xff] %v7142_v33  ;;  %v7148_v0 = vadd.f32 %v788_v45, %v7100_v7  ;;  %v790_v5 = vpop.f32.mrb[11].mxu1  ;;  %v7227_v33 = vld [vmem:[#allocation13 + $0xec] ss:$16 sps:$4 sm:$0xff]  }
 0x385   :  { %10411 = vst [vmem:[#allocation37_spill] sm:$0xff] %v7145_v35  ;;  %v7151_v12 = vadd.f32 %v790_v5, %v7108_v10  ;;  %v7225_v35 = vld [vmem:[#allocation13 + $0xe4] ss:$16 sps:$4 sm:$0xff]   ;;  %10432 = vst [vmem:[#allocation58_spill] sm:$0xff] %v7227_v33 }
 0x386   :  { %10412 = vst [vmem:[#allocation38_spill] sm:$0xff] %v7148_v0  ;;  %v7217_v0 = vld [vmem:[#allocation13 + $0xc0] ss:$16 sps:$4 sm:$0xff]   ;;  %10431 = vst [vmem:[#allocation57_spill] sm:$0xff] %v7225_v35 }
 0x387   :  { %10413 = vst [vmem:[#allocation39_spill] sm:$0xff] %v7151_v12  ;;  %v7215_v12 = vld [vmem:[#allocation13 + $0xcc] ss:$16 sps:$4 sm:$0xff]   ;;  %10429 = vst [vmem:[#allocation55_spill] sm:$0xff] %v7217_v0 }
 0x388   :  { %10428 = vst [vmem:[#allocation54_spill] sm:$0xff] %v7215_v12 }
 0x391   :  { %v4948_v13 = vpop.f32.mrb[8].mxu0 }
 0x392   :  { %v7154_v15 = vadd.f32 %v4948_v13, %v7103_v8  ;;  %v853_v20 = vpop.f32.mrb[9].mxu0 }
 0x393   :  { %v7157_v24 = vadd.f32 %v853_v20, %v7103_v8  ;;  %v4949_v26 = vpop.f32.mrb[10].mxu0 }
 0x394   :  { %10414 = vst [vmem:[#allocation40_spill] sm:$0xff] %v7154_v15  ;;  %v7163_v32 = vadd.f32 %v4949_v26, %v7103_v8  ;;  %v856_v34 = vpop.f32.mrb[11].mxu0  ;;  %v7179_v15 = vld [vmem:[#allocation13 + $0x6c] ss:$16 sps:$4 sm:$0xff]   ;;  %v7181_v26 = vld [vmem:[#allocation13 + $0x60] ss:$16 sps:$4 sm:$0xff]  }
 0x395   :  { %10415 = vst [vmem:[#allocation41_spill] sm:$0xff] %v7157_v24  ;;  %v7169_v13 = vadd.f32 %v856_v34, %v7103_v8  ;;  %1668 = vmatprep.subr.bf16.mxu0 %v7179_v15  ;;  %v7191_v34 = vld [vmem:[#allocation13 + $0x8c] ss:$16 sps:$4 sm:$0xff]   ;;  %v7219_v24 = vld [vmem:[#allocation13 + $0xc8] ss:$16 sps:$4 sm:$0xff]  }
 0x396   :  { %10417 = vst [vmem:[#allocation43_spill] sm:$0xff] %v7163_v32  ;;  %v7183_v32 = vld [vmem:[#allocation13 + $0x68] ss:$16 sps:$4 sm:$0xff]   ;;  %10430 = vst [vmem:[#allocation56_spill] sm:$0xff] %v7219_v24 }
 0x397   :  { %10419 = vst [vmem:[#allocation45_spill] sm:$0xff] %v7169_v13  ;;  %1669 = vmatpush1.bf16.msra.mxu0 %v7183_v32  ;;  %v7213_v13 = vld [vmem:[#allocation13 + $0xc4] ss:$16 sps:$4 sm:$0xff]  }
 0x398   :  { %v794_v22 = vpop.f32.mrb[12].mxu1  ;;  %1670 = vmatprep.subr.bf16.mxu0 %v7191_v34  ;;  %10427 = vst [vmem:[#allocation53_spill] sm:$0xff] %v7213_v13 }
 0x399   :  { %v7160_v28 = vadd.f32 %v794_v22, %v7100_v7  ;;  %v796_v30 = vpop.f32.mrb[13].mxu1  ;;  %v7177_v22 = vld [vmem:[#allocation13 + $0x64] ss:$16 sps:$4 sm:$0xff]  }
 0x39a   :  { %v7166_v45 = vadd.f32 %v796_v30, %v7108_v10  ;;  %v798_v5 = vpop.f32.mrb[14].mxu1  ;;  %1627 = vmatprep.subr.bf16.mxu1 %v7177_v22  ;;  %v7189_v30 = vld [vmem:[#allocation13 + $0x84] ss:$16 sps:$4 sm:$0xff]  }
 0x39b   :  { %10416 = vst [vmem:[#allocation42_spill] sm:$0xff] %v7160_v28  ;;  %v7172_v61 = vadd.f32 %v798_v5, %v7100_v7  ;;  %v800_v20 = vpop.f32.mrb[15].mxu1  ;;  %1628 = vmatpush1.bf16.msra.mxu1 %v7181_v26  ;;  %v7193_v5 = vld [vmem:[#allocation13 + $0x80] ss:$16 sps:$4 sm:$0xff]   ;;  %v7207_v28 = vld [vmem:[#allocation13 + $0xa8] ss:$16 sps:$4 sm:$0xff]  }
 0x39c   :  { %10418 = vst [vmem:[#allocation44_spill] sm:$0xff] %v7166_v45  ;;  %v7175_v1 = vadd.f32 %v800_v20, %v7108_v10  ;;  %v7195_v20 = vld [vmem:[#allocation13 + $0x88] ss:$16 sps:$4 sm:$0xff]   ;;  %1629 = vmatprep.subr.bf16.mxu1 %v7189_v30  ;;  %v7205_v45 = vld [vmem:[#allocation13 + $0xa0] ss:$16 sps:$4 sm:$0xff]   ;;  %10426 = vst [vmem:[#allocation52_spill] sm:$0xff] %v7207_v28 }
 0x39d   :  { %10420 = vst [vmem:[#allocation46_spill] sm:$0xff] %v7172_v61  ;;  %10422 = vst [vmem:[#allocation48_spill] sm:$0xff] %v7195_v20  ;;  %1671 = vmatpush1.bf16.msra.mxu0 %v7195_v20  ;;  %v7203_v61 = vld [vmem:[#allocation13 + $0xac] ss:$16 sps:$4 sm:$0xff]  }
 0x39e   :  { %10421 = vst [vmem:[#allocation47_spill] sm:$0xff] %v7175_v1  ;;  %v7201_v1 = vld [vmem:[#allocation13 + $0xa4] ss:$16 sps:$4 sm:$0xff]   ;;  %10424 = vst [vmem:[#allocation50_spill] sm:$0xff] %v7203_v61  ;;  %1672 = vmatprep.subr.bf16.mxu0 %v7203_v61 }
 0x39f   :  { %1630 = vmatpush1.bf16.msra.mxu1 %v7193_v5  ;;  %10423 = vst [vmem:[#allocation49_spill] sm:$0xff] %v7201_v1  ;;  %10425 = vst [vmem:[#allocation51_spill] sm:$0xff] %v7205_v45 }
 0x3a0   :  { %1631 = vmatprep.subr.bf16.mxu1 %v7201_v1 }
 0x3a1   :  { %1673 = vmatpush1.bf16.msra.mxu0 %v7207_v28 }
 0x3a2   :  { %1674 = vmatprep.subr.bf16.mxu0 %v7215_v12 }
 0x3a3   :  { %1632 = vmatpush1.bf16.msra.mxu1 %v7205_v45 }
 0x3a4   :  { %1633 = vmatprep.subr.bf16.mxu1 %v7213_v13 }
 0x3a5   :  { %1675 = vmatpush1.bf16.msra.mxu0 %v7219_v24 }
 0x3a6   :  { %1676 = vmatprep.subr.bf16.mxu0 %v7227_v33 }
 0x3a7   :  { %1634 = vmatpush1.bf16.msra.mxu1 %v7217_v0 }
 0x3a8   :  { %1635 = vmatprep.subr.bf16.mxu1 %v7225_v35  ;;  %v765_v35 = vadd.f32 %v7105_v9, %v7100_v7 }
 0x3a9   :  { %1677 = vmatpush1.bf16.msra.mxu0 %v7231_v31  ;;  %v7255_v31 = vld [vmem:[#allocation13 + $0x128] ss:$16 sps:$4 sm:$0xff]  }
 0x3aa   :  { %1678 = vmatprep.subr.bf16.mxu0 %v7239_v16  ;;  %10442 = vst [vmem:[#allocation68_spill] sm:$0xff] %v7255_v31  ;;  %v7261_v16 = vld [vmem:[#allocation13 + $0x144] ss:$16 sps:$4 sm:$0xff]  }
 0x3ab   :  { %1636 = vmatpush1.bf16.msra.mxu1 %v7229_v21  ;;  %10443 = vst [vmem:[#allocation69_spill] sm:$0xff] %v7261_v16  ;;  %v7271_v21 = vld [vmem:[#allocation13 + $0x164] ss:$16 sps:$4 sm:$0xff]  }
 0x3ac   :  { %1637 = vmatprep.subr.bf16.mxu1 %v7237_v29  ;;  %v7267_v29 = vld [vmem:[#allocation13 + $0x148] ss:$16 sps:$4 sm:$0xff]   ;;  %10447 = vst [vmem:[#allocation73_spill] sm:$0xff] %v7271_v21 }
 0x3ad   :  { %1679 = vmatpush1.bf16.msra.mxu0 %v7243_v25  ;;  %v7265_v25 = vld [vmem:[#allocation13 + $0x140] ss:$16 sps:$4 sm:$0xff]   ;;  %10446 = vst [vmem:[#allocation72_spill] sm:$0xff] %v7267_v29 }
 0x3ae   :  { %1680 = vmatprep.subr.bf16.mxu0 %v7251_v19  ;;  %10445 = vst [vmem:[#allocation71_spill] sm:$0xff] %v7265_v25  ;;  %v7283_v19 = vld [vmem:[#allocation13 + $0x184] ss:$16 sps:$4 sm:$0xff]  }
 0x3af   :  { %1638 = vmatpush1.bf16.msra.mxu1 %v7241_v27  ;;  %v7263_v27 = vld [vmem:[#allocation13 + $0x14c] ss:$16 sps:$4 sm:$0xff]   ;;  %10451 = vst [vmem:[#allocation77_spill] sm:$0xff] %v7283_v19 }
 0x3b0   :  { %1639 = vmatprep.subr.bf16.mxu1 %v7249_v23  ;;  %10444 = vst [vmem:[#allocation70_spill] sm:$0xff] %v7263_v27  ;;  %v7273_v23 = vld [vmem:[#allocation13 + $0x16c] ss:$16 sps:$4 sm:$0xff]  }
 0x3b1   :  { %1681 = vmatpush1.bf16.msra.mxu0 %v7255_v31  ;;  %10448 = vst [vmem:[#allocation74_spill] sm:$0xff] %v7273_v23  ;;  %v7277_v31 = vld [vmem:[#allocation13 + $0x160] ss:$16 sps:$4 sm:$0xff]  }
 0x3b2   :  { %1682 = vmatprep.subr.bf16.mxu0 %v7263_v27  ;;  %10449 = vst [vmem:[#allocation75_spill] sm:$0xff] %v7277_v31  ;;  %v7289_v27 = vld [vmem:[#allocation13 + $0x180] ss:$16 sps:$4 sm:$0xff]  }
 0x3b3   :  { %1640 = vmatpush1.bf16.msra.mxu1 %v7253_v14  ;;  %v7279_v14 = vld [vmem:[#allocation13 + $0x168] ss:$16 sps:$4 sm:$0xff]   ;;  %10453 = vst [vmem:[#allocation79_spill] sm:$0xff] %v7289_v27 }
 0x3b4   :  { %1641 = vmatprep.subr.bf16.mxu1 %v7261_v16  ;;  %10450 = vst [vmem:[#allocation76_spill] sm:$0xff] %v7279_v14  ;;  %v7285_v16 = vld [vmem:[#allocation13 + $0x18c] ss:$16 sps:$4 sm:$0xff]  }
 0x3b5   :  { %1683 = vmatpush1.bf16.msra.mxu0 %v7267_v29  ;;  %10452 = vst [vmem:[#allocation78_spill] sm:$0xff] %v7285_v16  ;;  %v7295_v29 = vld [vmem:[#allocation13 + $0x1a4] ss:$16 sps:$4 sm:$0xff]  }
 0x3b6   :  { %1684 = vmatprep.subr.bf16.mxu0 %v7273_v23  ;;  %10455 = vst [vmem:[#allocation81_spill] sm:$0xff] %v7295_v29  ;;  %v7299_v23 = vld [vmem:[#allocation7 + $0x1] ss:$0 sm:$0xff] }
 0x3b7   :  { %1642 = vmatpush1.bf16.msra.mxu1 %v7265_v25  ;;  %v7291_v25 = vld [vmem:[#allocation13 + $0x188] ss:$16 sps:$4 sm:$0xff]   ;;  %v1279_v33 = vpack.c.bf16 %v7299_v23, %v7299_v23 }
 0x3b8   :  { %1643 = vmatprep.subr.bf16.mxu1 %v7271_v21  ;;  %10454 = vst [vmem:[#allocation80_spill] sm:$0xff] %v7291_v25  ;;  %v7297_v21 = vld [vmem:[#allocation13 + $0x1ac] ss:$16 sps:$4 sm:$0xff]  }
 0x3b9   :  { %1685 = vmatpush1.bf16.msra.mxu0 %v7279_v14  ;;  %10456 = vst [vmem:[#allocation82_spill] sm:$0xff] %v7297_v21  ;;  %v7305_v14 = vld [vmem:[#allocation13 + $0x1a0] ss:$16 sps:$4 sm:$0xff]   ;;  %1653 = vmatprep.mubr.bf16.mxu1 %v1279_v33 }
 0x3ba   :  { %1686 = vmatprep.subr.bf16.mxu0 %v7285_v16  ;;  %10457 = vst [vmem:[#allocation83_spill] sm:$0xff] %v7305_v14  ;;  %v7311_v16 = vld [vmem:[#allocation13 + $0x1c4] ss:$16 sps:$4 sm:$0xff]   ;;  %1694 = vmatprep.mubr.bf16.mxu0 %v1279_v33  ;;  %v7329_v33 = vld [vmem:[#allocation13 + $0x1e0] ss:$16 sps:$4 sm:$0xff]  }
 0x3bb   :  { %1644 = vmatpush1.bf16.msra.mxu1 %v7277_v31  ;;  %v7307_v31 = vld [vmem:[#allocation13 + $0x1a8] ss:$16 sps:$4 sm:$0xff]   ;;  %10459 = vst [vmem:[#allocation85_spill] sm:$0xff] %v7311_v16  ;;  %10465 = vst [vmem:[#allocation91_spill] sm:$0xff] %v7329_v33 }
 0x3bc   :  { %1645 = vmatprep.subr.bf16.mxu1 %v7283_v19  ;;  %10458 = vst [vmem:[#allocation84_spill] sm:$0xff] %v7307_v31  ;;  %v7313_v19 = vld [vmem:[#allocation13 + $0x1cc] ss:$16 sps:$4 sm:$0xff]  }
 0x3bd   :  { %1687 = vmatpush1.bf16.msra.mxu0 %v7291_v25  ;;  %10460 = vst [vmem:[#allocation86_spill] sm:$0xff] %v7313_v19  ;;  %v7319_v25 = vld [vmem:[#allocation13 + $0x1c8] ss:$16 sps:$4 sm:$0xff]  }
 0x3be   :  { %1688 = vmatprep.subr.bf16.mxu0 %v7297_v21  ;;  %10462 = vst [vmem:[#allocation88_spill] sm:$0xff] %v7319_v25  ;;  %v7325_v21 = vld [vmem:[#allocation13 + $0x1ec] ss:$16 sps:$4 sm:$0xff]  }
 0x3bf   :  { %1646 = vmatpush1.bf16.msra.mxu1 %v7289_v27  ;;  %v7317_v27 = vld [vmem:[#allocation13 + $0x1c0] ss:$16 sps:$4 sm:$0xff]   ;;  %10464 = vst [vmem:[#allocation90_spill] sm:$0xff] %v7325_v21 }
 0x3c0   :  { %1647 = vmatprep.subr.bf16.mxu1 %v7295_v29  ;;  %10461 = vst [vmem:[#allocation87_spill] sm:$0xff] %v7317_v27  ;;  %v7323_v29 = vld [vmem:[#allocation13 + $0x1e4] ss:$16 sps:$4 sm:$0xff]  }
 0x3c1   :  { %1689 = vmatpush1.bf16.msra.mxu0 %v7307_v31  ;;  %10463 = vst [vmem:[#allocation89_spill] sm:$0xff] %v7323_v29  ;;  %v7335_v31 = vld [vmem:[#allocation16 + $0x4] ss:$16 sps:$4 sm:$0xff]  }
 0x3c2   :  { %1690 = vmatprep.subr.bf16.mxu0 %v7313_v19  ;;  %10467 = vst [vmem:[#allocation93_spill] sm:$0xff] %v7335_v31 }
 0x3c3   :  { %1648 = vmatpush1.bf16.msra.mxu1 %v7305_v14  ;;  %v7331_v14 = vld [vmem:[#allocation13 + $0x1e8] ss:$16 sps:$4 sm:$0xff]  }
 0x3c4   :  { %1649 = vmatprep.subr.bf16.mxu1 %v7311_v16  ;;  %10466 = vst [vmem:[#allocation92_spill] sm:$0xff] %v7331_v14  ;;  %v7337_v16 = vld [vmem:[#allocation16 + $0xc] ss:$16 sps:$4 sm:$0xff]  }
 0x3c5   :  { %1691 = vmatpush1.bf16.msra.mxu0 %v7319_v25  ;;  %10468 = vst [vmem:[#allocation94_spill] sm:$0xff] %v7337_v16  ;;  %v900_v25 = vld [vmem:[#allocation11] sm:$0x7] }
 0x3c6   :  { %1692 = vmatprep.subr.bf16.mxu0 %v7325_v21 }
 0x3c7   :  { %1650 = vmatpush1.bf16.msra.mxu1 %v7317_v27  ;;  %v7344_v27 = vrot.slane %v900_v25, %v7091_v3 }
 0x3c8   :  { %1651 = vmatprep.subr.bf16.mxu1 %v7323_v29  ;;  %v7347_v29 = vrot.slane %v900_v25, %v7097_v6 }
 0x3c9   :  { %1693 = vmatpush1.bf16.msra.mxu0 %v7331_v14 }
 0x3ca   :  { %2106 = vmatprep.subr.bf16.mxu0 %v7337_v16 }
 0x3cb   :  { %1652 = vmatpush1.bf16.msra.mxu1 %v7329_v33 }
 0x3cc   :  { %2065 = vmatprep.subr.bf16.mxu1 %v7335_v31  ;;  %v767_v31 = vadd.f32 %v7110_v11, %v7108_v10 }
 0x435   :  { %v1210_v21 = vpop.f32.mrb[16].mxu1  ;;  %v1251_v19 = vpop.f32.mrb[12].mxu0 }
 0x436   :  { %v1211_v33 = vadd.f32 %v1210_v21, %v7344_v27  ;;  %v1212_v24 = vpop.f32.mrb[17].mxu1  ;;  %v4968_v14 = vpop.f32.mrb[13].mxu0 }
 0x437   :  { %v1213_v16 = vadd.f32 %v1212_v24, %v7347_v29  ;;  %v1214_v0 = vpop.f32.mrb[18].mxu1  ;;  %v1254_v12 = vpop.f32.mrb[14].mxu0  ;;  %v7356_v14 = vrot.slane %v900_v25, %v7094_v4  ;;  %v7364_v25 = vld [vmem:[#allocation16] ss:$16 sps:$4 sm:$0xff]  }
 0x438   :  { %v1257_v13 = vadd.f32 %v1211_v33, %v765_v35  ;;  %v1215_v28 = vpop.f32.mrb[19].mxu1  ;;  %v4969_v45 = vpop.f32.mrb[15].mxu0  ;;  %v838_v35 = vadd.f32 %v7118_v18, %v7103_v8  ;;  %v7372_v8 = vld [vmem:[#allocation16 + $0x24] ss:$16 sps:$4 sm:$0xff]   ;;  %v7374_v18 = vld [vmem:[#allocation16 + $0x2c] ss:$16 sps:$4 sm:$0xff]  }
 0x439   :  { %v1264_v61 = vadd.f32 %v1213_v16, %v767_v31  ;;  %v1252_v11 = vadd.f32 %v1251_v19, %v7356_v14  ;;  %10470 = vst [vmem:[#allocation96_spill] sm:$0xff] %v7372_v8  ;;  %10471 = vst [vmem:[#allocation97_spill] sm:$0xff] %v7374_v18  ;;  %v7386_v33 = vld [vmem:[#allocation16 + $0x44] ss:$16 sps:$4 sm:$0xff]  }
 0x43a   :  { %v4585_v1 = vmul.f32 -1.442695, %v1257_v13  ;;  %v7366_v13 = vld [vmem:[#allocation16 + $0x8] ss:$16 sps:$4 sm:$0xff]   ;;  %10474 = vst [vmem:[#allocation100_spill] sm:$0xff] %v7386_v33 }
 0x43b   :  { %v4586_v20 = vmul.f32 -1.442695, %v1264_v61  ;;  %10469 = vst [vmem:[#allocation95_spill] sm:$0xff] %v7366_v13 }
 0x43c   :  { %5471 = vpow2.f32 %v4585_v1 }
 0x43d   :  { %5473 = vpow2.f32 %v4586_v20  ;;  %v7382_v20 = vld [vmem:[#allocation16 + $0x28] ss:$16 sps:$4 sm:$0xff]  }
 0x43e   :  { %10473 = vst [vmem:[#allocation99_spill] sm:$0xff] %v7382_v20 }
 0x446   :  { %v5472_v7 = vpop.eup %5471 }
 0x447   :  { %v1261_v9 = vadd.f32 1.0, %v5472_v7  ;;  %v5474_v21 = vpop.eup %5473  ;;  %v7388_v7 = vld [vmem:[#allocation16 + $0x4c] ss:$16 sps:$4 sm:$0xff]  }
 0x448   :  { %v1268_v10 = vadd.f32 1.0, %v5474_v21  ;;  %10475 = vst [vmem:[#allocation101_spill] sm:$0xff] %v7388_v7  ;;  %v7394_v21 = vld [vmem:[#allocation16 + $0x48] ss:$16 sps:$4 sm:$0xff]  }
 0x449   :  { %5475 = vrcp.f32 %v1261_v9  ;;  %v7392_v9 = vld [vmem:[#allocation16 + $0x40] ss:$16 sps:$4 sm:$0xff]   ;;  %10477 = vst [vmem:[#allocation103_spill] sm:$0xff] %v7394_v21 }
 0x44a   :  { %5477 = vrcp.f32 %v1268_v10  ;;  %10476 = vst [vmem:[#allocation102_spill] sm:$0xff] %v7392_v9  ;;  %v7398_v10 = vld [vmem:[#allocation16 + $0x64] ss:$16 sps:$4 sm:$0xff]  }
 0x44b   :  { %10478 = vst [vmem:[#allocation104_spill] sm:$0xff] %v7398_v10 }
 0x453   :  { %v5476_v0 = vpop.eup %5475 }
 0x454   :  { %v1271_v12 = vmul.f32 %v5476_v0, %v1252_v11  ;;  %v5478_v1 = vpop.eup %5477  ;;  %v7400_v11 = vld [vmem:[#allocation16 + $0x6c] ss:$16 sps:$4 sm:$0xff]   ;;  %v7404_v0 = vld [vmem:[#allocation16 + $0x60] ss:$16 sps:$4 sm:$0xff]  }
 0x455   :  { %v1274_v61 = vsub.f32 1.0, %v5478_v1  ;;  %v1276_v28 = vmul.f32 %v5478_v1, %v7054_v37  ;;  %v7380_v37 = vld [vmem:[#allocation16 + $0x20] ss:$16 sps:$4 sm:$0xff]   ;;  %10479 = vst [vmem:[#allocation105_spill] sm:$0xff] %v7400_v11  ;;  %10480 = vst [vmem:[#allocation106_spill] sm:$0xff] %v7404_v0 }
 0x456   :  { %v1272_v16 = vadd.f32 %v1271_v12, %v838_v35  ;;  %10472 = vst [vmem:[#allocation98_spill] sm:$0xff] %v7380_v37  ;;  %v7406_v35 = vld [vmem:[#allocation16 + $0x68] ss:$16 sps:$4 sm:$0xff]   ;;  %v7412_v12 = vld [vmem:[#allocation16 + $0x84] ss:$16 sps:$4 sm:$0xff]  }
 0x457   :  { %10481 = vst [vmem:[#allocation107_spill] sm:$0xff] %v7406_v35  ;;  %10482 = vst [vmem:[#allocation108_spill] sm:$0xff] %v7412_v12  ;;  %v7416_v1 = vld [vmem:[#allocation16 + $0x80] ss:$16 sps:$4 sm:$0xff]  }
 0x458   :  { %5479 = vtanh.f32 %v1272_v16  ;;  %v7414_v16 = vld [vmem:[#allocation16 + $0x8c] ss:$16 sps:$4 sm:$0xff]   ;;  %10484 = vst [vmem:[#allocation110_spill] sm:$0xff] %v7416_v1 }
 0x459   :  { %10483 = vst [vmem:[#allocation109_spill] sm:$0xff] %v7414_v16 }
 0x462   :  { %v5480_v31 = vpop.eup %5479 }
 0x463   :  { %v1275_v24 = vmul.f32 %v5480_v31, %v1274_v61  ;;  %v7418_v61 = vld [vmem:[#allocation16 + $0x88] ss:$16 sps:$4 sm:$0xff]   ;;  %v7424_v31 = vld [vmem:[#allocation16 + $0xa4] ss:$16 sps:$4 sm:$0xff]  }
 0x464   :  { %10485 = vst [vmem:[#allocation111_spill] sm:$0xff] %v7418_v61  ;;  %10486 = vst [vmem:[#allocation112_spill] sm:$0xff] %v7424_v31 }
 0x465   :  { %v7362_v45 = vadd.f32 %v1276_v28, %v1275_v24  ;;  %v7426_v24 = vld [vmem:[#allocation16 + $0xac] ss:$16 sps:$4 sm:$0xff]   ;;  %v7428_v28 = vld [vmem:[#allocation16 + $0xa0] ss:$16 sps:$4 sm:$0xff]  }
 0x466   :  { %10487 = vst [vmem:[#allocation113_spill] sm:$0xff] %v7426_v24  ;;  %10488 = vst [vmem:[#allocation114_spill] sm:$0xff] %v7428_v28 }
 0x467   :  { %v7370_v19 = vpack.c.bf16 %v7362_v45, %v7362_v45 }
 0x469   :  { %1654 = vmatmul.mubr.bf16.vlgmr.msra.gmra.mrb[20].mxu1 %v7370_v19  ;;  %1695 = vmatmul.mubr.bf16.vlgmr.msra.gmra.mrb[16].mxu0 %v7370_v19 }
 0x46a   :  { %2066 = vmatpush1.bf16.msra.mxu1 %v7364_v25  ;;  %2107 = vmatpush1.bf16.msra.mxu0 %v7366_v13 }
 0x46b   :  { %2067 = vmatprep.subr.bf16.mxu1 %v7372_v8  ;;  %2108 = vmatprep.subr.bf16.mxu0 %v7374_v18  ;;  %v10044_v8 = vsub.s32 3, %v7088_v2 }
 0x46e   :  { %2068 = vmatpush1.bf16.msra.mxu1 %v7380_v37  ;;  %2109 = vmatpush1.bf16.msra.mxu0 %v7382_v20 }
 0x46f   :  { %2069 = vmatprep.subr.bf16.mxu1 %v7386_v33  ;;  %2110 = vmatprep.subr.bf16.mxu0 %v7388_v7 }
 0x472   :  { %2070 = vmatpush1.bf16.msra.mxu1 %v7392_v9  ;;  %2111 = vmatpush1.bf16.msra.mxu0 %v7394_v21  ;;  %v7524_v21 = vld [vmem:[#allocation16 + $0x1ac] ss:$16 sps:$4 sm:$0xff]  }
 0x473   :  { %2071 = vmatprep.subr.bf16.mxu1 %v7398_v10  ;;  %2112 = vmatprep.subr.bf16.mxu0 %v7400_v11  ;;  %v7506_v11 = vld [vmem:[#allocation16 + $0x168] ss:$16 sps:$4 sm:$0xff]   ;;  %v7522_v10 = vld [vmem:[#allocation16 + $0x1a4] ss:$16 sps:$4 sm:$0xff]   ;;  %10519 = vst [vmem:[#allocation145_spill] sm:$0xff] %v7524_v21 }
 0x474   :  { %10513 = vst [vmem:[#allocation139_spill] sm:$0xff] %v7506_v11  ;;  %10518 = vst [vmem:[#allocation144_spill] sm:$0xff] %v7522_v10 }
 0x476   :  { %2072 = vmatpush1.bf16.msra.mxu1 %v7404_v0  ;;  %2113 = vmatpush1.bf16.msra.mxu0 %v7406_v35  ;;  %v7430_v35 = vld [vmem:[#allocation16 + $0xa8] ss:$16 sps:$4 sm:$0xff]  }
 0x477   :  { %2073 = vmatprep.subr.bf16.mxu1 %v7412_v12  ;;  %2114 = vmatprep.subr.bf16.mxu0 %v7414_v16  ;;  %10489 = vst [vmem:[#allocation115_spill] sm:$0xff] %v7430_v35  ;;  %v7436_v16 = vld [vmem:[#allocation16 + $0xc4] ss:$16 sps:$4 sm:$0xff]   ;;  %v7442_v12 = vld [vmem:[#allocation16 + $0xc8] ss:$16 sps:$4 sm:$0xff]  }
 0x478   :  { %10490 = vst [vmem:[#allocation116_spill] sm:$0xff] %v7436_v16  ;;  %10493 = vst [vmem:[#allocation119_spill] sm:$0xff] %v7442_v12 }
 0x47a   :  { %2074 = vmatpush1.bf16.msra.mxu1 %v7416_v1  ;;  %2115 = vmatpush1.bf16.msra.mxu0 %v7418_v61  ;;  %v7438_v1 = vld [vmem:[#allocation16 + $0xcc] ss:$16 sps:$4 sm:$0xff]   ;;  %v7440_v61 = vld [vmem:[#allocation16 + $0xc0] ss:$16 sps:$4 sm:$0xff]  }
 0x47b   :  { %2075 = vmatprep.subr.bf16.mxu1 %v7424_v31  ;;  %2116 = vmatprep.subr.bf16.mxu0 %v7426_v24  ;;  %10491 = vst [vmem:[#allocation117_spill] sm:$0xff] %v7438_v1  ;;  %10492 = vst [vmem:[#allocation118_spill] sm:$0xff] %v7440_v61  ;;  %v7448_v24 = vld [vmem:[#allocation16 + $0xe4] ss:$16 sps:$4 sm:$0xff]   ;;  %v7454_v31 = vld [vmem:[#allocation16 + $0xe8] ss:$16 sps:$4 sm:$0xff]  }
 0x47c   :  { %10494 = vst [vmem:[#allocation120_spill] sm:$0xff] %v7448_v24  ;;  %10497 = vst [vmem:[#allocation123_spill] sm:$0xff] %v7454_v31 }
 0x47e   :  { %2076 = vmatpush1.bf16.msra.mxu1 %v7428_v28  ;;  %2117 = vmatpush1.bf16.msra.mxu0 %v7430_v35  ;;  %v7450_v28 = vld [vmem:[#allocation16 + $0xec] ss:$16 sps:$4 sm:$0xff]   ;;  %v7452_v35 = vld [vmem:[#allocation16 + $0xe0] ss:$16 sps:$4 sm:$0xff]  }
 0x47f   :  { %2077 = vmatprep.subr.bf16.mxu1 %v7436_v16  ;;  %2118 = vmatprep.subr.bf16.mxu0 %v7438_v1  ;;  %10495 = vst [vmem:[#allocation121_spill] sm:$0xff] %v7450_v28  ;;  %10496 = vst [vmem:[#allocation122_spill] sm:$0xff] %v7452_v35  ;;  %v7460_v1 = vld [vmem:[#allocation16 + $0x104] ss:$16 sps:$4 sm:$0xff]   ;;  %v7466_v16 = vld [vmem:[#allocation16 + $0x108] ss:$16 sps:$4 sm:$0xff]  }
 0x480   :  { %10498 = vst [vmem:[#allocation124_spill] sm:$0xff] %v7460_v1  ;;  %10501 = vst [vmem:[#allocation127_spill] sm:$0xff] %v7466_v16 }
 0x482   :  { %2078 = vmatpush1.bf16.msra.mxu1 %v7440_v61  ;;  %2119 = vmatpush1.bf16.msra.mxu0 %v7442_v12  ;;  %v7462_v61 = vld [vmem:[#allocation16 + $0x10c] ss:$16 sps:$4 sm:$0xff]   ;;  %v7464_v12 = vld [vmem:[#allocation16 + $0x100] ss:$16 sps:$4 sm:$0xff]  }
 0x483   :  { %2079 = vmatprep.subr.bf16.mxu1 %v7448_v24  ;;  %2120 = vmatprep.subr.bf16.mxu0 %v7450_v28  ;;  %10499 = vst [vmem:[#allocation125_spill] sm:$0xff] %v7462_v61  ;;  %10500 = vst [vmem:[#allocation126_spill] sm:$0xff] %v7464_v12  ;;  %v7472_v28 = vld [vmem:[#allocation16 + $0x124] ss:$16 sps:$4 sm:$0xff]   ;;  %v7478_v24 = vld [vmem:[#allocation16 + $0x128] ss:$16 sps:$4 sm:$0xff]  }
 0x484   :  { %10502 = vst [vmem:[#allocation128_spill] sm:$0xff] %v7472_v28  ;;  %10505 = vst [vmem:[#allocation131_spill] sm:$0xff] %v7478_v24 }
 0x486   :  { %2080 = vmatpush1.bf16.msra.mxu1 %v7452_v35  ;;  %2121 = vmatpush1.bf16.msra.mxu0 %v7454_v31  ;;  %v7474_v35 = vld [vmem:[#allocation16 + $0x12c] ss:$16 sps:$4 sm:$0xff]   ;;  %v7476_v31 = vld [vmem:[#allocation16 + $0x120] ss:$16 sps:$4 sm:$0xff]  }
 0x487   :  { %2081 = vmatprep.subr.bf16.mxu1 %v7460_v1  ;;  %2122 = vmatprep.subr.bf16.mxu0 %v7462_v61  ;;  %10503 = vst [vmem:[#allocation129_spill] sm:$0xff] %v7474_v35  ;;  %10504 = vst [vmem:[#allocation130_spill] sm:$0xff] %v7476_v31  ;;  %v7484_v61 = vld [vmem:[#allocation16 + $0x144] ss:$16 sps:$4 sm:$0xff]   ;;  %v7490_v1 = vld [vmem:[#allocation16 + $0x148] ss:$16 sps:$4 sm:$0xff]  }
 0x488   :  { %10506 = vst [vmem:[#allocation132_spill] sm:$0xff] %v7484_v61  ;;  %10509 = vst [vmem:[#allocation135_spill] sm:$0xff] %v7490_v1 }
 0x48a   :  { %2082 = vmatpush1.bf16.msra.mxu1 %v7464_v12  ;;  %2123 = vmatpush1.bf16.msra.mxu0 %v7466_v16  ;;  %v7486_v12 = vld [vmem:[#allocation16 + $0x14c] ss:$16 sps:$4 sm:$0xff]   ;;  %v7488_v16 = vld [vmem:[#allocation16 + $0x140] ss:$16 sps:$4 sm:$0xff]  }
 0x48b   :  { %2083 = vmatprep.subr.bf16.mxu1 %v7472_v28  ;;  %2124 = vmatprep.subr.bf16.mxu0 %v7474_v35  ;;  %10507 = vst [vmem:[#allocation133_spill] sm:$0xff] %v7486_v12  ;;  %10508 = vst [vmem:[#allocation134_spill] sm:$0xff] %v7488_v16  ;;  %v7496_v35 = vld [vmem:[#allocation16 + $0x164] ss:$16 sps:$4 sm:$0xff]   ;;  %v7502_v28 = vld [vmem:[#allocation7 + $0x2] ss:$0 sm:$0xff] }
 0x48c   :  { %10510 = vst [vmem:[#allocation136_spill] sm:$0xff] %v7496_v35  ;;  %v1723_v0 = vpack.c.bf16 %v7502_v28, %v7502_v28 }
 0x48e   :  { %2084 = vmatpush1.bf16.msra.mxu1 %v7476_v31  ;;  %2125 = vmatpush1.bf16.msra.mxu0 %v7478_v24  ;;  %v7498_v31 = vld [vmem:[#allocation16 + $0x16c] ss:$16 sps:$4 sm:$0xff]   ;;  %v7500_v24 = vld [vmem:[#allocation16 + $0x160] ss:$16 sps:$4 sm:$0xff]  }
 0x48f   :  { %2085 = vmatprep.subr.bf16.mxu1 %v7484_v61  ;;  %2126 = vmatprep.subr.bf16.mxu0 %v7486_v12  ;;  %10511 = vst [vmem:[#allocation137_spill] sm:$0xff] %v7498_v31  ;;  %10512 = vst [vmem:[#allocation138_spill] sm:$0xff] %v7500_v24  ;;  %v7508_v61 = vld [vmem:[#allocation16 + $0x184] ss:$16 sps:$4 sm:$0xff]   ;;  %v7510_v12 = vld [vmem:[#allocation16 + $0x18c] ss:$16 sps:$4 sm:$0xff]  }
 0x490   :  { %10514 = vst [vmem:[#allocation140_spill] sm:$0xff] %v7508_v61  ;;  %10515 = vst [vmem:[#allocation141_spill] sm:$0xff] %v7510_v12  ;;  %2097 = vmatprep.mubr.bf16.mxu1 %v1723_v0  ;;  %2138 = vmatprep.mubr.bf16.mxu0 %v1723_v0  ;;  %v7528_v0 = vld [vmem:[#allocation16 + $0x1a0] ss:$16 sps:$4 sm:$0xff]  }
 0x491   :  { %10520 = vst [vmem:[#allocation146_spill] sm:$0xff] %v7528_v0 }
 0x492   :  { %2086 = vmatpush1.bf16.msra.mxu1 %v7488_v16  ;;  %2127 = vmatpush1.bf16.msra.mxu0 %v7490_v1  ;;  %v7516_v1 = vld [vmem:[#allocation16 + $0x180] ss:$16 sps:$4 sm:$0xff]   ;;  %v7518_v16 = vld [vmem:[#allocation16 + $0x188] ss:$16 sps:$4 sm:$0xff]  }
 0x493   :  { %2087 = vmatprep.subr.bf16.mxu1 %v7496_v35  ;;  %2128 = vmatprep.subr.bf16.mxu0 %v7498_v31  ;;  %10516 = vst [vmem:[#allocation142_spill] sm:$0xff] %v7516_v1  ;;  %10517 = vst [vmem:[#allocation143_spill] sm:$0xff] %v7518_v16 }
 0x496   :  { %2088 = vmatpush1.bf16.msra.mxu1 %v7500_v24  ;;  %2129 = vmatpush1.bf16.msra.mxu0 %v7506_v11  ;;  %v7530_v24 = vld [vmem:[#allocation16 + $0x1a8] ss:$16 sps:$4 sm:$0xff]   ;;  %v7534_v11 = vld [vmem:[#allocation16 + $0x1c4] ss:$16 sps:$4 sm:$0xff]  }
 0x497   :  { %2089 = vmatprep.subr.bf16.mxu1 %v7508_v61  ;;  %2130 = vmatprep.subr.bf16.mxu0 %v7510_v12  ;;  %10521 = vst [vmem:[#allocation147_spill] sm:$0xff] %v7530_v24  ;;  %10522 = vst [vmem:[#allocation148_spill] sm:$0xff] %v7534_v11  ;;  %v7536_v61 = vld [vmem:[#allocation16 + $0x1cc] ss:$16 sps:$4 sm:$0xff]   ;;  %v7540_v12 = vld [vmem:[#allocation16 + $0x1c0] ss:$16 sps:$4 sm:$0xff]  }
 0x498   :  { %10523 = vst [vmem:[#allocation149_spill] sm:$0xff] %v7536_v61  ;;  %10524 = vst [vmem:[#allocation150_spill] sm:$0xff] %v7540_v12 }
 0x49a   :  { %2090 = vmatpush1.bf16.msra.mxu1 %v7516_v1  ;;  %2131 = vmatpush1.bf16.msra.mxu0 %v7518_v16  ;;  %v7542_v1 = vld [vmem:[#allocation16 + $0x1c8] ss:$16 sps:$4 sm:$0xff]   ;;  %v7546_v16 = vld [vmem:[#allocation16 + $0x1e4] ss:$16 sps:$4 sm:$0xff]  }
 0x49b   :  { %2091 = vmatprep.subr.bf16.mxu1 %v7522_v10  ;;  %2132 = vmatprep.subr.bf16.mxu0 %v7524_v21  ;;  %10525 = vst [vmem:[#allocation151_spill] sm:$0xff] %v7542_v1  ;;  %10526 = vst [vmem:[#allocation152_spill] sm:$0xff] %v7546_v16  ;;  %v7548_v10 = vld [vmem:[#allocation16 + $0x1ec] ss:$16 sps:$4 sm:$0xff]   ;;  %v7552_v21 = vld [vmem:[#allocation16 + $0x1e0] ss:$16 sps:$4 sm:$0xff]  }
 0x49c   :  { %10527 = vst [vmem:[#allocation153_spill] sm:$0xff] %v7548_v10  ;;  %10528 = vst [vmem:[#allocation154_spill] sm:$0xff] %v7552_v21 }
 0x49e   :  { %2092 = vmatpush1.bf16.msra.mxu1 %v7528_v0  ;;  %2133 = vmatpush1.bf16.msra.mxu0 %v7530_v24  ;;  %v7554_v0 = vld [vmem:[#allocation16 + $0x1e8] ss:$16 sps:$4 sm:$0xff]  }
 0x49f   :  { %2093 = vmatprep.subr.bf16.mxu1 %v7534_v11  ;;  %2134 = vmatprep.subr.bf16.mxu0 %v7536_v61  ;;  %10529 = vst [vmem:[#allocation155_spill] sm:$0xff] %v7554_v0  ;;  %v10530_v61 = vmov 0.0   ;;  %v1029_v11 = vld [vmem:[#allocation14] sm:$0xf] }
 0x4a0   :  { %v7566_v31 = vrot.slane %v1029_v11, %v7097_v6 }
 0x4a2   :  { %2094 = vmatpush1.bf16.msra.mxu1 %v7540_v12  ;;  %2135 = vmatpush1.bf16.msra.mxu0 %v7542_v1  ;;  %v7563_v12 = vrot.slane %v1029_v11, %v7091_v3  ;;  %10532 = vst [vmem:[#allocation157_spill] sm:$0xff] %v7566_v31 }
 0x4a3   :  { %2095 = vmatprep.subr.bf16.mxu1 %v7546_v16  ;;  %2136 = vmatprep.subr.bf16.mxu0 %v7548_v10 }
 0x4a4   :  { %10531 = vst [vmem:[#allocation156_spill] sm:$0xff] %v7563_v12 }
 0x4a6   :  { %2096 = vmatpush1.bf16.msra.mxu1 %v7552_v21  ;;  %2137 = vmatpush1.bf16.msra.mxu0 %v7554_v0 }
 0x4a7   :  { %2166 = vmatprep.subr.bf16.mxu1 %v6962_v17  ;;  %4970 = vmatprep.subr.bf16.mxu0 %v10530_v61 }
 0x53c   :  { %v1655_v1 = vpop.f32.mrb[20].mxu1  ;;  %v1696_v24 = vpop.f32.mrb[16].mxu0 }
 0x53d   :  { %v1656_v16 = vadd.f32 %v1655_v1, %v7563_v12  ;;  %v1657_v10 = vpop.f32.mrb[21].mxu1  ;;  %v1698_v35 = vpop.f32.mrb[17].mxu0  ;;  %v7573_v1 = vrot.slane %v1029_v11, %v10044_v8 }
 0x53e   :  { %v1659_v21 = vpop.f32.mrb[22].mxu1  ;;  %v1700_v9 = vpop.f32.mrb[18].mxu0  ;;  %v1658_v33 = vadd.f32 %v1657_v10, %v7566_v31 }
 0x53f   :  { %v4651_v0 = vmul.f32 -1.442695, %v1656_v16  ;;  %v1660_v7 = vpop.f32.mrb[23].mxu1  ;;  %v1701_v17 = vpop.f32.mrb[19].mxu0  ;;  %v7576_v9 = vrot.slane %v1029_v11, %v7094_v4  ;;  %v1699_v21 = vadd.f32 %v1698_v35, %v7573_v1  ;;  %v7585_v11 = vld [vmem:[#allocation8] ss:$12 sps:$4 sm:$0xff]  }
 0x540   :  { %v4652_v20 = vmul.f32 -1.442695, %v1658_v33  ;;  %v7588_v35 = vld [vmem:[#allocation8 + $0x8] ss:$12 sps:$4 sm:$0xff]  }
 0x541   :  { %5481 = vpow2.f32 %v4651_v0  ;;  %v1697_v33 = vadd.f32 %v1696_v24, %v7576_v9  ;;  %v7591_v24 = vld [vmem:[#allocation8 + $0x1c] ss:$12 sps:$4 sm:$0xff]  }
 0x542   :  { %5483 = vpow2.f32 %v4652_v20 }
 0x54b   :  { %v5482_v37 = vpop.eup %5481 }
 0x54c   :  { %v1706_v18 = vadd.f32 1.0, %v5482_v37  ;;  %v5484_v13 = vpop.eup %5483 }
 0x54d   :  { %v1712_v7 = vadd.f32 1.0, %v5484_v13 }
 0x54e   :  { %5485 = vrcp.f32 %v1706_v18 }
 0x54f   :  { %5487 = vrcp.f32 %v1712_v7  ;;  %v7601_v7 = vld [vmem:[#allocation8 + $0x20] ss:$12 sps:$4 sm:$0xff]  }
 0x558   :  { %v5486_v10 = vpop.eup %5485 }
 0x559   :  { %v1715_v20 = vmul.f32 %v5486_v10, %v1699_v21  ;;  %v5488_v18 = vpop.eup %5487  ;;  %v7604_v21 = vld [vmem:[#allocation8 + $0x34] ss:$12 sps:$4 sm:$0xff]   ;;  %v7608_v10 = vld [vmem:[#allocation8 + $0x30] ss:$12 sps:$4 sm:$0xff]  }
 0x55a   :  { %v1718_v16 = vsub.f32 1.0, %v5488_v18  ;;  %v1720_v8 = vmul.f32 %v5488_v18, %v7299_v23  ;;  %v10533_v23 = vmov 0   ;;  %v10567_v18 = vld [vmem:[#allocation81_spill] sm:$0xff] }
 0x55b   :  { %v1716_v37 = vadd.f32 %v1715_v20, %v1697_v33  ;;  %v7611_v33 = vld [vmem:[#allocation8 + $0x38] ss:$12 sps:$4 sm:$0xff]  }
 0x55c   :  { %v7614_v20 = vld [vmem:[#allocation8 + $0x4c] ss:$12 sps:$4 sm:$0xff]  }
 0x55d   :  { %5489 = vtanh.f32 %v1716_v37  ;;  %v7618_v37 = vld [vmem:[#allocation8 + $0x48] ss:$12 sps:$4 sm:$0xff]  }
 0x567   :  { %v5490_v0 = vpop.eup %5489 }
 0x568   :  { %v1719_v17 = vmul.f32 %v5490_v0, %v1718_v16  ;;  %v10568_v16 = vld [vmem:[#allocation82_spill] sm:$0xff]  ;;  %v10569_v0 = vld [vmem:[#allocation83_spill] sm:$0xff] }
 0x56a   :  { %v7581_v31 = vadd.f32 %v1720_v8, %v1719_v17  ;;  %v7598_v8 = vld [vmem:[#allocation8 + $0x18] ss:$12 sps:$4 sm:$0xff]  }
 0x56b   :  { %v10570_v17 = vld [vmem:[#allocation84_spill] sm:$0xff] }
 0x56c   :  { %v1722_v13 = vpack.c.bf16 %v7581_v31, %v7581_v31 }
 0x56e   :  { %2098 = vmatmul.mubr.bf16.vlgmr.msra.gmra.mrb[24].mxu1 %v1722_v13  ;;  %2139 = vmatmul.mubr.bf16.vlgmr.msra.gmra.mrb[20].mxu0 %v1722_v13 }
 0x56f   :  { %2167 = vmatpush1.bf16.msra.mxu1 %v7585_v11  ;;  %4971 = vmatpush3.bf16.msra.mxu0 %v7588_v35 }
 0x570   :  { %2168 = vmatprep.subr.bf16.mxu1 %v7591_v24  ;;  %4972 = vmatprep.subr.bf16.mxu0 %v10530_v61 }
 0x571   :  { %2198 = vmatprep.mubr.bf16.mxu1 %v10533_v23  ;;  %4986 = vmatprep.mubr.msk.bf16.mxu0 %vm6485_vm0, %v10530_v61 }
 0x573   :  { %2169 = vmatpush1.bf16.msra.mxu1 %v7598_v8  ;;  %4973 = vmatpush3.bf16.msra.mxu0 %v7601_v7 }
 0x574   :  { %2170 = vmatprep.subr.bf16.mxu1 %v7604_v21  ;;  %4974 = vmatprep.subr.bf16.mxu0 %v10530_v61 }
 0x577   :  { %2171 = vmatpush1.bf16.msra.mxu1 %v7608_v10  ;;  %4975 = vmatpush3.bf16.msra.mxu0 %v7611_v33 }
 0x578   :  { %2172 = vmatprep.subr.bf16.mxu1 %v7614_v20  ;;  %4976 = vmatprep.subr.bf16.mxu0 %v10530_v61 }
 0x57b   :  { %2173 = vmatpush1.bf16.msra.mxu1 %v7618_v37  ;;  %4977 = vmatpush3.bf16.msra.mxu0 %v6987_v36  ;;  %v10534_v36 = vld [vmem:[#allocation48_spill] sm:$0xff] }
 0x57c   :  { %2174 = vmatprep.subr.bf16.mxu1 %v6992_v39  ;;  %4978 = vmatprep.subr.bf16.mxu0 %v10530_v61  ;;  %v10535_v39 = vld [vmem:[#allocation49_spill] sm:$0xff] }
 0x57f   :  { %2175 = vmatpush1.bf16.msra.mxu1 %v6994_v40  ;;  %4979 = vmatpush3.bf16.msra.mxu0 %v6997_v41  ;;  %v10536_v40 = vld [vmem:[#allocation50_spill] sm:$0xff]  ;;  %v10537_v41 = vld [vmem:[#allocation51_spill] sm:$0xff] }
 0x580   :  { %2176 = vmatprep.subr.bf16.mxu1 %v7004_v43  ;;  %4980 = vmatprep.subr.bf16.mxu0 %v10530_v61  ;;  %v10538_v43 = vld [vmem:[#allocation52_spill] sm:$0xff] }
 0x583   :  { %2177 = vmatpush1.bf16.msra.mxu1 %v7007_v44  ;;  %4981 = vmatpush3.bf16.msra.mxu0 %v7016_v47  ;;  %v10539_v44 = vld [vmem:[#allocation53_spill] sm:$0xff]  ;;  %v10540_v47 = vld [vmem:[#allocation54_spill] sm:$0xff] }
 0x584   :  { %2178 = vmatprep.subr.bf16.mxu1 %v7026_v49  ;;  %4982 = vmatprep.subr.bf16.mxu0 %v10530_v61  ;;  %v10541_v49 = vld [vmem:[#allocation55_spill] sm:$0xff] }
 0x587   :  { %2179 = vmatpush1.bf16.msra.mxu1 %v7028_v50  ;;  %4983 = vmatpush3.bf16.msra.mxu0 %v7030_v51  ;;  %v10542_v50 = vld [vmem:[#allocation56_spill] sm:$0xff]  ;;  %v10543_v51 = vld [vmem:[#allocation57_spill] sm:$0xff] }
 0x588   :  { %2180 = vmatprep.subr.bf16.mxu1 %v7032_v52  ;;  %4984 = vmatprep.subr.bf16.mxu0 %v10530_v61  ;;  %v10544_v52 = vld [vmem:[#allocation58_spill] sm:$0xff] }
 0x58b   :  { %2181 = vmatpush1.bf16.msra.mxu1 %v7037_v53  ;;  %4985 = vmatpush3.bf16.msra.mxu0 %v7039_v54  ;;  %v10545_v53 = vld [vmem:[#allocation59_spill] sm:$0xff]  ;;  %v10546_v54 = vld [vmem:[#allocation60_spill] sm:$0xff] }
 0x58c   :  { %2269 = vmatprep.subr.bf16.mxu1 %v7045_v55  ;;  %2310 = vmatprep.subr.bf16.mxu0 %v7047_v56  ;;  %v10547_v55 = vld [vmem:[#allocation61_spill] sm:$0xff]  ;;  %v10548_v56 = vld [vmem:[#allocation62_spill] sm:$0xff] }
 0x58e   :  { %2199 = vmatmul.mubr.bf16.vlgmr.msra.gmra.mrb[28].mxu1 %v7370_v19  ;;  %4987 = vmatmul.mubr.bf16.vlgmr.msra.gmra.mrb[24].mxu0 %v7370_v19  ;;  %v10566_v19 = vld [vmem:[#allocation80_spill] sm:$0xff] }
 0x58f   :  { %2301 = vmatprep.mubr.bf16.mxu1 %v1722_v13  ;;  %2342 = vmatprep.mubr.bf16.mxu0 %v1722_v13  ;;  %v10571_v13 = vld [vmem:[#allocation85_spill] sm:$0xff] }
 0x590   :  { %2270 = vmatpush1.bf16.msra.mxu1 %v7056_v38  ;;  %2311 = vmatpush1.bf16.msra.mxu0 %v7058_v42  ;;  %v10549_v38 = vld [vmem:[#allocation63_spill] sm:$0xff]  ;;  %v10550_v42 = vld [vmem:[#allocation64_spill] sm:$0xff] }
 0x591   :  { %2271 = vmatprep.subr.bf16.mxu1 %v7062_v46  ;;  %2312 = vmatprep.subr.bf16.mxu0 %v7064_v48  ;;  %v10551_v46 = vld [vmem:[#allocation65_spill] sm:$0xff]  ;;  %v10552_v48 = vld [vmem:[#allocation66_spill] sm:$0xff] }
 0x594   :  { %2272 = vmatpush1.bf16.msra.mxu1 %v7068_v57  ;;  %2313 = vmatpush1.bf16.msra.mxu0 %v7070_v58  ;;  %v10553_v57 = vld [vmem:[#allocation67_spill] sm:$0xff]  ;;  %v10554_v58 = vld [vmem:[#allocation68_spill] sm:$0xff] }
 0x595   :  { %2273 = vmatprep.subr.bf16.mxu1 %v7074_v59  ;;  %2314 = vmatprep.subr.bf16.mxu0 %v7076_v60  ;;  %v10555_v59 = vld [vmem:[#allocation69_spill] sm:$0xff]  ;;  %v10556_v60 = vld [vmem:[#allocation70_spill] sm:$0xff] }
 0x598   :  { %2274 = vmatpush1.bf16.msra.mxu1 %v7080_v62  ;;  %2315 = vmatpush1.bf16.msra.mxu0 %v7082_v63  ;;  %v10557_v62 = vld [vmem:[#allocation71_spill] sm:$0xff]  ;;  %v10558_v63 = vld [vmem:[#allocation72_spill] sm:$0xff] }
 0x599   :  { %2275 = vmatprep.subr.bf16.mxu1 %v7177_v22  ;;  %2316 = vmatprep.subr.bf16.mxu0 %v7179_v15  ;;  %v10559_v15 = vld [vmem:[#allocation73_spill] sm:$0xff]  ;;  %v10561_v22 = vld [vmem:[#allocation75_spill] sm:$0xff] }
 0x59c   :  { %2276 = vmatpush1.bf16.msra.mxu1 %v7181_v26  ;;  %2317 = vmatpush1.bf16.msra.mxu0 %v7183_v32  ;;  %v10560_v32 = vld [vmem:[#allocation74_spill] sm:$0xff]  ;;  %v10562_v26 = vld [vmem:[#allocation76_spill] sm:$0xff] }
 0x59d   :  { %2277 = vmatprep.subr.bf16.mxu1 %v7189_v30  ;;  %2318 = vmatprep.subr.bf16.mxu0 %v7191_v34  ;;  %v10563_v30 = vld [vmem:[#allocation77_spill] sm:$0xff]  ;;  %v10564_v34 = vld [vmem:[#allocation78_spill] sm:$0xff] }
 0x5a0   :  { %2278 = vmatpush1.bf16.msra.mxu1 %v7193_v5  ;;  %2319 = vmatpush1.bf16.msra.mxu0 %v10534_v36  ;;  %v10565_v5 = vld [vmem:[#allocation79_spill] sm:$0xff]  ;;  %v10572_v36 = vld [vmem:[#allocation86_spill] sm:$0xff] }
 0x5a1   :  { %2279 = vmatprep.subr.bf16.mxu1 %v10535_v39  ;;  %2320 = vmatprep.subr.bf16.mxu0 %v10536_v40  ;;  %v10573_v39 = vld [vmem:[#allocation87_spill] sm:$0xff]  ;;  %v10574_v40 = vld [vmem:[#allocation88_spill] sm:$0xff] }
 0x5a4   :  { %2280 = vmatpush1.bf16.msra.mxu1 %v10537_v41  ;;  %2321 = vmatpush1.bf16.msra.mxu0 %v10538_v43  ;;  %v10575_v41 = vld [vmem:[#allocation89_spill] sm:$0xff]  ;;  %v10576_v43 = vld [vmem:[#allocation90_spill] sm:$0xff] }
 0x5a5   :  { %2281 = vmatprep.subr.bf16.mxu1 %v10539_v44  ;;  %2322 = vmatprep.subr.bf16.mxu0 %v10540_v47  ;;  %v10577_v44 = vld [vmem:[#allocation91_spill] sm:$0xff]  ;;  %v10578_v47 = vld [vmem:[#allocation92_spill] sm:$0xff] }
 0x5a8   :  { %2282 = vmatpush1.bf16.msra.mxu1 %v10541_v49  ;;  %2323 = vmatpush1.bf16.msra.mxu0 %v10542_v50  ;;  %v10579_v49 = vld [vmem:[#allocation93_spill] sm:$0xff]  ;;  %v10580_v50 = vld [vmem:[#allocation94_spill] sm:$0xff] }
 0x5a9   :  { %2283 = vmatprep.subr.bf16.mxu1 %v10543_v51  ;;  %2324 = vmatprep.subr.bf16.mxu0 %v10544_v52  ;;  %v1030_v51 = vld [vmem:[%s9918_s13] sm:$0xf] }
 0x5aa   :  { %v7710_v52 = vrot.slane %v1030_v51, %v7091_v3 }
 0x5ac   :  { %2284 = vmatpush1.bf16.msra.mxu1 %v10545_v53  ;;  %2325 = vmatpush1.bf16.msra.mxu0 %v10546_v54  ;;  %10581 = vst [vmem:[#allocation48_spill] sm:$0xff] %v7710_v52 }
 0x5ad   :  { %2285 = vmatprep.subr.bf16.mxu1 %v10547_v55  ;;  %2326 = vmatprep.subr.bf16.mxu0 %v10548_v56  ;;  %v7713_v55 = vrot.slane %v1030_v51, %v7097_v6  ;;  %v10583_v6 = vsub.s32 3, %v7088_v2 }
 0x5af   :  { %10582 = vst [vmem:[#allocation49_spill] sm:$0xff] %v7713_v55 }
 0x5b0   :  { %2286 = vmatpush1.bf16.msra.mxu1 %v10549_v38  ;;  %2327 = vmatpush1.bf16.msra.mxu0 %v10550_v42 }
 0x5b1   :  { %2287 = vmatprep.subr.bf16.mxu1 %v10551_v46  ;;  %2328 = vmatprep.subr.bf16.mxu0 %v10552_v48 }
 0x5b4   :  { %2288 = vmatpush1.bf16.msra.mxu1 %v10553_v57  ;;  %2329 = vmatpush1.bf16.msra.mxu0 %v10554_v58 }
 0x5b5   :  { %2289 = vmatprep.subr.bf16.mxu1 %v10555_v59  ;;  %2330 = vmatprep.subr.bf16.mxu0 %v10556_v60 }
 0x5b8   :  { %2290 = vmatpush1.bf16.msra.mxu1 %v10557_v62  ;;  %2331 = vmatpush1.bf16.msra.mxu0 %v10558_v63 }
 0x5b9   :  { %2291 = vmatprep.subr.bf16.mxu1 %v10559_v15  ;;  %2332 = vmatprep.subr.bf16.mxu0 %v10560_v32  ;;  %v7719_v32 = vrot.slane %v1030_v51, %v10583_v6 }
 0x5bb   :  { %10584 = vst [vmem:[#allocation50_spill] sm:$0xff] %v7719_v32 }
 0x5bc   :  { %2292 = vmatpush1.bf16.msra.mxu1 %v10561_v22  ;;  %2333 = vmatpush1.bf16.msra.mxu0 %v10562_v26  ;;  %v7722_v22 = vrot.slane %v1030_v51, %v7094_v4 }
 0x5bd   :  { %2293 = vmatprep.subr.bf16.mxu1 %v10563_v30  ;;  %2334 = vmatprep.subr.bf16.mxu0 %v10564_v34 }
 0x5c0   :  { %2294 = vmatpush1.bf16.msra.mxu1 %v10565_v5  ;;  %2335 = vmatpush1.bf16.msra.mxu0 %v10566_v19 }
 0x5c1   :  { %2295 = vmatprep.subr.bf16.mxu1 %v10567_v18  ;;  %2336 = vmatprep.subr.bf16.mxu0 %v10568_v16 }
 0x5c4   :  { %2296 = vmatpush1.bf16.msra.mxu1 %v10569_v0  ;;  %2337 = vmatpush1.bf16.msra.mxu0 %v10570_v17 }
 0x5c5   :  { %2297 = vmatprep.subr.bf16.mxu1 %v10571_v13  ;;  %2338 = vmatprep.subr.bf16.mxu0 %v10572_v36 }
 0x5c8   :  { %2298 = vmatpush1.bf16.msra.mxu1 %v10573_v39  ;;  %2339 = vmatpush1.bf16.msra.mxu0 %v10574_v40  ;;  %v10585_v40 = vld [vmem:[#allocation27_spill] sm:$0xff] }
 0x5c9   :  { %2299 = vmatprep.subr.bf16.mxu1 %v10575_v41  ;;  %2340 = vmatprep.subr.bf16.mxu0 %v10576_v43 }
 0x5cc   :  { %2300 = vmatpush1.bf16.msra.mxu1 %v10577_v44  ;;  %2341 = vmatpush1.bf16.msra.mxu0 %v10578_v47  ;;  %v10586_v47 = vld [vmem:[#allocation29_spill] sm:$0xff] }
 0x5cd   :  { %2372 = vmatprep.subr.bf16.mxu1 %v10579_v49  ;;  %2413 = vmatprep.subr.bf16.mxu0 %v10580_v50 }
 0x641   :  { %v2099_v53 = vpop.f32.mrb[24].mxu1  ;;  %v2140_v54 = vpop.f32.mrb[20].mxu0 }
 0x642   :  { %v2100_v56 = vadd.f32 %v2099_v53, %v7710_v52  ;;  %v2101_v38 = vpop.f32.mrb[25].mxu1  ;;  %v2142_v42 = vpop.f32.mrb[21].mxu0  ;;  %v2141_v5 = vadd.f32 %v2140_v54, %v7722_v22 }
 0x643   :  { %v2103_v46 = vpop.f32.mrb[26].mxu1  ;;  %v2144_v48 = vpop.f32.mrb[22].mxu0  ;;  %v2102_v60 = vadd.f32 %v2101_v38, %v7713_v55  ;;  %v2143_v30 = vadd.f32 %v2142_v42, %v7719_v32 }
 0x644   :  { %v4717_v57 = vmul.f32 -1.442695, %v2100_v56  ;;  %v2104_v58 = vpop.f32.mrb[27].mxu1  ;;  %v2145_v59 = vpop.f32.mrb[23].mxu0 }
 0x645   :  { %v4718_v62 = vmul.f32 -1.442695, %v2102_v60 }
 0x646   :  { %5491 = vpow2.f32 %v4717_v57 }
 0x647   :  { %5493 = vpow2.f32 %v4718_v62 }
 0x650   :  { %v5492_v3 = vpop.eup %5491 }
 0x651   :  { %v2150_v63 = vadd.f32 1.0, %v5492_v3  ;;  %v5494_v15 = vpop.eup %5493 }
 0x652   :  { %v2156_v26 = vadd.f32 1.0, %v5494_v15 }
 0x653   :  { %5495 = vrcp.f32 %v2150_v63  ;;  %v10588_v63 = vld [vmem:[#allocation31_spill] sm:$0xff] }
 0x654   :  { %5497 = vrcp.f32 %v2156_v26 }
 0x65d   :  { %v5496_v34 = vpop.eup %5495 }
 0x65e   :  { %v2159_v19 = vmul.f32 %v5496_v34, %v2143_v30  ;;  %v5498_v51 = vpop.eup %5497 }
 0x65f   :  { %v2162_v54 = vsub.f32 1.0, %v5498_v51  ;;  %v2164_v42 = vmul.f32 %v7502_v28, %v5498_v51  ;;  %v10606_v51 = vld [vmem:[#allocation112_spill] sm:$0xff] }
 0x660   :  { %v2160_v18 = vadd.f32 %v2159_v19, %v2141_v5 }
 0x661   :  { %v2200_v16 = vpop.f32.mrb[28].mxu1  ;;  %v2241_v0 = vpop.f32.mrb[24].mxu0 }
 0x662   :  { %5499 = vtanh.f32 %v2160_v18  ;;  %v2201_v17 = vadd.f32 %v2200_v16, %v7344_v27  ;;  %v2202_v2 = vpop.f32.mrb[29].mxu1  ;;  %v4988_v13 = vpop.f32.mrb[25].mxu0  ;;  %v2242_v60 = vadd.f32 %v2241_v0, %v7356_v14  ;;  %v10589_v16 = vld [vmem:[#allocation95_spill] sm:$0xff]  ;;  %v10591_v0 = vld [vmem:[#allocation97_spill] sm:$0xff] }
 0x663   :  { %v2203_v36 = vadd.f32 %v2202_v2, %v7347_v29  ;;  %v2204_v4 = vpop.f32.mrb[30].mxu1  ;;  %v2244_v39 = vpop.f32.mrb[26].mxu0  ;;  %v10593_v2 = vld [vmem:[#allocation99_spill] sm:$0xff]  ;;  %v10594_v13 = vld [vmem:[#allocation100_spill] sm:$0xff] }
 0x664   :  { %v2247_v41 = vadd.f32 %v2201_v17, %v10585_v40  ;;  %v2205_v43 = vpop.f32.mrb[31].mxu1  ;;  %v4989_v44 = vpop.f32.mrb[27].mxu0  ;;  %v10592_v17 = vld [vmem:[#allocation98_spill] sm:$0xff]  ;;  %v10597_v39 = vld [vmem:[#allocation103_spill] sm:$0xff]  ;;  %v10598_v40 = vld [vmem:[#allocation104_spill] sm:$0xff] }
 0x665   :  { %v2254_v49 = vadd.f32 %v2203_v36, %v10586_v47  ;;  %v10595_v36 = vld [vmem:[#allocation101_spill] sm:$0xff]  ;;  %v10596_v4 = vld [vmem:[#allocation102_spill] sm:$0xff]  ;;  %v10601_v43 = vld [vmem:[#allocation107_spill] sm:$0xff] }
 0x666   :  { %v4719_v50 = vmul.f32 -1.442695, %v2247_v41  ;;  %v10600_v41 = vld [vmem:[#allocation106_spill] sm:$0xff]  ;;  %v10602_v44 = vld [vmem:[#allocation108_spill] sm:$0xff]  ;;  %v10603_v47 = vld [vmem:[#allocation109_spill] sm:$0xff] }
 0x667   :  { %v4720_v53 = vmul.f32 -1.442695, %v2254_v49  ;;  %v10604_v49 = vld [vmem:[#allocation110_spill] sm:$0xff] }
 0x668   :  { %5501 = vpow2.f32 %v4719_v50  ;;  %v10605_v50 = vld [vmem:[#allocation111_spill] sm:$0xff] }
 0x669   :  { %5503 = vpow2.f32 %v4720_v53  ;;  %v10607_v53 = vld [vmem:[#allocation113_spill] sm:$0xff] }
 0x66c   :  { %v5500_v56 = vpop.eup %5499 }
 0x66d   :  { %v2163_v38 = vmul.f32 %v5500_v56, %v2162_v54  ;;  %v10608_v54 = vld [vmem:[#allocation114_spill] sm:$0xff]  ;;  %v10609_v56 = vld [vmem:[#allocation115_spill] sm:$0xff] }
 0x66f   :  { %v7731_v46 = vadd.f32 %v2164_v42, %v2163_v38  ;;  %v10610_v38 = vld [vmem:[#allocation116_spill] sm:$0xff]  ;;  %v10611_v42 = vld [vmem:[#allocation117_spill] sm:$0xff] }
 0x671   :  { %10587 = vst [vmem:[#allocation51_spill] sm:$0xff] %v7731_v46  ;;  %v2371_v18 = vpack.c.bf16 %v7731_v46, %v7731_v46 }
 0x672   :  { %v5502_v48 = vpop.eup %5501 }
 0x673   :  { %v2251_v57 = vadd.f32 1.0, %v5502_v48  ;;  %v5504_v58 = vpop.eup %5503  ;;  %v10612_v48 = vld [vmem:[#allocation118_spill] sm:$0xff] }
 0x674   :  { %v2258_v59 = vadd.f32 1.0, %v5504_v58  ;;  %v10614_v58 = vld [vmem:[#allocation120_spill] sm:$0xff] }
 0x675   :  { %5505 = vrcp.f32 %v2251_v57  ;;  %v10613_v57 = vld [vmem:[#allocation119_spill] sm:$0xff] }
 0x676   :  { %5507 = vrcp.f32 %v2258_v59  ;;  %v10615_v59 = vld [vmem:[#allocation121_spill] sm:$0xff] }
 0x67f   :  { %v5506_v62 = vpop.eup %5505 }
 0x680   :  { %v2261_v3 = vmul.f32 %v5506_v62, %v2242_v60  ;;  %v5508_v6 = vpop.eup %5507  ;;  %v10616_v60 = vld [vmem:[#allocation122_spill] sm:$0xff]  ;;  %v10617_v62 = vld [vmem:[#allocation123_spill] sm:$0xff] }
 0x681   :  { %v2264_v26 = vsub.f32 1.0, %v5508_v6  ;;  %v2266_v34 = vmul.f32 %v5508_v6, %v7362_v45  ;;  %v10590_v45 = vld [vmem:[#allocation96_spill] sm:$0xff]  ;;  %v10621_v6 = vld [vmem:[#allocation127_spill] sm:$0xff] }
 0x682   :  { %v2262_v15 = vadd.f32 %v2261_v3, %v10588_v63  ;;  %v10618_v3 = vld [vmem:[#allocation124_spill] sm:$0xff]  ;;  %v10619_v63 = vld [vmem:[#allocation125_spill] sm:$0xff] }
 0x684   :  { %5509 = vtanh.f32 %v2262_v15  ;;  %v10620_v15 = vld [vmem:[#allocation126_spill] sm:$0xff] }
 0x68e   :  { %v5510_v30 = vpop.eup %5509 }
 0x68f   :  { %v2265_v28 = vmul.f32 %v5510_v30, %v2264_v26  ;;  %v10622_v26 = vld [vmem:[#allocation128_spill] sm:$0xff]  ;;  %v10623_v30 = vld [vmem:[#allocation129_spill] sm:$0xff] }
 0x691   :  { %v7736_v5 = vadd.f32 %v2266_v34, %v2265_v28  ;;  %v10624_v28 = vld [vmem:[#allocation130_spill] sm:$0xff]  ;;  %v10625_v34 = vld [vmem:[#allocation131_spill] sm:$0xff] }
 0x693   :  { %v7740_v19 = vpack.c.bf16 %v7736_v5, %v7736_v5 }
 0x695   :  { %2302 = vmatmul.mubr.bf16.vlgmr.msra.gmra.mrb[32].mxu1 %v7740_v19  ;;  %2343 = vmatmul.mubr.bf16.vlgmr.msra.gmra.mrb[28].mxu0 %v7740_v19 }
 0x696   :  { %2404 = vmatprep.mubr.bf16.mxu1 %v2371_v18  ;;  %2445 = vmatprep.mubr.bf16.mxu0 %v2371_v18  ;;  %v10626_v18 = vld [vmem:[#allocation132_spill] sm:$0xff] }
 0x697   :  { %2373 = vmatpush1.bf16.msra.mxu1 %v7364_v25  ;;  %2414 = vmatpush1.bf16.msra.mxu0 %v10589_v16  ;;  %v10599_v25 = vld [vmem:[#allocation105_spill] sm:$0xff] }
 0x698   :  { %2374 = vmatprep.subr.bf16.mxu1 %v10590_v45  ;;  %2415 = vmatprep.subr.bf16.mxu0 %v10591_v0  ;;  %v10627_v16 = vld [vmem:[#allocation133_spill] sm:$0xff]  ;;  %v10628_v45 = vld [vmem:[#allocation134_spill] sm:$0xff]  ;;  %v10629_v0 = vld [vmem:[#allocation135_spill] sm:$0xff] }
 0x69b   :  { %2375 = vmatpush1.bf16.msra.mxu1 %v10592_v17  ;;  %2416 = vmatpush1.bf16.msra.mxu0 %v10593_v2  ;;  %v10630_v17 = vld [vmem:[#allocation136_spill] sm:$0xff]  ;;  %v10631_v2 = vld [vmem:[#allocation137_spill] sm:$0xff] }
 0x69c   :  { %2376 = vmatprep.subr.bf16.mxu1 %v10594_v13  ;;  %2417 = vmatprep.subr.bf16.mxu0 %v10595_v36  ;;  %v10632_v13 = vld [vmem:[#allocation138_spill] sm:$0xff]  ;;  %v10633_v36 = vld [vmem:[#allocation139_spill] sm:$0xff] }
 0x69f   :  { %2377 = vmatpush1.bf16.msra.mxu1 %v10596_v4  ;;  %2418 = vmatpush1.bf16.msra.mxu0 %v10597_v39  ;;  %v10634_v4 = vld [vmem:[#allocation140_spill] sm:$0xff]  ;;  %v10635_v39 = vld [vmem:[#allocation141_spill] sm:$0xff] }
 0x6a0   :  { %2378 = vmatprep.subr.bf16.mxu1 %v10598_v40  ;;  %2419 = vmatprep.subr.bf16.mxu0 %v10599_v25  ;;  %v10636_v40 = vld [vmem:[#allocation142_spill] sm:$0xff]  ;;  %v10637_v25 = vld [vmem:[#allocation143_spill] sm:$0xff] }
 0x6a3   :  { %2379 = vmatpush1.bf16.msra.mxu1 %v10600_v41  ;;  %2420 = vmatpush1.bf16.msra.mxu0 %v10601_v43  ;;  %v10638_v41 = vld [vmem:[#allocation144_spill] sm:$0xff]  ;;  %v10639_v43 = vld [vmem:[#allocation145_spill] sm:$0xff] }
 0x6a4   :  { %2380 = vmatprep.subr.bf16.mxu1 %v10602_v44  ;;  %2421 = vmatprep.subr.bf16.mxu0 %v10603_v47  ;;  %v10640_v44 = vld [vmem:[#allocation146_spill] sm:$0xff]  ;;  %v10641_v47 = vld [vmem:[#allocation147_spill] sm:$0xff] }
 0x6a7   :  { %2381 = vmatpush1.bf16.msra.mxu1 %v10604_v49  ;;  %2422 = vmatpush1.bf16.msra.mxu0 %v10605_v50  ;;  %v10642_v49 = vld [vmem:[#allocation148_spill] sm:$0xff]  ;;  %v10643_v50 = vld [vmem:[#allocation149_spill] sm:$0xff] }
 0x6a8   :  { %2382 = vmatprep.subr.bf16.mxu1 %v10606_v51  ;;  %2423 = vmatprep.subr.bf16.mxu0 %v10607_v53  ;;  %v10644_v51 = vld [vmem:[#allocation150_spill] sm:$0xff]  ;;  %v10645_v53 = vld [vmem:[#allocation151_spill] sm:$0xff] }
 0x6ab   :  { %2383 = vmatpush1.bf16.msra.mxu1 %v10608_v54  ;;  %2424 = vmatpush1.bf16.msra.mxu0 %v10609_v56  ;;  %v10646_v54 = vld [vmem:[#allocation152_spill] sm:$0xff]  ;;  %v10647_v56 = vld [vmem:[#allocation153_spill] sm:$0xff] }
 0x6ac   :  { %2384 = vmatprep.subr.bf16.mxu1 %v10610_v38  ;;  %2425 = vmatprep.subr.bf16.mxu0 %v10611_v42  ;;  %v10648_v38 = vld [vmem:[#allocation154_spill] sm:$0xff]  ;;  %v10649_v42 = vld [vmem:[#allocation155_spill] sm:$0xff] }
 0x6af   :  { %2385 = vmatpush1.bf16.msra.mxu1 %v10612_v48  ;;  %2426 = vmatpush1.bf16.msra.mxu0 %v10613_v57  ;;  %v7808_v48 = vld [vmem:[#allocation8 + $0x4] ss:$12 sps:$4 sm:$0xff]  }
 0x6b0   :  { %2386 = vmatprep.subr.bf16.mxu1 %v10614_v58  ;;  %2427 = vmatprep.subr.bf16.mxu0 %v10615_v59 }
 0x6b3   :  { %2387 = vmatpush1.bf16.msra.mxu1 %v10616_v60  ;;  %2428 = vmatpush1.bf16.msra.mxu0 %v10617_v62 }
 0x6b4   :  { %2388 = vmatprep.subr.bf16.mxu1 %v10618_v3  ;;  %2429 = vmatprep.subr.bf16.mxu0 %v10619_v63 }
 0x6b7   :  { %2389 = vmatpush1.bf16.msra.mxu1 %v10620_v15  ;;  %2430 = vmatpush1.bf16.msra.mxu0 %v10621_v6 }
 0x6b8   :  { %2390 = vmatprep.subr.bf16.mxu1 %v10622_v26  ;;  %2431 = vmatprep.subr.bf16.mxu0 %v10623_v30  ;;  %v10650_v30 = vld [vmem:[#allocation157_spill] sm:$0xff] }
 0x6bb   :  { %2391 = vmatpush1.bf16.msra.mxu1 %v10624_v28  ;;  %2432 = vmatpush1.bf16.msra.mxu0 %v10625_v34 }
 0x6bc   :  { %2392 = vmatprep.subr.bf16.mxu1 %v10626_v18  ;;  %2433 = vmatprep.subr.bf16.mxu0 %v10627_v16 }
 0x6bf   :  { %2393 = vmatpush1.bf16.msra.mxu1 %v10628_v45  ;;  %2434 = vmatpush1.bf16.msra.mxu0 %v10629_v0 }
 0x6c0   :  { %2394 = vmatprep.subr.bf16.mxu1 %v10630_v17  ;;  %2435 = vmatprep.subr.bf16.mxu0 %v10631_v2 }
 0x6c3   :  { %2395 = vmatpush1.bf16.msra.mxu1 %v10632_v13  ;;  %2436 = vmatpush1.bf16.msra.mxu0 %v10633_v36 }
 0x6c4   :  { %2396 = vmatprep.subr.bf16.mxu1 %v10634_v4  ;;  %2437 = vmatprep.subr.bf16.mxu0 %v10635_v39 }
 0x6c7   :  { %2397 = vmatpush1.bf16.msra.mxu1 %v10636_v40  ;;  %2438 = vmatpush1.bf16.msra.mxu0 %v10637_v25 }
 0x6c8   :  { %2398 = vmatprep.subr.bf16.mxu1 %v10638_v41  ;;  %2439 = vmatprep.subr.bf16.mxu0 %v10639_v43 }
 0x6cb   :  { %2399 = vmatpush1.bf16.msra.mxu1 %v10640_v44  ;;  %2440 = vmatpush1.bf16.msra.mxu0 %v10641_v47 }
 0x6cc   :  { %2400 = vmatprep.subr.bf16.mxu1 %v10642_v49  ;;  %2441 = vmatprep.subr.bf16.mxu0 %v10643_v50  ;;  %v7874_v49 = vld [vmem:[#allocation8 + $0xa8] ss:$12 sps:$4 sm:$0xff]   ;;  %v7877_v50 = vld [vmem:[#allocation8 + $0xb0] ss:$12 sps:$4 sm:$0xff]  }
 0x6cf   :  { %2401 = vmatpush1.bf16.msra.mxu1 %v10644_v51  ;;  %2442 = vmatpush1.bf16.msra.mxu0 %v10645_v53  ;;  %v7880_v51 = vld [vmem:[#allocation13 + $0x4] ss:$16 sps:$4 sm:$0xff]   ;;  %v7883_v53 = vld [vmem:[#allocation13 + $0xc] ss:$16 sps:$4 sm:$0xff]  }
 0x6d0   :  { %2402 = vmatprep.subr.bf16.mxu1 %v10646_v54  ;;  %2443 = vmatprep.subr.bf16.mxu0 %v10647_v56  ;;  %v7888_v54 = vld [vmem:[#allocation13] ss:$16 sps:$4 sm:$0xff]   ;;  %v7891_v56 = vld [vmem:[#allocation13 + $0x8] ss:$16 sps:$4 sm:$0xff]  }
 0x6d3   :  { %2403 = vmatpush1.bf16.msra.mxu1 %v10648_v38  ;;  %2444 = vmatpush1.bf16.msra.mxu0 %v10649_v42  ;;  %v7894_v38 = vld [vmem:[#allocation13 + $0x24] ss:$16 sps:$4 sm:$0xff]   ;;  %v7897_v42 = vld [vmem:[#allocation13 + $0x2c] ss:$16 sps:$4 sm:$0xff]  }
 0x6d4   :  { %2473 = vmatprep.subr.bf16.mxu1 %v7808_v48  ;;  %4990 = vmatprep.subr.bf16.mxu0 %v10530_v61 }
 0x768   :  { %v2303_v57 = vpop.f32.mrb[32].mxu1  ;;  %v2344_v58 = vpop.f32.mrb[28].mxu0 }
 0x769   :  { %v2304_v59 = vadd.f32 %v2303_v57, %v7563_v12  ;;  %v2305_v60 = vpop.f32.mrb[33].mxu1  ;;  %v2346_v62 = vpop.f32.mrb[29].mxu0  ;;  %v2345_v13 = vadd.f32 %v2344_v58, %v7576_v9  ;;  %v7900_v57 = vld [vmem:[#allocation13 + $0x20] ss:$16 sps:$4 sm:$0xff]   ;;  %v7906_v58 = vld [vmem:[#allocation13 + $0x44] ss:$16 sps:$4 sm:$0xff]  }
 0x76a   :  { %v2307_v3 = vpop.f32.mrb[34].mxu1  ;;  %v2348_v63 = vpop.f32.mrb[30].mxu0  ;;  %v2306_v28 = vadd.f32 %v2305_v60, %v10650_v30  ;;  %v2347_v17 = vadd.f32 %v2346_v62, %v7573_v1  ;;  %v7912_v60 = vld [vmem:[#allocation13 + $0x40] ss:$16 sps:$4 sm:$0xff]   ;;  %v7915_v62 = vld [vmem:[#allocation13 + $0x48] ss:$16 sps:$4 sm:$0xff]  }
 0x76b   :  { %v4721_v15 = vmul.f32 -1.442695, %v2304_v59  ;;  %v2308_v6 = vpop.f32.mrb[35].mxu1  ;;  %v2349_v26 = vpop.f32.mrb[31].mxu0  ;;  %v7909_v59 = vld [vmem:[#allocation13 + $0x4c] ss:$16 sps:$4 sm:$0xff]  }
 0x76c   :  { %v4722_v34 = vmul.f32 -1.442695, %v2306_v28  ;;  %v7918_v3 = vld [vmem:[#allocation13 + $0x64] ss:$16 sps:$4 sm:$0xff]   ;;  %v7921_v63 = vld [vmem:[#allocation13 + $0x6c] ss:$16 sps:$4 sm:$0xff]  }
 0x76d   :  { %5511 = vpow2.f32 %v4721_v15  ;;  %v7924_v15 = vld [vmem:[#allocation13 + $0x60] ss:$16 sps:$4 sm:$0xff]   ;;  %v7927_v6 = vld [vmem:[#allocation13 + $0x68] ss:$16 sps:$4 sm:$0xff]   ;;  %v7930_v26 = vld [vmem:[#allocation13 + $0x84] ss:$16 sps:$4 sm:$0xff]  }
 0x76e   :  { %5513 = vpow2.f32 %v4722_v34  ;;  %v7933_v28 = vld [vmem:[#allocation13 + $0x8c] ss:$16 sps:$4 sm:$0xff]   ;;  %v7936_v34 = vld [vmem:[#allocation13 + $0x80] ss:$16 sps:$4 sm:$0xff]  }
 0x76f   :  { %10651 = vst [vmem:[#allocation52_spill] sm:$0xff] %v7933_v28  ;;  %10652 = vst [vmem:[#allocation53_spill] sm:$0xff] %v7936_v34 }
 0x777   :  { %v5512_v18 = vpop.eup %5511 }
 0x778   :  { %v2354_v16 = vadd.f32 1.0, %v5512_v18  ;;  %v5514_v45 = vpop.eup %5513  ;;  %v7939_v18 = vld [vmem:[#allocation13 + $0x88] ss:$16 sps:$4 sm:$0xff]  }
 0x779   :  { %v2360_v0 = vadd.f32 1.0, %v5514_v45  ;;  %10653 = vst [vmem:[#allocation54_spill] sm:$0xff] %v7939_v18  ;;  %v7945_v45 = vld [vmem:[#allocation13 + $0xac] ss:$16 sps:$4 sm:$0xff]  }
 0x77a   :  { %5515 = vrcp.f32 %v2354_v16  ;;  %v7942_v16 = vld [vmem:[#allocation13 + $0xa4] ss:$16 sps:$4 sm:$0xff]   ;;  %10655 = vst [vmem:[#allocation56_spill] sm:$0xff] %v7945_v45 }
 0x77b   :  { %5517 = vrcp.f32 %v2360_v0  ;;  %10654 = vst [vmem:[#allocation55_spill] sm:$0xff] %v7942_v16  ;;  %v7948_v0 = vld [vmem:[#allocation13 + $0xa0] ss:$16 sps:$4 sm:$0xff]  }
 0x77c   :  { %10656 = vst [vmem:[#allocation57_spill] sm:$0xff] %v7948_v0 }
 0x784   :  { %v5516_v2 = vpop.eup %5515 }
 0x785   :  { %v2363_v36 = vmul.f32 %v5516_v2, %v2347_v17  ;;  %v5518_v39 = vpop.eup %5517  ;;  %v7951_v17 = vld [vmem:[#allocation13 + $0xa8] ss:$16 sps:$4 sm:$0xff]   ;;  %v7954_v2 = vld [vmem:[#allocation13 + $0xc4] ss:$16 sps:$4 sm:$0xff]  }
 0x786   :  { %v2366_v40 = vsub.f32 1.0, %v5518_v39  ;;  %v2368_v43 = vmul.f32 %v5518_v39, %v7581_v31  ;;  %v7837_v31 = vld [vmem:[#allocation8 + $0x50] ss:$12 sps:$4 sm:$0xff]   ;;  %10657 = vst [vmem:[#allocation58_spill] sm:$0xff] %v7951_v17  ;;  %10658 = vst [vmem:[#allocation59_spill] sm:$0xff] %v7954_v2 }
 0x787   :  { %v2364_v4 = vadd.f32 %v2363_v36, %v2345_v13  ;;  %v7957_v13 = vld [vmem:[#allocation13 + $0xcc] ss:$16 sps:$4 sm:$0xff]   ;;  %v7960_v36 = vld [vmem:[#allocation13 + $0xc0] ss:$16 sps:$4 sm:$0xff]   ;;  %v7966_v39 = vld [vmem:[#allocation13 + $0xe4] ss:$16 sps:$4 sm:$0xff]  }
 0x788   :  { %10659 = vst [vmem:[#allocation60_spill] sm:$0xff] %v7957_v13  ;;  %10660 = vst [vmem:[#allocation61_spill] sm:$0xff] %v7960_v36 }
 0x789   :  { %5519 = vtanh.f32 %v2364_v4  ;;  %v7963_v4 = vld [vmem:[#allocation13 + $0xc8] ss:$16 sps:$4 sm:$0xff]   ;;  %10662 = vst [vmem:[#allocation63_spill] sm:$0xff] %v7966_v39 }
 0x78a   :  { %10661 = vst [vmem:[#allocation62_spill] sm:$0xff] %v7963_v4 }
 0x793   :  { %v5520_v25 = vpop.eup %5519 }
 0x794   :  { %v2367_v41 = vmul.f32 %v5520_v25, %v2366_v40  ;;  %v7969_v40 = vld [vmem:[#allocation13 + $0xec] ss:$16 sps:$4 sm:$0xff]   ;;  %v7972_v25 = vld [vmem:[#allocation13 + $0xe0] ss:$16 sps:$4 sm:$0xff]  }
 0x795   :  { %10663 = vst [vmem:[#allocation64_spill] sm:$0xff] %v7969_v40  ;;  %10664 = vst [vmem:[#allocation65_spill] sm:$0xff] %v7972_v25 }
 0x796   :  { %v7817_v44 = vadd.f32 %v2368_v43, %v2367_v41  ;;  %v7975_v41 = vld [vmem:[#allocation13 + $0xe8] ss:$16 sps:$4 sm:$0xff]   ;;  %v7978_v43 = vld [vmem:[#allocation13 + $0x104] ss:$16 sps:$4 sm:$0xff]  }
 0x797   :  { %10665 = vst [vmem:[#allocation66_spill] sm:$0xff] %v7975_v41  ;;  %10666 = vst [vmem:[#allocation67_spill] sm:$0xff] %v7978_v43 }
 0x798   :  { %v2370_v47 = vpack.c.bf16 %v7817_v44, %v7817_v44 }
 0x79a   :  { %2405 = vmatmul.mubr.bf16.vlgmr.msra.gmra.mrb[36].mxu1 %v2370_v47  ;;  %2446 = vmatmul.mubr.bf16.vlgmr.msra.gmra.mrb[32].mxu0 %v2370_v47 }
 0x79b   :  { %2474 = vmatpush1.bf16.msra.mxu1 %v7585_v11  ;;  %4991 = vmatpush3.bf16.msra.mxu0 %v7588_v35  ;;  %v7840_v11 = vld [vmem:[#allocation8 + $0x64] ss:$12 sps:$4 sm:$0xff]   ;;  %v7844_v35 = vld [vmem:[#allocation8 + $0x60] ss:$12 sps:$4 sm:$0xff]  }
 0x79c   :  { %2475 = vmatprep.subr.bf16.mxu1 %v7591_v24  ;;  %4992 = vmatprep.subr.bf16.mxu0 %v10530_v61  ;;  %v7847_v24 = vld [vmem:[#allocation8 + $0x68] ss:$12 sps:$4 sm:$0xff]  }
 0x79d   :  { %2505 = vmatprep.mubr.bf16.mxu1 %v10533_v23  ;;  %5006 = vmatprep.mubr.msk.bf16.mxu0 %vm6485_vm0, %v10530_v61 }
 0x79f   :  { %2476 = vmatpush1.bf16.msra.mxu1 %v7598_v8  ;;  %4993 = vmatpush3.bf16.msra.mxu0 %v7601_v7  ;;  %v7850_v8 = vld [vmem:[#allocation8 + $0x7c] ss:$12 sps:$4 sm:$0xff]   ;;  %v7854_v7 = vld [vmem:[#allocation8 + $0x78] ss:$12 sps:$4 sm:$0xff]  }
 0x7a0   :  { %2477 = vmatprep.subr.bf16.mxu1 %v7604_v21  ;;  %4994 = vmatprep.subr.bf16.mxu0 %v10530_v61  ;;  %v7857_v21 = vld [vmem:[#allocation8 + $0x80] ss:$12 sps:$4 sm:$0xff]  }
 0x7a3   :  { %2478 = vmatpush1.bf16.msra.mxu1 %v7608_v10  ;;  %4995 = vmatpush3.bf16.msra.mxu0 %v7611_v33  ;;  %v7860_v10 = vld [vmem:[#allocation8 + $0x94] ss:$12 sps:$4 sm:$0xff]   ;;  %v7864_v33 = vld [vmem:[#allocation8 + $0x90] ss:$12 sps:$4 sm:$0xff]  }
 0x7a4   :  { %2479 = vmatprep.subr.bf16.mxu1 %v7614_v20  ;;  %4996 = vmatprep.subr.bf16.mxu0 %v10530_v61  ;;  %v7867_v20 = vld [vmem:[#allocation8 + $0x98] ss:$12 sps:$4 sm:$0xff]  }
 0x7a7   :  { %2480 = vmatpush1.bf16.msra.mxu1 %v7618_v37  ;;  %4997 = vmatpush3.bf16.msra.mxu0 %v7837_v31  ;;  %v7870_v37 = vld [vmem:[#allocation8 + $0xac] ss:$12 sps:$4 sm:$0xff]  }
 0x7a8   :  { %2481 = vmatprep.subr.bf16.mxu1 %v7840_v11  ;;  %4998 = vmatprep.subr.bf16.mxu0 %v10530_v61 }
 0x7ab   :  { %2482 = vmatpush1.bf16.msra.mxu1 %v7844_v35  ;;  %4999 = vmatpush3.bf16.msra.mxu0 %v7847_v24 }
 0x7ac   :  { %2483 = vmatprep.subr.bf16.mxu1 %v7850_v8  ;;  %5000 = vmatprep.subr.bf16.mxu0 %v10530_v61 }
 0x7af   :  { %2484 = vmatpush1.bf16.msra.mxu1 %v7854_v7  ;;  %5001 = vmatpush3.bf16.msra.mxu0 %v7857_v21 }
 0x7b0   :  { %2485 = vmatprep.subr.bf16.mxu1 %v7860_v10  ;;  %5002 = vmatprep.subr.bf16.mxu0 %v10530_v61 }
 0x7b3   :  { %2486 = vmatpush1.bf16.msra.mxu1 %v7864_v33  ;;  %5003 = vmatpush3.bf16.msra.mxu0 %v7867_v20 }
 0x7b4   :  { %2487 = vmatprep.subr.bf16.mxu1 %v7870_v37  ;;  %5004 = vmatprep.subr.bf16.mxu0 %v10530_v61 }
 0x7b7   :  { %2488 = vmatpush1.bf16.msra.mxu1 %v7874_v49  ;;  %5005 = vmatpush3.bf16.msra.mxu0 %v7877_v50 }
 0x7b8   :  { %2576 = vmatprep.subr.bf16.mxu1 %v7880_v51  ;;  %2617 = vmatprep.subr.bf16.mxu0 %v7883_v53 }
 0x7ba   :  { %2506 = vmatmul.mubr.bf16.vlgmr.msra.gmra.mrb[40].mxu1 %v7740_v19  ;;  %5007 = vmatmul.mubr.bf16.vlgmr.msra.gmra.mrb[36].mxu0 %v7740_v19  ;;  %v7903_v19 = vld [vmem:[#allocation13 + $0x28] ss:$16 sps:$4 sm:$0xff]  }
 0x7bb   :  { %2608 = vmatprep.mubr.bf16.mxu1 %v2370_v47  ;;  %2649 = vmatprep.mubr.bf16.mxu0 %v2370_v47  ;;  %v7981_v47 = vld [vmem:[#allocation13 + $0x10c] ss:$16 sps:$4 sm:$0xff]  }
 0x7bc   :  { %2577 = vmatpush1.bf16.msra.mxu1 %v7888_v54  ;;  %2618 = vmatpush1.bf16.msra.mxu0 %v7891_v56  ;;  %10667 = vst [vmem:[#allocation68_spill] sm:$0xff] %v7981_v47 }
 0x7bd   :  { %2578 = vmatprep.subr.bf16.mxu1 %v7894_v38  ;;  %2619 = vmatprep.subr.bf16.mxu0 %v7897_v42 }
 0x7c0   :  { %2579 = vmatpush1.bf16.msra.mxu1 %v7900_v57  ;;  %2620 = vmatpush1.bf16.msra.mxu0 %v7903_v19 }
 0x7c1   :  { %2580 = vmatprep.subr.bf16.mxu1 %v7906_v58  ;;  %2621 = vmatprep.subr.bf16.mxu0 %v7909_v59 }
 0x7c4   :  { %2581 = vmatpush1.bf16.msra.mxu1 %v7912_v60  ;;  %2622 = vmatpush1.bf16.msra.mxu0 %v7915_v62 }
 0x7c5   :  { %2582 = vmatprep.subr.bf16.mxu1 %v7918_v3  ;;  %2623 = vmatprep.subr.bf16.mxu0 %v7921_v63 }
 0x7c8   :  { %2583 = vmatpush1.bf16.msra.mxu1 %v7924_v15  ;;  %2624 = vmatpush1.bf16.msra.mxu0 %v7927_v6 }
 0x7c9   :  { %2584 = vmatprep.subr.bf16.mxu1 %v7930_v26  ;;  %2625 = vmatprep.subr.bf16.mxu0 %v7933_v28 }
 0x7cc   :  { %2585 = vmatpush1.bf16.msra.mxu1 %v7936_v34  ;;  %2626 = vmatpush1.bf16.msra.mxu0 %v7939_v18 }
 0x7cd   :  { %2586 = vmatprep.subr.bf16.mxu1 %v7942_v16  ;;  %2627 = vmatprep.subr.bf16.mxu0 %v7945_v45 }
 0x7d0   :  { %2587 = vmatpush1.bf16.msra.mxu1 %v7948_v0  ;;  %2628 = vmatpush1.bf16.msra.mxu0 %v7951_v17 }
 0x7d1   :  { %2588 = vmatprep.subr.bf16.mxu1 %v7954_v2  ;;  %2629 = vmatprep.subr.bf16.mxu0 %v7957_v13 }
 0x7d4   :  { %2589 = vmatpush1.bf16.msra.mxu1 %v7960_v36  ;;  %2630 = vmatpush1.bf16.msra.mxu0 %v7963_v4 }
 0x7d5   :  { %2590 = vmatprep.subr.bf16.mxu1 %v7966_v39  ;;  %2631 = vmatprep.subr.bf16.mxu0 %v7969_v40  ;;  %v7984_v39 = vld [vmem:[#allocation13 + $0x100] ss:$16 sps:$4 sm:$0xff]   ;;  %v7987_v40 = vld [vmem:[#allocation13 + $0x108] ss:$16 sps:$4 sm:$0xff]  }
 0x7d6   :  { %10668 = vst [vmem:[#allocation69_spill] sm:$0xff] %v7984_v39  ;;  %10669 = vst [vmem:[#allocation70_spill] sm:$0xff] %v7987_v40 }
 0x7d8   :  { %2591 = vmatpush1.bf16.msra.mxu1 %v7972_v25  ;;  %2632 = vmatpush1.bf16.msra.mxu0 %v7975_v41  ;;  %v7990_v25 = vld [vmem:[#allocation13 + $0x124] ss:$16 sps:$4 sm:$0xff]   ;;  %v7993_v41 = vld [vmem:[#allocation13 + $0x12c] ss:$16 sps:$4 sm:$0xff]  }
 0x7d9   :  { %2592 = vmatprep.subr.bf16.mxu1 %v7978_v43  ;;  %2633 = vmatprep.subr.bf16.mxu0 %v7981_v47  ;;  %10670 = vst [vmem:[#allocation71_spill] sm:$0xff] %v7990_v25  ;;  %10671 = vst [vmem:[#allocation72_spill] sm:$0xff] %v7993_v41  ;;  %v7996_v43 = vld [vmem:[#allocation13 + $0x120] ss:$16 sps:$4 sm:$0xff]   ;;  %v7999_v47 = vld [vmem:[#allocation13 + $0x128] ss:$16 sps:$4 sm:$0xff]  }
 0x7da   :  { %10672 = vst [vmem:[#allocation73_spill] sm:$0xff] %v7996_v43  ;;  %10673 = vst [vmem:[#allocation74_spill] sm:$0xff] %v7999_v47 }
 0x7dc   :  { %2593 = vmatpush1.bf16.msra.mxu1 %v7984_v39  ;;  %2634 = vmatpush1.bf16.msra.mxu0 %v7987_v40  ;;  %v8002_v39 = vld [vmem:[#allocation13 + $0x144] ss:$16 sps:$4 sm:$0xff]   ;;  %v8005_v40 = vld [vmem:[#allocation13 + $0x14c] ss:$16 sps:$4 sm:$0xff]  }
 0x7dd   :  { %2594 = vmatprep.subr.bf16.mxu1 %v7990_v25  ;;  %2635 = vmatprep.subr.bf16.mxu0 %v7993_v41  ;;  %10674 = vst [vmem:[#allocation75_spill] sm:$0xff] %v8002_v39  ;;  %10675 = vst [vmem:[#allocation76_spill] sm:$0xff] %v8005_v40  ;;  %v8008_v25 = vld [vmem:[#allocation13 + $0x140] ss:$16 sps:$4 sm:$0xff]   ;;  %v8011_v41 = vld [vmem:[#allocation13 + $0x148] ss:$16 sps:$4 sm:$0xff]  }
 0x7de   :  { %10676 = vst [vmem:[#allocation77_spill] sm:$0xff] %v8008_v25  ;;  %10677 = vst [vmem:[#allocation78_spill] sm:$0xff] %v8011_v41 }
 0x7e0   :  { %2595 = vmatpush1.bf16.msra.mxu1 %v7996_v43  ;;  %2636 = vmatpush1.bf16.msra.mxu0 %v7999_v47  ;;  %v8014_v43 = vld [vmem:[#allocation13 + $0x164] ss:$16 sps:$4 sm:$0xff]   ;;  %v8017_v47 = vld [vmem:[#allocation13 + $0x16c] ss:$16 sps:$4 sm:$0xff]  }
 0x7e1   :  { %2596 = vmatprep.subr.bf16.mxu1 %v8002_v39  ;;  %2637 = vmatprep.subr.bf16.mxu0 %v8005_v40  ;;  %10678 = vst [vmem:[#allocation79_spill] sm:$0xff] %v8014_v43  ;;  %10679 = vst [vmem:[#allocation80_spill] sm:$0xff] %v8017_v47  ;;  %v8020_v39 = vld [vmem:[#allocation13 + $0x160] ss:$16 sps:$4 sm:$0xff]   ;;  %v8023_v40 = vld [vmem:[#allocation13 + $0x168] ss:$16 sps:$4 sm:$0xff]  }
 0x7e2   :  { %10680 = vst [vmem:[#allocation81_spill] sm:$0xff] %v8020_v39  ;;  %10681 = vst [vmem:[#allocation82_spill] sm:$0xff] %v8023_v40 }
 0x7e4   :  { %2597 = vmatpush1.bf16.msra.mxu1 %v8008_v25  ;;  %2638 = vmatpush1.bf16.msra.mxu0 %v8011_v41  ;;  %v8026_v25 = vld [vmem:[#allocation13 + $0x184] ss:$16 sps:$4 sm:$0xff]   ;;  %v8029_v41 = vld [vmem:[#allocation13 + $0x18c] ss:$16 sps:$4 sm:$0xff]  }
 0x7e5   :  { %2598 = vmatprep.subr.bf16.mxu1 %v8014_v43  ;;  %2639 = vmatprep.subr.bf16.mxu0 %v8017_v47  ;;  %10682 = vst [vmem:[#allocation83_spill] sm:$0xff] %v8026_v25  ;;  %10683 = vst [vmem:[#allocation84_spill] sm:$0xff] %v8029_v41  ;;  %v8032_v43 = vld [vmem:[#allocation13 + $0x180] ss:$16 sps:$4 sm:$0xff]   ;;  %v8035_v47 = vld [vmem:[#allocation13 + $0x188] ss:$16 sps:$4 sm:$0xff]  }
 0x7e6   :  { %10684 = vst [vmem:[#allocation85_spill] sm:$0xff] %v8032_v43  ;;  %10685 = vst [vmem:[#allocation86_spill] sm:$0xff] %v8035_v47 }
 0x7e8   :  { %2599 = vmatpush1.bf16.msra.mxu1 %v8020_v39  ;;  %2640 = vmatpush1.bf16.msra.mxu0 %v8023_v40  ;;  %v8038_v39 = vld [vmem:[#allocation13 + $0x1a4] ss:$16 sps:$4 sm:$0xff]   ;;  %v8041_v40 = vld [vmem:[#allocation13 + $0x1ac] ss:$16 sps:$4 sm:$0xff]  }
 0x7e9   :  { %2600 = vmatprep.subr.bf16.mxu1 %v8026_v25  ;;  %2641 = vmatprep.subr.bf16.mxu0 %v8029_v41  ;;  %10686 = vst [vmem:[#allocation87_spill] sm:$0xff] %v8038_v39  ;;  %10687 = vst [vmem:[#allocation88_spill] sm:$0xff] %v8041_v40  ;;  %v8044_v25 = vld [vmem:[#allocation13 + $0x1a0] ss:$16 sps:$4 sm:$0xff]   ;;  %v8047_v41 = vld [vmem:[#allocation13 + $0x1a8] ss:$16 sps:$4 sm:$0xff]  }
 0x7ea   :  { %10688 = vst [vmem:[#allocation89_spill] sm:$0xff] %v8044_v25  ;;  %10689 = vst [vmem:[#allocation90_spill] sm:$0xff] %v8047_v41 }
 0x7ec   :  { %2601 = vmatpush1.bf16.msra.mxu1 %v8032_v43  ;;  %2642 = vmatpush1.bf16.msra.mxu0 %v8035_v47  ;;  %v8050_v43 = vld [vmem:[#allocation13 + $0x1c4] ss:$16 sps:$4 sm:$0xff]   ;;  %v8053_v47 = vld [vmem:[#allocation13 + $0x1cc] ss:$16 sps:$4 sm:$0xff]  }
 0x7ed   :  { %2602 = vmatprep.subr.bf16.mxu1 %v8038_v39  ;;  %2643 = vmatprep.subr.bf16.mxu0 %v8041_v40  ;;  %10690 = vst [vmem:[#allocation91_spill] sm:$0xff] %v8050_v43  ;;  %10691 = vst [vmem:[#allocation92_spill] sm:$0xff] %v8053_v47  ;;  %v8056_v39 = vld [vmem:[#allocation13 + $0x1c0] ss:$16 sps:$4 sm:$0xff]   ;;  %v8059_v40 = vld [vmem:[#allocation13 + $0x1c8] ss:$16 sps:$4 sm:$0xff]  }
 0x7ee   :  { %10692 = vst [vmem:[#allocation93_spill] sm:$0xff] %v8056_v39  ;;  %10693 = vst [vmem:[#allocation94_spill] sm:$0xff] %v8059_v40 }
 0x7f0   :  { %2603 = vmatpush1.bf16.msra.mxu1 %v8044_v25  ;;  %2644 = vmatpush1.bf16.msra.mxu0 %v8047_v41  ;;  %v8062_v25 = vld [vmem:[#allocation13 + $0x1e4] ss:$16 sps:$4 sm:$0xff]   ;;  %v8065_v41 = vld [vmem:[#allocation13 + $0x1ec] ss:$16 sps:$4 sm:$0xff]  }
 0x7f1   :  { %2604 = vmatprep.subr.bf16.mxu1 %v8050_v43  ;;  %2645 = vmatprep.subr.bf16.mxu0 %v8053_v47  ;;  %10694 = vst [vmem:[#allocation27_spill] sm:$0xff] %v8062_v25  ;;  %10695 = vst [vmem:[#allocation29_spill] sm:$0xff] %v8065_v41  ;;  %v8068_v43 = vld [vmem:[#allocation13 + $0x1e0] ss:$16 sps:$4 sm:$0xff]   ;;  %v8071_v47 = vld [vmem:[#allocation13 + $0x1e8] ss:$16 sps:$4 sm:$0xff]  }
 0x7f2   :  { %10696 = vst [vmem:[#allocation31_spill] sm:$0xff] %v8068_v43  ;;  %10697 = vst [vmem:[#allocation95_spill] sm:$0xff] %v8071_v47 }
 0x7f4   :  { %2605 = vmatpush1.bf16.msra.mxu1 %v8056_v39  ;;  %2646 = vmatpush1.bf16.msra.mxu0 %v8059_v40  ;;  %v8074_v39 = vld [vmem:[#allocation16 + $0x4] ss:$16 sps:$4 sm:$0xff]   ;;  %v8077_v40 = vld [vmem:[#allocation16 + $0xc] ss:$16 sps:$4 sm:$0xff]  }
 0x7f5   :  { %2606 = vmatprep.subr.bf16.mxu1 %v8062_v25  ;;  %2647 = vmatprep.subr.bf16.mxu0 %v8065_v41  ;;  %10698 = vst [vmem:[#allocation96_spill] sm:$0xff] %v8074_v39  ;;  %10699 = vst [vmem:[#allocation97_spill] sm:$0xff] %v8077_v40 }
 0x7f8   :  { %2607 = vmatpush1.bf16.msra.mxu1 %v8068_v43  ;;  %2648 = vmatpush1.bf16.msra.mxu0 %v8071_v47 }
 0x7f9   :  { %2679 = vmatprep.subr.bf16.mxu1 %v8074_v39  ;;  %2720 = vmatprep.subr.bf16.mxu0 %v8077_v40 }
 0x86d   :  { %v2406_v25 = vpop.f32.mrb[36].mxu1  ;;  %v2447_v4 = vpop.f32.mrb[32].mxu0 }
 0x86e   :  { %v2407_v41 = vadd.f32 %v2406_v25, %v7710_v52  ;;  %v2408_v36 = vpop.f32.mrb[37].mxu1  ;;  %v2449_v13 = vpop.f32.mrb[33].mxu0  ;;  %v2448_v52 = vadd.f32 %v2447_v4, %v7722_v22 }
 0x86f   :  { %v2410_v2 = vpop.f32.mrb[38].mxu1  ;;  %v2451_v43 = vpop.f32.mrb[34].mxu0  ;;  %v2409_v47 = vadd.f32 %v2408_v36, %v7713_v55  ;;  %v2450_v28 = vadd.f32 %v2449_v13, %v7719_v32  ;;  %v10701_v55 = vld [vmem:[#allocation33_spill] sm:$0xff] }
 0x870   :  { %v4723_v17 = vmul.f32 -1.442695, %v2407_v41  ;;  %v2411_v0 = vpop.f32.mrb[39].mxu1  ;;  %v2452_v45 = vpop.f32.mrb[35].mxu0 }
 0x871   :  { %v4724_v16 = vmul.f32 -1.442695, %v2409_v47 }
 0x872   :  { %5521 = vpow2.f32 %v4723_v17 }
 0x873   :  { %5523 = vpow2.f32 %v4724_v16 }
 0x87c   :  { %v5522_v39 = vpop.eup %5521 }
 0x87d   :  { %v2457_v18 = vadd.f32 1.0, %v5522_v39  ;;  %v5524_v40 = vpop.eup %5523 }
 0x87e   :  { %v2463_v34 = vadd.f32 1.0, %v5524_v40  ;;  %v10700_v40 = vld [vmem:[#allocation32_spill] sm:$0xff] }
 0x87f   :  { %5525 = vrcp.f32 %v2457_v18 }
 0x880   :  { %5527 = vrcp.f32 %v2463_v34 }
 0x889   :  { %v5526_v25 = vpop.eup %5525 }
 0x88a   :  { %v2466_v2 = vmul.f32 %v5526_v25, %v2450_v28  ;;  %v5528_v28 = vpop.eup %5527 }
 0x88b   :  { %v2469_v25 = vsub.f32 1.0, %v5528_v28 }
 0x88c   :  { %v2467_v41 = vadd.f32 %v2466_v2, %v2448_v52 }
 0x88d   :  { %v2507_v0 = vpop.f32.mrb[40].mxu1  ;;  %v2548_v45 = vpop.f32.mrb[36].mxu0 }
 0x88e   :  { %5529 = vtanh.f32 %v2467_v41  ;;  %v2508_v17 = vadd.f32 %v2507_v0, %v7344_v27  ;;  %v2509_v36 = vpop.f32.mrb[41].mxu1  ;;  %v5008_v16 = vpop.f32.mrb[37].mxu0  ;;  %v2471_v0 = vmul.f32 %v5528_v28, %v7731_v46  ;;  %v8158_v46 = vld [vmem:[#allocation16 + $0xa4] ss:$16 sps:$4 sm:$0xff]  }
 0x88f   :  { %v2510_v39 = vadd.f32 %v2509_v36, %v7347_v29  ;;  %v2511_v18 = vpop.f32.mrb[42].mxu1  ;;  %v2551_v43 = vpop.f32.mrb[38].mxu0  ;;  %10719 = vst [vmem:[#allocation114_spill] sm:$0xff] %v8158_v46 }
 0x890   :  { %v2554_v47 = vadd.f32 %v2508_v17, %v10700_v40  ;;  %v2512_v13 = vpop.f32.mrb[43].mxu1  ;;  %v5009_v32 = vpop.f32.mrb[39].mxu0  ;;  %v10703_v40 = vld [vmem:[#allocation28_spill] sm:$0xff] }
 0x891   :  { %v2561_v4 = vadd.f32 %v2510_v39, %v10701_v55  ;;  %v2549_v32 = vadd.f32 %v2548_v45, %v7356_v14 }
 0x892   :  { %v4725_v34 = vmul.f32 -1.442695, %v2554_v47 }
 0x893   :  { %v4726_v52 = vmul.f32 -1.442695, %v2561_v4 }
 0x894   :  { %5531 = vpow2.f32 %v4725_v34 }
 0x895   :  { %5533 = vpow2.f32 %v4726_v52 }
 0x898   :  { %v5530_v2 = vpop.eup %5529 }
 0x899   :  { %v2470_v41 = vmul.f32 %v5530_v2, %v2469_v25 }
 0x89b   :  { %v8089_v16 = vadd.f32 %v2471_v0, %v2470_v41  ;;  %v8104_v41 = vld [vmem:[#allocation16] ss:$16 sps:$4 sm:$0xff]   ;;  %v8110_v0 = vld [vmem:[#allocation16 + $0x24] ss:$16 sps:$4 sm:$0xff]  }
 0x89d   :  { %10702 = vst [vmem:[#allocation98_spill] sm:$0xff] %v8089_v16  ;;  %v2678_v45 = vpack.c.bf16 %v8089_v16, %v8089_v16 }
 0x89e   :  { %v5532_v36 = vpop.eup %5531 }
 0x89f   :  { %v2558_v18 = vadd.f32 1.0, %v5532_v36  ;;  %v5534_v17 = vpop.eup %5533  ;;  %v8113_v36 = vld [vmem:[#allocation16 + $0x2c] ss:$16 sps:$4 sm:$0xff]  }
 0x8a0   :  { %v2565_v43 = vadd.f32 1.0, %v5534_v17  ;;  %10704 = vst [vmem:[#allocation99_spill] sm:$0xff] %v8113_v36  ;;  %v8119_v17 = vld [vmem:[#allocation16 + $0x28] ss:$16 sps:$4 sm:$0xff]  }
 0x8a1   :  { %5535 = vrcp.f32 %v2558_v18  ;;  %v8116_v18 = vld [vmem:[#allocation16 + $0x20] ss:$16 sps:$4 sm:$0xff]   ;;  %10706 = vst [vmem:[#allocation101_spill] sm:$0xff] %v8119_v17 }
 0x8a2   :  { %5537 = vrcp.f32 %v2565_v43  ;;  %10705 = vst [vmem:[#allocation100_spill] sm:$0xff] %v8116_v18  ;;  %v8122_v43 = vld [vmem:[#allocation16 + $0x44] ss:$16 sps:$4 sm:$0xff]  }
 0x8a3   :  { %10707 = vst [vmem:[#allocation102_spill] sm:$0xff] %v8122_v43 }
 0x8ab   :  { %v5536_v55 = vpop.eup %5535 }
 0x8ac   :  { %v2568_v39 = vmul.f32 %v5536_v55, %v2549_v32  ;;  %v5538_v13 = vpop.eup %5537  ;;  %v8125_v32 = vld [vmem:[#allocation16 + $0x4c] ss:$16 sps:$4 sm:$0xff]   ;;  %v8128_v55 = vld [vmem:[#allocation16 + $0x40] ss:$16 sps:$4 sm:$0xff]  }
 0x8ad   :  { %v2571_v4 = vsub.f32 1.0, %v5538_v13  ;;  %v2573_v52 = vmul.f32 %v5538_v13, %v7736_v5  ;;  %v8107_v5 = vld [vmem:[#allocation16 + $0x8] ss:$16 sps:$4 sm:$0xff]   ;;  %10708 = vst [vmem:[#allocation103_spill] sm:$0xff] %v8125_v32  ;;  %10709 = vst [vmem:[#allocation104_spill] sm:$0xff] %v8128_v55 }
 0x8ae   :  { %v2569_v47 = vadd.f32 %v2568_v39, %v10703_v40  ;;  %v8131_v39 = vld [vmem:[#allocation16 + $0x48] ss:$16 sps:$4 sm:$0xff]   ;;  %v8134_v40 = vld [vmem:[#allocation16 + $0x64] ss:$16 sps:$4 sm:$0xff]   ;;  %v8140_v13 = vld [vmem:[#allocation16 + $0x60] ss:$16 sps:$4 sm:$0xff]  }
 0x8af   :  { %10710 = vst [vmem:[#allocation105_spill] sm:$0xff] %v8131_v39  ;;  %10711 = vst [vmem:[#allocation106_spill] sm:$0xff] %v8134_v40 }
 0x8b0   :  { %5539 = vtanh.f32 %v2569_v47  ;;  %v8137_v47 = vld [vmem:[#allocation16 + $0x6c] ss:$16 sps:$4 sm:$0xff]   ;;  %10713 = vst [vmem:[#allocation108_spill] sm:$0xff] %v8140_v13 }
 0x8b1   :  { %10712 = vst [vmem:[#allocation107_spill] sm:$0xff] %v8137_v47 }
 0x8ba   :  { %v5540_v34 = vpop.eup %5539 }
 0x8bb   :  { %v2572_v28 = vmul.f32 %v5540_v34, %v2571_v4  ;;  %v8143_v4 = vld [vmem:[#allocation16 + $0x68] ss:$16 sps:$4 sm:$0xff]   ;;  %v8146_v34 = vld [vmem:[#allocation16 + $0x84] ss:$16 sps:$4 sm:$0xff]  }
 0x8bc   :  { %10714 = vst [vmem:[#allocation109_spill] sm:$0xff] %v8143_v4  ;;  %10715 = vst [vmem:[#allocation110_spill] sm:$0xff] %v8146_v34 }
 0x8bd   :  { %v8094_v25 = vadd.f32 %v2573_v52, %v2572_v28  ;;  %v8149_v28 = vld [vmem:[#allocation16 + $0x8c] ss:$16 sps:$4 sm:$0xff]   ;;  %v8152_v52 = vld [vmem:[#allocation16 + $0x80] ss:$16 sps:$4 sm:$0xff]  }
 0x8be   :  { %10716 = vst [vmem:[#allocation111_spill] sm:$0xff] %v8149_v28  ;;  %10717 = vst [vmem:[#allocation112_spill] sm:$0xff] %v8152_v52 }
 0x8bf   :  { %v8098_v2 = vpack.c.bf16 %v8094_v25, %v8094_v25 }
 0x8c1   :  { %2609 = vmatmul.mubr.bf16.vlgmr.msra.gmra.mrb[44].mxu1 %v8098_v2  ;;  %2650 = vmatmul.mubr.bf16.vlgmr.msra.gmra.mrb[40].mxu0 %v8098_v2 }
 0x8c2   :  { %2711 = vmatprep.mubr.bf16.mxu1 %v2678_v45  ;;  %2752 = vmatprep.mubr.bf16.mxu0 %v2678_v45  ;;  %v8155_v45 = vld [vmem:[#allocation16 + $0x88] ss:$16 sps:$4 sm:$0xff]  }
 0x8c3   :  { %2680 = vmatpush1.bf16.msra.mxu1 %v8104_v41  ;;  %2721 = vmatpush1.bf16.msra.mxu0 %v8107_v5  ;;  %10718 = vst [vmem:[#allocation113_spill] sm:$0xff] %v8155_v45 }
 0x8c4   :  { %2681 = vmatprep.subr.bf16.mxu1 %v8110_v0  ;;  %2722 = vmatprep.subr.bf16.mxu0 %v8113_v36 }
 0x8c7   :  { %2682 = vmatpush1.bf16.msra.mxu1 %v8116_v18  ;;  %2723 = vmatpush1.bf16.msra.mxu0 %v8119_v17 }
 0x8c8   :  { %2683 = vmatprep.subr.bf16.mxu1 %v8122_v43  ;;  %2724 = vmatprep.subr.bf16.mxu0 %v8125_v32 }
 0x8cb   :  { %2684 = vmatpush1.bf16.msra.mxu1 %v8128_v55  ;;  %2725 = vmatpush1.bf16.msra.mxu0 %v8131_v39 }
 0x8cc   :  { %2685 = vmatprep.subr.bf16.mxu1 %v8134_v40  ;;  %2726 = vmatprep.subr.bf16.mxu0 %v8137_v47 }
 0x8cf   :  { %2686 = vmatpush1.bf16.msra.mxu1 %v8140_v13  ;;  %2727 = vmatpush1.bf16.msra.mxu0 %v8143_v4  ;;  %v8161_v4 = vld [vmem:[#allocation16 + $0xac] ss:$16 sps:$4 sm:$0xff]  }
 0x8d0   :  { %2687 = vmatprep.subr.bf16.mxu1 %v8146_v34  ;;  %2728 = vmatprep.subr.bf16.mxu0 %v8149_v28  ;;  %10720 = vst [vmem:[#allocation115_spill] sm:$0xff] %v8161_v4  ;;  %v8164_v34 = vld [vmem:[#allocation16 + $0xa0] ss:$16 sps:$4 sm:$0xff]   ;;  %v8167_v28 = vld [vmem:[#allocation16 + $0xa8] ss:$16 sps:$4 sm:$0xff]  }
 0x8d1   :  { %10721 = vst [vmem:[#allocation116_spill] sm:$0xff] %v8164_v34  ;;  %10722 = vst [vmem:[#allocation117_spill] sm:$0xff] %v8167_v28 }
 0x8d3   :  { %2688 = vmatpush1.bf16.msra.mxu1 %v8152_v52  ;;  %2729 = vmatpush1.bf16.msra.mxu0 %v8155_v45  ;;  %v8170_v52 = vld [vmem:[#allocation16 + $0xc4] ss:$16 sps:$4 sm:$0xff]   ;;  %v8173_v45 = vld [vmem:[#allocation16 + $0xcc] ss:$16 sps:$4 sm:$0xff]  }
 0x8d4   :  { %2689 = vmatprep.subr.bf16.mxu1 %v8158_v46  ;;  %2730 = vmatprep.subr.bf16.mxu0 %v8161_v4  ;;  %10723 = vst [vmem:[#allocation118_spill] sm:$0xff] %v8170_v52  ;;  %10724 = vst [vmem:[#allocation119_spill] sm:$0xff] %v8173_v45  ;;  %v8176_v46 = vld [vmem:[#allocation16 + $0xc0] ss:$16 sps:$4 sm:$0xff]   ;;  %v8179_v4 = vld [vmem:[#allocation16 + $0xc8] ss:$16 sps:$4 sm:$0xff]  }
 0x8d5   :  { %10725 = vst [vmem:[#allocation120_spill] sm:$0xff] %v8176_v46  ;;  %10726 = vst [vmem:[#allocation121_spill] sm:$0xff] %v8179_v4 }
 0x8d7   :  { %2690 = vmatpush1.bf16.msra.mxu1 %v8164_v34  ;;  %2731 = vmatpush1.bf16.msra.mxu0 %v8167_v28  ;;  %v8182_v34 = vld [vmem:[#allocation16 + $0xe4] ss:$16 sps:$4 sm:$0xff]   ;;  %v8185_v28 = vld [vmem:[#allocation16 + $0xec] ss:$16 sps:$4 sm:$0xff]  }
 0x8d8   :  { %2691 = vmatprep.subr.bf16.mxu1 %v8170_v52  ;;  %2732 = vmatprep.subr.bf16.mxu0 %v8173_v45  ;;  %10727 = vst [vmem:[#allocation122_spill] sm:$0xff] %v8182_v34  ;;  %10728 = vst [vmem:[#allocation123_spill] sm:$0xff] %v8185_v28  ;;  %v8188_v52 = vld [vmem:[#allocation16 + $0xe0] ss:$16 sps:$4 sm:$0xff]   ;;  %v8191_v45 = vld [vmem:[#allocation16 + $0xe8] ss:$16 sps:$4 sm:$0xff]  }
 0x8d9   :  { %10729 = vst [vmem:[#allocation124_spill] sm:$0xff] %v8188_v52  ;;  %10730 = vst [vmem:[#allocation125_spill] sm:$0xff] %v8191_v45 }
 0x8db   :  { %2692 = vmatpush1.bf16.msra.mxu1 %v8176_v46  ;;  %2733 = vmatpush1.bf16.msra.mxu0 %v8179_v4  ;;  %v8194_v46 = vld [vmem:[#allocation16 + $0x104] ss:$16 sps:$4 sm:$0xff]   ;;  %v8197_v4 = vld [vmem:[#allocation16 + $0x10c] ss:$16 sps:$4 sm:$0xff]  }
 0x8dc   :  { %2693 = vmatprep.subr.bf16.mxu1 %v8182_v34  ;;  %2734 = vmatprep.subr.bf16.mxu0 %v8185_v28  ;;  %10731 = vst [vmem:[#allocation126_spill] sm:$0xff] %v8194_v46  ;;  %10732 = vst [vmem:[#allocation127_spill] sm:$0xff] %v8197_v4  ;;  %v8200_v34 = vld [vmem:[#allocation16 + $0x100] ss:$16 sps:$4 sm:$0xff]   ;;  %v8203_v28 = vld [vmem:[#allocation16 + $0x108] ss:$16 sps:$4 sm:$0xff]  }
 0x8dd   :  { %10733 = vst [vmem:[#allocation128_spill] sm:$0xff] %v8200_v34  ;;  %10734 = vst [vmem:[#allocation129_spill] sm:$0xff] %v8203_v28 }
 0x8df   :  { %2694 = vmatpush1.bf16.msra.mxu1 %v8188_v52  ;;  %2735 = vmatpush1.bf16.msra.mxu0 %v8191_v45  ;;  %v8206_v52 = vld [vmem:[#allocation16 + $0x124] ss:$16 sps:$4 sm:$0xff]   ;;  %v8209_v45 = vld [vmem:[#allocation16 + $0x12c] ss:$16 sps:$4 sm:$0xff]  }
 0x8e0   :  { %2695 = vmatprep.subr.bf16.mxu1 %v8194_v46  ;;  %2736 = vmatprep.subr.bf16.mxu0 %v8197_v4  ;;  %10735 = vst [vmem:[#allocation130_spill] sm:$0xff] %v8206_v52  ;;  %10736 = vst [vmem:[#allocation131_spill] sm:$0xff] %v8209_v45  ;;  %v8212_v46 = vld [vmem:[#allocation16 + $0x120] ss:$16 sps:$4 sm:$0xff]   ;;  %v8215_v4 = vld [vmem:[#allocation16 + $0x128] ss:$16 sps:$4 sm:$0xff]  }
 0x8e1   :  { %10737 = vst [vmem:[#allocation132_spill] sm:$0xff] %v8212_v46  ;;  %10738 = vst [vmem:[#allocation133_spill] sm:$0xff] %v8215_v4 }
 0x8e3   :  { %2696 = vmatpush1.bf16.msra.mxu1 %v8200_v34  ;;  %2737 = vmatpush1.bf16.msra.mxu0 %v8203_v28  ;;  %v8218_v34 = vld [vmem:[#allocation16 + $0x144] ss:$16 sps:$4 sm:$0xff]   ;;  %v8221_v28 = vld [vmem:[#allocation16 + $0x14c] ss:$16 sps:$4 sm:$0xff]  }
 0x8e4   :  { %2697 = vmatprep.subr.bf16.mxu1 %v8206_v52  ;;  %2738 = vmatprep.subr.bf16.mxu0 %v8209_v45  ;;  %10739 = vst [vmem:[#allocation134_spill] sm:$0xff] %v8218_v34  ;;  %10740 = vst [vmem:[#allocation135_spill] sm:$0xff] %v8221_v28  ;;  %v8224_v52 = vld [vmem:[#allocation16 + $0x140] ss:$16 sps:$4 sm:$0xff]   ;;  %v8227_v45 = vld [vmem:[#allocation16 + $0x148] ss:$16 sps:$4 sm:$0xff]  }
 0x8e5   :  { %10741 = vst [vmem:[#allocation136_spill] sm:$0xff] %v8224_v52  ;;  %10742 = vst [vmem:[#allocation137_spill] sm:$0xff] %v8227_v45 }
 0x8e7   :  { %2698 = vmatpush1.bf16.msra.mxu1 %v8212_v46  ;;  %2739 = vmatpush1.bf16.msra.mxu0 %v8215_v4  ;;  %v8230_v46 = vld [vmem:[#allocation16 + $0x164] ss:$16 sps:$4 sm:$0xff]   ;;  %v8233_v4 = vld [vmem:[#allocation16 + $0x16c] ss:$16 sps:$4 sm:$0xff]  }
 0x8e8   :  { %2699 = vmatprep.subr.bf16.mxu1 %v8218_v34  ;;  %2740 = vmatprep.subr.bf16.mxu0 %v8221_v28  ;;  %10743 = vst [vmem:[#allocation138_spill] sm:$0xff] %v8230_v46  ;;  %10744 = vst [vmem:[#allocation139_spill] sm:$0xff] %v8233_v4  ;;  %v8236_v34 = vld [vmem:[#allocation16 + $0x160] ss:$16 sps:$4 sm:$0xff]   ;;  %v8239_v28 = vld [vmem:[#allocation16 + $0x168] ss:$16 sps:$4 sm:$0xff]  }
 0x8e9   :  { %10745 = vst [vmem:[#allocation140_spill] sm:$0xff] %v8236_v34  ;;  %10746 = vst [vmem:[#allocation141_spill] sm:$0xff] %v8239_v28 }
 0x8eb   :  { %2700 = vmatpush1.bf16.msra.mxu1 %v8224_v52  ;;  %2741 = vmatpush1.bf16.msra.mxu0 %v8227_v45  ;;  %v8242_v52 = vld [vmem:[#allocation16 + $0x184] ss:$16 sps:$4 sm:$0xff]   ;;  %v8245_v45 = vld [vmem:[#allocation16 + $0x18c] ss:$16 sps:$4 sm:$0xff]  }
 0x8ec   :  { %2701 = vmatprep.subr.bf16.mxu1 %v8230_v46  ;;  %2742 = vmatprep.subr.bf16.mxu0 %v8233_v4  ;;  %10747 = vst [vmem:[#allocation142_spill] sm:$0xff] %v8242_v52  ;;  %10748 = vst [vmem:[#allocation143_spill] sm:$0xff] %v8245_v45  ;;  %v8248_v46 = vld [vmem:[#allocation16 + $0x180] ss:$16 sps:$4 sm:$0xff]   ;;  %v8251_v4 = vld [vmem:[#allocation16 + $0x188] ss:$16 sps:$4 sm:$0xff]  }
 0x8ed   :  { %10749 = vst [vmem:[#allocation144_spill] sm:$0xff] %v8248_v46  ;;  %10750 = vst [vmem:[#allocation145_spill] sm:$0xff] %v8251_v4 }
 0x8ef   :  { %2702 = vmatpush1.bf16.msra.mxu1 %v8236_v34  ;;  %2743 = vmatpush1.bf16.msra.mxu0 %v8239_v28  ;;  %v8254_v34 = vld [vmem:[#allocation16 + $0x1a4] ss:$16 sps:$4 sm:$0xff]   ;;  %v8257_v28 = vld [vmem:[#allocation16 + $0x1ac] ss:$16 sps:$4 sm:$0xff]  }
 0x8f0   :  { %2703 = vmatprep.subr.bf16.mxu1 %v8242_v52  ;;  %2744 = vmatprep.subr.bf16.mxu0 %v8245_v45  ;;  %10751 = vst [vmem:[#allocation146_spill] sm:$0xff] %v8254_v34  ;;  %10752 = vst [vmem:[#allocation147_spill] sm:$0xff] %v8257_v28  ;;  %v8260_v52 = vld [vmem:[#allocation16 + $0x1a0] ss:$16 sps:$4 sm:$0xff]   ;;  %v8263_v45 = vld [vmem:[#allocation16 + $0x1a8] ss:$16 sps:$4 sm:$0xff]  }
 0x8f1   :  { %10753 = vst [vmem:[#allocation148_spill] sm:$0xff] %v8260_v52  ;;  %10754 = vst [vmem:[#allocation149_spill] sm:$0xff] %v8263_v45 }
 0x8f3   :  { %2704 = vmatpush1.bf16.msra.mxu1 %v8248_v46  ;;  %2745 = vmatpush1.bf16.msra.mxu0 %v8251_v4  ;;  %v8266_v46 = vld [vmem:[#allocation16 + $0x1c4] ss:$16 sps:$4 sm:$0xff]   ;;  %v8269_v4 = vld [vmem:[#allocation16 + $0x1cc] ss:$16 sps:$4 sm:$0xff]  }
 0x8f4   :  { %2705 = vmatprep.subr.bf16.mxu1 %v8254_v34  ;;  %2746 = vmatprep.subr.bf16.mxu0 %v8257_v28  ;;  %10755 = vst [vmem:[#allocation150_spill] sm:$0xff] %v8266_v46  ;;  %10756 = vst [vmem:[#allocation151_spill] sm:$0xff] %v8269_v4  ;;  %v8272_v34 = vld [vmem:[#allocation16 + $0x1c0] ss:$16 sps:$4 sm:$0xff]   ;;  %v8275_v28 = vld [vmem:[#allocation16 + $0x1c8] ss:$16 sps:$4 sm:$0xff]  }
 0x8f5   :  { %10757 = vst [vmem:[#allocation152_spill] sm:$0xff] %v8272_v34  ;;  %10758 = vst [vmem:[#allocation153_spill] sm:$0xff] %v8275_v28 }
 0x8f7   :  { %2706 = vmatpush1.bf16.msra.mxu1 %v8260_v52  ;;  %2747 = vmatpush1.bf16.msra.mxu0 %v8263_v45  ;;  %v8278_v52 = vld [vmem:[#allocation16 + $0x1e4] ss:$16 sps:$4 sm:$0xff]   ;;  %v8281_v45 = vld [vmem:[#allocation16 + $0x1ec] ss:$16 sps:$4 sm:$0xff]  }
 0x8f8   :  { %2707 = vmatprep.subr.bf16.mxu1 %v8266_v46  ;;  %2748 = vmatprep.subr.bf16.mxu0 %v8269_v4  ;;  %10759 = vst [vmem:[#allocation154_spill] sm:$0xff] %v8278_v52  ;;  %10760 = vst [vmem:[#allocation155_spill] sm:$0xff] %v8281_v45  ;;  %v8284_v46 = vld [vmem:[#allocation16 + $0x1e0] ss:$16 sps:$4 sm:$0xff]   ;;  %v8287_v4 = vld [vmem:[#allocation16 + $0x1e8] ss:$16 sps:$4 sm:$0xff]  }
 0x8f9   :  { %10761 = vst [vmem:[#allocation157_spill] sm:$0xff] %v8284_v46  ;;  %10762 = vst [vmem:[#allocation32_spill] sm:$0xff] %v8287_v4 }
 0x8fb   :  { %2708 = vmatpush1.bf16.msra.mxu1 %v8272_v34  ;;  %2749 = vmatpush1.bf16.msra.mxu0 %v8275_v28 }
 0x8fc   :  { %2709 = vmatprep.subr.bf16.mxu1 %v8278_v52  ;;  %2750 = vmatprep.subr.bf16.mxu0 %v8281_v45 }
 0x8ff   :  { %2710 = vmatpush1.bf16.msra.mxu1 %v8284_v46  ;;  %2751 = vmatpush1.bf16.msra.mxu0 %v8287_v4 }
 0x900   :  { %2780 = vmatprep.subr.bf16.mxu1 %v7808_v48  ;;  %5010 = vmatprep.subr.bf16.mxu0 %v10530_v61 }
 0x994   :  { %v2610_v28 = vpop.f32.mrb[44].mxu1  ;;  %v2651_v34 = vpop.f32.mrb[40].mxu0 }
 0x995   :  { %v2611_v52 = vadd.f32 %v2610_v28, %v7563_v12  ;;  %v2612_v13 = vpop.f32.mrb[45].mxu1  ;;  %v2653_v47 = vpop.f32.mrb[41].mxu0  ;;  %v2652_v12 = vadd.f32 %v2651_v34, %v7576_v9  ;;  %v8324_v34 = vld [vmem:[#allocation8 + $0x30] ss:$12 sps:$4 sm:$0xff]  }
 0x996   :  { %v2614_v40 = vpop.f32.mrb[46].mxu1  ;;  %v2655_v45 = vpop.f32.mrb[42].mxu0  ;;  %v2613_v46 = vadd.f32 %v2612_v13, %v10650_v30  ;;  %v2654_v36 = vadd.f32 %v2653_v47, %v7573_v1  ;;  %v8301_v47 = vld [vmem:[#allocation8] ss:$12 sps:$4 sm:$0xff]  }
 0x997   :  { %v4727_v39 = vmul.f32 -1.442695, %v2611_v52  ;;  %v2615_v55 = vpop.f32.mrb[47].mxu1  ;;  %v2656_v32 = vpop.f32.mrb[43].mxu0  ;;  %v8327_v45 = vld [vmem:[#allocation8 + $0x38] ss:$12 sps:$4 sm:$0xff]  }
 0x998   :  { %v4728_v43 = vmul.f32 -1.442695, %v2613_v46 }
 0x999   :  { %5541 = vpow2.f32 %v4727_v39 }
 0x99a   :  { %5543 = vpow2.f32 %v4728_v43 }
 0x9a3   :  { %v5542_v4 = vpop.eup %5541 }
 0x9a4   :  { %v2661_v48 = vadd.f32 1.0, %v5542_v4  ;;  %v5544_v17 = vpop.eup %5543  ;;  %v8320_v4 = vld [vmem:[#allocation8 + $0x34] ss:$12 sps:$4 sm:$0xff]  }
 0x9a5   :  { %v2667_v18 = vadd.f32 1.0, %v5544_v17 }
 0x9a6   :  { %5545 = vrcp.f32 %v2661_v48  ;;  %v8330_v48 = vld [vmem:[#allocation8 + $0x4c] ss:$12 sps:$4 sm:$0xff]  }
 0x9a7   :  { %5547 = vrcp.f32 %v2667_v18  ;;  %v8317_v18 = vld [vmem:[#allocation8 + $0x20] ss:$12 sps:$4 sm:$0xff]  }
 0x9b0   :  { %v5546_v28 = vpop.eup %5545 }
 0x9b1   :  { %v2670_v40 = vmul.f32 %v5546_v28, %v2654_v36  ;;  %v5548_v32 = vpop.eup %5547  ;;  %v8304_v36 = vld [vmem:[#allocation8 + $0x8] ss:$12 sps:$4 sm:$0xff]  }
 0x9b2   :  { %v2673_v55 = vsub.f32 1.0, %v5548_v32  ;;  %v2675_v46 = vmul.f32 %v5548_v32, %v7817_v44  ;;  %v8314_v44 = vld [vmem:[#allocation8 + $0x18] ss:$12 sps:$4 sm:$0xff]   ;;  %v8334_v28 = vld [vmem:[#allocation8 + $0x48] ss:$12 sps:$4 sm:$0xff]   ;;  %v10796_v32 = vld [vmem:[#allocation85_spill] sm:$0xff] }
 0x9b3   :  { %v2671_v52 = vadd.f32 %v2670_v40, %v2652_v12  ;;  %v8307_v12 = vld [vmem:[#allocation8 + $0x1c] ss:$12 sps:$4 sm:$0xff]   ;;  %v10794_v40 = vld [vmem:[#allocation83_spill] sm:$0xff] }
 0x9b5   :  { %5549 = vtanh.f32 %v2671_v52  ;;  %v10795_v52 = vld [vmem:[#allocation84_spill] sm:$0xff] }
 0x9bf   :  { %v5550_v13 = vpop.eup %5549 }
 0x9c0   :  { %v2674_v39 = vmul.f32 %v5550_v13, %v2673_v55  ;;  %v10797_v55 = vld [vmem:[#allocation86_spill] sm:$0xff]  ;;  %v10798_v13 = vld [vmem:[#allocation87_spill] sm:$0xff] }
 0x9c2   :  { %v8297_v43 = vadd.f32 %v2675_v46, %v2674_v39  ;;  %v10799_v39 = vld [vmem:[#allocation88_spill] sm:$0xff]  ;;  %v10800_v46 = vld [vmem:[#allocation89_spill] sm:$0xff] }
 0x9c4   :  { %v2677_v17 = vpack.c.bf16 %v8297_v43, %v8297_v43 }
 0x9c6   :  { %2712 = vmatmul.mubr.bf16.vlgmr.msra.gmra.mrb[48].mxu1 %v2677_v17  ;;  %2753 = vmatmul.mubr.bf16.vlgmr.msra.gmra.mrb[44].mxu0 %v2677_v17 }
 0x9c7   :  { %2781 = vmatpush1.bf16.msra.mxu1 %v8301_v47  ;;  %5011 = vmatpush3.bf16.msra.mxu0 %v8304_v36 }
 0x9c8   :  { %2782 = vmatprep.subr.bf16.mxu1 %v8307_v12  ;;  %5012 = vmatprep.subr.bf16.mxu0 %v10530_v61 }
 0x9c9   :  { %2812 = vmatprep.mubr.bf16.mxu1 %v10533_v23  ;;  %5026 = vmatprep.mubr.msk.bf16.mxu0 %vm6485_vm0, %v10530_v61 }
 0x9cb   :  { %2783 = vmatpush1.bf16.msra.mxu1 %v8314_v44  ;;  %5013 = vmatpush3.bf16.msra.mxu0 %v8317_v18 }
 0x9cc   :  { %2784 = vmatprep.subr.bf16.mxu1 %v8320_v4  ;;  %5014 = vmatprep.subr.bf16.mxu0 %v10530_v61 }
 0x9cf   :  { %2785 = vmatpush1.bf16.msra.mxu1 %v8324_v34  ;;  %5015 = vmatpush3.bf16.msra.mxu0 %v8327_v45 }
 0x9d0   :  { %2786 = vmatprep.subr.bf16.mxu1 %v8330_v48  ;;  %5016 = vmatprep.subr.bf16.mxu0 %v10530_v61 }
 0x9d3   :  { %2787 = vmatpush1.bf16.msra.mxu1 %v8334_v28  ;;  %5017 = vmatpush3.bf16.msra.mxu0 %v7837_v31  ;;  %v10763_v31 = vld [vmem:[#allocation52_spill] sm:$0xff] }
 0x9d4   :  { %2788 = vmatprep.subr.bf16.mxu1 %v7840_v11  ;;  %5018 = vmatprep.subr.bf16.mxu0 %v10530_v61  ;;  %v10764_v11 = vld [vmem:[#allocation53_spill] sm:$0xff] }
 0x9d7   :  { %2789 = vmatpush1.bf16.msra.mxu1 %v7844_v35  ;;  %5019 = vmatpush3.bf16.msra.mxu0 %v7847_v24  ;;  %v10765_v35 = vld [vmem:[#allocation54_spill] sm:$0xff]  ;;  %v10766_v24 = vld [vmem:[#allocation55_spill] sm:$0xff] }
 0x9d8   :  { %2790 = vmatprep.subr.bf16.mxu1 %v7850_v8  ;;  %5020 = vmatprep.subr.bf16.mxu0 %v10530_v61  ;;  %v10767_v8 = vld [vmem:[#allocation56_spill] sm:$0xff] }
 0x9db   :  { %2791 = vmatpush1.bf16.msra.mxu1 %v7854_v7  ;;  %5021 = vmatpush3.bf16.msra.mxu0 %v7857_v21  ;;  %v10768_v7 = vld [vmem:[#allocation57_spill] sm:$0xff]  ;;  %v10769_v21 = vld [vmem:[#allocation58_spill] sm:$0xff] }
 0x9dc   :  { %2792 = vmatprep.subr.bf16.mxu1 %v7860_v10  ;;  %5022 = vmatprep.subr.bf16.mxu0 %v10530_v61  ;;  %v10770_v10 = vld [vmem:[#allocation59_spill] sm:$0xff] }
 0x9df   :  { %2793 = vmatpush1.bf16.msra.mxu1 %v7864_v33  ;;  %5023 = vmatpush3.bf16.msra.mxu0 %v7867_v20  ;;  %v10771_v33 = vld [vmem:[#allocation60_spill] sm:$0xff]  ;;  %v10772_v20 = vld [vmem:[#allocation61_spill] sm:$0xff] }
 0x9e0   :  { %2794 = vmatprep.subr.bf16.mxu1 %v7870_v37  ;;  %5024 = vmatprep.subr.bf16.mxu0 %v10530_v61  ;;  %v10773_v37 = vld [vmem:[#allocation62_spill] sm:$0xff] }
 0x9e3   :  { %2795 = vmatpush1.bf16.msra.mxu1 %v7874_v49  ;;  %5025 = vmatpush3.bf16.msra.mxu0 %v7877_v50  ;;  %v10774_v49 = vld [vmem:[#allocation63_spill] sm:$0xff]  ;;  %v10775_v50 = vld [vmem:[#allocation64_spill] sm:$0xff] }
 0x9e4   :  { %2883 = vmatprep.subr.bf16.mxu1 %v7880_v51  ;;  %2924 = vmatprep.subr.bf16.mxu0 %v7883_v53  ;;  %v10776_v51 = vld [vmem:[#allocation65_spill] sm:$0xff]  ;;  %v10777_v53 = vld [vmem:[#allocation66_spill] sm:$0xff] }
 0x9e6   :  { %2813 = vmatmul.mubr.bf16.vlgmr.msra.gmra.mrb[52].mxu1 %v8098_v2  ;;  %5027 = vmatmul.mubr.bf16.vlgmr.msra.gmra.mrb[48].mxu0 %v8098_v2  ;;  %v10793_v2 = vld [vmem:[#allocation82_spill] sm:$0xff] }
 0x9e7   :  { %2915 = vmatprep.mubr.bf16.mxu1 %v2677_v17  ;;  %2956 = vmatprep.mubr.bf16.mxu0 %v2677_v17  ;;  %v10801_v17 = vld [vmem:[#allocation90_spill] sm:$0xff] }
 0x9e8   :  { %2884 = vmatpush1.bf16.msra.mxu1 %v7888_v54  ;;  %2925 = vmatpush1.bf16.msra.mxu0 %v7891_v56  ;;  %v10778_v54 = vld [vmem:[#allocation67_spill] sm:$0xff]  ;;  %v10779_v56 = vld [vmem:[#allocation68_spill] sm:$0xff] }
 0x9e9   :  { %2885 = vmatprep.subr.bf16.mxu1 %v7894_v38  ;;  %2926 = vmatprep.subr.bf16.mxu0 %v7897_v42  ;;  %v10780_v38 = vld [vmem:[#allocation69_spill] sm:$0xff]  ;;  %v10781_v42 = vld [vmem:[#allocation70_spill] sm:$0xff] }
 0x9ec   :  { %2886 = vmatpush1.bf16.msra.mxu1 %v7900_v57  ;;  %2927 = vmatpush1.bf16.msra.mxu0 %v7903_v19  ;;  %v10782_v57 = vld [vmem:[#allocation71_spill] sm:$0xff]  ;;  %v10783_v19 = vld [vmem:[#allocation72_spill] sm:$0xff] }
 0x9ed   :  { %2887 = vmatprep.subr.bf16.mxu1 %v7906_v58  ;;  %2928 = vmatprep.subr.bf16.mxu0 %v7909_v59  ;;  %v10784_v58 = vld [vmem:[#allocation73_spill] sm:$0xff]  ;;  %v10785_v59 = vld [vmem:[#allocation74_spill] sm:$0xff] }
 0x9f0   :  { %2888 = vmatpush1.bf16.msra.mxu1 %v7912_v60  ;;  %2929 = vmatpush1.bf16.msra.mxu0 %v7915_v62  ;;  %v10786_v60 = vld [vmem:[#allocation75_spill] sm:$0xff]  ;;  %v10787_v62 = vld [vmem:[#allocation76_spill] sm:$0xff] }
 0x9f1   :  { %2889 = vmatprep.subr.bf16.mxu1 %v7918_v3  ;;  %2930 = vmatprep.subr.bf16.mxu0 %v7921_v63  ;;  %v10788_v3 = vld [vmem:[#allocation77_spill] sm:$0xff]  ;;  %v10789_v63 = vld [vmem:[#allocation78_spill] sm:$0xff] }
 0x9f4   :  { %2890 = vmatpush1.bf16.msra.mxu1 %v7924_v15  ;;  %2931 = vmatpush1.bf16.msra.mxu0 %v7927_v6  ;;  %v10790_v15 = vld [vmem:[#allocation79_spill] sm:$0xff]  ;;  %v10791_v6 = vld [vmem:[#allocation80_spill] sm:$0xff] }
 0x9f5   :  { %2891 = vmatprep.subr.bf16.mxu1 %v7930_v26  ;;  %2932 = vmatprep.subr.bf16.mxu0 %v10763_v31  ;;  %v10792_v26 = vld [vmem:[#allocation81_spill] sm:$0xff]  ;;  %v10802_v31 = vld [vmem:[#allocation91_spill] sm:$0xff] }
 0x9f8   :  { %2892 = vmatpush1.bf16.msra.mxu1 %v10764_v11  ;;  %2933 = vmatpush1.bf16.msra.mxu0 %v10765_v35  ;;  %v10803_v11 = vld [vmem:[#allocation92_spill] sm:$0xff]  ;;  %v10804_v35 = vld [vmem:[#allocation93_spill] sm:$0xff] }
 0x9f9   :  { %2893 = vmatprep.subr.bf16.mxu1 %v10766_v24  ;;  %2934 = vmatprep.subr.bf16.mxu0 %v10767_v8  ;;  %v10805_v24 = vld [vmem:[#allocation94_spill] sm:$0xff]  ;;  %v10806_v8 = vld [vmem:[#allocation27_spill] sm:$0xff] }
 0x9fc   :  { %2894 = vmatpush1.bf16.msra.mxu1 %v10768_v7  ;;  %2935 = vmatpush1.bf16.msra.mxu0 %v10769_v21  ;;  %v10807_v7 = vld [vmem:[#allocation29_spill] sm:$0xff]  ;;  %v10808_v21 = vld [vmem:[#allocation31_spill] sm:$0xff] }
 0x9fd   :  { %2895 = vmatprep.subr.bf16.mxu1 %v10770_v10  ;;  %2936 = vmatprep.subr.bf16.mxu0 %v10771_v33  ;;  %v10809_v10 = vld [vmem:[#allocation95_spill] sm:$0xff]  ;;  %v10810_v33 = vld [vmem:[#allocation96_spill] sm:$0xff] }
 0xa00   :  { %2896 = vmatpush1.bf16.msra.mxu1 %v10772_v20  ;;  %2937 = vmatpush1.bf16.msra.mxu0 %v10773_v37  ;;  %v10811_v20 = vld [vmem:[#allocation97_spill] sm:$0xff] }
 0xa01   :  { %2897 = vmatprep.subr.bf16.mxu1 %v10774_v49  ;;  %2938 = vmatprep.subr.bf16.mxu0 %v10775_v50  ;;  %v10812_v50 = vld [vmem:[#allocation48_spill] sm:$0xff] }
 0xa04   :  { %2898 = vmatpush1.bf16.msra.mxu1 %v10776_v51  ;;  %2939 = vmatpush1.bf16.msra.mxu0 %v10777_v53 }
 0xa05   :  { %2899 = vmatprep.subr.bf16.mxu1 %v10778_v54  ;;  %2940 = vmatprep.subr.bf16.mxu0 %v10779_v56 }
 0xa08   :  { %2900 = vmatpush1.bf16.msra.mxu1 %v10780_v38  ;;  %2941 = vmatpush1.bf16.msra.mxu0 %v10781_v42 }
 0xa09   :  { %2901 = vmatprep.subr.bf16.mxu1 %v10782_v57  ;;  %2942 = vmatprep.subr.bf16.mxu0 %v10783_v19 }
 0xa0c   :  { %2902 = vmatpush1.bf16.msra.mxu1 %v10784_v58  ;;  %2943 = vmatpush1.bf16.msra.mxu0 %v10785_v59  ;;  %v10813_v58 = vld [vmem:[#allocation49_spill] sm:$0xff] }
 0xa0d   :  { %2903 = vmatprep.subr.bf16.mxu1 %v10786_v60  ;;  %2944 = vmatprep.subr.bf16.mxu0 %v10787_v62 }
 0xa10   :  { %2904 = vmatpush1.bf16.msra.mxu1 %v10788_v3  ;;  %2945 = vmatpush1.bf16.msra.mxu0 %v10789_v63 }
 0xa11   :  { %2905 = vmatprep.subr.bf16.mxu1 %v10790_v15  ;;  %2946 = vmatprep.subr.bf16.mxu0 %v10791_v6  ;;  %v10814_v6 = vld [vmem:[#allocation50_spill] sm:$0xff] }
 0xa14   :  { %2906 = vmatpush1.bf16.msra.mxu1 %v10792_v26  ;;  %2947 = vmatpush1.bf16.msra.mxu0 %v10793_v2 }
 0xa15   :  { %2907 = vmatprep.subr.bf16.mxu1 %v10794_v40  ;;  %2948 = vmatprep.subr.bf16.mxu0 %v10795_v52 }
 0xa18   :  { %2908 = vmatpush1.bf16.msra.mxu1 %v10796_v32  ;;  %2949 = vmatpush1.bf16.msra.mxu0 %v10797_v55 }
 0xa19   :  { %2909 = vmatprep.subr.bf16.mxu1 %v10798_v13  ;;  %2950 = vmatprep.subr.bf16.mxu0 %v10799_v39 }
 0xa1c   :  { %2910 = vmatpush1.bf16.msra.mxu1 %v10800_v46  ;;  %2951 = vmatpush1.bf16.msra.mxu0 %v10801_v17 }
 0xa1d   :  { %2911 = vmatprep.subr.bf16.mxu1 %v10802_v31  ;;  %2952 = vmatprep.subr.bf16.mxu0 %v10803_v11 }
 0xa20   :  { %2912 = vmatpush1.bf16.msra.mxu1 %v10804_v35  ;;  %2953 = vmatpush1.bf16.msra.mxu0 %v10805_v24  ;;  %v10815_v24 = vld [vmem:[#allocation34_spill] sm:$0xff] }
 0xa21   :  { %2913 = vmatprep.subr.bf16.mxu1 %v10806_v8  ;;  %2954 = vmatprep.subr.bf16.mxu0 %v10807_v7 }
 0xa24   :  { %2914 = vmatpush1.bf16.msra.mxu1 %v10808_v21  ;;  %2955 = vmatpush1.bf16.msra.mxu0 %v10809_v10  ;;  %v10816_v10 = vld [vmem:[#allocation35_spill] sm:$0xff] }
 0xa25   :  { %2986 = vmatprep.subr.bf16.mxu1 %v10810_v33  ;;  %3027 = vmatprep.subr.bf16.mxu0 %v10811_v20 }
 0xa99   :  { %v2713_v37 = vpop.f32.mrb[48].mxu1  ;;  %v2754_v49 = vpop.f32.mrb[44].mxu0 }
 0xa9a   :  { %v2714_v51 = vadd.f32 %v2713_v37, %v10812_v50  ;;  %v2715_v53 = vpop.f32.mrb[49].mxu1  ;;  %v2756_v54 = vpop.f32.mrb[45].mxu0  ;;  %v2755_v40 = vadd.f32 %v2754_v49, %v7722_v22 }
 0xa9b   :  { %v2717_v56 = vpop.f32.mrb[50].mxu1  ;;  %v2758_v38 = vpop.f32.mrb[46].mxu0  ;;  %v2716_v59 = vadd.f32 %v2715_v53, %v10813_v58  ;;  %v2757_v26 = vadd.f32 %v2756_v54, %v10814_v6 }
 0xa9c   :  { %v4729_v42 = vmul.f32 -1.442695, %v2714_v51  ;;  %v2718_v57 = vpop.f32.mrb[51].mxu1  ;;  %v2759_v19 = vpop.f32.mrb[47].mxu0 }
 0xa9d   :  { %v4730_v60 = vmul.f32 -1.442695, %v2716_v59 }
 0xa9e   :  { %5551 = vpow2.f32 %v4729_v42 }
 0xa9f   :  { %5553 = vpow2.f32 %v4730_v60 }
 0xaa8   :  { %v5552_v62 = vpop.eup %5551 }
 0xaa9   :  { %v2764_v3 = vadd.f32 1.0, %v5552_v62  ;;  %v5554_v63 = vpop.eup %5553 }
 0xaaa   :  { %v2770_v15 = vadd.f32 1.0, %v5554_v63  ;;  %v10818_v63 = vld [vmem:[#allocation30_spill] sm:$0xff] }
 0xaab   :  { %5555 = vrcp.f32 %v2764_v3 }
 0xaac   :  { %5557 = vrcp.f32 %v2770_v15 }
 0xab5   :  { %v5556_v2 = vpop.eup %5555 }
 0xab6   :  { %v2773_v52 = vmul.f32 %v5556_v2, %v2757_v26  ;;  %v5558_v37 = vpop.eup %5557 }
 0xab7   :  { %v2776_v51 = vsub.f32 1.0, %v5558_v37  ;;  %v2778_v56 = vmul.f32 %v5558_v37, %v8089_v16  ;;  %v10835_v37 = vld [vmem:[#allocation115_spill] sm:$0xff]  ;;  %v8681_v16 = vld [vmem:[#allocation13 + $0x10c] ss:$16 sps:$4 sm:$0xff]  }
 0xab8   :  { %v2774_v32 = vadd.f32 %v2773_v52, %v2755_v40  ;;  %10895 = vst [vmem:[#allocation67_spill] sm:$0xff] %v8681_v16 }
 0xab9   :  { %v2814_v55 = vpop.f32.mrb[52].mxu1  ;;  %v2855_v13 = vpop.f32.mrb[48].mxu0 }
 0xaba   :  { %5559 = vtanh.f32 %v2774_v32  ;;  %v2815_v39 = vadd.f32 %v2814_v55, %v7344_v27  ;;  %v2816_v46 = vpop.f32.mrb[53].mxu1  ;;  %v5028_v17 = vpop.f32.mrb[49].mxu0  ;;  %v2856_v60 = vadd.f32 %v2855_v13, %v7356_v14 }
 0xabb   :  { %v2817_v31 = vadd.f32 %v2816_v46, %v7347_v29  ;;  %v2818_v11 = vpop.f32.mrb[54].mxu1  ;;  %v2858_v35 = vpop.f32.mrb[50].mxu0  ;;  %v10820_v46 = vld [vmem:[#allocation100_spill] sm:$0xff]  ;;  %v10821_v17 = vld [vmem:[#allocation101_spill] sm:$0xff] }
 0xabc   :  { %v2861_v8 = vadd.f32 %v2815_v39, %v10815_v24  ;;  %v2819_v7 = vpop.f32.mrb[55].mxu1  ;;  %v5029_v21 = vpop.f32.mrb[51].mxu0  ;;  %v10823_v11 = vld [vmem:[#allocation103_spill] sm:$0xff]  ;;  %v10824_v35 = vld [vmem:[#allocation104_spill] sm:$0xff]  ;;  %v10825_v24 = vld [vmem:[#allocation105_spill] sm:$0xff] }
 0xabd   :  { %v2868_v33 = vadd.f32 %v2817_v31, %v10816_v10  ;;  %v10822_v31 = vld [vmem:[#allocation102_spill] sm:$0xff]  ;;  %v10831_v21 = vld [vmem:[#allocation111_spill] sm:$0xff]  ;;  %v10832_v10 = vld [vmem:[#allocation112_spill] sm:$0xff] }
 0xabe   :  { %v4731_v20 = vmul.f32 -1.442695, %v2861_v8  ;;  %v10826_v8 = vld [vmem:[#allocation106_spill] sm:$0xff] }
 0xabf   :  { %v4732_v49 = vmul.f32 -1.442695, %v2868_v33  ;;  %v10830_v7 = vld [vmem:[#allocation110_spill] sm:$0xff]  ;;  %v10833_v33 = vld [vmem:[#allocation113_spill] sm:$0xff] }
 0xac0   :  { %5561 = vpow2.f32 %v4731_v20  ;;  %v10834_v20 = vld [vmem:[#allocation114_spill] sm:$0xff] }
 0xac1   :  { %5563 = vpow2.f32 %v4732_v49  ;;  %v10836_v49 = vld [vmem:[#allocation116_spill] sm:$0xff] }
 0xac4   :  { %v5560_v53 = vpop.eup %5559 }
 0xac5   :  { %v2777_v54 = vmul.f32 %v5560_v53, %v2776_v51  ;;  %v10837_v51 = vld [vmem:[#allocation117_spill] sm:$0xff]  ;;  %v10838_v53 = vld [vmem:[#allocation118_spill] sm:$0xff] }
 0xac7   :  { %v8431_v38 = vadd.f32 %v2778_v56, %v2777_v54  ;;  %v10839_v54 = vld [vmem:[#allocation119_spill] sm:$0xff]  ;;  %v10840_v56 = vld [vmem:[#allocation120_spill] sm:$0xff] }
 0xac9   :  { %10817 = vst [vmem:[#allocation33_spill] sm:$0xff] %v8431_v38  ;;  %v2985_v13 = vpack.c.bf16 %v8431_v38, %v8431_v38 }
 0xaca   :  { %v5562_v42 = vpop.eup %5561 }
 0xacb   :  { %v2865_v57 = vadd.f32 1.0, %v5562_v42  ;;  %v5564_v19 = vpop.eup %5563  ;;  %v10841_v42 = vld [vmem:[#allocation121_spill] sm:$0xff] }
 0xacc   :  { %v2872_v59 = vadd.f32 1.0, %v5564_v19  ;;  %v10843_v19 = vld [vmem:[#allocation123_spill] sm:$0xff] }
 0xacd   :  { %5565 = vrcp.f32 %v2865_v57  ;;  %v10842_v57 = vld [vmem:[#allocation122_spill] sm:$0xff] }
 0xace   :  { %5567 = vrcp.f32 %v2872_v59  ;;  %v10844_v59 = vld [vmem:[#allocation124_spill] sm:$0xff] }
 0xad7   :  { %v5566_v62 = vpop.eup %5565 }
 0xad8   :  { %v2875_v3 = vmul.f32 %v5566_v62, %v2856_v60  ;;  %v5568_v26 = vpop.eup %5567  ;;  %v10845_v60 = vld [vmem:[#allocation125_spill] sm:$0xff]  ;;  %v10846_v62 = vld [vmem:[#allocation126_spill] sm:$0xff] }
 0xad9   :  { %v2878_v2 = vsub.f32 1.0, %v5568_v26  ;;  %v2880_v32 = vmul.f32 %v5568_v26, %v8094_v25  ;;  %v10819_v25 = vld [vmem:[#allocation99_spill] sm:$0xff]  ;;  %v10850_v26 = vld [vmem:[#allocation130_spill] sm:$0xff] }
 0xada   :  { %v2876_v15 = vadd.f32 %v2875_v3, %v10818_v63  ;;  %v10847_v3 = vld [vmem:[#allocation127_spill] sm:$0xff]  ;;  %v10848_v63 = vld [vmem:[#allocation128_spill] sm:$0xff] }
 0xadc   :  { %5569 = vtanh.f32 %v2876_v15  ;;  %v10849_v15 = vld [vmem:[#allocation129_spill] sm:$0xff] }
 0xae6   :  { %v5570_v40 = vpop.eup %5569 }
 0xae7   :  { %v2879_v52 = vmul.f32 %v5570_v40, %v2878_v2  ;;  %v10851_v2 = vld [vmem:[#allocation131_spill] sm:$0xff]  ;;  %v10852_v40 = vld [vmem:[#allocation132_spill] sm:$0xff] }
 0xae9   :  { %v8436_v55 = vadd.f32 %v2880_v32, %v2879_v52  ;;  %v10853_v52 = vld [vmem:[#allocation133_spill] sm:$0xff]  ;;  %v10854_v32 = vld [vmem:[#allocation134_spill] sm:$0xff] }
 0xaeb   :  { %v8440_v39 = vpack.c.bf16 %v8436_v55, %v8436_v55 }
 0xaed   :  { %2916 = vmatmul.mubr.bf16.vlgmr.msra.gmra.mrb[56].mxu1 %v8440_v39  ;;  %2957 = vmatmul.mubr.bf16.vlgmr.msra.gmra.mrb[52].mxu0 %v8440_v39 }
 0xaee   :  { %3018 = vmatprep.mubr.bf16.mxu1 %v2985_v13  ;;  %3059 = vmatprep.mubr.bf16.mxu0 %v2985_v13  ;;  %v10855_v13 = vld [vmem:[#allocation135_spill] sm:$0xff] }
 0xaef   :  { %2987 = vmatpush1.bf16.msra.mxu1 %v8104_v41  ;;  %3028 = vmatpush1.bf16.msra.mxu0 %v8107_v5  ;;  %v10827_v41 = vld [vmem:[#allocation107_spill] sm:$0xff]  ;;  %v10828_v5 = vld [vmem:[#allocation108_spill] sm:$0xff] }
 0xaf0   :  { %2988 = vmatprep.subr.bf16.mxu1 %v8110_v0  ;;  %3029 = vmatprep.subr.bf16.mxu0 %v10819_v25  ;;  %v10829_v0 = vld [vmem:[#allocation109_spill] sm:$0xff]  ;;  %v10856_v25 = vld [vmem:[#allocation136_spill] sm:$0xff] }
 0xaf3   :  { %2989 = vmatpush1.bf16.msra.mxu1 %v10820_v46  ;;  %3030 = vmatpush1.bf16.msra.mxu0 %v10821_v17  ;;  %v10857_v46 = vld [vmem:[#allocation137_spill] sm:$0xff]  ;;  %v10858_v17 = vld [vmem:[#allocation138_spill] sm:$0xff] }
 0xaf4   :  { %2990 = vmatprep.subr.bf16.mxu1 %v10822_v31  ;;  %3031 = vmatprep.subr.bf16.mxu0 %v10823_v11  ;;  %v10859_v31 = vld [vmem:[#allocation139_spill] sm:$0xff]  ;;  %v10860_v11 = vld [vmem:[#allocation140_spill] sm:$0xff] }
 0xaf7   :  { %2991 = vmatpush1.bf16.msra.mxu1 %v10824_v35  ;;  %3032 = vmatpush1.bf16.msra.mxu0 %v10825_v24  ;;  %v10861_v35 = vld [vmem:[#allocation141_spill] sm:$0xff]  ;;  %v10862_v24 = vld [vmem:[#allocation142_spill] sm:$0xff] }
 0xaf8   :  { %2992 = vmatprep.subr.bf16.mxu1 %v10826_v8  ;;  %3033 = vmatprep.subr.bf16.mxu0 %v10827_v41  ;;  %v10863_v8 = vld [vmem:[#allocation143_spill] sm:$0xff]  ;;  %v10864_v41 = vld [vmem:[#allocation144_spill] sm:$0xff] }
 0xafb   :  { %2993 = vmatpush1.bf16.msra.mxu1 %v10828_v5  ;;  %3034 = vmatpush1.bf16.msra.mxu0 %v10829_v0  ;;  %v10865_v5 = vld [vmem:[#allocation145_spill] sm:$0xff]  ;;  %v10866_v0 = vld [vmem:[#allocation146_spill] sm:$0xff] }
 0xafc   :  { %2994 = vmatprep.subr.bf16.mxu1 %v10830_v7  ;;  %3035 = vmatprep.subr.bf16.mxu0 %v10831_v21  ;;  %v10867_v7 = vld [vmem:[#allocation147_spill] sm:$0xff]  ;;  %v10868_v21 = vld [vmem:[#allocation148_spill] sm:$0xff] }
 0xaff   :  { %2995 = vmatpush1.bf16.msra.mxu1 %v10832_v10  ;;  %3036 = vmatpush1.bf16.msra.mxu0 %v10833_v33  ;;  %v10869_v10 = vld [vmem:[#allocation149_spill] sm:$0xff]  ;;  %v10870_v33 = vld [vmem:[#allocation150_spill] sm:$0xff] }
 0xb00   :  { %2996 = vmatprep.subr.bf16.mxu1 %v10834_v20  ;;  %3037 = vmatprep.subr.bf16.mxu0 %v10835_v37  ;;  %v10871_v20 = vld [vmem:[#allocation151_spill] sm:$0xff]  ;;  %v10872_v37 = vld [vmem:[#allocation152_spill] sm:$0xff] }
 0xb03   :  { %2997 = vmatpush1.bf16.msra.mxu1 %v10836_v49  ;;  %3038 = vmatpush1.bf16.msra.mxu0 %v10837_v51  ;;  %v10873_v49 = vld [vmem:[#allocation153_spill] sm:$0xff]  ;;  %v10874_v51 = vld [vmem:[#allocation154_spill] sm:$0xff] }
 0xb04   :  { %2998 = vmatprep.subr.bf16.mxu1 %v10838_v53  ;;  %3039 = vmatprep.subr.bf16.mxu0 %v10839_v54  ;;  %v10875_v53 = vld [vmem:[#allocation155_spill] sm:$0xff]  ;;  %v10876_v54 = vld [vmem:[#allocation157_spill] sm:$0xff] }
 0xb07   :  { %2999 = vmatpush1.bf16.msra.mxu1 %v10840_v56  ;;  %3040 = vmatpush1.bf16.msra.mxu0 %v10841_v42  ;;  %v10877_v56 = vld [vmem:[#allocation32_spill] sm:$0xff]  ;;  %v8508_v42 = vld [vmem:[#allocation8 + $0x4] ss:$12 sps:$4 sm:$0xff]  }
 0xb08   :  { %3000 = vmatprep.subr.bf16.mxu1 %v10842_v57  ;;  %3041 = vmatprep.subr.bf16.mxu0 %v10843_v19 }
 0xb0b   :  { %3001 = vmatpush1.bf16.msra.mxu1 %v10844_v59  ;;  %3042 = vmatpush1.bf16.msra.mxu0 %v10845_v60  ;;  %v10878_v59 = vld [vmem:[#allocation156_spill] sm:$0xff] }
 0xb0c   :  { %3002 = vmatprep.subr.bf16.mxu1 %v10846_v62  ;;  %3043 = vmatprep.subr.bf16.mxu0 %v10847_v3 }
 0xb0f   :  { %3003 = vmatpush1.bf16.msra.mxu1 %v10848_v63  ;;  %3044 = vmatpush1.bf16.msra.mxu0 %v10849_v15 }
 0xb10   :  { %3004 = vmatprep.subr.bf16.mxu1 %v10850_v26  ;;  %3045 = vmatprep.subr.bf16.mxu0 %v10851_v2 }
 0xb13   :  { %3005 = vmatpush1.bf16.msra.mxu1 %v10852_v40  ;;  %3046 = vmatpush1.bf16.msra.mxu0 %v10853_v52 }
 0xb14   :  { %3006 = vmatprep.subr.bf16.mxu1 %v10854_v32  ;;  %3047 = vmatprep.subr.bf16.mxu0 %v10855_v13 }
 0xb17   :  { %3007 = vmatpush1.bf16.msra.mxu1 %v10856_v25  ;;  %3048 = vmatpush1.bf16.msra.mxu0 %v10857_v46 }
 0xb18   :  { %3008 = vmatprep.subr.bf16.mxu1 %v10858_v17  ;;  %3049 = vmatprep.subr.bf16.mxu0 %v10859_v31 }
 0xb1b   :  { %3009 = vmatpush1.bf16.msra.mxu1 %v10860_v11  ;;  %3050 = vmatpush1.bf16.msra.mxu0 %v10861_v35 }
 0xb1c   :  { %3010 = vmatprep.subr.bf16.mxu1 %v10862_v24  ;;  %3051 = vmatprep.subr.bf16.mxu0 %v10863_v8 }
 0xb1f   :  { %3011 = vmatpush1.bf16.msra.mxu1 %v10864_v41  ;;  %3052 = vmatpush1.bf16.msra.mxu0 %v10865_v5 }
 0xb20   :  { %3012 = vmatprep.subr.bf16.mxu1 %v10866_v0  ;;  %3053 = vmatprep.subr.bf16.mxu0 %v10867_v7 }
 0xb23   :  { %3013 = vmatpush1.bf16.msra.mxu1 %v10868_v21  ;;  %3054 = vmatpush1.bf16.msra.mxu0 %v10869_v10 }
 0xb24   :  { %3014 = vmatprep.subr.bf16.mxu1 %v10870_v33  ;;  %3055 = vmatprep.subr.bf16.mxu0 %v10871_v20  ;;  %v8574_v20 = vld [vmem:[#allocation8 + $0xa8] ss:$12 sps:$4 sm:$0xff]  }
 0xb27   :  { %3015 = vmatpush1.bf16.msra.mxu1 %v10872_v37  ;;  %3056 = vmatpush1.bf16.msra.mxu0 %v10873_v49  ;;  %v8577_v37 = vld [vmem:[#allocation8 + $0xb0] ss:$12 sps:$4 sm:$0xff]  }
 0xb28   :  { %3016 = vmatprep.subr.bf16.mxu1 %v10874_v51  ;;  %3057 = vmatprep.subr.bf16.mxu0 %v10875_v53  ;;  %v8580_v49 = vld [vmem:[#allocation13 + $0x4] ss:$16 sps:$4 sm:$0xff]   ;;  %v8583_v51 = vld [vmem:[#allocation13 + $0xc] ss:$16 sps:$4 sm:$0xff]   ;;  %v8588_v53 = vld [vmem:[#allocation13] ss:$16 sps:$4 sm:$0xff]  }
 0xb2b   :  { %3017 = vmatpush1.bf16.msra.mxu1 %v10876_v54  ;;  %3058 = vmatpush1.bf16.msra.mxu0 %v10877_v56  ;;  %v8591_v54 = vld [vmem:[#allocation13 + $0x8] ss:$16 sps:$4 sm:$0xff]   ;;  %v8594_v56 = vld [vmem:[#allocation13 + $0x24] ss:$16 sps:$4 sm:$0xff]  }
 0xb2c   :  { %3087 = vmatprep.subr.bf16.mxu1 %v8508_v42  ;;  %5030 = vmatprep.subr.bf16.mxu0 %v10530_v61 }
 0xbc0   :  { %v2917_v57 = vpop.f32.mrb[56].mxu1  ;;  %v2958_v19 = vpop.f32.mrb[52].mxu0 }
 0xbc1   :  { %v2918_v60 = vadd.f32 %v2917_v57, %v10878_v59  ;;  %v2919_v62 = vpop.f32.mrb[57].mxu1  ;;  %v2960_v3 = vpop.f32.mrb[53].mxu0  ;;  %v2959_v35 = vadd.f32 %v2958_v19, %v7576_v9  ;;  %v8597_v57 = vld [vmem:[#allocation13 + $0x2c] ss:$16 sps:$4 sm:$0xff]   ;;  %v8600_v19 = vld [vmem:[#allocation13 + $0x20] ss:$16 sps:$4 sm:$0xff]  }
 0xbc2   :  { %v2921_v63 = vpop.f32.mrb[58].mxu1  ;;  %v2962_v15 = vpop.f32.mrb[54].mxu0  ;;  %v2920_v52 = vadd.f32 %v2919_v62, %v10650_v30  ;;  %v2961_v31 = vadd.f32 %v2960_v3, %v7573_v1  ;;  %v8609_v62 = vld [vmem:[#allocation13 + $0x4c] ss:$16 sps:$4 sm:$0xff]   ;;  %v8612_v3 = vld [vmem:[#allocation13 + $0x40] ss:$16 sps:$4 sm:$0xff]  }
 0xbc3   :  { %v4733_v26 = vmul.f32 -1.442695, %v2918_v60  ;;  %v2922_v2 = vpop.f32.mrb[59].mxu1  ;;  %v2963_v40 = vpop.f32.mrb[55].mxu0  ;;  %v8606_v60 = vld [vmem:[#allocation13 + $0x44] ss:$16 sps:$4 sm:$0xff]  }
 0xbc4   :  { %v4734_v32 = vmul.f32 -1.442695, %v2920_v52  ;;  %v8615_v63 = vld [vmem:[#allocation13 + $0x48] ss:$16 sps:$4 sm:$0xff]   ;;  %v8618_v15 = vld [vmem:[#allocation13 + $0x64] ss:$16 sps:$4 sm:$0xff]  }
 0xbc5   :  { %5571 = vpow2.f32 %v4733_v26  ;;  %v8621_v26 = vld [vmem:[#allocation13 + $0x6c] ss:$16 sps:$4 sm:$0xff]   ;;  %v8624_v2 = vld [vmem:[#allocation13 + $0x60] ss:$16 sps:$4 sm:$0xff]   ;;  %v8627_v40 = vld [vmem:[#allocation13 + $0x68] ss:$16 sps:$4 sm:$0xff]  }
 0xbc6   :  { %5573 = vpow2.f32 %v4734_v32  ;;  %v8630_v52 = vld [vmem:[#allocation13 + $0x84] ss:$16 sps:$4 sm:$0xff]   ;;  %v8633_v32 = vld [vmem:[#allocation13 + $0x8c] ss:$16 sps:$4 sm:$0xff]  }
 0xbc7   :  { %10879 = vst [vmem:[#allocation28_spill] sm:$0xff] %v8633_v32 }
 0xbcf   :  { %v5572_v13 = vpop.eup %5571 }
 0xbd0   :  { %v2968_v25 = vadd.f32 1.0, %v5572_v13  ;;  %v5574_v46 = vpop.eup %5573  ;;  %v8636_v13 = vld [vmem:[#allocation13 + $0x80] ss:$16 sps:$4 sm:$0xff]  }
 0xbd1   :  { %v2974_v17 = vadd.f32 1.0, %v5574_v46  ;;  %10880 = vst [vmem:[#allocation52_spill] sm:$0xff] %v8636_v13  ;;  %v8642_v46 = vld [vmem:[#allocation13 + $0xa4] ss:$16 sps:$4 sm:$0xff]  }
 0xbd2   :  { %5575 = vrcp.f32 %v2968_v25  ;;  %v8639_v25 = vld [vmem:[#allocation13 + $0x88] ss:$16 sps:$4 sm:$0xff]   ;;  %10882 = vst [vmem:[#allocation54_spill] sm:$0xff] %v8642_v46 }
 0xbd3   :  { %5577 = vrcp.f32 %v2974_v17  ;;  %10881 = vst [vmem:[#allocation53_spill] sm:$0xff] %v8639_v25  ;;  %v8645_v17 = vld [vmem:[#allocation13 + $0xac] ss:$16 sps:$4 sm:$0xff]  }
 0xbd4   :  { %10883 = vst [vmem:[#allocation55_spill] sm:$0xff] %v8645_v17 }
 0xbdc   :  { %v5576_v11 = vpop.eup %5575 }
 0xbdd   :  { %v2977_v24 = vmul.f32 %v5576_v11, %v2961_v31  ;;  %v5578_v41 = vpop.eup %5577  ;;  %v8648_v31 = vld [vmem:[#allocation13 + $0xa0] ss:$16 sps:$4 sm:$0xff]   ;;  %v8651_v11 = vld [vmem:[#allocation13 + $0xa8] ss:$16 sps:$4 sm:$0xff]  }
 0xbde   :  { %v2980_v5 = vsub.f32 1.0, %v5578_v41  ;;  %v2982_v21 = vmul.f32 %v5578_v41, %v8297_v43  ;;  %v8537_v43 = vld [vmem:[#allocation8 + $0x50] ss:$12 sps:$4 sm:$0xff]   ;;  %10884 = vst [vmem:[#allocation56_spill] sm:$0xff] %v8648_v31  ;;  %10885 = vst [vmem:[#allocation57_spill] sm:$0xff] %v8651_v11 }
 0xbdf   :  { %v2978_v8 = vadd.f32 %v2977_v24, %v2959_v35  ;;  %v8654_v35 = vld [vmem:[#allocation13 + $0xc4] ss:$16 sps:$4 sm:$0xff]   ;;  %v8657_v24 = vld [vmem:[#allocation13 + $0xcc] ss:$16 sps:$4 sm:$0xff]   ;;  %v8663_v41 = vld [vmem:[#allocation13 + $0xc8] ss:$16 sps:$4 sm:$0xff]  }
 0xbe0   :  { %10886 = vst [vmem:[#allocation58_spill] sm:$0xff] %v8654_v35  ;;  %10887 = vst [vmem:[#allocation59_spill] sm:$0xff] %v8657_v24 }
 0xbe1   :  { %5579 = vtanh.f32 %v2978_v8  ;;  %v8660_v8 = vld [vmem:[#allocation13 + $0xc0] ss:$16 sps:$4 sm:$0xff]   ;;  %10889 = vst [vmem:[#allocation61_spill] sm:$0xff] %v8663_v41 }
 0xbe2   :  { %10888 = vst [vmem:[#allocation60_spill] sm:$0xff] %v8660_v8 }
 0xbeb   :  { %v5580_v0 = vpop.eup %5579 }
 0xbec   :  { %v2981_v7 = vmul.f32 %v5580_v0, %v2980_v5  ;;  %v8666_v5 = vld [vmem:[#allocation13 + $0xe4] ss:$16 sps:$4 sm:$0xff]   ;;  %v8669_v0 = vld [vmem:[#allocation13 + $0xec] ss:$16 sps:$4 sm:$0xff]  }
 0xbed   :  { %10890 = vst [vmem:[#allocation62_spill] sm:$0xff] %v8666_v5  ;;  %10891 = vst [vmem:[#allocation63_spill] sm:$0xff] %v8669_v0 }
 0xbee   :  { %v8517_v10 = vadd.f32 %v2982_v21, %v2981_v7  ;;  %v8672_v7 = vld [vmem:[#allocation13 + $0xe0] ss:$16 sps:$4 sm:$0xff]   ;;  %v8675_v21 = vld [vmem:[#allocation13 + $0xe8] ss:$16 sps:$4 sm:$0xff]  }
 0xbef   :  { %10892 = vst [vmem:[#allocation64_spill] sm:$0xff] %v8672_v7  ;;  %10893 = vst [vmem:[#allocation65_spill] sm:$0xff] %v8675_v21 }
 0xbf0   :  { %v2984_v33 = vpack.c.bf16 %v8517_v10, %v8517_v10 }
 0xbf2   :  { %3019 = vmatmul.mubr.bf16.vlgmr.msra.gmra.mrb[60].mxu1 %v2984_v33  ;;  %3060 = vmatmul.mubr.bf16.vlgmr.msra.gmra.mrb[56].mxu0 %v2984_v33 }
 0xbf3   :  { %3088 = vmatpush1.bf16.msra.mxu1 %v8301_v47  ;;  %5031 = vmatpush3.bf16.msra.mxu0 %v8304_v36  ;;  %v8540_v47 = vld [vmem:[#allocation8 + $0x64] ss:$12 sps:$4 sm:$0xff]   ;;  %v8544_v36 = vld [vmem:[#allocation8 + $0x60] ss:$12 sps:$4 sm:$0xff]  }
 0xbf4   :  { %3089 = vmatprep.subr.bf16.mxu1 %v8307_v12  ;;  %5032 = vmatprep.subr.bf16.mxu0 %v10530_v61  ;;  %v8547_v12 = vld [vmem:[#allocation8 + $0x68] ss:$12 sps:$4 sm:$0xff]  }
 0xbf5   :  { %3119 = vmatprep.mubr.bf16.mxu1 %v10533_v23  ;;  %5046 = vmatprep.mubr.msk.bf16.mxu0 %vm6485_vm0, %v10530_v61 }
 0xbf7   :  { %3090 = vmatpush1.bf16.msra.mxu1 %v8314_v44  ;;  %5033 = vmatpush3.bf16.msra.mxu0 %v8317_v18  ;;  %v8550_v44 = vld [vmem:[#allocation8 + $0x7c] ss:$12 sps:$4 sm:$0xff]   ;;  %v8554_v18 = vld [vmem:[#allocation8 + $0x78] ss:$12 sps:$4 sm:$0xff]  }
 0xbf8   :  { %3091 = vmatprep.subr.bf16.mxu1 %v8320_v4  ;;  %5034 = vmatprep.subr.bf16.mxu0 %v10530_v61  ;;  %v8557_v4 = vld [vmem:[#allocation8 + $0x80] ss:$12 sps:$4 sm:$0xff]  }
 0xbfb   :  { %3092 = vmatpush1.bf16.msra.mxu1 %v8324_v34  ;;  %5035 = vmatpush3.bf16.msra.mxu0 %v8327_v45  ;;  %v8560_v34 = vld [vmem:[#allocation8 + $0x94] ss:$12 sps:$4 sm:$0xff]   ;;  %v8564_v45 = vld [vmem:[#allocation8 + $0x90] ss:$12 sps:$4 sm:$0xff]  }
 0xbfc   :  { %3093 = vmatprep.subr.bf16.mxu1 %v8330_v48  ;;  %5036 = vmatprep.subr.bf16.mxu0 %v10530_v61  ;;  %v8567_v48 = vld [vmem:[#allocation8 + $0x98] ss:$12 sps:$4 sm:$0xff]  }
 0xbff   :  { %3094 = vmatpush1.bf16.msra.mxu1 %v8334_v28  ;;  %5037 = vmatpush3.bf16.msra.mxu0 %v8537_v43  ;;  %v8570_v28 = vld [vmem:[#allocation8 + $0xac] ss:$12 sps:$4 sm:$0xff]  }
 0xc00   :  { %3095 = vmatprep.subr.bf16.mxu1 %v8540_v47  ;;  %5038 = vmatprep.subr.bf16.mxu0 %v10530_v61 }
 0xc03   :  { %3096 = vmatpush1.bf16.msra.mxu1 %v8544_v36  ;;  %5039 = vmatpush3.bf16.msra.mxu0 %v8547_v12 }
 0xc04   :  { %3097 = vmatprep.subr.bf16.mxu1 %v8550_v44  ;;  %5040 = vmatprep.subr.bf16.mxu0 %v10530_v61 }
 0xc07   :  { %3098 = vmatpush1.bf16.msra.mxu1 %v8554_v18  ;;  %5041 = vmatpush3.bf16.msra.mxu0 %v8557_v4 }
 0xc08   :  { %3099 = vmatprep.subr.bf16.mxu1 %v8560_v34  ;;  %5042 = vmatprep.subr.bf16.mxu0 %v10530_v61 }
 0xc0b   :  { %3100 = vmatpush1.bf16.msra.mxu1 %v8564_v45  ;;  %5043 = vmatpush3.bf16.msra.mxu0 %v8567_v48 }
 0xc0c   :  { %3101 = vmatprep.subr.bf16.mxu1 %v8570_v28  ;;  %5044 = vmatprep.subr.bf16.mxu0 %v10530_v61 }
 0xc0f   :  { %3102 = vmatpush1.bf16.msra.mxu1 %v8574_v20  ;;  %5045 = vmatpush3.bf16.msra.mxu0 %v8577_v37 }
 0xc10   :  { %3190 = vmatprep.subr.bf16.mxu1 %v8580_v49  ;;  %3231 = vmatprep.subr.bf16.mxu0 %v8583_v51 }
 0xc12   :  { %3120 = vmatmul.mubr.bf16.vlgmr.msra.gmra.mrb[64].mxu1 %v8440_v39  ;;  %5047 = vmatmul.mubr.bf16.vlgmr.msra.gmra.mrb[60].mxu0 %v8440_v39  ;;  %v8603_v39 = vld [vmem:[#allocation13 + $0x28] ss:$16 sps:$4 sm:$0xff]  }
 0xc13   :  { %3222 = vmatprep.mubr.bf16.mxu1 %v2984_v33  ;;  %3263 = vmatprep.mubr.bf16.mxu0 %v2984_v33  ;;  %v8678_v33 = vld [vmem:[#allocation13 + $0x104] ss:$16 sps:$4 sm:$0xff]  }
 0xc14   :  { %3191 = vmatpush1.bf16.msra.mxu1 %v8588_v53  ;;  %3232 = vmatpush1.bf16.msra.mxu0 %v8591_v54  ;;  %10894 = vst [vmem:[#allocation66_spill] sm:$0xff] %v8678_v33 }
 0xc15   :  { %3192 = vmatprep.subr.bf16.mxu1 %v8594_v56  ;;  %3233 = vmatprep.subr.bf16.mxu0 %v8597_v57 }
 0xc18   :  { %3193 = vmatpush1.bf16.msra.mxu1 %v8600_v19  ;;  %3234 = vmatpush1.bf16.msra.mxu0 %v8603_v39 }
 0xc19   :  { %3194 = vmatprep.subr.bf16.mxu1 %v8606_v60  ;;  %3235 = vmatprep.subr.bf16.mxu0 %v8609_v62 }
 0xc1c   :  { %3195 = vmatpush1.bf16.msra.mxu1 %v8612_v3  ;;  %3236 = vmatpush1.bf16.msra.mxu0 %v8615_v63 }
 0xc1d   :  { %3196 = vmatprep.subr.bf16.mxu1 %v8618_v15  ;;  %3237 = vmatprep.subr.bf16.mxu0 %v8621_v26 }
 0xc20   :  { %3197 = vmatpush1.bf16.msra.mxu1 %v8624_v2  ;;  %3238 = vmatpush1.bf16.msra.mxu0 %v8627_v40 }
 0xc21   :  { %3198 = vmatprep.subr.bf16.mxu1 %v8630_v52  ;;  %3239 = vmatprep.subr.bf16.mxu0 %v8633_v32 }
 0xc24   :  { %3199 = vmatpush1.bf16.msra.mxu1 %v8636_v13  ;;  %3240 = vmatpush1.bf16.msra.mxu0 %v8639_v25 }
 0xc25   :  { %3200 = vmatprep.subr.bf16.mxu1 %v8642_v46  ;;  %3241 = vmatprep.subr.bf16.mxu0 %v8645_v17 }
 0xc28   :  { %3201 = vmatpush1.bf16.msra.mxu1 %v8648_v31  ;;  %3242 = vmatpush1.bf16.msra.mxu0 %v8651_v11 }
 0xc29   :  { %3202 = vmatprep.subr.bf16.mxu1 %v8654_v35  ;;  %3243 = vmatprep.subr.bf16.mxu0 %v8657_v24 }
 0xc2c   :  { %3203 = vmatpush1.bf16.msra.mxu1 %v8660_v8  ;;  %3244 = vmatpush1.bf16.msra.mxu0 %v8663_v41 }
 0xc2d   :  { %3204 = vmatprep.subr.bf16.mxu1 %v8666_v5  ;;  %3245 = vmatprep.subr.bf16.mxu0 %v8669_v0  ;;  %v8684_v5 = vld [vmem:[#allocation13 + $0x100] ss:$16 sps:$4 sm:$0xff]   ;;  %v8687_v0 = vld [vmem:[#allocation13 + $0x108] ss:$16 sps:$4 sm:$0xff]  }
 0xc2e   :  { %10896 = vst [vmem:[#allocation68_spill] sm:$0xff] %v8684_v5  ;;  %10897 = vst [vmem:[#allocation69_spill] sm:$0xff] %v8687_v0 }
 0xc30   :  { %3205 = vmatpush1.bf16.msra.mxu1 %v8672_v7  ;;  %3246 = vmatpush1.bf16.msra.mxu0 %v8675_v21  ;;  %v8690_v7 = vld [vmem:[#allocation13 + $0x124] ss:$16 sps:$4 sm:$0xff]   ;;  %v8693_v21 = vld [vmem:[#allocation13 + $0x12c] ss:$16 sps:$4 sm:$0xff]  }
 0xc31   :  { %3206 = vmatprep.subr.bf16.mxu1 %v8678_v33  ;;  %3247 = vmatprep.subr.bf16.mxu0 %v8681_v16  ;;  %10898 = vst [vmem:[#allocation70_spill] sm:$0xff] %v8690_v7  ;;  %10899 = vst [vmem:[#allocation71_spill] sm:$0xff] %v8693_v21  ;;  %v8696_v33 = vld [vmem:[#allocation13 + $0x120] ss:$16 sps:$4 sm:$0xff]   ;;  %v8699_v16 = vld [vmem:[#allocation13 + $0x128] ss:$16 sps:$4 sm:$0xff]  }
 0xc32   :  { %10900 = vst [vmem:[#allocation72_spill] sm:$0xff] %v8696_v33  ;;  %10901 = vst [vmem:[#allocation73_spill] sm:$0xff] %v8699_v16 }
 0xc34   :  { %3207 = vmatpush1.bf16.msra.mxu1 %v8684_v5  ;;  %3248 = vmatpush1.bf16.msra.mxu0 %v8687_v0  ;;  %v8702_v5 = vld [vmem:[#allocation13 + $0x144] ss:$16 sps:$4 sm:$0xff]   ;;  %v8705_v0 = vld [vmem:[#allocation13 + $0x14c] ss:$16 sps:$4 sm:$0xff]  }
 0xc35   :  { %3208 = vmatprep.subr.bf16.mxu1 %v8690_v7  ;;  %3249 = vmatprep.subr.bf16.mxu0 %v8693_v21  ;;  %10902 = vst [vmem:[#allocation74_spill] sm:$0xff] %v8702_v5  ;;  %10903 = vst [vmem:[#allocation75_spill] sm:$0xff] %v8705_v0  ;;  %v8708_v7 = vld [vmem:[#allocation13 + $0x140] ss:$16 sps:$4 sm:$0xff]   ;;  %v8711_v21 = vld [vmem:[#allocation13 + $0x148] ss:$16 sps:$4 sm:$0xff]  }
 0xc36   :  { %10904 = vst [vmem:[#allocation76_spill] sm:$0xff] %v8708_v7  ;;  %10905 = vst [vmem:[#allocation77_spill] sm:$0xff] %v8711_v21 }
 0xc38   :  { %3209 = vmatpush1.bf16.msra.mxu1 %v8696_v33  ;;  %3250 = vmatpush1.bf16.msra.mxu0 %v8699_v16  ;;  %v8714_v33 = vld [vmem:[#allocation13 + $0x164] ss:$16 sps:$4 sm:$0xff]   ;;  %v8717_v16 = vld [vmem:[#allocation13 + $0x16c] ss:$16 sps:$4 sm:$0xff]  }
 0xc39   :  { %3210 = vmatprep.subr.bf16.mxu1 %v8702_v5  ;;  %3251 = vmatprep.subr.bf16.mxu0 %v8705_v0  ;;  %10906 = vst [vmem:[#allocation78_spill] sm:$0xff] %v8714_v33  ;;  %10907 = vst [vmem:[#allocation79_spill] sm:$0xff] %v8717_v16  ;;  %v8720_v5 = vld [vmem:[#allocation13 + $0x160] ss:$16 sps:$4 sm:$0xff]   ;;  %v8723_v0 = vld [vmem:[#allocation13 + $0x168] ss:$16 sps:$4 sm:$0xff]  }
 0xc3a   :  { %10908 = vst [vmem:[#allocation80_spill] sm:$0xff] %v8720_v5  ;;  %10909 = vst [vmem:[#allocation81_spill] sm:$0xff] %v8723_v0 }
 0xc3c   :  { %3211 = vmatpush1.bf16.msra.mxu1 %v8708_v7  ;;  %3252 = vmatpush1.bf16.msra.mxu0 %v8711_v21  ;;  %v8726_v7 = vld [vmem:[#allocation13 + $0x184] ss:$16 sps:$4 sm:$0xff]   ;;  %v8729_v21 = vld [vmem:[#allocation13 + $0x18c] ss:$16 sps:$4 sm:$0xff]  }
 0xc3d   :  { %3212 = vmatprep.subr.bf16.mxu1 %v8714_v33  ;;  %3253 = vmatprep.subr.bf16.mxu0 %v8717_v16  ;;  %10910 = vst [vmem:[#allocation82_spill] sm:$0xff] %v8726_v7  ;;  %10911 = vst [vmem:[#allocation83_spill] sm:$0xff] %v8729_v21  ;;  %v8732_v33 = vld [vmem:[#allocation13 + $0x180] ss:$16 sps:$4 sm:$0xff]   ;;  %v8735_v16 = vld [vmem:[#allocation13 + $0x188] ss:$16 sps:$4 sm:$0xff]  }
 0xc3e   :  { %10912 = vst [vmem:[#allocation84_spill] sm:$0xff] %v8732_v33  ;;  %10913 = vst [vmem:[#allocation85_spill] sm:$0xff] %v8735_v16 }
 0xc40   :  { %3213 = vmatpush1.bf16.msra.mxu1 %v8720_v5  ;;  %3254 = vmatpush1.bf16.msra.mxu0 %v8723_v0  ;;  %v8738_v5 = vld [vmem:[#allocation13 + $0x1a4] ss:$16 sps:$4 sm:$0xff]   ;;  %v8741_v0 = vld [vmem:[#allocation13 + $0x1ac] ss:$16 sps:$4 sm:$0xff]  }
 0xc41   :  { %3214 = vmatprep.subr.bf16.mxu1 %v8726_v7  ;;  %3255 = vmatprep.subr.bf16.mxu0 %v8729_v21  ;;  %10914 = vst [vmem:[#allocation86_spill] sm:$0xff] %v8738_v5  ;;  %10915 = vst [vmem:[#allocation87_spill] sm:$0xff] %v8741_v0  ;;  %v8744_v7 = vld [vmem:[#allocation13 + $0x1a0] ss:$16 sps:$4 sm:$0xff]   ;;  %v8747_v21 = vld [vmem:[#allocation13 + $0x1a8] ss:$16 sps:$4 sm:$0xff]  }
 0xc42   :  { %10916 = vst [vmem:[#allocation88_spill] sm:$0xff] %v8744_v7  ;;  %10917 = vst [vmem:[#allocation89_spill] sm:$0xff] %v8747_v21 }
 0xc44   :  { %3215 = vmatpush1.bf16.msra.mxu1 %v8732_v33  ;;  %3256 = vmatpush1.bf16.msra.mxu0 %v8735_v16  ;;  %v8750_v33 = vld [vmem:[#allocation13 + $0x1c4] ss:$16 sps:$4 sm:$0xff]   ;;  %v8753_v16 = vld [vmem:[#allocation13 + $0x1cc] ss:$16 sps:$4 sm:$0xff]  }
 0xc45   :  { %3216 = vmatprep.subr.bf16.mxu1 %v8738_v5  ;;  %3257 = vmatprep.subr.bf16.mxu0 %v8741_v0  ;;  %10918 = vst [vmem:[#allocation90_spill] sm:$0xff] %v8750_v33  ;;  %10919 = vst [vmem:[#allocation91_spill] sm:$0xff] %v8753_v16  ;;  %v8756_v5 = vld [vmem:[#allocation13 + $0x1c0] ss:$16 sps:$4 sm:$0xff]   ;;  %v8759_v0 = vld [vmem:[#allocation13 + $0x1c8] ss:$16 sps:$4 sm:$0xff]  }
 0xc46   :  { %10920 = vst [vmem:[#allocation92_spill] sm:$0xff] %v8756_v5  ;;  %10921 = vst [vmem:[#allocation93_spill] sm:$0xff] %v8759_v0 }
 0xc48   :  { %3217 = vmatpush1.bf16.msra.mxu1 %v8744_v7  ;;  %3258 = vmatpush1.bf16.msra.mxu0 %v8747_v21  ;;  %v8762_v7 = vld [vmem:[#allocation13 + $0x1e4] ss:$16 sps:$4 sm:$0xff]   ;;  %v8765_v21 = vld [vmem:[#allocation13 + $0x1ec] ss:$16 sps:$4 sm:$0xff]  }
 0xc49   :  { %3218 = vmatprep.subr.bf16.mxu1 %v8750_v33  ;;  %3259 = vmatprep.subr.bf16.mxu0 %v8753_v16  ;;  %10922 = vst [vmem:[#allocation94_spill] sm:$0xff] %v8762_v7  ;;  %10923 = vst [vmem:[#allocation27_spill] sm:$0xff] %v8765_v21  ;;  %v8768_v33 = vld [vmem:[#allocation13 + $0x1e0] ss:$16 sps:$4 sm:$0xff]   ;;  %v8771_v16 = vld [vmem:[#allocation13 + $0x1e8] ss:$16 sps:$4 sm:$0xff]  }
 0xc4a   :  { %10924 = vst [vmem:[#allocation29_spill] sm:$0xff] %v8768_v33  ;;  %10925 = vst [vmem:[#allocation31_spill] sm:$0xff] %v8771_v16 }
 0xc4c   :  { %3219 = vmatpush1.bf16.msra.mxu1 %v8756_v5  ;;  %3260 = vmatpush1.bf16.msra.mxu0 %v8759_v0  ;;  %v8774_v5 = vld [vmem:[#allocation16 + $0x4] ss:$16 sps:$4 sm:$0xff]   ;;  %v8777_v0 = vld [vmem:[#allocation16 + $0xc] ss:$16 sps:$4 sm:$0xff]  }
 0xc4d   :  { %3220 = vmatprep.subr.bf16.mxu1 %v8762_v7  ;;  %3261 = vmatprep.subr.bf16.mxu0 %v8765_v21  ;;  %10926 = vst [vmem:[#allocation95_spill] sm:$0xff] %v8774_v5  ;;  %10927 = vst [vmem:[#allocation96_spill] sm:$0xff] %v8777_v0 }
 0xc50   :  { %3221 = vmatpush1.bf16.msra.mxu1 %v8768_v33  ;;  %3262 = vmatpush1.bf16.msra.mxu0 %v8771_v16 }
 0xc51   :  { %3293 = vmatprep.subr.bf16.mxu1 %v8774_v5  ;;  %3334 = vmatprep.subr.bf16.mxu0 %v8777_v0 }
 0xcc5   :  { %v3020_v7 = vpop.f32.mrb[60].mxu1  ;;  %v3061_v41 = vpop.f32.mrb[56].mxu0 }
 0xcc6   :  { %v3021_v21 = vadd.f32 %v3020_v7, %v10812_v50  ;;  %v3022_v8 = vpop.f32.mrb[61].mxu1  ;;  %v3063_v24 = vpop.f32.mrb[57].mxu0  ;;  %v3062_v50 = vadd.f32 %v3061_v41, %v7722_v22 }
 0xcc7   :  { %v3024_v35 = vpop.f32.mrb[62].mxu1  ;;  %v3065_v33 = vpop.f32.mrb[58].mxu0  ;;  %v3023_v16 = vadd.f32 %v3022_v8, %v10813_v58  ;;  %v3064_v32 = vadd.f32 %v3063_v24, %v10814_v6  ;;  %v10929_v58 = vld [vmem:[#allocation37_spill] sm:$0xff] }
 0xcc8   :  { %v4735_v11 = vmul.f32 -1.442695, %v3021_v21  ;;  %v3025_v31 = vpop.f32.mrb[63].mxu1  ;;  %v3066_v17 = vpop.f32.mrb[59].mxu0 }
 0xcc9   :  { %v4736_v46 = vmul.f32 -1.442695, %v3023_v16 }
 0xcca   :  { %5581 = vpow2.f32 %v4735_v11 }
 0xccb   :  { %5583 = vpow2.f32 %v4736_v46 }
 0xcd4   :  { %v5582_v5 = vpop.eup %5581 }
 0xcd5   :  { %v3071_v25 = vadd.f32 1.0, %v5582_v5  ;;  %v5584_v0 = vpop.eup %5583 }
 0xcd6   :  { %v3077_v13 = vadd.f32 1.0, %v5584_v0  ;;  %v10928_v0 = vld [vmem:[#allocation36_spill] sm:$0xff] }
 0xcd7   :  { %5585 = vrcp.f32 %v3071_v25 }
 0xcd8   :  { %5587 = vrcp.f32 %v3077_v13 }
 0xce1   :  { %v5586_v7 = vpop.eup %5585 }
 0xce2   :  { %v3080_v35 = vmul.f32 %v5586_v7, %v3064_v32  ;;  %v5588_v32 = vpop.eup %5587 }
 0xce3   :  { %v3083_v7 = vsub.f32 1.0, %v5588_v32 }
 0xce4   :  { %v3081_v21 = vadd.f32 %v3080_v35, %v3062_v50 }
 0xce5   :  { %v3121_v31 = vpop.f32.mrb[64].mxu1  ;;  %v3162_v17 = vpop.f32.mrb[60].mxu0 }
 0xce6   :  { %5589 = vtanh.f32 %v3081_v21  ;;  %v3122_v11 = vadd.f32 %v3121_v31, %v7344_v27  ;;  %v3123_v16 = vpop.f32.mrb[65].mxu1  ;;  %v5048_v46 = vpop.f32.mrb[61].mxu0  ;;  %v3085_v31 = vmul.f32 %v5588_v32, %v8431_v38  ;;  %v8858_v38 = vld [vmem:[#allocation16 + $0xa4] ss:$16 sps:$4 sm:$0xff]  }
 0xce7   :  { %v3124_v8 = vadd.f32 %v3123_v16, %v7347_v29  ;;  %v3125_v25 = vpop.f32.mrb[66].mxu1  ;;  %v3165_v5 = vpop.f32.mrb[62].mxu0  ;;  %10947 = vst [vmem:[#allocation111_spill] sm:$0xff] %v8858_v38 }
 0xce8   :  { %v3168_v33 = vadd.f32 %v3122_v11, %v10928_v0  ;;  %v3126_v24 = vpop.f32.mrb[67].mxu1  ;;  %v5049_v6 = vpop.f32.mrb[63].mxu0  ;;  %v10931_v0 = vld [vmem:[#allocation41_spill] sm:$0xff] }
 0xce9   :  { %v3175_v41 = vadd.f32 %v3124_v8, %v10929_v58  ;;  %v3163_v6 = vadd.f32 %v3162_v17, %v7356_v14 }
 0xcea   :  { %v4737_v13 = vmul.f32 -1.442695, %v3168_v33 }
 0xceb   :  { %v4738_v50 = vmul.f32 -1.442695, %v3175_v41 }
 0xcec   :  { %5591 = vpow2.f32 %v4737_v13 }
 0xced   :  { %5593 = vpow2.f32 %v4738_v50 }
 0xcf0   :  { %v5590_v35 = vpop.eup %5589 }
 0xcf1   :  { %v3084_v21 = vmul.f32 %v5590_v35, %v3083_v7 }
 0xcf3   :  { %v8789_v46 = vadd.f32 %v3085_v31, %v3084_v21  ;;  %v8804_v21 = vld [vmem:[#allocation16] ss:$16 sps:$4 sm:$0xff]   ;;  %v8810_v31 = vld [vmem:[#allocation16 + $0x24] ss:$16 sps:$4 sm:$0xff]  }
 0xcf5   :  { %10930 = vst [vmem:[#allocation97_spill] sm:$0xff] %v8789_v46  ;;  %v3292_v17 = vpack.c.bf16 %v8789_v46, %v8789_v46 }
 0xcf6   :  { %v5592_v16 = vpop.eup %5591 }
 0xcf7   :  { %v3172_v25 = vadd.f32 1.0, %v5592_v16  ;;  %v5594_v11 = vpop.eup %5593  ;;  %v8813_v16 = vld [vmem:[#allocation16 + $0x2c] ss:$16 sps:$4 sm:$0xff]  }
 0xcf8   :  { %v3179_v5 = vadd.f32 1.0, %v5594_v11  ;;  %10932 = vst [vmem:[#allocation34_spill] sm:$0xff] %v8813_v16  ;;  %v8819_v11 = vld [vmem:[#allocation16 + $0x28] ss:$16 sps:$4 sm:$0xff]  }
 0xcf9   :  { %5595 = vrcp.f32 %v3172_v25  ;;  %v8816_v25 = vld [vmem:[#allocation16 + $0x20] ss:$16 sps:$4 sm:$0xff]   ;;  %10934 = vst [vmem:[#allocation30_spill] sm:$0xff] %v8819_v11 }
 0xcfa   :  { %5597 = vrcp.f32 %v3179_v5  ;;  %10933 = vst [vmem:[#allocation35_spill] sm:$0xff] %v8816_v25  ;;  %v8822_v5 = vld [vmem:[#allocation16 + $0x44] ss:$16 sps:$4 sm:$0xff]  }
 0xcfb   :  { %10935 = vst [vmem:[#allocation99_spill] sm:$0xff] %v8822_v5 }
 0xd03   :  { %v5596_v58 = vpop.eup %5595 }
 0xd04   :  { %v3182_v8 = vmul.f32 %v5596_v58, %v3163_v6  ;;  %v5598_v24 = vpop.eup %5597  ;;  %v8825_v6 = vld [vmem:[#allocation16 + $0x4c] ss:$16 sps:$4 sm:$0xff]   ;;  %v8828_v58 = vld [vmem:[#allocation16 + $0x40] ss:$16 sps:$4 sm:$0xff]  }
 0xd05   :  { %v3185_v41 = vsub.f32 1.0, %v5598_v24  ;;  %v3187_v50 = vmul.f32 %v5598_v24, %v8436_v55  ;;  %v8807_v55 = vld [vmem:[#allocation16 + $0x8] ss:$16 sps:$4 sm:$0xff]   ;;  %10936 = vst [vmem:[#allocation100_spill] sm:$0xff] %v8825_v6  ;;  %10937 = vst [vmem:[#allocation101_spill] sm:$0xff] %v8828_v58 }
 0xd06   :  { %v3183_v33 = vadd.f32 %v3182_v8, %v10931_v0  ;;  %v8831_v8 = vld [vmem:[#allocation16 + $0x48] ss:$16 sps:$4 sm:$0xff]   ;;  %v8834_v0 = vld [vmem:[#allocation16 + $0x64] ss:$16 sps:$4 sm:$0xff]   ;;  %v8840_v24 = vld [vmem:[#allocation16 + $0x60] ss:$16 sps:$4 sm:$0xff]  }
 0xd07   :  { %10938 = vst [vmem:[#allocation102_spill] sm:$0xff] %v8831_v8  ;;  %10939 = vst [vmem:[#allocation103_spill] sm:$0xff] %v8834_v0 }
 0xd08   :  { %5599 = vtanh.f32 %v3183_v33  ;;  %v8837_v33 = vld [vmem:[#allocation16 + $0x6c] ss:$16 sps:$4 sm:$0xff]   ;;  %10941 = vst [vmem:[#allocation105_spill] sm:$0xff] %v8840_v24 }
 0xd09   :  { %10940 = vst [vmem:[#allocation104_spill] sm:$0xff] %v8837_v33 }
 0xd12   :  { %v5600_v13 = vpop.eup %5599 }
 0xd13   :  { %v3186_v32 = vmul.f32 %v5600_v13, %v3185_v41  ;;  %v8843_v41 = vld [vmem:[#allocation16 + $0x68] ss:$16 sps:$4 sm:$0xff]   ;;  %v8846_v13 = vld [vmem:[#allocation16 + $0x84] ss:$16 sps:$4 sm:$0xff]  }
 0xd14   :  { %10942 = vst [vmem:[#allocation106_spill] sm:$0xff] %v8843_v41  ;;  %10943 = vst [vmem:[#allocation107_spill] sm:$0xff] %v8846_v13 }
 0xd15   :  { %v8794_v7 = vadd.f32 %v3187_v50, %v3186_v32  ;;  %v8849_v32 = vld [vmem:[#allocation16 + $0x8c] ss:$16 sps:$4 sm:$0xff]   ;;  %v8852_v50 = vld [vmem:[#allocation16 + $0x80] ss:$16 sps:$4 sm:$0xff]  }
 0xd16   :  { %10944 = vst [vmem:[#allocation108_spill] sm:$0xff] %v8849_v32  ;;  %10945 = vst [vmem:[#allocation109_spill] sm:$0xff] %v8852_v50 }
 0xd17   :  { %v8798_v35 = vpack.c.bf16 %v8794_v7, %v8794_v7 }
 0xd19   :  { %3223 = vmatmul.mubr.bf16.vlgmr.msra.gmra.mrb[68].mxu1 %v8798_v35  ;;  %3264 = vmatmul.mubr.bf16.vlgmr.msra.gmra.mrb[64].mxu0 %v8798_v35 }
 0xd1a   :  { %3325 = vmatprep.mubr.bf16.mxu1 %v3292_v17  ;;  %3366 = vmatprep.mubr.bf16.mxu0 %v3292_v17  ;;  %v8855_v17 = vld [vmem:[#allocation16 + $0x88] ss:$16 sps:$4 sm:$0xff]  }
 0xd1b   :  { %3294 = vmatpush1.bf16.msra.mxu1 %v8804_v21  ;;  %3335 = vmatpush1.bf16.msra.mxu0 %v8807_v55  ;;  %10946 = vst [vmem:[#allocation110_spill] sm:$0xff] %v8855_v17 }
 0xd1c   :  { %3295 = vmatprep.subr.bf16.mxu1 %v8810_v31  ;;  %3336 = vmatprep.subr.bf16.mxu0 %v8813_v16 }
 0xd1f   :  { %3296 = vmatpush1.bf16.msra.mxu1 %v8816_v25  ;;  %3337 = vmatpush1.bf16.msra.mxu0 %v8819_v11 }
 0xd20   :  { %3297 = vmatprep.subr.bf16.mxu1 %v8822_v5  ;;  %3338 = vmatprep.subr.bf16.mxu0 %v8825_v6 }
 0xd23   :  { %3298 = vmatpush1.bf16.msra.mxu1 %v8828_v58  ;;  %3339 = vmatpush1.bf16.msra.mxu0 %v8831_v8 }
 0xd24   :  { %3299 = vmatprep.subr.bf16.mxu1 %v8834_v0  ;;  %3340 = vmatprep.subr.bf16.mxu0 %v8837_v33 }
 0xd27   :  { %3300 = vmatpush1.bf16.msra.mxu1 %v8840_v24  ;;  %3341 = vmatpush1.bf16.msra.mxu0 %v8843_v41  ;;  %v8861_v41 = vld [vmem:[#allocation16 + $0xac] ss:$16 sps:$4 sm:$0xff]  }
 0xd28   :  { %3301 = vmatprep.subr.bf16.mxu1 %v8846_v13  ;;  %3342 = vmatprep.subr.bf16.mxu0 %v8849_v32  ;;  %10948 = vst [vmem:[#allocation112_spill] sm:$0xff] %v8861_v41  ;;  %v8864_v13 = vld [vmem:[#allocation16 + $0xa0] ss:$16 sps:$4 sm:$0xff]   ;;  %v8867_v32 = vld [vmem:[#allocation16 + $0xa8] ss:$16 sps:$4 sm:$0xff]  }
 0xd29   :  { %10949 = vst [vmem:[#allocation113_spill] sm:$0xff] %v8864_v13  ;;  %10950 = vst [vmem:[#allocation114_spill] sm:$0xff] %v8867_v32 }
 0xd2b   :  { %3302 = vmatpush1.bf16.msra.mxu1 %v8852_v50  ;;  %3343 = vmatpush1.bf16.msra.mxu0 %v8855_v17  ;;  %v8870_v50 = vld [vmem:[#allocation16 + $0xc4] ss:$16 sps:$4 sm:$0xff]   ;;  %v8873_v17 = vld [vmem:[#allocation16 + $0xcc] ss:$16 sps:$4 sm:$0xff]  }
 0xd2c   :  { %3303 = vmatprep.subr.bf16.mxu1 %v8858_v38  ;;  %3344 = vmatprep.subr.bf16.mxu0 %v8861_v41  ;;  %10951 = vst [vmem:[#allocation115_spill] sm:$0xff] %v8870_v50  ;;  %10952 = vst [vmem:[#allocation116_spill] sm:$0xff] %v8873_v17  ;;  %v8876_v38 = vld [vmem:[#allocation16 + $0xc0] ss:$16 sps:$4 sm:$0xff]   ;;  %v8879_v41 = vld [vmem:[#allocation16 + $0xc8] ss:$16 sps:$4 sm:$0xff]  }
 0xd2d   :  { %10953 = vst [vmem:[#allocation117_spill] sm:$0xff] %v8876_v38  ;;  %10954 = vst [vmem:[#allocation118_spill] sm:$0xff] %v8879_v41 }
 0xd2f   :  { %3304 = vmatpush1.bf16.msra.mxu1 %v8864_v13  ;;  %3345 = vmatpush1.bf16.msra.mxu0 %v8867_v32  ;;  %v8882_v13 = vld [vmem:[#allocation16 + $0xe4] ss:$16 sps:$4 sm:$0xff]   ;;  %v8885_v32 = vld [vmem:[#allocation16 + $0xec] ss:$16 sps:$4 sm:$0xff]  }
 0xd30   :  { %3305 = vmatprep.subr.bf16.mxu1 %v8870_v50  ;;  %3346 = vmatprep.subr.bf16.mxu0 %v8873_v17  ;;  %10955 = vst [vmem:[#allocation119_spill] sm:$0xff] %v8882_v13  ;;  %10956 = vst [vmem:[#allocation120_spill] sm:$0xff] %v8885_v32  ;;  %v8888_v50 = vld [vmem:[#allocation16 + $0xe0] ss:$16 sps:$4 sm:$0xff]   ;;  %v8891_v17 = vld [vmem:[#allocation16 + $0xe8] ss:$16 sps:$4 sm:$0xff]  }
 0xd31   :  { %10957 = vst [vmem:[#allocation121_spill] sm:$0xff] %v8888_v50  ;;  %10958 = vst [vmem:[#allocation122_spill] sm:$0xff] %v8891_v17 }
 0xd33   :  { %3306 = vmatpush1.bf16.msra.mxu1 %v8876_v38  ;;  %3347 = vmatpush1.bf16.msra.mxu0 %v8879_v41  ;;  %v8894_v38 = vld [vmem:[#allocation16 + $0x104] ss:$16 sps:$4 sm:$0xff]   ;;  %v8897_v41 = vld [vmem:[#allocation16 + $0x10c] ss:$16 sps:$4 sm:$0xff]  }
 0xd34   :  { %3307 = vmatprep.subr.bf16.mxu1 %v8882_v13  ;;  %3348 = vmatprep.subr.bf16.mxu0 %v8885_v32  ;;  %10959 = vst [vmem:[#allocation123_spill] sm:$0xff] %v8894_v38  ;;  %10960 = vst [vmem:[#allocation124_spill] sm:$0xff] %v8897_v41  ;;  %v8900_v13 = vld [vmem:[#allocation16 + $0x100] ss:$16 sps:$4 sm:$0xff]   ;;  %v8903_v32 = vld [vmem:[#allocation16 + $0x108] ss:$16 sps:$4 sm:$0xff]  }
 0xd35   :  { %10961 = vst [vmem:[#allocation125_spill] sm:$0xff] %v8900_v13  ;;  %10962 = vst [vmem:[#allocation126_spill] sm:$0xff] %v8903_v32 }
 0xd37   :  { %3308 = vmatpush1.bf16.msra.mxu1 %v8888_v50  ;;  %3349 = vmatpush1.bf16.msra.mxu0 %v8891_v17  ;;  %v8906_v50 = vld [vmem:[#allocation16 + $0x124] ss:$16 sps:$4 sm:$0xff]   ;;  %v8909_v17 = vld [vmem:[#allocation16 + $0x12c] ss:$16 sps:$4 sm:$0xff]  }
 0xd38   :  { %3309 = vmatprep.subr.bf16.mxu1 %v8894_v38  ;;  %3350 = vmatprep.subr.bf16.mxu0 %v8897_v41  ;;  %10963 = vst [vmem:[#allocation127_spill] sm:$0xff] %v8906_v50  ;;  %10964 = vst [vmem:[#allocation128_spill] sm:$0xff] %v8909_v17  ;;  %v8912_v38 = vld [vmem:[#allocation16 + $0x120] ss:$16 sps:$4 sm:$0xff]   ;;  %v8915_v41 = vld [vmem:[#allocation16 + $0x128] ss:$16 sps:$4 sm:$0xff]  }
 0xd39   :  { %10965 = vst [vmem:[#allocation129_spill] sm:$0xff] %v8912_v38  ;;  %10966 = vst [vmem:[#allocation130_spill] sm:$0xff] %v8915_v41 }
 0xd3b   :  { %3310 = vmatpush1.bf16.msra.mxu1 %v8900_v13  ;;  %3351 = vmatpush1.bf16.msra.mxu0 %v8903_v32  ;;  %v8918_v13 = vld [vmem:[#allocation16 + $0x144] ss:$16 sps:$4 sm:$0xff]   ;;  %v8921_v32 = vld [vmem:[#allocation16 + $0x14c] ss:$16 sps:$4 sm:$0xff]  }
 0xd3c   :  { %3311 = vmatprep.subr.bf16.mxu1 %v8906_v50  ;;  %3352 = vmatprep.subr.bf16.mxu0 %v8909_v17  ;;  %10967 = vst [vmem:[#allocation131_spill] sm:$0xff] %v8918_v13  ;;  %10968 = vst [vmem:[#allocation132_spill] sm:$0xff] %v8921_v32  ;;  %v8924_v50 = vld [vmem:[#allocation16 + $0x140] ss:$16 sps:$4 sm:$0xff]   ;;  %v8927_v17 = vld [vmem:[#allocation16 + $0x148] ss:$16 sps:$4 sm:$0xff]  }
 0xd3d   :  { %10969 = vst [vmem:[#allocation133_spill] sm:$0xff] %v8924_v50  ;;  %10970 = vst [vmem:[#allocation134_spill] sm:$0xff] %v8927_v17 }
 0xd3f   :  { %3312 = vmatpush1.bf16.msra.mxu1 %v8912_v38  ;;  %3353 = vmatpush1.bf16.msra.mxu0 %v8915_v41  ;;  %v8930_v38 = vld [vmem:[#allocation16 + $0x164] ss:$16 sps:$4 sm:$0xff]   ;;  %v8933_v41 = vld [vmem:[#allocation16 + $0x16c] ss:$16 sps:$4 sm:$0xff]  }
 0xd40   :  { %3313 = vmatprep.subr.bf16.mxu1 %v8918_v13  ;;  %3354 = vmatprep.subr.bf16.mxu0 %v8921_v32  ;;  %10971 = vst [vmem:[#allocation135_spill] sm:$0xff] %v8930_v38  ;;  %10972 = vst [vmem:[#allocation136_spill] sm:$0xff] %v8933_v41  ;;  %v8936_v13 = vld [vmem:[#allocation16 + $0x160] ss:$16 sps:$4 sm:$0xff]   ;;  %v8939_v32 = vld [vmem:[#allocation16 + $0x168] ss:$16 sps:$4 sm:$0xff]  }
 0xd41   :  { %10973 = vst [vmem:[#allocation137_spill] sm:$0xff] %v8936_v13  ;;  %10974 = vst [vmem:[#allocation138_spill] sm:$0xff] %v8939_v32 }
 0xd43   :  { %3314 = vmatpush1.bf16.msra.mxu1 %v8924_v50  ;;  %3355 = vmatpush1.bf16.msra.mxu0 %v8927_v17  ;;  %v8942_v50 = vld [vmem:[#allocation16 + $0x184] ss:$16 sps:$4 sm:$0xff]   ;;  %v8945_v17 = vld [vmem:[#allocation16 + $0x18c] ss:$16 sps:$4 sm:$0xff]  }
 0xd44   :  { %3315 = vmatprep.subr.bf16.mxu1 %v8930_v38  ;;  %3356 = vmatprep.subr.bf16.mxu0 %v8933_v41  ;;  %10975 = vst [vmem:[#allocation139_spill] sm:$0xff] %v8942_v50  ;;  %10976 = vst [vmem:[#allocation140_spill] sm:$0xff] %v8945_v17  ;;  %v8948_v38 = vld [vmem:[#allocation16 + $0x180] ss:$16 sps:$4 sm:$0xff]   ;;  %v8951_v41 = vld [vmem:[#allocation16 + $0x188] ss:$16 sps:$4 sm:$0xff]  }
 0xd45   :  { %10977 = vst [vmem:[#allocation141_spill] sm:$0xff] %v8948_v38  ;;  %10978 = vst [vmem:[#allocation142_spill] sm:$0xff] %v8951_v41 }
 0xd47   :  { %3316 = vmatpush1.bf16.msra.mxu1 %v8936_v13  ;;  %3357 = vmatpush1.bf16.msra.mxu0 %v8939_v32  ;;  %v8954_v13 = vld [vmem:[#allocation16 + $0x1a4] ss:$16 sps:$4 sm:$0xff]   ;;  %v8957_v32 = vld [vmem:[#allocation16 + $0x1ac] ss:$16 sps:$4 sm:$0xff]  }
 0xd48   :  { %3317 = vmatprep.subr.bf16.mxu1 %v8942_v50  ;;  %3358 = vmatprep.subr.bf16.mxu0 %v8945_v17  ;;  %10979 = vst [vmem:[#allocation143_spill] sm:$0xff] %v8954_v13  ;;  %10980 = vst [vmem:[#allocation144_spill] sm:$0xff] %v8957_v32  ;;  %v8960_v50 = vld [vmem:[#allocation16 + $0x1a0] ss:$16 sps:$4 sm:$0xff]   ;;  %v8963_v17 = vld [vmem:[#allocation16 + $0x1a8] ss:$16 sps:$4 sm:$0xff]  }
 0xd49   :  { %10981 = vst [vmem:[#allocation145_spill] sm:$0xff] %v8960_v50  ;;  %10982 = vst [vmem:[#allocation146_spill] sm:$0xff] %v8963_v17 }
 0xd4b   :  { %3318 = vmatpush1.bf16.msra.mxu1 %v8948_v38  ;;  %3359 = vmatpush1.bf16.msra.mxu0 %v8951_v41  ;;  %v8966_v38 = vld [vmem:[#allocation16 + $0x1c4] ss:$16 sps:$4 sm:$0xff]   ;;  %v8969_v41 = vld [vmem:[#allocation16 + $0x1cc] ss:$16 sps:$4 sm:$0xff]  }
 0xd4c   :  { %3319 = vmatprep.subr.bf16.mxu1 %v8954_v13  ;;  %3360 = vmatprep.subr.bf16.mxu0 %v8957_v32  ;;  %10983 = vst [vmem:[#allocation147_spill] sm:$0xff] %v8966_v38  ;;  %10984 = vst [vmem:[#allocation148_spill] sm:$0xff] %v8969_v41  ;;  %v8972_v13 = vld [vmem:[#allocation16 + $0x1c0] ss:$16 sps:$4 sm:$0xff]   ;;  %v8975_v32 = vld [vmem:[#allocation16 + $0x1c8] ss:$16 sps:$4 sm:$0xff]  }
 0xd4d   :  { %10985 = vst [vmem:[#allocation149_spill] sm:$0xff] %v8972_v13  ;;  %10986 = vst [vmem:[#allocation150_spill] sm:$0xff] %v8975_v32 }
 0xd4f   :  { %3320 = vmatpush1.bf16.msra.mxu1 %v8960_v50  ;;  %3361 = vmatpush1.bf16.msra.mxu0 %v8963_v17  ;;  %v8978_v50 = vld [vmem:[#allocation16 + $0x1e4] ss:$16 sps:$4 sm:$0xff]   ;;  %v8981_v17 = vld [vmem:[#allocation16 + $0x1ec] ss:$16 sps:$4 sm:$0xff]  }
 0xd50   :  { %3321 = vmatprep.subr.bf16.mxu1 %v8966_v38  ;;  %3362 = vmatprep.subr.bf16.mxu0 %v8969_v41  ;;  %10987 = vst [vmem:[#allocation151_spill] sm:$0xff] %v8978_v50  ;;  %10988 = vst [vmem:[#allocation152_spill] sm:$0xff] %v8981_v17  ;;  %v8984_v38 = vld [vmem:[#allocation16 + $0x1e0] ss:$16 sps:$4 sm:$0xff]   ;;  %v8987_v41 = vld [vmem:[#allocation16 + $0x1e8] ss:$16 sps:$4 sm:$0xff]  }
 0xd51   :  { %10989 = vst [vmem:[#allocation153_spill] sm:$0xff] %v8984_v38  ;;  %10990 = vst [vmem:[#allocation154_spill] sm:$0xff] %v8987_v41 }
 0xd53   :  { %3322 = vmatpush1.bf16.msra.mxu1 %v8972_v13  ;;  %3363 = vmatpush1.bf16.msra.mxu0 %v8975_v32 }
 0xd54   :  { %3323 = vmatprep.subr.bf16.mxu1 %v8978_v50  ;;  %3364 = vmatprep.subr.bf16.mxu0 %v8981_v17 }
 0xd57   :  { %3324 = vmatpush1.bf16.msra.mxu1 %v8984_v38  ;;  %3365 = vmatpush1.bf16.msra.mxu0 %v8987_v41 }
 0xd58   :  { %3394 = vmatprep.subr.bf16.mxu1 %v8508_v42  ;;  %5050 = vmatprep.subr.bf16.mxu0 %v10530_v61 }
 0xdec   :  { %v3224_v32 = vpop.f32.mrb[68].mxu1  ;;  %v3265_v13 = vpop.f32.mrb[64].mxu0 }
 0xded   :  { %v3225_v50 = vadd.f32 %v3224_v32, %v10878_v59  ;;  %v3226_v24 = vpop.f32.mrb[69].mxu1  ;;  %v3267_v33 = vpop.f32.mrb[65].mxu0  ;;  %v3266_v59 = vadd.f32 %v3265_v13, %v7576_v9  ;;  %v9024_v13 = vld [vmem:[#allocation8 + $0x30] ss:$12 sps:$4 sm:$0xff]  }
 0xdee   :  { %v3228_v0 = vpop.f32.mrb[70].mxu1  ;;  %v3269_v17 = vpop.f32.mrb[66].mxu0  ;;  %v3227_v38 = vadd.f32 %v3226_v24, %v10650_v30  ;;  %v3268_v16 = vadd.f32 %v3267_v33, %v7573_v1  ;;  %v9001_v33 = vld [vmem:[#allocation8] ss:$12 sps:$4 sm:$0xff]  }
 0xdef   :  { %v4739_v8 = vmul.f32 -1.442695, %v3225_v50  ;;  %v3229_v58 = vpop.f32.mrb[71].mxu1  ;;  %v3270_v6 = vpop.f32.mrb[67].mxu0  ;;  %v9027_v17 = vld [vmem:[#allocation8 + $0x38] ss:$12 sps:$4 sm:$0xff]  }
 0xdf0   :  { %v4740_v5 = vmul.f32 -1.442695, %v3227_v38 }
 0xdf1   :  { %5601 = vpow2.f32 %v4739_v8 }
 0xdf2   :  { %5603 = vpow2.f32 %v4740_v5 }
 0xdfb   :  { %v5602_v41 = vpop.eup %5601 }
 0xdfc   :  { %v3275_v42 = vadd.f32 1.0, %v5602_v41  ;;  %v5604_v11 = vpop.eup %5603  ;;  %v9020_v41 = vld [vmem:[#allocation8 + $0x34] ss:$12 sps:$4 sm:$0xff]  }
 0xdfd   :  { %v3281_v25 = vadd.f32 1.0, %v5604_v11 }
 0xdfe   :  { %5605 = vrcp.f32 %v3275_v42  ;;  %v9030_v42 = vld [vmem:[#allocation8 + $0x4c] ss:$12 sps:$4 sm:$0xff]  }
 0xdff   :  { %5607 = vrcp.f32 %v3281_v25  ;;  %v9017_v25 = vld [vmem:[#allocation8 + $0x20] ss:$12 sps:$4 sm:$0xff]  }
 0xe08   :  { %v5606_v32 = vpop.eup %5605 }
 0xe09   :  { %v3284_v0 = vmul.f32 %v5606_v32, %v3268_v16  ;;  %v5608_v6 = vpop.eup %5607  ;;  %v9004_v16 = vld [vmem:[#allocation8 + $0x8] ss:$12 sps:$4 sm:$0xff]  }
 0xe0a   :  { %v3287_v58 = vsub.f32 1.0, %v5608_v6  ;;  %v3289_v38 = vmul.f32 %v5608_v6, %v8517_v10  ;;  %v9014_v10 = vld [vmem:[#allocation8 + $0x18] ss:$12 sps:$4 sm:$0xff]   ;;  %v9034_v32 = vld [vmem:[#allocation8 + $0x48] ss:$12 sps:$4 sm:$0xff]  }
 0xe0b   :  { %v3285_v50 = vadd.f32 %v3284_v0, %v3266_v59  ;;  %v9007_v59 = vld [vmem:[#allocation8 + $0x1c] ss:$12 sps:$4 sm:$0xff]   ;;  %v11024_v6 = vld [vmem:[#allocation84_spill] sm:$0xff] }
 0xe0c   :  { %v11022_v0 = vld [vmem:[#allocation82_spill] sm:$0xff] }
 0xe0d   :  { %5609 = vtanh.f32 %v3285_v50  ;;  %v11023_v50 = vld [vmem:[#allocation83_spill] sm:$0xff] }
 0xe17   :  { %v5610_v24 = vpop.eup %5609 }
 0xe18   :  { %v3288_v8 = vmul.f32 %v5610_v24, %v3287_v58  ;;  %v11025_v58 = vld [vmem:[#allocation85_spill] sm:$0xff]  ;;  %v11026_v24 = vld [vmem:[#allocation86_spill] sm:$0xff] }
 0xe1a   :  { %v8997_v5 = vadd.f32 %v3289_v38, %v3288_v8  ;;  %v11027_v8 = vld [vmem:[#allocation87_spill] sm:$0xff]  ;;  %v11028_v38 = vld [vmem:[#allocation88_spill] sm:$0xff] }
 0xe1c   :  { %v3291_v11 = vpack.c.bf16 %v8997_v5, %v8997_v5 }
 0xe1e   :  { %3326 = vmatmul.mubr.bf16.vlgmr.msra.gmra.mrb[72].mxu1 %v3291_v11  ;;  %3367 = vmatmul.mubr.bf16.vlgmr.msra.gmra.mrb[68].mxu0 %v3291_v11 }
 0xe1f   :  { %3395 = vmatpush1.bf16.msra.mxu1 %v9001_v33  ;;  %5051 = vmatpush3.bf16.msra.mxu0 %v9004_v16 }
 0xe20   :  { %3396 = vmatprep.subr.bf16.mxu1 %v9007_v59  ;;  %5052 = vmatprep.subr.bf16.mxu0 %v10530_v61 }
 0xe21   :  { %3426 = vmatprep.mubr.bf16.mxu1 %v10533_v23  ;;  %5066 = vmatprep.mubr.msk.bf16.mxu0 %vm6485_vm0, %v10530_v61 }
 0xe23   :  { %3397 = vmatpush1.bf16.msra.mxu1 %v9014_v10  ;;  %5053 = vmatpush3.bf16.msra.mxu0 %v9017_v25 }
 0xe24   :  { %3398 = vmatprep.subr.bf16.mxu1 %v9020_v41  ;;  %5054 = vmatprep.subr.bf16.mxu0 %v10530_v61 }
 0xe27   :  { %3399 = vmatpush1.bf16.msra.mxu1 %v9024_v13  ;;  %5055 = vmatpush3.bf16.msra.mxu0 %v9027_v17 }
 0xe28   :  { %3400 = vmatprep.subr.bf16.mxu1 %v9030_v42  ;;  %5056 = vmatprep.subr.bf16.mxu0 %v10530_v61 }
 0xe2b   :  { %3401 = vmatpush1.bf16.msra.mxu1 %v9034_v32  ;;  %5057 = vmatpush3.bf16.msra.mxu0 %v8537_v43  ;;  %v10991_v43 = vld [vmem:[#allocation28_spill] sm:$0xff] }
 0xe2c   :  { %3402 = vmatprep.subr.bf16.mxu1 %v8540_v47  ;;  %5058 = vmatprep.subr.bf16.mxu0 %v10530_v61  ;;  %v10992_v47 = vld [vmem:[#allocation52_spill] sm:$0xff] }
 0xe2f   :  { %3403 = vmatpush1.bf16.msra.mxu1 %v8544_v36  ;;  %5059 = vmatpush3.bf16.msra.mxu0 %v8547_v12  ;;  %v10993_v36 = vld [vmem:[#allocation53_spill] sm:$0xff]  ;;  %v10994_v12 = vld [vmem:[#allocation54_spill] sm:$0xff] }
 0xe30   :  { %3404 = vmatprep.subr.bf16.mxu1 %v8550_v44  ;;  %5060 = vmatprep.subr.bf16.mxu0 %v10530_v61  ;;  %v10995_v44 = vld [vmem:[#allocation55_spill] sm:$0xff] }
 0xe33   :  { %3405 = vmatpush1.bf16.msra.mxu1 %v8554_v18  ;;  %5061 = vmatpush3.bf16.msra.mxu0 %v8557_v4  ;;  %v10996_v18 = vld [vmem:[#allocation56_spill] sm:$0xff]  ;;  %v10997_v4 = vld [vmem:[#allocation57_spill] sm:$0xff] }
 0xe34   :  { %3406 = vmatprep.subr.bf16.mxu1 %v8560_v34  ;;  %5062 = vmatprep.subr.bf16.mxu0 %v10530_v61  ;;  %v10998_v34 = vld [vmem:[#allocation58_spill] sm:$0xff] }
 0xe37   :  { %3407 = vmatpush1.bf16.msra.mxu1 %v8564_v45  ;;  %5063 = vmatpush3.bf16.msra.mxu0 %v8567_v48  ;;  %v10999_v45 = vld [vmem:[#allocation59_spill] sm:$0xff]  ;;  %v11000_v48 = vld [vmem:[#allocation60_spill] sm:$0xff] }
 0xe38   :  { %3408 = vmatprep.subr.bf16.mxu1 %v8570_v28  ;;  %5064 = vmatprep.subr.bf16.mxu0 %v10530_v61  ;;  %v11001_v28 = vld [vmem:[#allocation61_spill] sm:$0xff] }
 0xe3b   :  { %3409 = vmatpush1.bf16.msra.mxu1 %v8574_v20  ;;  %5065 = vmatpush3.bf16.msra.mxu0 %v8577_v37  ;;  %v11002_v20 = vld [vmem:[#allocation62_spill] sm:$0xff]  ;;  %v11003_v37 = vld [vmem:[#allocation63_spill] sm:$0xff] }
 0xe3c   :  { %3497 = vmatprep.subr.bf16.mxu1 %v8580_v49  ;;  %3538 = vmatprep.subr.bf16.mxu0 %v8583_v51  ;;  %v11004_v49 = vld [vmem:[#allocation64_spill] sm:$0xff]  ;;  %v11005_v51 = vld [vmem:[#allocation65_spill] sm:$0xff] }
 0xe3e   :  { %3427 = vmatmul.mubr.bf16.vlgmr.msra.gmra.mrb[76].mxu1 %v8798_v35  ;;  %5067 = vmatmul.mubr.bf16.vlgmr.msra.gmra.mrb[72].mxu0 %v8798_v35  ;;  %v11021_v35 = vld [vmem:[#allocation81_spill] sm:$0xff] }
 0xe3f   :  { %3529 = vmatprep.mubr.bf16.mxu1 %v3291_v11  ;;  %3570 = vmatprep.mubr.bf16.mxu0 %v3291_v11  ;;  %v11029_v11 = vld [vmem:[#allocation89_spill] sm:$0xff] }
 0xe40   :  { %3498 = vmatpush1.bf16.msra.mxu1 %v8588_v53  ;;  %3539 = vmatpush1.bf16.msra.mxu0 %v8591_v54  ;;  %v11006_v53 = vld [vmem:[#allocation66_spill] sm:$0xff]  ;;  %v11007_v54 = vld [vmem:[#allocation67_spill] sm:$0xff] }
 0xe41   :  { %3499 = vmatprep.subr.bf16.mxu1 %v8594_v56  ;;  %3540 = vmatprep.subr.bf16.mxu0 %v8597_v57  ;;  %v11008_v56 = vld [vmem:[#allocation68_spill] sm:$0xff]  ;;  %v11009_v57 = vld [vmem:[#allocation69_spill] sm:$0xff] }
 0xe44   :  { %3500 = vmatpush1.bf16.msra.mxu1 %v8600_v19  ;;  %3541 = vmatpush1.bf16.msra.mxu0 %v8603_v39  ;;  %v11010_v19 = vld [vmem:[#allocation70_spill] sm:$0xff]  ;;  %v11011_v39 = vld [vmem:[#allocation71_spill] sm:$0xff] }
 0xe45   :  { %3501 = vmatprep.subr.bf16.mxu1 %v8606_v60  ;;  %3542 = vmatprep.subr.bf16.mxu0 %v8609_v62  ;;  %v11012_v60 = vld [vmem:[#allocation72_spill] sm:$0xff]  ;;  %v11013_v62 = vld [vmem:[#allocation73_spill] sm:$0xff] }
 0xe48   :  { %3502 = vmatpush1.bf16.msra.mxu1 %v8612_v3  ;;  %3543 = vmatpush1.bf16.msra.mxu0 %v8615_v63  ;;  %v11014_v3 = vld [vmem:[#allocation74_spill] sm:$0xff]  ;;  %v11015_v63 = vld [vmem:[#allocation75_spill] sm:$0xff] }
 0xe49   :  { %3503 = vmatprep.subr.bf16.mxu1 %v8618_v15  ;;  %3544 = vmatprep.subr.bf16.mxu0 %v8621_v26  ;;  %v11016_v15 = vld [vmem:[#allocation76_spill] sm:$0xff]  ;;  %v11017_v26 = vld [vmem:[#allocation77_spill] sm:$0xff] }
 0xe4c   :  { %3504 = vmatpush1.bf16.msra.mxu1 %v8624_v2  ;;  %3545 = vmatpush1.bf16.msra.mxu0 %v8627_v40  ;;  %v11018_v2 = vld [vmem:[#allocation78_spill] sm:$0xff]  ;;  %v11019_v40 = vld [vmem:[#allocation79_spill] sm:$0xff] }
 0xe4d   :  { %3505 = vmatprep.subr.bf16.mxu1 %v8630_v52  ;;  %3546 = vmatprep.subr.bf16.mxu0 %v10991_v43  ;;  %v11020_v52 = vld [vmem:[#allocation80_spill] sm:$0xff]  ;;  %v11030_v43 = vld [vmem:[#allocation90_spill] sm:$0xff] }
 0xe50   :  { %3506 = vmatpush1.bf16.msra.mxu1 %v10992_v47  ;;  %3547 = vmatpush1.bf16.msra.mxu0 %v10993_v36  ;;  %v11031_v47 = vld [vmem:[#allocation91_spill] sm:$0xff]  ;;  %v11032_v36 = vld [vmem:[#allocation92_spill] sm:$0xff] }
 0xe51   :  { %3507 = vmatprep.subr.bf16.mxu1 %v10994_v12  ;;  %3548 = vmatprep.subr.bf16.mxu0 %v10995_v44  ;;  %v11033_v12 = vld [vmem:[#allocation93_spill] sm:$0xff]  ;;  %v11034_v44 = vld [vmem:[#allocation94_spill] sm:$0xff] }
 0xe54   :  { %3508 = vmatpush1.bf16.msra.mxu1 %v10996_v18  ;;  %3549 = vmatpush1.bf16.msra.mxu0 %v10997_v4  ;;  %v11035_v18 = vld [vmem:[#allocation27_spill] sm:$0xff]  ;;  %v11036_v4 = vld [vmem:[#allocation29_spill] sm:$0xff] }
 0xe55   :  { %3509 = vmatprep.subr.bf16.mxu1 %v10998_v34  ;;  %3550 = vmatprep.subr.bf16.mxu0 %v10999_v45  ;;  %v11037_v34 = vld [vmem:[#allocation31_spill] sm:$0xff] }
 0xe56   :  { %v11038_v45 = vld [vmem:[#allocation95_spill] sm:$0xff] }
 0xe58   :  { %3510 = vmatpush1.bf16.msra.mxu1 %v11000_v48  ;;  %3551 = vmatpush1.bf16.msra.mxu0 %v11001_v28  ;;  %v11039_v48 = vld [vmem:[#allocation96_spill] sm:$0xff] }
 0xe59   :  { %3511 = vmatprep.subr.bf16.mxu1 %v11002_v20  ;;  %3552 = vmatprep.subr.bf16.mxu0 %v11003_v37  ;;  %v11040_v37 = vld [vmem:[#allocation48_spill] sm:$0xff] }
 0xe5c   :  { %3512 = vmatpush1.bf16.msra.mxu1 %v11004_v49  ;;  %3553 = vmatpush1.bf16.msra.mxu0 %v11005_v51 }
 0xe5d   :  { %3513 = vmatprep.subr.bf16.mxu1 %v11006_v53  ;;  %3554 = vmatprep.subr.bf16.mxu0 %v11007_v54 }
 0xe60   :  { %3514 = vmatpush1.bf16.msra.mxu1 %v11008_v56  ;;  %3555 = vmatpush1.bf16.msra.mxu0 %v11009_v57 }
 0xe61   :  { %3515 = vmatprep.subr.bf16.mxu1 %v11010_v19  ;;  %3556 = vmatprep.subr.bf16.mxu0 %v11011_v39 }
 0xe64   :  { %3516 = vmatpush1.bf16.msra.mxu1 %v11012_v60  ;;  %3557 = vmatpush1.bf16.msra.mxu0 %v11013_v62  ;;  %v11041_v60 = vld [vmem:[#allocation49_spill] sm:$0xff] }
 0xe65   :  { %3517 = vmatprep.subr.bf16.mxu1 %v11014_v3  ;;  %3558 = vmatprep.subr.bf16.mxu0 %v11015_v63 }
 0xe68   :  { %3518 = vmatpush1.bf16.msra.mxu1 %v11016_v15  ;;  %3559 = vmatpush1.bf16.msra.mxu0 %v11017_v26 }
 0xe69   :  { %3519 = vmatprep.subr.bf16.mxu1 %v11018_v2  ;;  %3560 = vmatprep.subr.bf16.mxu0 %v11019_v40  ;;  %v11042_v40 = vld [vmem:[#allocation50_spill] sm:$0xff] }
 0xe6c   :  { %3520 = vmatpush1.bf16.msra.mxu1 %v11020_v52  ;;  %3561 = vmatpush1.bf16.msra.mxu0 %v11021_v35 }
 0xe6d   :  { %3521 = vmatprep.subr.bf16.mxu1 %v11022_v0  ;;  %3562 = vmatprep.subr.bf16.mxu0 %v11023_v50 }
 0xe70   :  { %3522 = vmatpush1.bf16.msra.mxu1 %v11024_v6  ;;  %3563 = vmatpush1.bf16.msra.mxu0 %v11025_v58 }
 0xe71   :  { %3523 = vmatprep.subr.bf16.mxu1 %v11026_v24  ;;  %3564 = vmatprep.subr.bf16.mxu0 %v11027_v8 }
 0xe74   :  { %3524 = vmatpush1.bf16.msra.mxu1 %v11028_v38  ;;  %3565 = vmatpush1.bf16.msra.mxu0 %v11029_v11 }
 0xe75   :  { %3525 = vmatprep.subr.bf16.mxu1 %v11030_v43  ;;  %3566 = vmatprep.subr.bf16.mxu0 %v11031_v47 }
 0xe78   :  { %3526 = vmatpush1.bf16.msra.mxu1 %v11032_v36  ;;  %3567 = vmatpush1.bf16.msra.mxu0 %v11033_v12  ;;  %v11043_v12 = vld [vmem:[#allocation38_spill] sm:$0xff] }
 0xe79   :  { %3527 = vmatprep.subr.bf16.mxu1 %v11034_v44  ;;  %3568 = vmatprep.subr.bf16.mxu0 %v11035_v18 }
 0xe7c   :  { %3528 = vmatpush1.bf16.msra.mxu1 %v11036_v4  ;;  %3569 = vmatpush1.bf16.msra.mxu0 %v11037_v34  ;;  %v11044_v34 = vld [vmem:[#allocation39_spill] sm:$0xff] }
 0xe7d   :  { %3600 = vmatprep.subr.bf16.mxu1 %v11038_v45  ;;  %3641 = vmatprep.subr.bf16.mxu0 %v11039_v48 }
 0xef1   :  { %v3327_v28 = vpop.f32.mrb[72].mxu1  ;;  %v3368_v20 = vpop.f32.mrb[68].mxu0 }
 0xef2   :  { %v3328_v49 = vadd.f32 %v3327_v28, %v11040_v37  ;;  %v3329_v51 = vpop.f32.mrb[73].mxu1  ;;  %v3370_v53 = vpop.f32.mrb[69].mxu0  ;;  %v3369_v0 = vadd.f32 %v3368_v20, %v7722_v22 }
 0xef3   :  { %v3331_v54 = vpop.f32.mrb[74].mxu1  ;;  %v3372_v56 = vpop.f32.mrb[70].mxu0  ;;  %v3330_v62 = vadd.f32 %v3329_v51, %v11041_v60  ;;  %v3371_v52 = vadd.f32 %v3370_v53, %v11042_v40 }
 0xef4   :  { %v4741_v57 = vmul.f32 -1.442695, %v3328_v49  ;;  %v3332_v19 = vpop.f32.mrb[75].mxu1  ;;  %v3373_v39 = vpop.f32.mrb[71].mxu0 }
 0xef5   :  { %v4742_v3 = vmul.f32 -1.442695, %v3330_v62 }
 0xef6   :  { %5611 = vpow2.f32 %v4741_v57 }
 0xef7   :  { %5613 = vpow2.f32 %v4742_v3 }
 0xf00   :  { %v5612_v63 = vpop.eup %5611 }
 0xf01   :  { %v3378_v15 = vadd.f32 1.0, %v5612_v63  ;;  %v5614_v26 = vpop.eup %5613 }
 0xf02   :  { %v3384_v2 = vadd.f32 1.0, %v5614_v26  ;;  %v11046_v26 = vld [vmem:[#allocation45_spill] sm:$0xff] }
 0xf03   :  { %5615 = vrcp.f32 %v3378_v15 }
 0xf04   :  { %5617 = vrcp.f32 %v3384_v2 }
 0xf0d   :  { %v5616_v35 = vpop.eup %5615 }
 0xf0e   :  { %v3387_v50 = vmul.f32 %v5616_v35, %v3371_v52  ;;  %v5618_v28 = vpop.eup %5617 }
 0xf0f   :  { %v3390_v49 = vsub.f32 1.0, %v5618_v28  ;;  %v3392_v54 = vmul.f32 %v5618_v28, %v8789_v46  ;;  %v11063_v28 = vld [vmem:[#allocation112_spill] sm:$0xff] }
 0xf10   :  { %v3388_v6 = vadd.f32 %v3387_v50, %v3369_v0  ;;  %v9381_v46 = vld [vmem:[#allocation13 + $0x10c] ss:$16 sps:$4 sm:$0xff]  }
 0xf11   :  { %v3428_v58 = vpop.f32.mrb[76].mxu1  ;;  %v3469_v24 = vpop.f32.mrb[72].mxu0  ;;  %11123 = vst [vmem:[#allocation62_spill] sm:$0xff] %v9381_v46 }
 0xf12   :  { %5619 = vtanh.f32 %v3388_v6  ;;  %v3429_v8 = vadd.f32 %v3428_v58, %v7344_v27  ;;  %v3430_v38 = vpop.f32.mrb[77].mxu1  ;;  %v5068_v11 = vpop.f32.mrb[73].mxu0  ;;  %v3470_v3 = vadd.f32 %v3469_v24, %v7356_v14 }
 0xf13   :  { %v3431_v43 = vadd.f32 %v3430_v38, %v7347_v29  ;;  %v3432_v47 = vpop.f32.mrb[78].mxu1  ;;  %v3472_v36 = vpop.f32.mrb[74].mxu0  ;;  %v11048_v38 = vld [vmem:[#allocation35_spill] sm:$0xff]  ;;  %v11049_v11 = vld [vmem:[#allocation30_spill] sm:$0xff] }
 0xf14   :  { %v3475_v44 = vadd.f32 %v3429_v8, %v11043_v12  ;;  %v3433_v18 = vpop.f32.mrb[79].mxu1  ;;  %v5069_v4 = vpop.f32.mrb[75].mxu0  ;;  %v11051_v47 = vld [vmem:[#allocation100_spill] sm:$0xff]  ;;  %v11052_v36 = vld [vmem:[#allocation101_spill] sm:$0xff]  ;;  %v11053_v12 = vld [vmem:[#allocation102_spill] sm:$0xff] }
 0xf15   :  { %v3482_v45 = vadd.f32 %v3431_v43, %v11044_v34  ;;  %v11050_v43 = vld [vmem:[#allocation99_spill] sm:$0xff]  ;;  %v11059_v4 = vld [vmem:[#allocation108_spill] sm:$0xff]  ;;  %v11060_v34 = vld [vmem:[#allocation109_spill] sm:$0xff] }
 0xf16   :  { %v4743_v48 = vmul.f32 -1.442695, %v3475_v44  ;;  %v11054_v44 = vld [vmem:[#allocation103_spill] sm:$0xff] }
 0xf17   :  { %v4744_v20 = vmul.f32 -1.442695, %v3482_v45  ;;  %v11058_v18 = vld [vmem:[#allocation107_spill] sm:$0xff]  ;;  %v11061_v45 = vld [vmem:[#allocation110_spill] sm:$0xff] }
 0xf18   :  { %5621 = vpow2.f32 %v4743_v48  ;;  %v11062_v48 = vld [vmem:[#allocation111_spill] sm:$0xff] }
 0xf19   :  { %5623 = vpow2.f32 %v4744_v20  ;;  %v11064_v20 = vld [vmem:[#allocation113_spill] sm:$0xff] }
 0xf1c   :  { %v5620_v51 = vpop.eup %5619 }
 0xf1d   :  { %v3391_v53 = vmul.f32 %v5620_v51, %v3390_v49  ;;  %v11065_v49 = vld [vmem:[#allocation114_spill] sm:$0xff]  ;;  %v11066_v51 = vld [vmem:[#allocation115_spill] sm:$0xff] }
 0xf1f   :  { %v9131_v56 = vadd.f32 %v3392_v54, %v3391_v53  ;;  %v11067_v53 = vld [vmem:[#allocation116_spill] sm:$0xff]  ;;  %v11068_v54 = vld [vmem:[#allocation117_spill] sm:$0xff] }
 0xf21   :  { %11045 = vst [vmem:[#allocation155_spill] sm:$0xff] %v9131_v56  ;;  %v3599_v24 = vpack.c.bf16 %v9131_v56, %v9131_v56 }
 0xf22   :  { %v5622_v57 = vpop.eup %5621 }
 0xf23   :  { %v3479_v19 = vadd.f32 1.0, %v5622_v57  ;;  %v5624_v39 = vpop.eup %5623  ;;  %v11069_v57 = vld [vmem:[#allocation118_spill] sm:$0xff] }
 0xf24   :  { %v3486_v62 = vadd.f32 1.0, %v5624_v39  ;;  %v11071_v39 = vld [vmem:[#allocation120_spill] sm:$0xff] }
 0xf25   :  { %5625 = vrcp.f32 %v3479_v19  ;;  %v11070_v19 = vld [vmem:[#allocation119_spill] sm:$0xff] }
 0xf26   :  { %5627 = vrcp.f32 %v3486_v62  ;;  %v11072_v62 = vld [vmem:[#allocation121_spill] sm:$0xff] }
 0xf2f   :  { %v5626_v63 = vpop.eup %5625 }
 0xf30   :  { %v3489_v15 = vmul.f32 %v5626_v63, %v3470_v3  ;;  %v5628_v52 = vpop.eup %5627  ;;  %v11073_v3 = vld [vmem:[#allocation122_spill] sm:$0xff]  ;;  %v11074_v63 = vld [vmem:[#allocation123_spill] sm:$0xff] }
 0xf31   :  { %v3492_v35 = vsub.f32 1.0, %v5628_v52  ;;  %v3494_v6 = vmul.f32 %v5628_v52, %v8794_v7  ;;  %v11047_v7 = vld [vmem:[#allocation34_spill] sm:$0xff]  ;;  %v11078_v52 = vld [vmem:[#allocation127_spill] sm:$0xff] }
 0xf32   :  { %v3490_v2 = vadd.f32 %v3489_v15, %v11046_v26  ;;  %v11075_v15 = vld [vmem:[#allocation124_spill] sm:$0xff]  ;;  %v11076_v26 = vld [vmem:[#allocation125_spill] sm:$0xff] }
 0xf34   :  { %5629 = vtanh.f32 %v3490_v2  ;;  %v11077_v2 = vld [vmem:[#allocation126_spill] sm:$0xff] }
 0xf3e   :  { %v5630_v0 = vpop.eup %5629 }
 0xf3f   :  { %v3493_v50 = vmul.f32 %v5630_v0, %v3492_v35  ;;  %v11079_v35 = vld [vmem:[#allocation128_spill] sm:$0xff]  ;;  %v11080_v0 = vld [vmem:[#allocation129_spill] sm:$0xff] }
 0xf41   :  { %v9136_v58 = vadd.f32 %v3494_v6, %v3493_v50  ;;  %v11081_v50 = vld [vmem:[#allocation130_spill] sm:$0xff]  ;;  %v11082_v6 = vld [vmem:[#allocation131_spill] sm:$0xff] }
 0xf43   :  { %v9140_v8 = vpack.c.bf16 %v9136_v58, %v9136_v58 }
 0xf45   :  { %3530 = vmatmul.mubr.bf16.vlgmr.msra.gmra.mrb[80].mxu1 %v9140_v8  ;;  %3571 = vmatmul.mubr.bf16.vlgmr.msra.gmra.mrb[76].mxu0 %v9140_v8 }
 0xf46   :  { %3632 = vmatprep.mubr.bf16.mxu1 %v3599_v24  ;;  %3673 = vmatprep.mubr.bf16.mxu0 %v3599_v24  ;;  %v11083_v24 = vld [vmem:[#allocation132_spill] sm:$0xff] }
 0xf47   :  { %3601 = vmatpush1.bf16.msra.mxu1 %v8804_v21  ;;  %3642 = vmatpush1.bf16.msra.mxu0 %v8807_v55  ;;  %v11055_v21 = vld [vmem:[#allocation104_spill] sm:$0xff]  ;;  %v11056_v55 = vld [vmem:[#allocation105_spill] sm:$0xff] }
 0xf48   :  { %3602 = vmatprep.subr.bf16.mxu1 %v8810_v31  ;;  %3643 = vmatprep.subr.bf16.mxu0 %v11047_v7  ;;  %v11057_v31 = vld [vmem:[#allocation106_spill] sm:$0xff]  ;;  %v11084_v7 = vld [vmem:[#allocation133_spill] sm:$0xff] }
 0xf4b   :  { %3603 = vmatpush1.bf16.msra.mxu1 %v11048_v38  ;;  %3644 = vmatpush1.bf16.msra.mxu0 %v11049_v11  ;;  %v11085_v38 = vld [vmem:[#allocation134_spill] sm:$0xff]  ;;  %v11086_v11 = vld [vmem:[#allocation135_spill] sm:$0xff] }
 0xf4c   :  { %3604 = vmatprep.subr.bf16.mxu1 %v11050_v43  ;;  %3645 = vmatprep.subr.bf16.mxu0 %v11051_v47  ;;  %v11087_v43 = vld [vmem:[#allocation136_spill] sm:$0xff]  ;;  %v11088_v47 = vld [vmem:[#allocation137_spill] sm:$0xff] }
 0xf4f   :  { %3605 = vmatpush1.bf16.msra.mxu1 %v11052_v36  ;;  %3646 = vmatpush1.bf16.msra.mxu0 %v11053_v12  ;;  %v11089_v36 = vld [vmem:[#allocation138_spill] sm:$0xff]  ;;  %v11090_v12 = vld [vmem:[#allocation139_spill] sm:$0xff] }
 0xf50   :  { %3606 = vmatprep.subr.bf16.mxu1 %v11054_v44  ;;  %3647 = vmatprep.subr.bf16.mxu0 %v11055_v21  ;;  %v11091_v44 = vld [vmem:[#allocation140_spill] sm:$0xff]  ;;  %v11092_v21 = vld [vmem:[#allocation141_spill] sm:$0xff] }
 0xf53   :  { %3607 = vmatpush1.bf16.msra.mxu1 %v11056_v55  ;;  %3648 = vmatpush1.bf16.msra.mxu0 %v11057_v31  ;;  %v11093_v55 = vld [vmem:[#allocation142_spill] sm:$0xff]  ;;  %v11094_v31 = vld [vmem:[#allocation143_spill] sm:$0xff] }
 0xf54   :  { %3608 = vmatprep.subr.bf16.mxu1 %v11058_v18  ;;  %3649 = vmatprep.subr.bf16.mxu0 %v11059_v4  ;;  %v11095_v18 = vld [vmem:[#allocation144_spill] sm:$0xff]  ;;  %v11096_v4 = vld [vmem:[#allocation145_spill] sm:$0xff] }
 0xf57   :  { %3609 = vmatpush1.bf16.msra.mxu1 %v11060_v34  ;;  %3650 = vmatpush1.bf16.msra.mxu0 %v11061_v45  ;;  %v11097_v34 = vld [vmem:[#allocation146_spill] sm:$0xff]  ;;  %v11098_v45 = vld [vmem:[#allocation147_spill] sm:$0xff] }
 0xf58   :  { %3610 = vmatprep.subr.bf16.mxu1 %v11062_v48  ;;  %3651 = vmatprep.subr.bf16.mxu0 %v11063_v28  ;;  %v11099_v48 = vld [vmem:[#allocation148_spill] sm:$0xff]  ;;  %v11100_v28 = vld [vmem:[#allocation149_spill] sm:$0xff] }
 0xf5b   :  { %3611 = vmatpush1.bf16.msra.mxu1 %v11064_v20  ;;  %3652 = vmatpush1.bf16.msra.mxu0 %v11065_v49  ;;  %v11101_v20 = vld [vmem:[#allocation150_spill] sm:$0xff]  ;;  %v11102_v49 = vld [vmem:[#allocation151_spill] sm:$0xff] }
 0xf5c   :  { %3612 = vmatprep.subr.bf16.mxu1 %v11066_v51  ;;  %3653 = vmatprep.subr.bf16.mxu0 %v11067_v53  ;;  %v11103_v51 = vld [vmem:[#allocation152_spill] sm:$0xff]  ;;  %v11104_v53 = vld [vmem:[#allocation153_spill] sm:$0xff] }
 0xf5f   :  { %3613 = vmatpush1.bf16.msra.mxu1 %v11068_v54  ;;  %3654 = vmatpush1.bf16.msra.mxu0 %v11069_v57  ;;  %v11105_v54 = vld [vmem:[#allocation154_spill] sm:$0xff] }
 0xf60   :  { %3614 = vmatprep.subr.bf16.mxu1 %v11070_v19  ;;  %3655 = vmatprep.subr.bf16.mxu0 %v11071_v39  ;;  %v9208_v57 = vld [vmem:[#allocation8 + $0x4] ss:$12 sps:$4 sm:$0xff]  }
 0xf63   :  { %3615 = vmatpush1.bf16.msra.mxu1 %v11072_v62  ;;  %3656 = vmatpush1.bf16.msra.mxu0 %v11073_v3  ;;  %v11106_v62 = vld [vmem:[#allocation156_spill] sm:$0xff] }
 0xf64   :  { %3616 = vmatprep.subr.bf16.mxu1 %v11074_v63  ;;  %3657 = vmatprep.subr.bf16.mxu0 %v11075_v15 }
 0xf67   :  { %3617 = vmatpush1.bf16.msra.mxu1 %v11076_v26  ;;  %3658 = vmatpush1.bf16.msra.mxu0 %v11077_v2 }
 0xf68   :  { %3618 = vmatprep.subr.bf16.mxu1 %v11078_v52  ;;  %3659 = vmatprep.subr.bf16.mxu0 %v11079_v35 }
 0xf6b   :  { %3619 = vmatpush1.bf16.msra.mxu1 %v11080_v0  ;;  %3660 = vmatpush1.bf16.msra.mxu0 %v11081_v50 }
 0xf6c   :  { %3620 = vmatprep.subr.bf16.mxu1 %v11082_v6  ;;  %3661 = vmatprep.subr.bf16.mxu0 %v11083_v24 }
 0xf6f   :  { %3621 = vmatpush1.bf16.msra.mxu1 %v11084_v7  ;;  %3662 = vmatpush1.bf16.msra.mxu0 %v11085_v38 }
 0xf70   :  { %3622 = vmatprep.subr.bf16.mxu1 %v11086_v11  ;;  %3663 = vmatprep.subr.bf16.mxu0 %v11087_v43 }
 0xf73   :  { %3623 = vmatpush1.bf16.msra.mxu1 %v11088_v47  ;;  %3664 = vmatpush1.bf16.msra.mxu0 %v11089_v36 }
 0xf74   :  { %3624 = vmatprep.subr.bf16.mxu1 %v11090_v12  ;;  %3665 = vmatprep.subr.bf16.mxu0 %v11091_v44 }
 0xf77   :  { %3625 = vmatpush1.bf16.msra.mxu1 %v11092_v21  ;;  %3666 = vmatpush1.bf16.msra.mxu0 %v11093_v55 }
 0xf78   :  { %3626 = vmatprep.subr.bf16.mxu1 %v11094_v31  ;;  %3667 = vmatprep.subr.bf16.mxu0 %v11095_v18 }
 0xf7b   :  { %3627 = vmatpush1.bf16.msra.mxu1 %v11096_v4  ;;  %3668 = vmatpush1.bf16.msra.mxu0 %v11097_v34 }
 0xf7c   :  { %3628 = vmatprep.subr.bf16.mxu1 %v11098_v45  ;;  %3669 = vmatprep.subr.bf16.mxu0 %v11099_v48  ;;  %v9274_v48 = vld [vmem:[#allocation8 + $0xa8] ss:$12 sps:$4 sm:$0xff]  }
 0xf7f   :  { %3629 = vmatpush1.bf16.msra.mxu1 %v11100_v28  ;;  %3670 = vmatpush1.bf16.msra.mxu0 %v11101_v20  ;;  %v9277_v28 = vld [vmem:[#allocation8 + $0xb0] ss:$12 sps:$4 sm:$0xff]  }
 0xf80   :  { %3630 = vmatprep.subr.bf16.mxu1 %v11102_v49  ;;  %3671 = vmatprep.subr.bf16.mxu0 %v11103_v51  ;;  %v9280_v20 = vld [vmem:[#allocation13 + $0x4] ss:$16 sps:$4 sm:$0xff]   ;;  %v9283_v49 = vld [vmem:[#allocation13 + $0xc] ss:$16 sps:$4 sm:$0xff]   ;;  %v9288_v51 = vld [vmem:[#allocation13] ss:$16 sps:$4 sm:$0xff]  }
 0xf83   :  { %3631 = vmatpush1.bf16.msra.mxu1 %v11104_v53  ;;  %3672 = vmatpush1.bf16.msra.mxu0 %v11105_v54  ;;  %v9291_v53 = vld [vmem:[#allocation13 + $0x8] ss:$16 sps:$4 sm:$0xff]   ;;  %v9294_v54 = vld [vmem:[#allocation13 + $0x24] ss:$16 sps:$4 sm:$0xff]  }
 0xf84   :  { %3701 = vmatprep.subr.bf16.mxu1 %v9208_v57  ;;  %5070 = vmatprep.subr.bf16.mxu0 %v10530_v61 }
0x1018   :  { %v3531_v19 = vpop.f32.mrb[80].mxu1  ;;  %v3572_v39 = vpop.f32.mrb[76].mxu0 }
0x1019   :  { %v3532_v3 = vadd.f32 %v3531_v19, %v11106_v62  ;;  %v3533_v63 = vpop.f32.mrb[81].mxu1  ;;  %v3574_v15 = vpop.f32.mrb[77].mxu0  ;;  %v3573_v36 = vadd.f32 %v3572_v39, %v7576_v9  ;;  %v9297_v19 = vld [vmem:[#allocation13 + $0x2c] ss:$16 sps:$4 sm:$0xff]   ;;  %v9300_v39 = vld [vmem:[#allocation13 + $0x20] ss:$16 sps:$4 sm:$0xff]  }
0x101a   :  { %v3535_v26 = vpop.f32.mrb[82].mxu1  ;;  %v3576_v2 = vpop.f32.mrb[78].mxu0  ;;  %v3534_v50 = vadd.f32 %v3533_v63, %v10650_v30  ;;  %v3575_v43 = vadd.f32 %v3574_v15, %v7573_v1  ;;  %v9309_v63 = vld [vmem:[#allocation13 + $0x4c] ss:$16 sps:$4 sm:$0xff]   ;;  %v9312_v15 = vld [vmem:[#allocation13 + $0x40] ss:$16 sps:$4 sm:$0xff]  }
0x101b   :  { %v4745_v52 = vmul.f32 -1.442695, %v3532_v3  ;;  %v3536_v35 = vpop.f32.mrb[83].mxu1  ;;  %v3577_v0 = vpop.f32.mrb[79].mxu0  ;;  %v9306_v3 = vld [vmem:[#allocation13 + $0x44] ss:$16 sps:$4 sm:$0xff]  }
0x101c   :  { %v4746_v6 = vmul.f32 -1.442695, %v3534_v50  ;;  %v9315_v26 = vld [vmem:[#allocation13 + $0x48] ss:$16 sps:$4 sm:$0xff]   ;;  %v9318_v2 = vld [vmem:[#allocation13 + $0x64] ss:$16 sps:$4 sm:$0xff]  }
0x101d   :  { %5631 = vpow2.f32 %v4745_v52  ;;  %v9321_v52 = vld [vmem:[#allocation13 + $0x6c] ss:$16 sps:$4 sm:$0xff]   ;;  %v9324_v35 = vld [vmem:[#allocation13 + $0x60] ss:$16 sps:$4 sm:$0xff]   ;;  %v9327_v0 = vld [vmem:[#allocation13 + $0x68] ss:$16 sps:$4 sm:$0xff]  }
0x101e   :  { %5633 = vpow2.f32 %v4746_v6  ;;  %v9330_v50 = vld [vmem:[#allocation13 + $0x84] ss:$16 sps:$4 sm:$0xff]   ;;  %v9333_v6 = vld [vmem:[#allocation13 + $0x8c] ss:$16 sps:$4 sm:$0xff]  }
0x101f   :  { %11107 = vst [vmem:[#allocation157_spill] sm:$0xff] %v9333_v6 }
0x1027   :  { %v5632_v24 = vpop.eup %5631 }
0x1028   :  { %v3582_v7 = vadd.f32 1.0, %v5632_v24  ;;  %v5634_v38 = vpop.eup %5633  ;;  %v9336_v24 = vld [vmem:[#allocation13 + $0x80] ss:$16 sps:$4 sm:$0xff]  }
0x1029   :  { %v3588_v11 = vadd.f32 1.0, %v5634_v38  ;;  %11108 = vst [vmem:[#allocation32_spill] sm:$0xff] %v9336_v24  ;;  %v9342_v38 = vld [vmem:[#allocation13 + $0xa4] ss:$16 sps:$4 sm:$0xff]  }
0x102a   :  { %5635 = vrcp.f32 %v3582_v7  ;;  %v9339_v7 = vld [vmem:[#allocation13 + $0x88] ss:$16 sps:$4 sm:$0xff]   ;;  %11110 = vst [vmem:[#allocation37_spill] sm:$0xff] %v9342_v38 }
0x102b   :  { %5637 = vrcp.f32 %v3588_v11  ;;  %11109 = vst [vmem:[#allocation36_spill] sm:$0xff] %v9339_v7  ;;  %v9345_v11 = vld [vmem:[#allocation13 + $0xac] ss:$16 sps:$4 sm:$0xff]  }
0x102c   :  { %11111 = vst [vmem:[#allocation41_spill] sm:$0xff] %v9345_v11 }
0x1034   :  { %v5636_v47 = vpop.eup %5635 }
0x1035   :  { %v3591_v12 = vmul.f32 %v5636_v47, %v3575_v43  ;;  %v5638_v21 = vpop.eup %5637  ;;  %v9348_v43 = vld [vmem:[#allocation13 + $0xa0] ss:$16 sps:$4 sm:$0xff]   ;;  %v9351_v47 = vld [vmem:[#allocation13 + $0xa8] ss:$16 sps:$4 sm:$0xff]  }
0x1036   :  { %v3594_v55 = vsub.f32 1.0, %v5638_v21  ;;  %v3596_v4 = vmul.f32 %v5638_v21, %v8997_v5  ;;  %v9237_v5 = vld [vmem:[#allocation8 + $0x50] ss:$12 sps:$4 sm:$0xff]   ;;  %11112 = vst [vmem:[#allocation28_spill] sm:$0xff] %v9348_v43  ;;  %11113 = vst [vmem:[#allocation52_spill] sm:$0xff] %v9351_v47 }
0x1037   :  { %v3592_v44 = vadd.f32 %v3591_v12, %v3573_v36  ;;  %v9354_v36 = vld [vmem:[#allocation13 + $0xc4] ss:$16 sps:$4 sm:$0xff]   ;;  %v9357_v12 = vld [vmem:[#allocation13 + $0xcc] ss:$16 sps:$4 sm:$0xff]   ;;  %v9363_v21 = vld [vmem:[#allocation13 + $0xc8] ss:$16 sps:$4 sm:$0xff]  }
0x1038   :  { %11114 = vst [vmem:[#allocation53_spill] sm:$0xff] %v9354_v36  ;;  %11115 = vst [vmem:[#allocation54_spill] sm:$0xff] %v9357_v12 }
0x1039   :  { %5639 = vtanh.f32 %v3592_v44  ;;  %v9360_v44 = vld [vmem:[#allocation13 + $0xc0] ss:$16 sps:$4 sm:$0xff]   ;;  %11117 = vst [vmem:[#allocation56_spill] sm:$0xff] %v9363_v21 }
0x103a   :  { %11116 = vst [vmem:[#allocation55_spill] sm:$0xff] %v9360_v44 }
0x1043   :  { %v5640_v31 = vpop.eup %5639 }
0x1044   :  { %v3595_v18 = vmul.f32 %v5640_v31, %v3594_v55  ;;  %v9366_v55 = vld [vmem:[#allocation13 + $0xe4] ss:$16 sps:$4 sm:$0xff]   ;;  %v9369_v31 = vld [vmem:[#allocation13 + $0xec] ss:$16 sps:$4 sm:$0xff]  }
0x1045   :  { %11118 = vst [vmem:[#allocation57_spill] sm:$0xff] %v9366_v55  ;;  %11119 = vst [vmem:[#allocation58_spill] sm:$0xff] %v9369_v31 }
0x1046   :  { %v9217_v34 = vadd.f32 %v3596_v4, %v3595_v18  ;;  %v9372_v18 = vld [vmem:[#allocation13 + $0xe0] ss:$16 sps:$4 sm:$0xff]   ;;  %v9375_v4 = vld [vmem:[#allocation13 + $0xe8] ss:$16 sps:$4 sm:$0xff]  }
0x1047   :  { %11120 = vst [vmem:[#allocation59_spill] sm:$0xff] %v9372_v18  ;;  %11121 = vst [vmem:[#allocation60_spill] sm:$0xff] %v9375_v4 }
0x1048   :  { %v3598_v45 = vpack.c.bf16 %v9217_v34, %v9217_v34 }
0x104a   :  { %3633 = vmatmul.mubr.bf16.vlgmr.msra.gmra.mrb[84].mxu1 %v3598_v45  ;;  %3674 = vmatmul.mubr.bf16.vlgmr.msra.gmra.mrb[80].mxu0 %v3598_v45 }
0x104b   :  { %3702 = vmatpush1.bf16.msra.mxu1 %v9001_v33  ;;  %5071 = vmatpush3.bf16.msra.mxu0 %v9004_v16  ;;  %v9240_v33 = vld [vmem:[#allocation8 + $0x64] ss:$12 sps:$4 sm:$0xff]   ;;  %v9244_v16 = vld [vmem:[#allocation8 + $0x60] ss:$12 sps:$4 sm:$0xff]  }
0x104c   :  { %3703 = vmatprep.subr.bf16.mxu1 %v9007_v59  ;;  %5072 = vmatprep.subr.bf16.mxu0 %v10530_v61  ;;  %v9247_v59 = vld [vmem:[#allocation8 + $0x68] ss:$12 sps:$4 sm:$0xff]  }
0x104d   :  { %3733 = vmatprep.mubr.bf16.mxu1 %v10533_v23  ;;  %5086 = vmatprep.mubr.msk.bf16.mxu0 %vm6485_vm0, %v10530_v61 }
0x104f   :  { %3704 = vmatpush1.bf16.msra.mxu1 %v9014_v10  ;;  %5073 = vmatpush3.bf16.msra.mxu0 %v9017_v25  ;;  %v9250_v10 = vld [vmem:[#allocation8 + $0x7c] ss:$12 sps:$4 sm:$0xff]   ;;  %v9254_v25 = vld [vmem:[#allocation8 + $0x78] ss:$12 sps:$4 sm:$0xff]  }
0x1050   :  { %3705 = vmatprep.subr.bf16.mxu1 %v9020_v41  ;;  %5074 = vmatprep.subr.bf16.mxu0 %v10530_v61  ;;  %v9257_v41 = vld [vmem:[#allocation8 + $0x80] ss:$12 sps:$4 sm:$0xff]  }
0x1053   :  { %3706 = vmatpush1.bf16.msra.mxu1 %v9024_v13  ;;  %5075 = vmatpush3.bf16.msra.mxu0 %v9027_v17  ;;  %v9260_v13 = vld [vmem:[#allocation8 + $0x94] ss:$12 sps:$4 sm:$0xff]   ;;  %v9264_v17 = vld [vmem:[#allocation8 + $0x90] ss:$12 sps:$4 sm:$0xff]  }
0x1054   :  { %3707 = vmatprep.subr.bf16.mxu1 %v9030_v42  ;;  %5076 = vmatprep.subr.bf16.mxu0 %v10530_v61  ;;  %v9267_v42 = vld [vmem:[#allocation8 + $0x98] ss:$12 sps:$4 sm:$0xff]  }
0x1057   :  { %3708 = vmatpush1.bf16.msra.mxu1 %v9034_v32  ;;  %5077 = vmatpush3.bf16.msra.mxu0 %v9237_v5  ;;  %v9270_v32 = vld [vmem:[#allocation8 + $0xac] ss:$12 sps:$4 sm:$0xff]  }
0x1058   :  { %3709 = vmatprep.subr.bf16.mxu1 %v9240_v33  ;;  %5078 = vmatprep.subr.bf16.mxu0 %v10530_v61 }
0x105b   :  { %3710 = vmatpush1.bf16.msra.mxu1 %v9244_v16  ;;  %5079 = vmatpush3.bf16.msra.mxu0 %v9247_v59 }
0x105c   :  { %3711 = vmatprep.subr.bf16.mxu1 %v9250_v10  ;;  %5080 = vmatprep.subr.bf16.mxu0 %v10530_v61 }
0x105f   :  { %3712 = vmatpush1.bf16.msra.mxu1 %v9254_v25  ;;  %5081 = vmatpush3.bf16.msra.mxu0 %v9257_v41 }
0x1060   :  { %3713 = vmatprep.subr.bf16.mxu1 %v9260_v13  ;;  %5082 = vmatprep.subr.bf16.mxu0 %v10530_v61 }
0x1063   :  { %3714 = vmatpush1.bf16.msra.mxu1 %v9264_v17  ;;  %5083 = vmatpush3.bf16.msra.mxu0 %v9267_v42 }
0x1064   :  { %3715 = vmatprep.subr.bf16.mxu1 %v9270_v32  ;;  %5084 = vmatprep.subr.bf16.mxu0 %v10530_v61 }
0x1067   :  { %3716 = vmatpush1.bf16.msra.mxu1 %v9274_v48  ;;  %5085 = vmatpush3.bf16.msra.mxu0 %v9277_v28 }
0x1068   :  { %3804 = vmatprep.subr.bf16.mxu1 %v9280_v20  ;;  %3845 = vmatprep.subr.bf16.mxu0 %v9283_v49 }
0x106a   :  { %3734 = vmatmul.mubr.bf16.vlgmr.msra.gmra.mrb[88].mxu1 %v9140_v8  ;;  %5087 = vmatmul.mubr.bf16.vlgmr.msra.gmra.mrb[84].mxu0 %v9140_v8  ;;  %v9303_v8 = vld [vmem:[#allocation13 + $0x28] ss:$16 sps:$4 sm:$0xff]  }
0x106b   :  { %3836 = vmatprep.mubr.bf16.mxu1 %v3598_v45  ;;  %3877 = vmatprep.mubr.bf16.mxu0 %v3598_v45  ;;  %v9378_v45 = vld [vmem:[#allocation13 + $0x104] ss:$16 sps:$4 sm:$0xff]  }
0x106c   :  { %3805 = vmatpush1.bf16.msra.mxu1 %v9288_v51  ;;  %3846 = vmatpush1.bf16.msra.mxu0 %v9291_v53  ;;  %11122 = vst [vmem:[#allocation61_spill] sm:$0xff] %v9378_v45 }
0x106d   :  { %3806 = vmatprep.subr.bf16.mxu1 %v9294_v54  ;;  %3847 = vmatprep.subr.bf16.mxu0 %v9297_v19 }
0x1070   :  { %3807 = vmatpush1.bf16.msra.mxu1 %v9300_v39  ;;  %3848 = vmatpush1.bf16.msra.mxu0 %v9303_v8 }
0x1071   :  { %3808 = vmatprep.subr.bf16.mxu1 %v9306_v3  ;;  %3849 = vmatprep.subr.bf16.mxu0 %v9309_v63 }
0x1074   :  { %3809 = vmatpush1.bf16.msra.mxu1 %v9312_v15  ;;  %3850 = vmatpush1.bf16.msra.mxu0 %v9315_v26 }
0x1075   :  { %3810 = vmatprep.subr.bf16.mxu1 %v9318_v2  ;;  %3851 = vmatprep.subr.bf16.mxu0 %v9321_v52 }
0x1078   :  { %3811 = vmatpush1.bf16.msra.mxu1 %v9324_v35  ;;  %3852 = vmatpush1.bf16.msra.mxu0 %v9327_v0 }
0x1079   :  { %3812 = vmatprep.subr.bf16.mxu1 %v9330_v50  ;;  %3853 = vmatprep.subr.bf16.mxu0 %v9333_v6 }
0x107c   :  { %3813 = vmatpush1.bf16.msra.mxu1 %v9336_v24  ;;  %3854 = vmatpush1.bf16.msra.mxu0 %v9339_v7 }
0x107d   :  { %3814 = vmatprep.subr.bf16.mxu1 %v9342_v38  ;;  %3855 = vmatprep.subr.bf16.mxu0 %v9345_v11 }
0x1080   :  { %3815 = vmatpush1.bf16.msra.mxu1 %v9348_v43  ;;  %3856 = vmatpush1.bf16.msra.mxu0 %v9351_v47 }
0x1081   :  { %3816 = vmatprep.subr.bf16.mxu1 %v9354_v36  ;;  %3857 = vmatprep.subr.bf16.mxu0 %v9357_v12 }
0x1084   :  { %3817 = vmatpush1.bf16.msra.mxu1 %v9360_v44  ;;  %3858 = vmatpush1.bf16.msra.mxu0 %v9363_v21 }
0x1085   :  { %3818 = vmatprep.subr.bf16.mxu1 %v9366_v55  ;;  %3859 = vmatprep.subr.bf16.mxu0 %v9369_v31  ;;  %v9384_v55 = vld [vmem:[#allocation13 + $0x100] ss:$16 sps:$4 sm:$0xff]   ;;  %v9387_v31 = vld [vmem:[#allocation13 + $0x108] ss:$16 sps:$4 sm:$0xff]  }
0x1086   :  { %11124 = vst [vmem:[#allocation63_spill] sm:$0xff] %v9384_v55  ;;  %11125 = vst [vmem:[#allocation64_spill] sm:$0xff] %v9387_v31 }
0x1088   :  { %3819 = vmatpush1.bf16.msra.mxu1 %v9372_v18  ;;  %3860 = vmatpush1.bf16.msra.mxu0 %v9375_v4  ;;  %v9390_v18 = vld [vmem:[#allocation13 + $0x124] ss:$16 sps:$4 sm:$0xff]   ;;  %v9393_v4 = vld [vmem:[#allocation13 + $0x12c] ss:$16 sps:$4 sm:$0xff]  }
0x1089   :  { %3820 = vmatprep.subr.bf16.mxu1 %v9378_v45  ;;  %3861 = vmatprep.subr.bf16.mxu0 %v9381_v46  ;;  %11126 = vst [vmem:[#allocation65_spill] sm:$0xff] %v9390_v18  ;;  %11127 = vst [vmem:[#allocation66_spill] sm:$0xff] %v9393_v4  ;;  %v9396_v45 = vld [vmem:[#allocation13 + $0x120] ss:$16 sps:$4 sm:$0xff]   ;;  %v9399_v46 = vld [vmem:[#allocation13 + $0x128] ss:$16 sps:$4 sm:$0xff]  }
0x108a   :  { %11128 = vst [vmem:[#allocation67_spill] sm:$0xff] %v9396_v45  ;;  %11129 = vst [vmem:[#allocation68_spill] sm:$0xff] %v9399_v46 }
0x108c   :  { %3821 = vmatpush1.bf16.msra.mxu1 %v9384_v55  ;;  %3862 = vmatpush1.bf16.msra.mxu0 %v9387_v31  ;;  %v9402_v55 = vld [vmem:[#allocation13 + $0x144] ss:$16 sps:$4 sm:$0xff]   ;;  %v9405_v31 = vld [vmem:[#allocation13 + $0x14c] ss:$16 sps:$4 sm:$0xff]  }
0x108d   :  { %3822 = vmatprep.subr.bf16.mxu1 %v9390_v18  ;;  %3863 = vmatprep.subr.bf16.mxu0 %v9393_v4  ;;  %11130 = vst [vmem:[#allocation69_spill] sm:$0xff] %v9402_v55  ;;  %11131 = vst [vmem:[#allocation70_spill] sm:$0xff] %v9405_v31  ;;  %v9408_v18 = vld [vmem:[#allocation13 + $0x140] ss:$16 sps:$4 sm:$0xff]   ;;  %v9411_v4 = vld [vmem:[#allocation13 + $0x148] ss:$16 sps:$4 sm:$0xff]  }
0x108e   :  { %11132 = vst [vmem:[#allocation71_spill] sm:$0xff] %v9408_v18  ;;  %11133 = vst [vmem:[#allocation72_spill] sm:$0xff] %v9411_v4 }
0x1090   :  { %3823 = vmatpush1.bf16.msra.mxu1 %v9396_v45  ;;  %3864 = vmatpush1.bf16.msra.mxu0 %v9399_v46  ;;  %v9414_v45 = vld [vmem:[#allocation13 + $0x164] ss:$16 sps:$4 sm:$0xff]   ;;  %v9417_v46 = vld [vmem:[#allocation13 + $0x16c] ss:$16 sps:$4 sm:$0xff]  }
0x1091   :  { %3824 = vmatprep.subr.bf16.mxu1 %v9402_v55  ;;  %3865 = vmatprep.subr.bf16.mxu0 %v9405_v31  ;;  %11134 = vst [vmem:[#allocation73_spill] sm:$0xff] %v9414_v45  ;;  %11135 = vst [vmem:[#allocation74_spill] sm:$0xff] %v9417_v46  ;;  %v9420_v55 = vld [vmem:[#allocation13 + $0x160] ss:$16 sps:$4 sm:$0xff]   ;;  %v9423_v31 = vld [vmem:[#allocation13 + $0x168] ss:$16 sps:$4 sm:$0xff]  }
0x1092   :  { %11136 = vst [vmem:[#allocation75_spill] sm:$0xff] %v9420_v55  ;;  %11137 = vst [vmem:[#allocation76_spill] sm:$0xff] %v9423_v31 }
0x1094   :  { %3825 = vmatpush1.bf16.msra.mxu1 %v9408_v18  ;;  %3866 = vmatpush1.bf16.msra.mxu0 %v9411_v4  ;;  %v9426_v18 = vld [vmem:[#allocation13 + $0x184] ss:$16 sps:$4 sm:$0xff]   ;;  %v9429_v4 = vld [vmem:[#allocation13 + $0x18c] ss:$16 sps:$4 sm:$0xff]  }
0x1095   :  { %3826 = vmatprep.subr.bf16.mxu1 %v9414_v45  ;;  %3867 = vmatprep.subr.bf16.mxu0 %v9417_v46  ;;  %11138 = vst [vmem:[#allocation77_spill] sm:$0xff] %v9426_v18  ;;  %11139 = vst [vmem:[#allocation78_spill] sm:$0xff] %v9429_v4  ;;  %v9432_v45 = vld [vmem:[#allocation13 + $0x180] ss:$16 sps:$4 sm:$0xff]   ;;  %v9435_v46 = vld [vmem:[#allocation13 + $0x188] ss:$16 sps:$4 sm:$0xff]  }
0x1096   :  { %11140 = vst [vmem:[#allocation79_spill] sm:$0xff] %v9432_v45  ;;  %11141 = vst [vmem:[#allocation80_spill] sm:$0xff] %v9435_v46 }
0x1098   :  { %3827 = vmatpush1.bf16.msra.mxu1 %v9420_v55  ;;  %3868 = vmatpush1.bf16.msra.mxu0 %v9423_v31  ;;  %v9438_v55 = vld [vmem:[#allocation13 + $0x1a4] ss:$16 sps:$4 sm:$0xff]   ;;  %v9441_v31 = vld [vmem:[#allocation13 + $0x1ac] ss:$16 sps:$4 sm:$0xff]  }
0x1099   :  { %3828 = vmatprep.subr.bf16.mxu1 %v9426_v18  ;;  %3869 = vmatprep.subr.bf16.mxu0 %v9429_v4  ;;  %11142 = vst [vmem:[#allocation81_spill] sm:$0xff] %v9438_v55  ;;  %11143 = vst [vmem:[#allocation82_spill] sm:$0xff] %v9441_v31  ;;  %v9444_v18 = vld [vmem:[#allocation13 + $0x1a0] ss:$16 sps:$4 sm:$0xff]   ;;  %v9447_v4 = vld [vmem:[#allocation13 + $0x1a8] ss:$16 sps:$4 sm:$0xff]  }
0x109a   :  { %11144 = vst [vmem:[#allocation83_spill] sm:$0xff] %v9444_v18  ;;  %11145 = vst [vmem:[#allocation84_spill] sm:$0xff] %v9447_v4 }
0x109c   :  { %3829 = vmatpush1.bf16.msra.mxu1 %v9432_v45  ;;  %3870 = vmatpush1.bf16.msra.mxu0 %v9435_v46  ;;  %v9450_v45 = vld [vmem:[#allocation13 + $0x1c4] ss:$16 sps:$4 sm:$0xff]   ;;  %v9453_v46 = vld [vmem:[#allocation13 + $0x1cc] ss:$16 sps:$4 sm:$0xff]  }
0x109d   :  { %3830 = vmatprep.subr.bf16.mxu1 %v9438_v55  ;;  %3871 = vmatprep.subr.bf16.mxu0 %v9441_v31  ;;  %11146 = vst [vmem:[#allocation85_spill] sm:$0xff] %v9450_v45  ;;  %11147 = vst [vmem:[#allocation86_spill] sm:$0xff] %v9453_v46  ;;  %v9456_v55 = vld [vmem:[#allocation13 + $0x1c0] ss:$16 sps:$4 sm:$0xff]   ;;  %v9459_v31 = vld [vmem:[#allocation13 + $0x1c8] ss:$16 sps:$4 sm:$0xff]  }
0x109e   :  { %11148 = vst [vmem:[#allocation87_spill] sm:$0xff] %v9456_v55  ;;  %11149 = vst [vmem:[#allocation88_spill] sm:$0xff] %v9459_v31 }
0x10a0   :  { %3831 = vmatpush1.bf16.msra.mxu1 %v9444_v18  ;;  %3872 = vmatpush1.bf16.msra.mxu0 %v9447_v4  ;;  %v9462_v18 = vld [vmem:[#allocation13 + $0x1e4] ss:$16 sps:$4 sm:$0xff]   ;;  %v9465_v4 = vld [vmem:[#allocation13 + $0x1ec] ss:$16 sps:$4 sm:$0xff]  }
0x10a1   :  { %3832 = vmatprep.subr.bf16.mxu1 %v9450_v45  ;;  %3873 = vmatprep.subr.bf16.mxu0 %v9453_v46  ;;  %11150 = vst [vmem:[#allocation89_spill] sm:$0xff] %v9462_v18  ;;  %11151 = vst [vmem:[#allocation90_spill] sm:$0xff] %v9465_v4  ;;  %v9468_v45 = vld [vmem:[#allocation13 + $0x1e0] ss:$16 sps:$4 sm:$0xff]   ;;  %v9471_v46 = vld [vmem:[#allocation13 + $0x1e8] ss:$16 sps:$4 sm:$0xff]  }
0x10a2   :  { %11152 = vst [vmem:[#allocation91_spill] sm:$0xff] %v9468_v45  ;;  %11153 = vst [vmem:[#allocation92_spill] sm:$0xff] %v9471_v46 }
0x10a4   :  { %3833 = vmatpush1.bf16.msra.mxu1 %v9456_v55  ;;  %3874 = vmatpush1.bf16.msra.mxu0 %v9459_v31  ;;  %v9474_v55 = vld [vmem:[#allocation16 + $0x4] ss:$16 sps:$4 sm:$0xff]   ;;  %v9477_v31 = vld [vmem:[#allocation16 + $0xc] ss:$16 sps:$4 sm:$0xff]  }
0x10a5   :  { %3834 = vmatprep.subr.bf16.mxu1 %v9462_v18  ;;  %3875 = vmatprep.subr.bf16.mxu0 %v9465_v4  ;;  %11154 = vst [vmem:[#allocation93_spill] sm:$0xff] %v9474_v55  ;;  %11155 = vst [vmem:[#allocation94_spill] sm:$0xff] %v9477_v31 }
0x10a8   :  { %3835 = vmatpush1.bf16.msra.mxu1 %v9468_v45  ;;  %3876 = vmatpush1.bf16.msra.mxu0 %v9471_v46 }
0x10a9   :  { %3907 = vmatprep.subr.bf16.mxu1 %v9474_v55  ;;  %3948 = vmatprep.subr.bf16.mxu0 %v9477_v31 }
0x111d   :  { %v3634_v18 = vpop.f32.mrb[84].mxu1  ;;  %v3675_v21 = vpop.f32.mrb[80].mxu0 }
0x111e   :  { %v3635_v4 = vadd.f32 %v3634_v18, %v11040_v37  ;;  %v3636_v44 = vpop.f32.mrb[85].mxu1  ;;  %v3677_v12 = vpop.f32.mrb[81].mxu0  ;;  %v3676_v37 = vadd.f32 %v3675_v21, %v7722_v22 }
0x111f   :  { %v3638_v36 = vpop.f32.mrb[86].mxu1  ;;  %v3679_v45 = vpop.f32.mrb[82].mxu0  ;;  %v3637_v46 = vadd.f32 %v3636_v44, %v11041_v60  ;;  %v3678_v6 = vadd.f32 %v3677_v12, %v11042_v40  ;;  %v11157_v60 = vld [vmem:[#allocation44_spill] sm:$0xff] }
0x1120   :  { %v4747_v47 = vmul.f32 -1.442695, %v3635_v4  ;;  %v3639_v43 = vpop.f32.mrb[87].mxu1  ;;  %v3680_v11 = vpop.f32.mrb[83].mxu0 }
0x1121   :  { %v4748_v38 = vmul.f32 -1.442695, %v3637_v46 }
0x1122   :  { %5641 = vpow2.f32 %v4747_v47 }
0x1123   :  { %5643 = vpow2.f32 %v4748_v38 }
0x112c   :  { %v5642_v55 = vpop.eup %5641 }
0x112d   :  { %v3685_v7 = vadd.f32 1.0, %v5642_v55  ;;  %v5644_v31 = vpop.eup %5643 }
0x112e   :  { %v3691_v24 = vadd.f32 1.0, %v5644_v31  ;;  %v11156_v31 = vld [vmem:[#allocation42_spill] sm:$0xff] }
0x112f   :  { %5645 = vrcp.f32 %v3685_v7 }
0x1130   :  { %5647 = vrcp.f32 %v3691_v24 }
0x1139   :  { %v5646_v18 = vpop.eup %5645 }
0x113a   :  { %v3694_v36 = vmul.f32 %v5646_v18, %v3678_v6  ;;  %v5648_v6 = vpop.eup %5647 }
0x113b   :  { %v3697_v18 = vsub.f32 1.0, %v5648_v6 }
0x113c   :  { %v3695_v4 = vadd.f32 %v3694_v36, %v3676_v37 }
0x113d   :  { %v3735_v43 = vpop.f32.mrb[88].mxu1  ;;  %v3776_v11 = vpop.f32.mrb[84].mxu0 }
0x113e   :  { %5649 = vtanh.f32 %v3695_v4  ;;  %v3736_v47 = vadd.f32 %v3735_v43, %v7344_v27  ;;  %v3737_v46 = vpop.f32.mrb[89].mxu1  ;;  %v5088_v38 = vpop.f32.mrb[85].mxu0  ;;  %v3699_v43 = vmul.f32 %v5648_v6, %v9131_v56  ;;  %v9558_v56 = vld [vmem:[#allocation16 + $0xa4] ss:$16 sps:$4 sm:$0xff]  }
0x113f   :  { %v3738_v44 = vadd.f32 %v3737_v46, %v7347_v29  ;;  %v3739_v7 = vpop.f32.mrb[90].mxu1  ;;  %v3779_v55 = vpop.f32.mrb[86].mxu0  ;;  %11174 = vst [vmem:[#allocation103_spill] sm:$0xff] %v9558_v56 }
0x1140   :  { %v3782_v45 = vadd.f32 %v3736_v47, %v11156_v31  ;;  %v3740_v12 = vpop.f32.mrb[91].mxu1  ;;  %v5089_v40 = vpop.f32.mrb[87].mxu0  ;;  %v11158_v31 = vld [vmem:[#allocation40_spill] sm:$0xff] }
0x1141   :  { %v3789_v21 = vadd.f32 %v3738_v44, %v11157_v60  ;;  %v3777_v40 = vadd.f32 %v3776_v11, %v7356_v14 }
0x1142   :  { %v4749_v24 = vmul.f32 -1.442695, %v3782_v45 }
0x1143   :  { %v4750_v37 = vmul.f32 -1.442695, %v3789_v21 }
0x1144   :  { %5651 = vpow2.f32 %v4749_v24 }
0x1145   :  { %5653 = vpow2.f32 %v4750_v37 }
0x1148   :  { %v5650_v36 = vpop.eup %5649 }
0x1149   :  { %v3698_v4 = vmul.f32 %v5650_v36, %v3697_v18 }
0x114b   :  { %v9489_v38 = vadd.f32 %v3699_v43, %v3698_v4  ;;  %v9504_v4 = vld [vmem:[#allocation16] ss:$16 sps:$4 sm:$0xff]   ;;  %v9510_v43 = vld [vmem:[#allocation16 + $0x24] ss:$16 sps:$4 sm:$0xff]  }
0x114d   :  { %v3906_v11 = vpack.c.bf16 %v9489_v38, %v9489_v38 }
0x114e   :  { %v5652_v46 = vpop.eup %5651 }
0x114f   :  { %v3786_v7 = vadd.f32 1.0, %v5652_v46  ;;  %v5654_v47 = vpop.eup %5653  ;;  %v9513_v46 = vld [vmem:[#allocation16 + $0x2c] ss:$16 sps:$4 sm:$0xff]  }
0x1150   :  { %v3793_v55 = vadd.f32 1.0, %v5654_v47  ;;  %11159 = vst [vmem:[#allocation27_spill] sm:$0xff] %v9513_v46  ;;  %v9519_v47 = vld [vmem:[#allocation16 + $0x28] ss:$16 sps:$4 sm:$0xff]  }
0x1151   :  { %5655 = vrcp.f32 %v3786_v7  ;;  %v9516_v7 = vld [vmem:[#allocation16 + $0x20] ss:$16 sps:$4 sm:$0xff]   ;;  %11161 = vst [vmem:[#allocation31_spill] sm:$0xff] %v9519_v47 }
0x1152   :  { %5657 = vrcp.f32 %v3793_v55  ;;  %11160 = vst [vmem:[#allocation29_spill] sm:$0xff] %v9516_v7  ;;  %v9522_v55 = vld [vmem:[#allocation16 + $0x44] ss:$16 sps:$4 sm:$0xff]  }
0x1153   :  { %11162 = vst [vmem:[#allocation95_spill] sm:$0xff] %v9522_v55 }
0x115b   :  { %v5656_v60 = vpop.eup %5655 }
0x115c   :  { %v3796_v44 = vmul.f32 %v5656_v60, %v3777_v40  ;;  %v5658_v12 = vpop.eup %5657  ;;  %v9525_v40 = vld [vmem:[#allocation16 + $0x4c] ss:$16 sps:$4 sm:$0xff]   ;;  %v9528_v60 = vld [vmem:[#allocation16 + $0x40] ss:$16 sps:$4 sm:$0xff]  }
0x115d   :  { %v3799_v21 = vsub.f32 1.0, %v5658_v12  ;;  %v3801_v37 = vmul.f32 %v5658_v12, %v9136_v58  ;;  %v9507_v58 = vld [vmem:[#allocation16 + $0x8] ss:$16 sps:$4 sm:$0xff]   ;;  %11163 = vst [vmem:[#allocation96_spill] sm:$0xff] %v9525_v40  ;;  %11164 = vst [vmem:[#allocation38_spill] sm:$0xff] %v9528_v60 }
0x115e   :  { %v3797_v45 = vadd.f32 %v3796_v44, %v11158_v31  ;;  %v9531_v44 = vld [vmem:[#allocation16 + $0x48] ss:$16 sps:$4 sm:$0xff]   ;;  %v9534_v31 = vld [vmem:[#allocation16 + $0x64] ss:$16 sps:$4 sm:$0xff]   ;;  %v9540_v12 = vld [vmem:[#allocation16 + $0x60] ss:$16 sps:$4 sm:$0xff]  }
0x115f   :  { %11165 = vst [vmem:[#allocation39_spill] sm:$0xff] %v9531_v44  ;;  %11166 = vst [vmem:[#allocation45_spill] sm:$0xff] %v9534_v31 }
0x1160   :  { %5659 = vtanh.f32 %v3797_v45  ;;  %v9537_v45 = vld [vmem:[#allocation16 + $0x6c] ss:$16 sps:$4 sm:$0xff]   ;;  %11168 = vst [vmem:[#allocation35_spill] sm:$0xff] %v9540_v12 }
0x1161   :  { %11167 = vst [vmem:[#allocation34_spill] sm:$0xff] %v9537_v45 }
0x116a   :  { %v5660_v24 = vpop.eup %5659 }
0x116b   :  { %v3800_v6 = vmul.f32 %v5660_v24, %v3799_v21  ;;  %v9543_v21 = vld [vmem:[#allocation16 + $0x68] ss:$16 sps:$4 sm:$0xff]   ;;  %v9546_v24 = vld [vmem:[#allocation16 + $0x84] ss:$16 sps:$4 sm:$0xff]  }
0x116c   :  { %11169 = vst [vmem:[#allocation30_spill] sm:$0xff] %v9543_v21  ;;  %11170 = vst [vmem:[#allocation99_spill] sm:$0xff] %v9546_v24 }
0x116d   :  { %v9494_v18 = vadd.f32 %v3801_v37, %v3800_v6  ;;  %v9549_v6 = vld [vmem:[#allocation16 + $0x8c] ss:$16 sps:$4 sm:$0xff]   ;;  %v9552_v37 = vld [vmem:[#allocation16 + $0x80] ss:$16 sps:$4 sm:$0xff]  }
0x116e   :  { %11171 = vst [vmem:[#allocation100_spill] sm:$0xff] %v9549_v6  ;;  %11172 = vst [vmem:[#allocation101_spill] sm:$0xff] %v9552_v37 }
0x116f   :  { %v9498_v36 = vpack.c.bf16 %v9494_v18, %v9494_v18 }
0x1171   :  { %3837 = vmatmul.mubr.bf16.vlgmr.msra.gmra.mrb[92].mxu1 %v9498_v36  ;;  %3878 = vmatmul.mubr.bf16.vlgmr.msra.gmra.mrb[88].mxu0 %v9498_v36 }
0x1172   :  { %3939 = vmatprep.mubr.bf16.mxu1 %v3906_v11  ;;  %3980 = vmatprep.mubr.bf16.mxu0 %v3906_v11  ;;  %v9555_v11 = vld [vmem:[#allocation16 + $0x88] ss:$16 sps:$4 sm:$0xff]  }
0x1173   :  { %3908 = vmatpush1.bf16.msra.mxu1 %v9504_v4  ;;  %3949 = vmatpush1.bf16.msra.mxu0 %v9507_v58  ;;  %11173 = vst [vmem:[#allocation102_spill] sm:$0xff] %v9555_v11 }
0x1174   :  { %3909 = vmatprep.subr.bf16.mxu1 %v9510_v43  ;;  %3950 = vmatprep.subr.bf16.mxu0 %v9513_v46 }
0x1177   :  { %3910 = vmatpush1.bf16.msra.mxu1 %v9516_v7  ;;  %3951 = vmatpush1.bf16.msra.mxu0 %v9519_v47 }
0x1178   :  { %3911 = vmatprep.subr.bf16.mxu1 %v9522_v55  ;;  %3952 = vmatprep.subr.bf16.mxu0 %v9525_v40 }
0x117b   :  { %3912 = vmatpush1.bf16.msra.mxu1 %v9528_v60  ;;  %3953 = vmatpush1.bf16.msra.mxu0 %v9531_v44 }
0x117c   :  { %3913 = vmatprep.subr.bf16.mxu1 %v9534_v31  ;;  %3954 = vmatprep.subr.bf16.mxu0 %v9537_v45 }
0x117f   :  { %3914 = vmatpush1.bf16.msra.mxu1 %v9540_v12  ;;  %3955 = vmatpush1.bf16.msra.mxu0 %v9543_v21  ;;  %v9561_v21 = vld [vmem:[#allocation16 + $0xac] ss:$16 sps:$4 sm:$0xff]  }
0x1180   :  { %3915 = vmatprep.subr.bf16.mxu1 %v9546_v24  ;;  %3956 = vmatprep.subr.bf16.mxu0 %v9549_v6  ;;  %11175 = vst [vmem:[#allocation104_spill] sm:$0xff] %v9561_v21  ;;  %v9564_v24 = vld [vmem:[#allocation16 + $0xa0] ss:$16 sps:$4 sm:$0xff]   ;;  %v9567_v6 = vld [vmem:[#allocation16 + $0xa8] ss:$16 sps:$4 sm:$0xff]  }
0x1181   :  { %11176 = vst [vmem:[#allocation105_spill] sm:$0xff] %v9564_v24  ;;  %11177 = vst [vmem:[#allocation106_spill] sm:$0xff] %v9567_v6 }
0x1183   :  { %3916 = vmatpush1.bf16.msra.mxu1 %v9552_v37  ;;  %3957 = vmatpush1.bf16.msra.mxu0 %v9555_v11  ;;  %v9570_v37 = vld [vmem:[#allocation16 + $0xc4] ss:$16 sps:$4 sm:$0xff]   ;;  %v9573_v11 = vld [vmem:[#allocation16 + $0xcc] ss:$16 sps:$4 sm:$0xff]  }
0x1184   :  { %3917 = vmatprep.subr.bf16.mxu1 %v9558_v56  ;;  %3958 = vmatprep.subr.bf16.mxu0 %v9561_v21  ;;  %11178 = vst [vmem:[#allocation107_spill] sm:$0xff] %v9570_v37  ;;  %11179 = vst [vmem:[#allocation108_spill] sm:$0xff] %v9573_v11  ;;  %v9576_v56 = vld [vmem:[#allocation16 + $0xc0] ss:$16 sps:$4 sm:$0xff]   ;;  %v9579_v21 = vld [vmem:[#allocation16 + $0xc8] ss:$16 sps:$4 sm:$0xff]  }
0x1185   :  { %11180 = vst [vmem:[#allocation109_spill] sm:$0xff] %v9576_v56  ;;  %11181 = vst [vmem:[#allocation110_spill] sm:$0xff] %v9579_v21 }
0x1187   :  { %3918 = vmatpush1.bf16.msra.mxu1 %v9564_v24  ;;  %3959 = vmatpush1.bf16.msra.mxu0 %v9567_v6  ;;  %v9582_v24 = vld [vmem:[#allocation16 + $0xe4] ss:$16 sps:$4 sm:$0xff]   ;;  %v9585_v6 = vld [vmem:[#allocation16 + $0xec] ss:$16 sps:$4 sm:$0xff]  }
0x1188   :  { %3919 = vmatprep.subr.bf16.mxu1 %v9570_v37  ;;  %3960 = vmatprep.subr.bf16.mxu0 %v9573_v11  ;;  %11182 = vst [vmem:[#allocation111_spill] sm:$0xff] %v9582_v24  ;;  %11183 = vst [vmem:[#allocation112_spill] sm:$0xff] %v9585_v6  ;;  %v9588_v37 = vld [vmem:[#allocation16 + $0xe0] ss:$16 sps:$4 sm:$0xff]   ;;  %v9591_v11 = vld [vmem:[#allocation16 + $0xe8] ss:$16 sps:$4 sm:$0xff]  }
0x1189   :  { %11184 = vst [vmem:[#allocation113_spill] sm:$0xff] %v9588_v37  ;;  %11185 = vst [vmem:[#allocation114_spill] sm:$0xff] %v9591_v11 }
0x118b   :  { %3920 = vmatpush1.bf16.msra.mxu1 %v9576_v56  ;;  %3961 = vmatpush1.bf16.msra.mxu0 %v9579_v21  ;;  %v9594_v56 = vld [vmem:[#allocation16 + $0x104] ss:$16 sps:$4 sm:$0xff]   ;;  %v9597_v21 = vld [vmem:[#allocation16 + $0x10c] ss:$16 sps:$4 sm:$0xff]  }
0x118c   :  { %3921 = vmatprep.subr.bf16.mxu1 %v9582_v24  ;;  %3962 = vmatprep.subr.bf16.mxu0 %v9585_v6  ;;  %11186 = vst [vmem:[#allocation115_spill] sm:$0xff] %v9594_v56  ;;  %11187 = vst [vmem:[#allocation116_spill] sm:$0xff] %v9597_v21  ;;  %v9600_v24 = vld [vmem:[#allocation16 + $0x100] ss:$16 sps:$4 sm:$0xff]   ;;  %v9603_v6 = vld [vmem:[#allocation16 + $0x108] ss:$16 sps:$4 sm:$0xff]  }
0x118d   :  { %11188 = vst [vmem:[#allocation117_spill] sm:$0xff] %v9600_v24  ;;  %11189 = vst [vmem:[#allocation118_spill] sm:$0xff] %v9603_v6 }
0x118f   :  { %3922 = vmatpush1.bf16.msra.mxu1 %v9588_v37  ;;  %3963 = vmatpush1.bf16.msra.mxu0 %v9591_v11  ;;  %v9606_v37 = vld [vmem:[#allocation16 + $0x124] ss:$16 sps:$4 sm:$0xff]   ;;  %v9609_v11 = vld [vmem:[#allocation16 + $0x12c] ss:$16 sps:$4 sm:$0xff]  }
0x1190   :  { %3923 = vmatprep.subr.bf16.mxu1 %v9594_v56  ;;  %3964 = vmatprep.subr.bf16.mxu0 %v9597_v21  ;;  %11190 = vst [vmem:[#allocation119_spill] sm:$0xff] %v9606_v37  ;;  %11191 = vst [vmem:[#allocation120_spill] sm:$0xff] %v9609_v11  ;;  %v9612_v56 = vld [vmem:[#allocation16 + $0x120] ss:$16 sps:$4 sm:$0xff]   ;;  %v9615_v21 = vld [vmem:[#allocation16 + $0x128] ss:$16 sps:$4 sm:$0xff]  }
0x1191   :  { %11192 = vst [vmem:[#allocation121_spill] sm:$0xff] %v9612_v56  ;;  %11193 = vst [vmem:[#allocation122_spill] sm:$0xff] %v9615_v21 }
0x1193   :  { %3924 = vmatpush1.bf16.msra.mxu1 %v9600_v24  ;;  %3965 = vmatpush1.bf16.msra.mxu0 %v9603_v6  ;;  %v9618_v24 = vld [vmem:[#allocation16 + $0x144] ss:$16 sps:$4 sm:$0xff]   ;;  %v9621_v6 = vld [vmem:[#allocation16 + $0x14c] ss:$16 sps:$4 sm:$0xff]  }
0x1194   :  { %3925 = vmatprep.subr.bf16.mxu1 %v9606_v37  ;;  %3966 = vmatprep.subr.bf16.mxu0 %v9609_v11  ;;  %11194 = vst [vmem:[#allocation123_spill] sm:$0xff] %v9618_v24  ;;  %11195 = vst [vmem:[#allocation124_spill] sm:$0xff] %v9621_v6  ;;  %v9624_v37 = vld [vmem:[#allocation16 + $0x140] ss:$16 sps:$4 sm:$0xff]   ;;  %v9627_v11 = vld [vmem:[#allocation16 + $0x148] ss:$16 sps:$4 sm:$0xff]  }
0x1195   :  { %11196 = vst [vmem:[#allocation125_spill] sm:$0xff] %v9624_v37  ;;  %11197 = vst [vmem:[#allocation126_spill] sm:$0xff] %v9627_v11 }
0x1197   :  { %3926 = vmatpush1.bf16.msra.mxu1 %v9612_v56  ;;  %3967 = vmatpush1.bf16.msra.mxu0 %v9615_v21  ;;  %v9630_v56 = vld [vmem:[#allocation16 + $0x164] ss:$16 sps:$4 sm:$0xff]   ;;  %v9633_v21 = vld [vmem:[#allocation16 + $0x16c] ss:$16 sps:$4 sm:$0xff]  }
0x1198   :  { %3927 = vmatprep.subr.bf16.mxu1 %v9618_v24  ;;  %3968 = vmatprep.subr.bf16.mxu0 %v9621_v6  ;;  %11198 = vst [vmem:[#allocation127_spill] sm:$0xff] %v9630_v56  ;;  %11199 = vst [vmem:[#allocation128_spill] sm:$0xff] %v9633_v21  ;;  %v9636_v24 = vld [vmem:[#allocation16 + $0x160] ss:$16 sps:$4 sm:$0xff]   ;;  %v9639_v6 = vld [vmem:[#allocation16 + $0x168] ss:$16 sps:$4 sm:$0xff]  }
0x1199   :  { %11200 = vst [vmem:[#allocation129_spill] sm:$0xff] %v9636_v24  ;;  %11201 = vst [vmem:[#allocation130_spill] sm:$0xff] %v9639_v6 }
0x119b   :  { %3928 = vmatpush1.bf16.msra.mxu1 %v9624_v37  ;;  %3969 = vmatpush1.bf16.msra.mxu0 %v9627_v11  ;;  %v9642_v37 = vld [vmem:[#allocation16 + $0x184] ss:$16 sps:$4 sm:$0xff]   ;;  %v9645_v11 = vld [vmem:[#allocation16 + $0x18c] ss:$16 sps:$4 sm:$0xff]  }
0x119c   :  { %3929 = vmatprep.subr.bf16.mxu1 %v9630_v56  ;;  %3970 = vmatprep.subr.bf16.mxu0 %v9633_v21  ;;  %11202 = vst [vmem:[#allocation131_spill] sm:$0xff] %v9642_v37  ;;  %11203 = vst [vmem:[#allocation132_spill] sm:$0xff] %v9645_v11  ;;  %v9648_v56 = vld [vmem:[#allocation16 + $0x180] ss:$16 sps:$4 sm:$0xff]   ;;  %v9651_v21 = vld [vmem:[#allocation16 + $0x188] ss:$16 sps:$4 sm:$0xff]  }
0x119d   :  { %11204 = vst [vmem:[#allocation133_spill] sm:$0xff] %v9648_v56  ;;  %11205 = vst [vmem:[#allocation134_spill] sm:$0xff] %v9651_v21 }
0x119f   :  { %3930 = vmatpush1.bf16.msra.mxu1 %v9636_v24  ;;  %3971 = vmatpush1.bf16.msra.mxu0 %v9639_v6  ;;  %v9654_v24 = vld [vmem:[#allocation16 + $0x1a4] ss:$16 sps:$4 sm:$0xff]   ;;  %v9657_v6 = vld [vmem:[#allocation16 + $0x1ac] ss:$16 sps:$4 sm:$0xff]  }
0x11a0   :  { %3931 = vmatprep.subr.bf16.mxu1 %v9642_v37  ;;  %3972 = vmatprep.subr.bf16.mxu0 %v9645_v11  ;;  %11206 = vst [vmem:[#allocation135_spill] sm:$0xff] %v9654_v24  ;;  %11207 = vst [vmem:[#allocation136_spill] sm:$0xff] %v9657_v6  ;;  %v9660_v37 = vld [vmem:[#allocation16 + $0x1a0] ss:$16 sps:$4 sm:$0xff]   ;;  %v9663_v11 = vld [vmem:[#allocation16 + $0x1a8] ss:$16 sps:$4 sm:$0xff]  }
0x11a1   :  { %11208 = vst [vmem:[#allocation137_spill] sm:$0xff] %v9660_v37  ;;  %11209 = vst [vmem:[#allocation138_spill] sm:$0xff] %v9663_v11 }
0x11a3   :  { %3932 = vmatpush1.bf16.msra.mxu1 %v9648_v56  ;;  %3973 = vmatpush1.bf16.msra.mxu0 %v9651_v21  ;;  %v9666_v56 = vld [vmem:[#allocation16 + $0x1c4] ss:$16 sps:$4 sm:$0xff]   ;;  %v9669_v21 = vld [vmem:[#allocation16 + $0x1cc] ss:$16 sps:$4 sm:$0xff]  }
0x11a4   :  { %3933 = vmatprep.subr.bf16.mxu1 %v9654_v24  ;;  %3974 = vmatprep.subr.bf16.mxu0 %v9657_v6  ;;  %11210 = vst [vmem:[#allocation139_spill] sm:$0xff] %v9666_v56  ;;  %11211 = vst [vmem:[#allocation140_spill] sm:$0xff] %v9669_v21  ;;  %v9672_v24 = vld [vmem:[#allocation16 + $0x1c0] ss:$16 sps:$4 sm:$0xff]   ;;  %v9675_v6 = vld [vmem:[#allocation16 + $0x1c8] ss:$16 sps:$4 sm:$0xff]  }
0x11a5   :  { %11212 = vst [vmem:[#allocation141_spill] sm:$0xff] %v9672_v24  ;;  %11213 = vst [vmem:[#allocation142_spill] sm:$0xff] %v9675_v6 }
0x11a7   :  { %3934 = vmatpush1.bf16.msra.mxu1 %v9660_v37  ;;  %3975 = vmatpush1.bf16.msra.mxu0 %v9663_v11  ;;  %v9678_v37 = vld [vmem:[#allocation16 + $0x1e4] ss:$16 sps:$4 sm:$0xff]   ;;  %v9681_v11 = vld [vmem:[#allocation16 + $0x1ec] ss:$16 sps:$4 sm:$0xff]  }
0x11a8   :  { %3935 = vmatprep.subr.bf16.mxu1 %v9666_v56  ;;  %3976 = vmatprep.subr.bf16.mxu0 %v9669_v21  ;;  %11214 = vst [vmem:[#allocation143_spill] sm:$0xff] %v9678_v37  ;;  %11215 = vst [vmem:[#allocation144_spill] sm:$0xff] %v9681_v11  ;;  %v9684_v56 = vld [vmem:[#allocation16 + $0x1e0] ss:$16 sps:$4 sm:$0xff]   ;;  %v9687_v21 = vld [vmem:[#allocation16 + $0x1e8] ss:$16 sps:$4 sm:$0xff]  }
0x11a9   :  { %11216 = vst [vmem:[#allocation145_spill] sm:$0xff] %v9684_v56  ;;  %11217 = vst [vmem:[#allocation146_spill] sm:$0xff] %v9687_v21 }
0x11ab   :  { %3936 = vmatpush1.bf16.msra.mxu1 %v9672_v24  ;;  %3977 = vmatpush1.bf16.msra.mxu0 %v9675_v6 }
0x11ac   :  { %3937 = vmatprep.subr.bf16.mxu1 %v9678_v37  ;;  %3978 = vmatprep.subr.bf16.mxu0 %v9681_v11 }
0x11af   :  { %3938 = vmatpush1.bf16.msra.mxu1 %v9684_v56  ;;  %3979 = vmatpush1.bf16.msra.mxu0 %v9687_v21 }
0x11b0   :  { %4008 = vmatprep.subr.bf16.mxu1 %v9208_v57  ;;  %5090 = vmatprep.subr.bf16.mxu0 %v10530_v61 }
0x1244   :  { %v3838_v6 = vpop.f32.mrb[92].mxu1  ;;  %v3879_v24 = vpop.f32.mrb[88].mxu0 }
0x1245   :  { %v3839_v37 = vadd.f32 %v3838_v6, %v11106_v62  ;;  %v3840_v12 = vpop.f32.mrb[93].mxu1  ;;  %v3881_v45 = vpop.f32.mrb[89].mxu0  ;;  %v3880_v62 = vadd.f32 %v3879_v24, %v7576_v9  ;;  %v6206_v24 = vld [vmem:[#allocation8 + $0x30] ss:$12 sps:$4 sm:$0xff]  }
0x1246   :  { %v3842_v31 = vpop.f32.mrb[94].mxu1  ;;  %v3883_v11 = vpop.f32.mrb[90].mxu0  ;;  %v3841_v56 = vadd.f32 %v3840_v12, %v10650_v30  ;;  %v3882_v46 = vadd.f32 %v3881_v45, %v7573_v1  ;;  %v6200_v45 = vld [vmem:[#allocation8] ss:$12 sps:$4 sm:$0xff]  }
0x1247   :  { %v4751_v44 = vmul.f32 -1.442695, %v3839_v37  ;;  %v3843_v60 = vpop.f32.mrb[95].mxu1  ;;  %v3884_v40 = vpop.f32.mrb[91].mxu0  ;;  %v6207_v11 = vld [vmem:[#allocation8 + $0x38] ss:$12 sps:$4 sm:$0xff]  }
0x1248   :  { %v4752_v55 = vmul.f32 -1.442695, %v3841_v56 }
0x1249   :  { %5661 = vpow2.f32 %v4751_v44 }
0x124a   :  { %5663 = vpow2.f32 %v4752_v55 }
0x1253   :  { %v5662_v21 = vpop.eup %5661 }
0x1254   :  { %v3889_v57 = vadd.f32 1.0, %v5662_v21  ;;  %v5664_v47 = vpop.eup %5663  ;;  %v6201_v21 = vld [vmem:[#allocation8 + $0x8] ss:$12 sps:$4 sm:$0xff]  }
0x1255   :  { %v3895_v7 = vadd.f32 1.0, %v5664_v47 }
0x1256   :  { %5665 = vrcp.f32 %v3889_v57  ;;  %v6208_v57 = vld [vmem:[#allocation8 + $0x4c] ss:$12 sps:$4 sm:$0xff]  }
0x1257   :  { %5667 = vrcp.f32 %v3895_v7  ;;  %v6205_v7 = vld [vmem:[#allocation8 + $0x34] ss:$12 sps:$4 sm:$0xff]  }
0x1260   :  { %v5666_v6 = vpop.eup %5665 }
0x1261   :  { %v3898_v31 = vmul.f32 %v5666_v6, %v3882_v46  ;;  %v5668_v40 = vpop.eup %5667  ;;  %v6202_v46 = vld [vmem:[#allocation8 + $0x1c] ss:$12 sps:$4 sm:$0xff]  }
0x1262   :  { %v3901_v60 = vsub.f32 1.0, %v5668_v40  ;;  %v3903_v56 = vmul.f32 %v5668_v40, %v9217_v34  ;;  %v6204_v34 = vld [vmem:[#allocation8 + $0x20] ss:$12 sps:$4 sm:$0xff]   ;;  %v11250_v6 = vld [vmem:[#allocation78_spill] sm:$0xff] }
0x1263   :  { %v3899_v37 = vadd.f32 %v3898_v31, %v3880_v62  ;;  %v6203_v62 = vld [vmem:[#allocation8 + $0x18] ss:$12 sps:$4 sm:$0xff]   ;;  %v11251_v31 = vld [vmem:[#allocation79_spill] sm:$0xff]  ;;  %v11253_v40 = vld [vmem:[#allocation81_spill] sm:$0xff] }
0x1265   :  { %5669 = vtanh.f32 %v3899_v37  ;;  %v11252_v37 = vld [vmem:[#allocation80_spill] sm:$0xff] }
0x126f   :  { %v5670_v12 = vpop.eup %5669 }
0x1270   :  { %v3902_v44 = vmul.f32 %v5670_v12, %v3901_v60  ;;  %v11254_v60 = vld [vmem:[#allocation82_spill] sm:$0xff]  ;;  %v11255_v12 = vld [vmem:[#allocation83_spill] sm:$0xff] }
0x1272   :  { %v9697_v55 = vadd.f32 %v3903_v56, %v3902_v44  ;;  %v11256_v44 = vld [vmem:[#allocation84_spill] sm:$0xff]  ;;  %v11257_v56 = vld [vmem:[#allocation85_spill] sm:$0xff] }
0x1274   :  { %v3905_v47 = vpack.c.bf16 %v9697_v55, %v9697_v55 }
0x1276   :  { %3940 = vmatmul.mubr.bf16.vlgmr.msra.gmra.mrb[96].mxu1 %v3905_v47  ;;  %3981 = vmatmul.mubr.bf16.vlgmr.msra.gmra.mrb[92].mxu0 %v3905_v47 }
0x1277   :  { %4009 = vmatpush1.bf16.msra.mxu1 %v6200_v45  ;;  %5091 = vmatpush3.bf16.msra.mxu0 %v6201_v21  ;;  %v11259_v45 = vld [vmem:[#allocation87_spill] sm:$0xff]  ;;  %v11260_v21 = vld [vmem:[#allocation88_spill] sm:$0xff] }
0x1278   :  { %4010 = vmatprep.subr.bf16.mxu1 %v6202_v46  ;;  %5092 = vmatprep.subr.bf16.mxu0 %v10530_v61  ;;  %v11261_v46 = vld [vmem:[#allocation89_spill] sm:$0xff] }
0x1279   :  { %4040 = vmatprep.mubr.bf16.mxu1 %v10533_v23  ;;  %5106 = vmatprep.mubr.msk.bf16.mxu0 %vm6485_vm0, %v10530_v61  ;;  %v6209_v23 = vld [vmem:[#allocation8 + $0x48] ss:$12 sps:$4 sm:$0xff]  }
0x127b   :  { %4011 = vmatpush1.bf16.msra.mxu1 %v6203_v62  ;;  %5093 = vmatpush3.bf16.msra.mxu0 %v6204_v34  ;;  %v11262_v62 = vld [vmem:[#allocation90_spill] sm:$0xff]  ;;  %v11263_v34 = vld [vmem:[#allocation91_spill] sm:$0xff] }
0x127c   :  { %4012 = vmatprep.subr.bf16.mxu1 %v6205_v7  ;;  %5094 = vmatprep.subr.bf16.mxu0 %v10530_v61  ;;  %v11264_v7 = vld [vmem:[#allocation92_spill] sm:$0xff] }
0x127f   :  { %4013 = vmatpush1.bf16.msra.mxu1 %v6206_v24  ;;  %5095 = vmatpush3.bf16.msra.mxu0 %v6207_v11  ;;  %v11265_v24 = vld [vmem:[#allocation93_spill] sm:$0xff]  ;;  %v11266_v11 = vld [vmem:[#allocation94_spill] sm:$0xff] }
0x1280   :  { %4014 = vmatprep.subr.bf16.mxu1 %v6208_v57  ;;  %5096 = vmatprep.subr.bf16.mxu0 %v10530_v61 }
0x1283   :  { %4015 = vmatpush1.bf16.msra.mxu1 %v6209_v23  ;;  %5097 = vmatpush3.bf16.msra.mxu0 %v9237_v5  ;;  %v11219_v5 = vld [vmem:[#allocation32_spill] sm:$0xff] }
0x1284   :  { %4016 = vmatprep.subr.bf16.mxu1 %v9240_v33  ;;  %5098 = vmatprep.subr.bf16.mxu0 %v10530_v61  ;;  %v11220_v33 = vld [vmem:[#allocation36_spill] sm:$0xff] }
0x1287   :  { %4017 = vmatpush1.bf16.msra.mxu1 %v9244_v16  ;;  %5099 = vmatpush3.bf16.msra.mxu0 %v9247_v59  ;;  %v11221_v16 = vld [vmem:[#allocation37_spill] sm:$0xff] }
0x1288   :  { %4018 = vmatprep.subr.bf16.mxu1 %v9250_v10  ;;  %5100 = vmatprep.subr.bf16.mxu0 %v10530_v61  ;;  %v11222_v59 = vld [vmem:[#allocation41_spill] sm:$0xff]  ;;  %v11223_v10 = vld [vmem:[#allocation28_spill] sm:$0xff] }
0x128b   :  { %4019 = vmatpush1.bf16.msra.mxu1 %v9254_v25  ;;  %5101 = vmatpush3.bf16.msra.mxu0 %v9257_v41  ;;  %v11224_v25 = vld [vmem:[#allocation52_spill] sm:$0xff]  ;;  %v11225_v41 = vld [vmem:[#allocation53_spill] sm:$0xff] }
0x128c   :  { %4020 = vmatprep.subr.bf16.mxu1 %v9260_v13  ;;  %5102 = vmatprep.subr.bf16.mxu0 %v10530_v61  ;;  %v11226_v13 = vld [vmem:[#allocation54_spill] sm:$0xff] }
0x128f   :  { %4021 = vmatpush1.bf16.msra.mxu1 %v9264_v17  ;;  %5103 = vmatpush3.bf16.msra.mxu0 %v9267_v42  ;;  %v11227_v17 = vld [vmem:[#allocation55_spill] sm:$0xff]  ;;  %v11228_v42 = vld [vmem:[#allocation56_spill] sm:$0xff] }
0x1290   :  { %4022 = vmatprep.subr.bf16.mxu1 %v9270_v32  ;;  %5104 = vmatprep.subr.bf16.mxu0 %v10530_v61  ;;  %v11218_v61 = vld [vmem:[#allocation157_spill] sm:$0xff] }
0x1291   :  { %v11229_v32 = vld [vmem:[#allocation57_spill] sm:$0xff] }
0x1293   :  { %4023 = vmatpush1.bf16.msra.mxu1 %v9274_v48  ;;  %5105 = vmatpush3.bf16.msra.mxu0 %v9277_v28  ;;  %v11230_v48 = vld [vmem:[#allocation58_spill] sm:$0xff]  ;;  %v11231_v28 = vld [vmem:[#allocation59_spill] sm:$0xff] }
0x1294   :  { %4111 = vmatprep.subr.bf16.mxu1 %v9280_v20  ;;  %4152 = vmatprep.subr.bf16.mxu0 %v9283_v49  ;;  %v11232_v20 = vld [vmem:[#allocation60_spill] sm:$0xff]  ;;  %v11233_v49 = vld [vmem:[#allocation61_spill] sm:$0xff] }
0x1296   :  { %4041 = vmatmul.mubr.bf16.vlgmr.msra.gmra.mrb[100].mxu1 %v9498_v36  ;;  %5107 = vmatmul.mubr.bf16.vlgmr.msra.gmra.mrb[96].mxu0 %v9498_v36  ;;  %v11249_v36 = vld [vmem:[#allocation77_spill] sm:$0xff] }
0x1297   :  { %4143 = vmatprep.mubr.bf16.mxu1 %v3905_v47  ;;  %4184 = vmatprep.mubr.bf16.mxu0 %v3905_v47  ;;  %v11258_v47 = vld [vmem:[#allocation86_spill] sm:$0xff] }
0x1298   :  { %4112 = vmatpush1.bf16.msra.mxu1 %v9288_v51  ;;  %4153 = vmatpush1.bf16.msra.mxu0 %v9291_v53  ;;  %v11234_v51 = vld [vmem:[#allocation62_spill] sm:$0xff]  ;;  %v11235_v53 = vld [vmem:[#allocation63_spill] sm:$0xff] }
0x1299   :  { %4113 = vmatprep.subr.bf16.mxu1 %v9294_v54  ;;  %4154 = vmatprep.subr.bf16.mxu0 %v9297_v19  ;;  %v11236_v54 = vld [vmem:[#allocation64_spill] sm:$0xff]  ;;  %v11237_v19 = vld [vmem:[#allocation65_spill] sm:$0xff] }
0x129c   :  { %4114 = vmatpush1.bf16.msra.mxu1 %v9300_v39  ;;  %4155 = vmatpush1.bf16.msra.mxu0 %v9303_v8  ;;  %v11238_v39 = vld [vmem:[#allocation66_spill] sm:$0xff]  ;;  %v11239_v8 = vld [vmem:[#allocation67_spill] sm:$0xff] }
0x129d   :  { %4115 = vmatprep.subr.bf16.mxu1 %v9306_v3  ;;  %4156 = vmatprep.subr.bf16.mxu0 %v9309_v63  ;;  %v11240_v3 = vld [vmem:[#allocation68_spill] sm:$0xff]  ;;  %v11241_v63 = vld [vmem:[#allocation69_spill] sm:$0xff] }
0x12a0   :  { %4116 = vmatpush1.bf16.msra.mxu1 %v9312_v15  ;;  %4157 = vmatpush1.bf16.msra.mxu0 %v9315_v26  ;;  %v11242_v15 = vld [vmem:[#allocation70_spill] sm:$0xff]  ;;  %v11243_v26 = vld [vmem:[#allocation71_spill] sm:$0xff] }
0x12a1   :  { %4117 = vmatprep.subr.bf16.mxu1 %v9318_v2  ;;  %4158 = vmatprep.subr.bf16.mxu0 %v9321_v52  ;;  %v11244_v2 = vld [vmem:[#allocation72_spill] sm:$0xff]  ;;  %v11245_v52 = vld [vmem:[#allocation73_spill] sm:$0xff] }
0x12a4   :  { %4118 = vmatpush1.bf16.msra.mxu1 %v9324_v35  ;;  %4159 = vmatpush1.bf16.msra.mxu0 %v9327_v0  ;;  %v11246_v35 = vld [vmem:[#allocation74_spill] sm:$0xff]  ;;  %v11247_v0 = vld [vmem:[#allocation75_spill] sm:$0xff] }
0x12a5   :  { %4119 = vmatprep.subr.bf16.mxu1 %v9330_v50  ;;  %4160 = vmatprep.subr.bf16.mxu0 %v11218_v61  ;;  %v11248_v50 = vld [vmem:[#allocation76_spill] sm:$0xff] }
0x12a6   :  { %v11267_v61 = vld [vmem:[#allocation48_spill] sm:$0xff] }
0x12a8   :  { %4120 = vmatpush1.bf16.msra.mxu1 %v11219_v5  ;;  %4161 = vmatpush1.bf16.msra.mxu0 %v11220_v33 }
0x12a9   :  { %4121 = vmatprep.subr.bf16.mxu1 %v11221_v16  ;;  %4162 = vmatprep.subr.bf16.mxu0 %v11222_v59 }
0x12ac   :  { %4122 = vmatpush1.bf16.msra.mxu1 %v11223_v10  ;;  %4163 = vmatpush1.bf16.msra.mxu0 %v11224_v25 }
0x12ad   :  { %4123 = vmatprep.subr.bf16.mxu1 %v11225_v41  ;;  %4164 = vmatprep.subr.bf16.mxu0 %v11226_v13 }
0x12b0   :  { %4124 = vmatpush1.bf16.msra.mxu1 %v11227_v17  ;;  %4165 = vmatpush1.bf16.msra.mxu0 %v11228_v42  ;;  %v11268_v17 = vld [vmem:[#allocation49_spill] sm:$0xff] }
0x12b1   :  { %4125 = vmatprep.subr.bf16.mxu1 %v11229_v32  ;;  %4166 = vmatprep.subr.bf16.mxu0 %v11230_v48 }
0x12b4   :  { %4126 = vmatpush1.bf16.msra.mxu1 %v11231_v28  ;;  %4167 = vmatpush1.bf16.msra.mxu0 %v11232_v20 }
0x12b5   :  { %4127 = vmatprep.subr.bf16.mxu1 %v11233_v49  ;;  %4168 = vmatprep.subr.bf16.mxu0 %v11234_v51  ;;  %v11269_v51 = vld [vmem:[#allocation50_spill] sm:$0xff] }
0x12b8   :  { %4128 = vmatpush1.bf16.msra.mxu1 %v11235_v53  ;;  %4169 = vmatpush1.bf16.msra.mxu0 %v11236_v54 }
0x12b9   :  { %4129 = vmatprep.subr.bf16.mxu1 %v11237_v19  ;;  %4170 = vmatprep.subr.bf16.mxu0 %v11238_v39 }
0x12bc   :  { %4130 = vmatpush1.bf16.msra.mxu1 %v11239_v8  ;;  %4171 = vmatpush1.bf16.msra.mxu0 %v11240_v3 }
0x12bd   :  { %4131 = vmatprep.subr.bf16.mxu1 %v11241_v63  ;;  %4172 = vmatprep.subr.bf16.mxu0 %v11242_v15 }
0x12c0   :  { %4132 = vmatpush1.bf16.msra.mxu1 %v11243_v26  ;;  %4173 = vmatpush1.bf16.msra.mxu0 %v11244_v2 }
0x12c1   :  { %4133 = vmatprep.subr.bf16.mxu1 %v11245_v52  ;;  %4174 = vmatprep.subr.bf16.mxu0 %v11246_v35 }
0x12c4   :  { %4134 = vmatpush1.bf16.msra.mxu1 %v11247_v0  ;;  %4175 = vmatpush1.bf16.msra.mxu0 %v11248_v50  ;;  %v11270_v50 = vld [vmem:[#allocation46_spill] sm:$0xff] }
0x12c5   :  { %4135 = vmatprep.subr.bf16.mxu1 %v11249_v36  ;;  %4176 = vmatprep.subr.bf16.mxu0 %v11250_v6 }
0x12c8   :  { %4136 = vmatpush1.bf16.msra.mxu1 %v11251_v31  ;;  %4177 = vmatpush1.bf16.msra.mxu0 %v11252_v37  ;;  %v11271_v37 = vld [vmem:[#allocation47_spill] sm:$0xff] }
0x12c9   :  { %4137 = vmatprep.subr.bf16.mxu1 %v11253_v40  ;;  %4178 = vmatprep.subr.bf16.mxu0 %v11254_v60 }
0x12cc   :  { %4138 = vmatpush1.bf16.msra.mxu1 %v11255_v12  ;;  %4179 = vmatpush1.bf16.msra.mxu0 %v11256_v44 }
0x12cd   :  { %4139 = vmatprep.subr.bf16.mxu1 %v11257_v56  ;;  %4180 = vmatprep.subr.bf16.mxu0 %v11258_v47 }
0x12d0   :  { %4140 = vmatpush1.bf16.msra.mxu1 %v11259_v45  ;;  %4181 = vmatpush1.bf16.msra.mxu0 %v11260_v21 }
0x12d1   :  { %4141 = vmatprep.subr.bf16.mxu1 %v11261_v46  ;;  %4182 = vmatprep.subr.bf16.mxu0 %v11262_v62 }
0x12d4   :  { %4142 = vmatpush1.bf16.msra.mxu1 %v11263_v34  ;;  %4183 = vmatpush1.bf16.msra.mxu0 %v11264_v7 }
0x12d5   :  { %4214 = vmatprep.subr.bf16.mxu1 %v11265_v24  ;;  %4255 = vmatprep.subr.bf16.mxu0 %v11266_v11 }
0x1349   :  { %v3941_v57 = vpop.f32.mrb[96].mxu1  ;;  %v3982_v23 = vpop.f32.mrb[92].mxu0 }
0x134a   :  { %v3942_v5 = vadd.f32 %v3941_v57, %v11267_v61  ;;  %v3943_v33 = vpop.f32.mrb[97].mxu1  ;;  %v3984_v16 = vpop.f32.mrb[93].mxu0  ;;  %v3983_v19 = vadd.f32 %v3982_v23, %v7722_v22  ;;  %v11272_v57 = vld [vmem:[#allocation43_spill] sm:$0xff] }
0x134b   :  { %v3945_v59 = vpop.f32.mrb[98].mxu1  ;;  %v3986_v10 = vpop.f32.mrb[94].mxu0  ;;  %v3944_v42 = vadd.f32 %v3943_v33, %v11268_v17  ;;  %v3985_v53 = vadd.f32 %v3984_v16, %v11269_v51 }
0x134c   :  { %v4753_v25 = vmul.f32 -1.442695, %v3942_v5  ;;  %v3946_v41 = vpop.f32.mrb[99].mxu1  ;;  %v3987_v13 = vpop.f32.mrb[95].mxu0 }
0x134d   :  { %v4754_v32 = vmul.f32 -1.442695, %v3944_v42  ;;  %v11274_v42 = vld [vmem:[#allocation29_spill] sm:$0xff] }
0x134e   :  { %5671 = vpow2.f32 %v4753_v25 }
0x134f   :  { %5673 = vpow2.f32 %v4754_v32  ;;  %v11276_v32 = vld [vmem:[#allocation95_spill] sm:$0xff] }
0x1358   :  { %v5672_v48 = vpop.eup %5671 }
0x1359   :  { %v3992_v28 = vadd.f32 1.0, %v5672_v48  ;;  %v5674_v20 = vpop.eup %5673  ;;  %v11277_v48 = vld [vmem:[#allocation96_spill] sm:$0xff] }
0x135a   :  { %v3998_v49 = vadd.f32 1.0, %v5674_v20  ;;  %v11279_v20 = vld [vmem:[#allocation39_spill] sm:$0xff] }
0x135b   :  { %5675 = vrcp.f32 %v3992_v28  ;;  %v11278_v28 = vld [vmem:[#allocation38_spill] sm:$0xff] }
0x135c   :  { %5677 = vrcp.f32 %v3998_v49  ;;  %v11280_v49 = vld [vmem:[#allocation45_spill] sm:$0xff] }
0x1365   :  { %v5676_v54 = vpop.eup %5675 }
0x1366   :  { %v4001_v39 = vmul.f32 %v5676_v54, %v3985_v53  ;;  %v5678_v12 = vpop.eup %5677  ;;  %v11284_v53 = vld [vmem:[#allocation99_spill] sm:$0xff]  ;;  %v11285_v54 = vld [vmem:[#allocation100_spill] sm:$0xff] }
0x1367   :  { %v4004_v56 = vsub.f32 1.0, %v5678_v12 }
0x1368   :  { %v4002_v8 = vadd.f32 %v4001_v39, %v3983_v19  ;;  %v11286_v19 = vld [vmem:[#allocation101_spill] sm:$0xff]  ;;  %v11287_v39 = vld [vmem:[#allocation102_spill] sm:$0xff] }
0x1369   :  { %v4042_v3 = vpop.f32.mrb[100].mxu1  ;;  %v4083_v63 = vpop.f32.mrb[96].mxu0 }
0x136a   :  { %5679 = vtanh.f32 %v4002_v8  ;;  %v4043_v15 = vadd.f32 %v4042_v3, %v7344_v27  ;;  %v4044_v26 = vpop.f32.mrb[101].mxu1  ;;  %v5108_v2 = vpop.f32.mrb[97].mxu0  ;;  %v4006_v27 = vmul.f32 %v5678_v12, %v9489_v38  ;;  %v4084_v7 = vadd.f32 %v4083_v63, %v7356_v14  ;;  %v11273_v14 = vld [vmem:[#allocation27_spill] sm:$0xff]  ;;  %v11289_v3 = vld [vmem:[#allocation104_spill] sm:$0xff]  ;;  %v11290_v63 = vld [vmem:[#allocation105_spill] sm:$0xff] }
0x136b   :  { %v4045_v52 = vadd.f32 %v4044_v26, %v7347_v29  ;;  %v4046_v35 = vpop.f32.mrb[102].mxu1  ;;  %v4086_v0 = vpop.f32.mrb[98].mxu0  ;;  %v11288_v8 = vld [vmem:[#allocation103_spill] sm:$0xff]  ;;  %v11293_v2 = vld [vmem:[#allocation108_spill] sm:$0xff] }
0x136c   :  { %v4089_v36 = vadd.f32 %v4043_v15, %v11270_v50  ;;  %v4047_v6 = vpop.f32.mrb[103].mxu1  ;;  %v5109_v31 = vpop.f32.mrb[99].mxu0  ;;  %v11291_v15 = vld [vmem:[#allocation106_spill] sm:$0xff]  ;;  %v11292_v26 = vld [vmem:[#allocation107_spill] sm:$0xff]  ;;  %v11297_v50 = vld [vmem:[#allocation112_spill] sm:$0xff] }
0x136d   :  { %v4096_v40 = vadd.f32 %v4045_v52, %v11271_v37  ;;  %v11294_v52 = vld [vmem:[#allocation109_spill] sm:$0xff]  ;;  %v11295_v35 = vld [vmem:[#allocation110_spill] sm:$0xff]  ;;  %v11296_v0 = vld [vmem:[#allocation111_spill] sm:$0xff] }
0x136e   :  { %v4755_v60 = vmul.f32 -1.442695, %v4089_v36  ;;  %v11298_v36 = vld [vmem:[#allocation113_spill] sm:$0xff]  ;;  %v11299_v6 = vld [vmem:[#allocation114_spill] sm:$0xff]  ;;  %v11300_v31 = vld [vmem:[#allocation115_spill] sm:$0xff] }
0x136f   :  { %v4756_v44 = vmul.f32 -1.442695, %v4096_v40  ;;  %v11301_v37 = vld [vmem:[#allocation116_spill] sm:$0xff]  ;;  %v11302_v40 = vld [vmem:[#allocation117_spill] sm:$0xff]  ;;  %v11304_v12 = vld [vmem:[#allocation119_spill] sm:$0xff] }
0x1370   :  { %5681 = vpow2.f32 %v4755_v60  ;;  %v11303_v60 = vld [vmem:[#allocation118_spill] sm:$0xff] }
0x1371   :  { %5683 = vpow2.f32 %v4756_v44  ;;  %v11305_v44 = vld [vmem:[#allocation120_spill] sm:$0xff] }
0x1374   :  { %v5680_v47 = vpop.eup %5679 }
0x1375   :  { %v4005_v45 = vmul.f32 %v5680_v47, %v4004_v56  ;;  %v11306_v56 = vld [vmem:[#allocation121_spill] sm:$0xff]  ;;  %v11307_v47 = vld [vmem:[#allocation122_spill] sm:$0xff] }
0x1377   :  { %v9801_v21 = vadd.f32 %v4006_v27, %v4005_v45  ;;  %v11308_v45 = vld [vmem:[#allocation123_spill] sm:$0xff]  ;;  %v11309_v27 = vld [vmem:[#allocation124_spill] sm:$0xff] }
0x1379   :  { %v4213_v13 = vpack.c.bf16 %v9801_v21, %v9801_v21 }
0x137a   :  { %v5682_v29 = vpop.eup %5681 }
0x137b   :  { %v4093_v46 = vadd.f32 1.0, %v5682_v29  ;;  %v5684_v62 = vpop.eup %5683  ;;  %v11310_v29 = vld [vmem:[#allocation125_spill] sm:$0xff] }
0x137c   :  { %v4100_v34 = vadd.f32 1.0, %v5684_v62  ;;  %v11312_v62 = vld [vmem:[#allocation127_spill] sm:$0xff] }
0x137d   :  { %5685 = vrcp.f32 %v4093_v46  ;;  %v11311_v46 = vld [vmem:[#allocation126_spill] sm:$0xff] }
0x137e   :  { %5687 = vrcp.f32 %v4100_v34  ;;  %v11313_v34 = vld [vmem:[#allocation128_spill] sm:$0xff] }
0x1387   :  { %v5686_v24 = vpop.eup %5685 }
0x1388   :  { %v4103_v11 = vmul.f32 %v5686_v24, %v4084_v7  ;;  %v5688_v5 = vpop.eup %5687  ;;  %v11314_v7 = vld [vmem:[#allocation129_spill] sm:$0xff]  ;;  %v11315_v24 = vld [vmem:[#allocation130_spill] sm:$0xff] }
0x1389   :  { %v4106_v33 = vsub.f32 1.0, %v5688_v5  ;;  %v4108_v10 = vmul.f32 %v5688_v5, %v9494_v18  ;;  %v11275_v18 = vld [vmem:[#allocation31_spill] sm:$0xff]  ;;  %v11319_v5 = vld [vmem:[#allocation134_spill] sm:$0xff] }
0x138a   :  { %v4104_v23 = vadd.f32 %v4103_v11, %v11272_v57  ;;  %v11316_v11 = vld [vmem:[#allocation131_spill] sm:$0xff]  ;;  %v11317_v57 = vld [vmem:[#allocation132_spill] sm:$0xff] }
0x138c   :  { %5689 = vtanh.f32 %v4104_v23  ;;  %v11318_v23 = vld [vmem:[#allocation133_spill] sm:$0xff] }
0x1396   :  { %v5690_v16 = vpop.eup %5689 }
0x1397   :  { %v4107_v59 = vmul.f32 %v5690_v16, %v4106_v33  ;;  %v11320_v33 = vld [vmem:[#allocation135_spill] sm:$0xff]  ;;  %v11321_v16 = vld [vmem:[#allocation136_spill] sm:$0xff] }
0x1399   :  { %v4109_v25 = vadd.f32 %v4108_v10, %v4107_v59  ;;  %v11322_v59 = vld [vmem:[#allocation137_spill] sm:$0xff]  ;;  %v11323_v10 = vld [vmem:[#allocation138_spill] sm:$0xff] }
0x139b   :  { %v4110_v41 = vpack.c.bf16 %v4109_v25, %v4109_v25  ;;  %v11324_v25 = vld [vmem:[#allocation139_spill] sm:$0xff] }
0x139d   :  { %4144 = vmatmul.mubr.bf16.vlgmr.msra.gmra.mrb[104].mxu1 %v4110_v41  ;;  %4185 = vmatmul.mubr.bf16.vlgmr.msra.gmra.mrb[100].mxu0 %v4110_v41  ;;  %v11325_v41 = vld [vmem:[#allocation140_spill] sm:$0xff] }
0x139e   :  { %4246 = vmatprep.mubr.bf16.mxu1 %v4213_v13  ;;  %4287 = vmatprep.mubr.bf16.mxu0 %v4213_v13  ;;  %v11326_v13 = vld [vmem:[#allocation141_spill] sm:$0xff] }
0x139f   :  { %4215 = vmatpush1.bf16.msra.mxu1 %v9504_v4  ;;  %4256 = vmatpush1.bf16.msra.mxu0 %v9507_v58  ;;  %v11281_v4 = vld [vmem:[#allocation34_spill] sm:$0xff]  ;;  %v11282_v58 = vld [vmem:[#allocation35_spill] sm:$0xff] }
0x13a0   :  { %4216 = vmatprep.subr.bf16.mxu1 %v9510_v43  ;;  %4257 = vmatprep.subr.bf16.mxu0 %v11273_v14  ;;  %v11283_v43 = vld [vmem:[#allocation30_spill] sm:$0xff] }
0x13a1   :  { %v11327_v14 = vld [vmem:[#allocation142_spill] sm:$0xff] }
0x13a3   :  { %4217 = vmatpush1.bf16.msra.mxu1 %v11274_v42  ;;  %4258 = vmatpush1.bf16.msra.mxu0 %v11275_v18  ;;  %v11328_v42 = vld [vmem:[#allocation143_spill] sm:$0xff]  ;;  %v11329_v18 = vld [vmem:[#allocation144_spill] sm:$0xff] }
0x13a4   :  { %4218 = vmatprep.subr.bf16.mxu1 %v11276_v32  ;;  %4259 = vmatprep.subr.bf16.mxu0 %v11277_v48  ;;  %v11330_v32 = vld [vmem:[#allocation145_spill] sm:$0xff]  ;;  %v11331_v48 = vld [vmem:[#allocation146_spill] sm:$0xff] }
0x13a7   :  { %4219 = vmatpush1.bf16.msra.mxu1 %v11278_v28  ;;  %4260 = vmatpush1.bf16.msra.mxu0 %v11279_v20  ;;  %v5439_v28 = vld [vmem:[#allocation17] sm:$0xff]  }
0x13a8   :  { %4220 = vmatprep.subr.bf16.mxu1 %v11280_v49  ;;  %4261 = vmatprep.subr.bf16.mxu0 %v11281_v4  ;;  %v11332_v4 = vld [vmem:[#allocation156_spill] sm:$0xff] }
0x13ab   :  { %4221 = vmatpush1.bf16.msra.mxu1 %v11282_v58  ;;  %4262 = vmatpush1.bf16.msra.mxu0 %v11283_v43 }
0x13ac   :  { %4222 = vmatprep.subr.bf16.mxu1 %v11284_v53  ;;  %4263 = vmatprep.subr.bf16.mxu0 %v11285_v54 }
0x13af   :  { %4223 = vmatpush1.bf16.msra.mxu1 %v11286_v19  ;;  %4264 = vmatpush1.bf16.msra.mxu0 %v11287_v39 }
0x13b0   :  { %4224 = vmatprep.subr.bf16.mxu1 %v11288_v8  ;;  %4265 = vmatprep.subr.bf16.mxu0 %v11289_v3 }
0x13b3   :  { %4225 = vmatpush1.bf16.msra.mxu1 %v11290_v63  ;;  %4266 = vmatpush1.bf16.msra.mxu0 %v11291_v15 }
0x13b4   :  { %4226 = vmatprep.subr.bf16.mxu1 %v11292_v26  ;;  %4267 = vmatprep.subr.bf16.mxu0 %v11293_v2  ;;  %v11333_v2 = vld [vmem:[#allocation98_spill] sm:$0xff] }
0x13b7   :  { %4227 = vmatpush1.bf16.msra.mxu1 %v11294_v52  ;;  %4268 = vmatpush1.bf16.msra.mxu0 %v11295_v35  ;;  %v4762_v52 = vmul.f32 -1.442695, %v11333_v2 }
0x13b8   :  { %4228 = vmatprep.subr.bf16.mxu1 %v11296_v0  ;;  %4269 = vmatprep.subr.bf16.mxu0 %v11297_v50  ;;  %v11334_v0 = vld [vmem:[#allocation51_spill] sm:$0xff] }
0x13b9   :  { %v4761_v50 = vmul.f32 -1.442695, %v11334_v0 }
0x13bb   :  { %4229 = vmatpush1.bf16.msra.mxu1 %v11298_v36  ;;  %4270 = vmatpush1.bf16.msra.mxu0 %v11299_v6 }
0x13bc   :  { %4230 = vmatprep.subr.bf16.mxu1 %v11300_v31  ;;  %4271 = vmatprep.subr.bf16.mxu0 %v11301_v37 }
0x13bf   :  { %4231 = vmatpush1.bf16.msra.mxu1 %v11302_v40  ;;  %4272 = vmatpush1.bf16.msra.mxu0 %v11303_v60 }
0x13c0   :  { %4232 = vmatprep.subr.bf16.mxu1 %v11304_v12  ;;  %4273 = vmatprep.subr.bf16.mxu0 %v11305_v44 }
0x13c3   :  { %4233 = vmatpush1.bf16.msra.mxu1 %v11306_v56  ;;  %4274 = vmatpush1.bf16.msra.mxu0 %v11307_v47 }
0x13c4   :  { %4234 = vmatprep.subr.bf16.mxu1 %v11308_v45  ;;  %4275 = vmatprep.subr.bf16.mxu0 %v11309_v27 }
0x13c7   :  { %4235 = vmatpush1.bf16.msra.mxu1 %v11310_v29  ;;  %4276 = vmatpush1.bf16.msra.mxu0 %v11311_v46 }
0x13c8   :  { %4236 = vmatprep.subr.bf16.mxu1 %v11312_v62  ;;  %4277 = vmatprep.subr.bf16.mxu0 %v11313_v34  ;;  %v11335_v34 = vld [vmem:[#allocation97_spill] sm:$0xff] }
0x13cb   :  { %4237 = vmatpush1.bf16.msra.mxu1 %v11314_v7  ;;  %4278 = vmatpush1.bf16.msra.mxu0 %v11315_v24  ;;  %v4764_v7 = vmul.f32 -1.442695, %v11335_v34  ;;  %v4767_v34 = vmul.f32 -1.442695, %v9801_v21 }
0x13cc   :  { %4238 = vmatprep.subr.bf16.mxu1 %v11316_v11  ;;  %4279 = vmatprep.subr.bf16.mxu0 %v11317_v57  ;;  %v11336_v57 = vld [vmem:[#allocation33_spill] sm:$0xff] }
0x13cf   :  { %4239 = vmatpush1.bf16.msra.mxu1 %v11318_v23  ;;  %4280 = vmatpush1.bf16.msra.mxu0 %v11319_v5  ;;  %v4763_v23 = vmul.f32 -1.442695, %v11336_v57 }
0x13d0   :  { %4240 = vmatprep.subr.bf16.mxu1 %v11320_v33  ;;  %4281 = vmatprep.subr.bf16.mxu0 %v11321_v16  ;;  %v5440_v33 = vld [vmem:[#allocation17 + $0x8] sm:$0xff]   ;;  %v11337_v16 = vld [vmem:[#allocation155_spill] sm:$0xff] }
0x13d3   :  { %4241 = vmatpush1.bf16.msra.mxu1 %v11322_v59  ;;  %4282 = vmatpush1.bf16.msra.mxu0 %v11323_v10  ;;  %v4765_v59 = vmul.f32 -1.442695, %v11337_v16 }
0x13d4   :  { %4242 = vmatprep.subr.bf16.mxu1 %v11324_v25  ;;  %4283 = vmatprep.subr.bf16.mxu0 %v11325_v41  ;;  %v5443_v41 = vld [vmem:[#allocation17 + $0x20] sm:$0xff]  }
0x13d7   :  { %4243 = vmatpush1.bf16.msra.mxu1 %v11326_v13  ;;  %4284 = vmatpush1.bf16.msra.mxu0 %v11327_v14 }
0x13d8   :  { %4244 = vmatprep.subr.bf16.mxu1 %v11328_v42  ;;  %4285 = vmatprep.subr.bf16.mxu0 %v11329_v18 }
0x13db   :  { %4245 = vmatpush1.bf16.msra.mxu1 %v11330_v32  ;;  %4286 = vmatpush1.bf16.msra.mxu0 %v11331_v48  ;;  %v5444_v32 = vld [vmem:[#allocation17 + $0x28] sm:$0xff]  }
0x13dc   :  { %5110 = vmatprep.subr.bf16.mxu1 %v5439_v28 }
0x1470   :  { %v4145_v20 = vpop.f32.mrb[104].mxu1  ;;  %v4186_v49 = vpop.f32.mrb[100].mxu0 }
0x1471   :  { %v4146_v58 = vadd.f32 %v4145_v20, %v11332_v4  ;;  %v4147_v43 = vpop.f32.mrb[105].mxu1  ;;  %v4188_v53 = vpop.f32.mrb[101].mxu0  ;;  %v5446_v4 = vld [vmem:[#allocation17 + $0x38] sm:$0xff]  }
0x1472   :  { %v4149_v54 = vpop.f32.mrb[106].mxu1  ;;  %v4190_v19 = vpop.f32.mrb[102].mxu0  ;;  %v4148_v63 = vadd.f32 %v4147_v43, %v10650_v30  ;;  %v4189_v31 = vadd.f32 %v4188_v53, %v7573_v1  ;;  %v4187_v30 = vadd.f32 %v4186_v49, %v7576_v9  ;;  %v4766_v9 = vmul.f32 -1.442695, %v9489_v38  ;;  %v5442_v38 = vld [vmem:[#allocation17 + $0x18] sm:$0xff]   ;;  %v5445_v49 = vld [vmem:[#allocation17 + $0x30] sm:$0xff]  }
0x1473   :  { %v4757_v39 = vmul.f32 -1.442695, %v4146_v58  ;;  %v4150_v8 = vpop.f32.mrb[107].mxu1  ;;  %v4191_v3 = vpop.f32.mrb[103].mxu0 }
0x1474   :  { %v4758_v15 = vmul.f32 -1.442695, %v4148_v63 }
0x1475   :  { %5691 = vpow2.f32 %v4757_v39 }
0x1476   :  { %5693 = vpow2.f32 %v4758_v15 }
0x147f   :  { %v5692_v26 = vpop.eup %5691 }
0x1480   :  { %v4196_v35 = vadd.f32 1.0, %v5692_v26  ;;  %v5694_v36 = vpop.eup %5693 }
0x1481   :  { %v4202_v6 = vadd.f32 1.0, %v5694_v36 }
0x1482   :  { %5695 = vrcp.f32 %v4196_v35 }
0x1483   :  { %5697 = vpow2.f32 %v4762_v52 }
0x1484   :  { %5699 = vpow2.f32 %v4761_v50 }
0x1485   :  { %5701 = vrcp.f32 %v4202_v6 }
0x148c   :  { %v5696_v37 = vpop.eup %5695 }
0x148d   :  { %v5698_v40 = vpop.eup %5697  ;;  %v4205_v60 = vmul.f32 %v5696_v37, %v4189_v31 }
0x148e   :  { %v5700_v12 = vpop.eup %5699  ;;  %v4340_v56 = vadd.f32 1.0, %v5698_v40 }
0x148f   :  { %v4206_v44 = vadd.f32 %v4205_v60, %v4187_v30  ;;  %v4339_v47 = vadd.f32 1.0, %v5700_v12  ;;  %v5702_v45 = vpop.eup %5701 }
0x1490   :  { %v4208_v27 = vsub.f32 1.0, %v5702_v45  ;;  %v4210_v62 = vmul.f32 %v5702_v45, %v9697_v55  ;;  %v5441_v55 = vld [vmem:[#allocation17 + $0x10] sm:$0xff]  }
0x1491   :  { %5703 = vtanh.f32 %v4206_v44 }
0x1492   :  { %5705 = vrcp.f32 %v4340_v56  ;;  %v4769_v56 = vld [vmem:[%s9922_s17] ss:$0 sm:$0xff]  ;;  %s6488_s17 = smov [#allocation19]  }
0x1493   :  { %5707 = vrcp.f32 %v4339_v47  ;;  %s4516_s23 = sshll.u32 %s6488_s17, 4  ;;  %s4517_s23 = int_to_ptr.vmem [resolvable:$true] %s4516_s23 }
0x1494   :  { %5709 = vpow2.f32 %v4764_v7  ;;  %s6430_s3 = scalar_lea.vmem %s4517_s23, 1024  ;;  %p6435_p11 = scmp.lt.s32.totalorder %s4517_s23, %s4517_s23 }
0x1495   :  { %5711 = vpow2.f32 %v4766_v9  ;;  %p6431_p10 = scmp.ne.s32.totalorder %s4517_s23, %s6430_s3  ;;  %p6436_p12 = scmp.lt.s32.totalorder %s6430_s3, %s6430_s3 }
0x1496   :  { %5713 = vpow2.f32 %v4763_v23 }
0x1497   :  { %5715 = vpow2.f32 %v4765_v59  ;;  %p6437_p13 = por %p6436_p12, %p6435_p11 }
0x1499   :  { %p6438_p0 = pnand %p6437_p13, %p6431_p10 }
0x149b   :  { %v5704_v29 = vpop.eup %5703 }
0x149c   :  { %v4209_v46 = vmul.f32 %v5704_v29, %v4208_v27  ;;  %v5706_v1 = vpop.eup %5705 }
0x149d   :  { %v5708_v11 = vpop.eup %5707 }
0x149e   :  { %v4211_v24 = vadd.f32 %v4210_v62, %v4209_v46  ;;  %v4363_v10 = vpack.c.bf16 %v5706_v1, %v5708_v11  ;;  %v5710_v25 = vpop.eup %5709 }
0x149f   :  { %v5712_v13 = vpop.eup %5711  ;;  %v4342_v18 = vadd.f32 1.0, %v5710_v25 }
0x14a0   :  { %v4212_v5 = vpack.c.bf16 %v4211_v24, %v4211_v24  ;;  %v5714_v14 = vpop.eup %5713  ;;  %v4344_v48 = vadd.f32 1.0, %v5712_v13 }
0x14a1   :  { %v5716_v42 = vpop.eup %5715  ;;  %5717 = vrcp.f32 %v4342_v18 }
0x14a2   :  { %4247 = vmatmul.mubr.bf16.vlgmr.msra.gmra.mrb[108].mxu1 %v4212_v5  ;;  %4288 = vmatmul.mubr.bf16.vlgmr.msra.gmra.mrb[104].mxu0 %v4212_v5  ;;  %v4343_v20 = vadd.f32 1.0, %v5716_v42  ;;  %5719 = vrcp.f32 %v4344_v48 }
0x14a3   :  { %5111 = vmatpush3.bf16.msra.mxu1 %v5439_v28  ;;  %5126 = vmatprep.mubr.bf16.mxu1 %v4363_v10  ;;  %v4341_v28 = vadd.f32 1.0, %v5714_v14 }
0x14a4   :  { %5112 = vmatprep.subr.bf16.mxu1 %v5440_v33 }
0x14a5   :  { %5721 = vrcp.f32 %v4341_v28 }
0x14a6   :  { %5723 = vrcp.f32 %v4343_v20 }
0x14a7   :  { %5113 = vmatpush3.bf16.msra.mxu1 %v5440_v33 }
0x14a8   :  { %5114 = vmatprep.subr.bf16.mxu1 %v5441_v55 }
0x14ab   :  { %5115 = vmatpush3.bf16.msra.mxu1 %v5441_v55  ;;  %v5718_v58 = vpop.eup %5717 }
0x14ac   :  { %5116 = vmatprep.subr.bf16.mxu1 %v5442_v38  ;;  %v5720_v43 = vpop.eup %5719 }
0x14af   :  { %5117 = vmatpush3.bf16.msra.mxu1 %v5442_v38  ;;  %v5722_v53 = vpop.eup %5721 }
0x14b0   :  { %5118 = vmatprep.subr.bf16.mxu1 %v5443_v41  ;;  %v5724_v54 = vpop.eup %5723  ;;  %v4364_v19 = vpack.c.bf16 %v5718_v58, %v5722_v53 }
0x14b1   :  { %v4365_v39 = vpack.c.bf16 %v5720_v43, %v5724_v54 }
0x14b3   :  { %5119 = vmatpush3.bf16.msra.mxu1 %v5443_v41 }
0x14b4   :  { %5120 = vmatprep.subr.bf16.mxu1 %v5444_v32 }
0x14b7   :  { %5121 = vmatpush3.bf16.msra.mxu1 %v5444_v32 }
0x14b8   :  { %5122 = vmatprep.subr.bf16.mxu1 %v5445_v49 }
0x14bb   :  { %5123 = vmatpush3.bf16.msra.mxu1 %v5445_v49 }
0x14bc   :  { %5124 = vmatprep.subr.bf16.mxu1 %v5446_v4 }
0x14bf   :  { %5125 = vmatpush3.bf16.msra.mxu1 %v5446_v4 }
0x14c2   :  { %5127 = vmatmul.mubr.bf16.vlgmr.msra.gmra.mrb[112].mxu1 %v4364_v19 }
0x14c3   :  { %5130 = vmatprep.mubr.bf16.mxu1 %v4365_v39 }
0x1575   :  { %v4248_v8 = vpop.f32.mrb[108].mxu1  ;;  %v4289_v3 = vpop.f32.mrb[104].mxu0 }
0x1576   :  { %v4249_v63 = vadd.f32 %v4248_v8, %v11267_v61  ;;  %v4250_v15 = vpop.f32.mrb[109].mxu1  ;;  %v4291_v26 = vpop.f32.mrb[105].mxu0  ;;  %v4290_v12 = vadd.f32 %v4289_v3, %v7722_v22 }
0x1577   :  { %v4252_v2 = vpop.f32.mrb[110].mxu1  ;;  %v4293_v52 = vpop.f32.mrb[106].mxu0  ;;  %v4251_v36 = vadd.f32 %v4250_v15, %v11268_v17  ;;  %v4292_v60 = vadd.f32 %v4291_v26, %v11269_v51 }
0x1578   :  { %v4759_v35 = vmul.f32 -1.442695, %v4249_v63  ;;  %v4253_v0 = vpop.f32.mrb[111].mxu1  ;;  %v4294_v50 = vpop.f32.mrb[107].mxu0 }
0x1579   :  { %v4760_v6 = vmul.f32 -1.442695, %v4251_v36 }
0x157a   :  { %5725 = vpow2.f32 %v4759_v35 }
0x157b   :  { %5727 = vpow2.f32 %v4760_v6 }
0x1584   :  { %v5726_v31 = vpop.eup %5725 }
0x1585   :  { %v4299_v37 = vadd.f32 1.0, %v5726_v31  ;;  %v5728_v40 = vpop.eup %5727 }
0x1586   :  { %v4305_v30 = vadd.f32 1.0, %v5728_v40 }
0x1587   :  { %5729 = vrcp.f32 %v4299_v37 }
0x1588   :  { %5731 = vrcp.f32 %v4305_v30 }
0x1591   :  { %v5730_v61 = vpop.eup %5729 }
0x1592   :  { %v4308_v44 = vmul.f32 %v5730_v61, %v4292_v60  ;;  %v5732_v22 = vpop.eup %5731 }
0x1593   :  { %v4311_v7 = vsub.f32 1.0, %v5732_v22  ;;  %v4313_v9 = vmul.f32 %v5732_v22, %v9801_v21 }
0x1594   :  { %v4309_v17 = vadd.f32 %v4308_v44, %v4290_v12 }
0x1595   :  { %v5128_v47 = vpop.f32.mrb[112].mxu1 }
0x1596   :  { %5733 = vtanh.f32 %v4309_v17  ;;  %v4481_v45 = vadd.f32 %v5128_v47, %v4769_v56  ;;  %v4472_v27 = vpop.f32.mrb[113].mxu1 }
0x1597   :  { %v4473_v29 = vadd.f32 %v4769_v56, %v4472_v27  ;;  %v5129_v46 = vpop.f32.mrb[114].mxu1  ;;  %5735 = vpow2.f32 %v4767_v34 }
0x1598   :  { %4505 = vst [vmem:[#allocation19 + $0x10] sm:$0xff] %v4481_v45  ;;  %v4484_v62 = vadd.f32 %v5129_v46, %v4769_v56  ;;  %v4475_v1 = vpop.f32.mrb[115].mxu1 }
0x1599   :  { %4503 = vst [vmem:[#allocation19] sm:$0xff] %v4473_v29  ;;  %v4476_v51 = vadd.f32 %v4769_v56, %v4475_v1 }
0x159a   :  { %4506 = vst [vmem:[#allocation19 + $0x18] sm:$0xff] %v4484_v62 }
0x159b   :  { %4504 = vst [vmem:[#allocation19 + $0x8] sm:$0xff] %v4476_v51 }
0x15a0   :  { %v5734_v24 = vpop.eup %5733 }
0x15a1   :  { %v4312_v11 = vmul.f32 %v5734_v24, %v4311_v7  ;;  %v5736_v5 = vpop.eup %5735 }
0x15a2   :  { %v4345_v33 = vadd.f32 1.0, %v5736_v5 }
0x15a3   :  { %v4314_v57 = vadd.f32 %v4313_v9, %v4312_v11 }
0x15a5   :  { %v4768_v23 = vmul.f32 -1.442695, %v4314_v57 }
0x15a7   :  { %5737 = vpow2.f32 %v4768_v23 }
0x15a8   :  { %5739 = vrcp.f32 %v4345_v33 }
0x15b1   :  { %v5738_v16 = vpop.eup %5737 }
0x15b2   :  { %v4346_v59 = vadd.f32 1.0, %v5738_v16  ;;  %v5740_v10 = vpop.eup %5739 }
0x15b4   :  { %5741 = vrcp.f32 %v4346_v59 }
0x15be   :  { %v5742_v55 = vpop.eup %5741 }
0x15bf   :  { %v4366_v38 = vpack.c.bf16 %v5742_v55, %v5740_v10 }
0x15c1   :  { %5131 = vmatmul.mubr.bf16.gmra.mrb[116].mxu1 %v4366_v38 }
0x1694   :  { %v5132_v25 = vpop.f32.mrb[116].mxu1 }
0x1695   :  { %v4497_v41 = vadd.f32 %v5132_v25, %v4769_v56  ;;  %v4488_v13 = vpop.f32.mrb[117].mxu1 }
0x1696   :  { %v4489_v21 = vadd.f32 %v4769_v56, %v4488_v13  ;;  %v5133_v14 = vpop.f32.mrb[118].mxu1 }
0x1697   :  { %4509 = vst [vmem:[#allocation19 + $0x30] sm:$0xff] %v4497_v41  ;;  %v4500_v42 = vadd.f32 %v5133_v14, %v4769_v56  ;;  %v4491_v18 = vpop.f32.mrb[119].mxu1 }
0x1698   :  { %4507 = vst [vmem:[#allocation19 + $0x20] sm:$0xff] %v4489_v21  ;;  %v4492_v32 = vadd.f32 %v4769_v56, %v4491_v18 }
0x1699   :  { %4510 = vst [vmem:[#allocation19 + $0x38] sm:$0xff] %v4500_v42 }
0x169a   :  { %4508 = vst [vmem:[#allocation19 + $0x28] sm:$0xff] %v4492_v32 }
0x169b   :  { %6441 = shalt.err (!%p6438_p0)
}
0x169c   :  { %s11338_s26 = sld [smem:[#allocation161_spill]] }
0x16a2   :  { %s6442_s10 = scalar_lea.hbm %s11338_s26, 1024 }
0x16a3   :  { %p6443_p1 = scmp.ne.s32.totalorder %s11338_s26, %s6442_s10  ;;  %p6446_p2 = scmp.lt.u32.totalorder %s6442_s10, %s11338_s26 }
0x16a5   :  { %p6448_p3 = pnand %p6446_p2, %p6443_p1 }
0x16a7   :  { %6451 = shalt.err (!%p6448_p3)
}
0x16a8   :  { %4522 = dma.vmem_to_hbm [thread:$0]  %s4517_s23, 1024, %s11338_s26, [#allocation4], %s10399_s0, %s10399_s0, %s10398_s21  }
0x16a9   :  { %6464 = dma.done.wait [#allocation4], 1024  }
0x16aa   :  { %6465 = vsyncadd [#allocation4], 4294966272 }
0x16ab   :  { %4526 = vsyncpa [#allocation3], 1 }
0x16ac   :  { %4527 = vsyncpa [#allocation6], 1 }
0x16ad   :  { %4528 = vsyncpa [#allocation9], 1 }
0x16ae   :  { %4529 = vsyncpa [#allocation12], 1 }
0x16af   :  { %4530 = vsyncpa [#allocation15], 1 }
0x16b0   :  { %4531 = vsyncpa [#allocation18], 1 }
0x16b1   :  { %4532 = vsyncpa [#allocation4], 1 }

</bundles_post_ra>
